<compile_context>
chip_gen: v6e
topology: v6e:2x2x1
jax: 0.10.0
libtpu: 0.0.40
codegen_flags: <defaults>
</compile_context>

<pallas_src>
import math

import jax
import jax.numpy as jnp
from jax.experimental import pallas as pl
from jax.experimental.pallas import tpu as pltpu


_VMEM_LIMIT = 32 * 1024 * 1024   # bytes; tiles below are sized well under this


def _round_up(x, m):
    return -(-x // m) * m


# ------------------------------ Pallas kernels ------------------------------

def conv_relu_pool_kernel(x_ref, w_ref, b_ref, o_ref):
    """One conv+ReLU+maxpool stage on a tile of tm pooled output pixels.

    x_ref: (1, 4*tm, 9*Cin) bf16 -- im2col rows of the 4 pool offsets, stacked
           [offset0 | offset1 | offset2 | offset3] along the row axis.
    w_ref: (9*Cin, Cout) bf16 (resident across the grid: constant index_map)
    b_ref: (1, Cout) f32
    o_ref: (1, tm, Cout) f32
    """
    tm = o_ref.shape[1]
    # ONE MXU matmul for all four pool offsets (weights pushed to the MXU once).
    y = jnp.dot(x_ref[0], w_ref[...], preferred_element_type=jnp.float32)
    # 2x2 max-pool = max over the four row groups; bias + ReLU hoisted after the
    # max (exactly equivalent: +bias is monotone, ReLU commutes with max).
    m = jnp.maximum(jnp.maximum(y[0 * tm:1 * tm], y[1 * tm:2 * tm]),
                    jnp.maximum(y[2 * tm:3 * tm], y[3 * tm:4 * tm]))
    o_ref[0] = jnp.maximum(m + b_ref[...], 0.0)


def conv3_head_kernel(x_ref, w3_ref, b3_ref, w1_ref, b1_ref, w2_ref, b2_ref, o_ref):
    """Fused conv3+ReLU+pool -> flatten -> fc1 -> fc2 for a tile of tb images.

    x_ref:  (4, 9, tb, 576) bf16  -- [pool offset, pooled pixel, image, 9*64 patch]
    w3_ref: (576, 128) bf16, b3_ref: (1, 128) f32
    w1_ref: (9, 128, 256) bf16    -- fc1 weight, flatten-permuted, per pooled pixel
    b1_ref: (1, 256) f32
    w2_ref: (256, 128) bf16 (fc2 transposed, zero-padded 10 -> 128)
    b2_ref: (1, 128) f32 (zero-padded)
    o_ref:  (tb, 128) f32 (lanes [0:10] are the real logits)
    """
    tb = o_ref.shape[0]
    w3 = w3_ref[...]
    b3 = b3_ref[...]
    h = jnp.zeros((tb, w1_ref.shape[2]), jnp.float32)
    for p in range(9):                       # 3x3 pooled pixels, statically unrolled
        m = jnp.dot(x_ref[0, p], w3, preferred_element_type=jnp.float32)
        for q in range(1, 4):                # running max over the 4 pool offsets
            m = jnp.maximum(m, jnp.dot(x_ref[q, p], w3,
                                       preferred_element_type=jnp.float32))
        a = jnp.maximum(m + b3, 0.0).astype(jnp.bfloat16)   # conv3 act @ pixel p
        h = h + jnp.dot(a, w1_ref[p], preferred_element_type=jnp.float32)
    h = (h + b1_ref[...]).astype(jnp.bfloat16)   # NB: no ReLU between fc1 and fc2
    o_ref[...] = (jnp.dot(h, w2_ref[...], preferred_element_type=jnp.float32)
                  + b2_ref[...])


# --------------------------- JAX glue (data movement) ---------------------------

def _pooled_im2col(xp, Ho, Wo, q0, q1):
    """(B*Ho*Wo, 9*Cin) im2col rows for pool offset (q0, q1); rows are (b, i, j)."""
    B, _, _, Cin = xp.shape
    slabs = [xp[:, q0 + dh:q0 + dh + 2 * Ho:2, q1 + dw:q1 + dw + 2 * Wo:2, :]
             for dh in range(3) for dw in range(3)]
    patches = jnp.stack(slabs, axis=3)                      # (B, Ho, Wo, 9, Cin)
    return patches.reshape(B * Ho * Wo, 9 * Cin)


def conv_relu_pool_stage(x_nhwc, w_col, b_row, *, tm_max=256):
    """Conv2d(3x3, pad=1) + ReLU + MaxPool2d(2,2), tiled over pooled output pixels."""
    B, H, W, Cin = x_nhwc.shape
    K, C = w_col.shape
    Ho, Wo = H // 2, W // 2
    M = B * Ho * Wo

    xp = jnp.pad(x_nhwc, ((0, 0), (1, 1), (1, 1), (0, 0))).astype(jnp.bfloat16)
    cols = [_pooled_im2col(xp, Ho, Wo, q0, q1) for q0 in (0, 1) for q1 in (0, 1)]

    tm = min(tm_max, _round_up(M, 8))
    Mp = _round_up(M, tm)
    nm = Mp // tm
    cols = [jnp.pad(c, ((0, Mp - M), (0, 0))) for c in cols]
    # (nm, 4*tm, K): one grid step = the 4 pool offsets of one tile of tm pixels.
    x_blk = jnp.concatenate([c.reshape(nm, tm, K) for c in cols], axis=1)

    out = pl.pallas_call(
        conv_relu_pool_kernel,
        out_shape=jax.ShapeDtypeStruct((nm, tm, C), jnp.float32),
        grid=(nm,),
        in_specs=[
            pl.BlockSpec((1, 4 * tm, K), lambda i: (i, 0, 0)),
            pl.BlockSpec((K, C), lambda i: (0, 0)),        # weight stays resident
            pl.BlockSpec((1, C), lambda i: (0, 0)),
        ],
        out_specs=pl.BlockSpec((1, tm, C), lambda i: (i, 0, 0)),
        compiler_params=pltpu.CompilerParams(
            dimension_semantics=("parallel",),
            vmem_limit_bytes=_VMEM_LIMIT),
    )(x_blk, w_col, b_row)
    return out.reshape(Mp, C)[:M].reshape(B, Ho, Wo, C)


def _pooled_patches_pixel_major(xp, Ho, Wo, q0, q1):
    """(Ho*Wo, B, 9*Cin) im2col patches for pool offset (q0, q1), pixel-major."""
    B, _, _, Cin = xp.shape
    slabs = [xp[:, q0 + dh:q0 + dh + 2 * Ho:2, q1 + dw:q1 + dw + 2 * Wo:2, :]
             for dh in range(3) for dw in range(3)]
    patches = jnp.stack(slabs, axis=3).reshape(B, Ho * Wo, 9 * Cin)
    return jnp.transpose(patches, (1, 0, 2))


def conv3_and_head(x_nhwc, w3_col, b3_row, fc1_p, fc1_b, fc2_p, fc2_b, *, tb_max=128):
    """Fused conv3 + ReLU + pool + flatten + fc1 + fc2, tiled over batch."""
    B, H, W, Cin = x_nhwc.shape            # (B, 7, 7, 64)
    K = w3_col.shape[0]                    # 576
    Ho, Wo = H // 2, W // 2                # 3, 3

    xp = jnp.pad(x_nhwc, ((0, 0), (1, 1), (1, 1), (0, 0))).astype(jnp.bfloat16)
    cols = jnp.stack([_pooled_patches_pixel_major(xp, Ho, Wo, q0, q1)
                      for q0 in (0, 1) for q1 in (0, 1)], axis=0)   # (4, 9, B, 576)

    tb = min(tb_max, _round_up(B, 8))
    Bp = _round_up(B, tb)
    nb = Bp // tb
    cols = jnp.pad(cols, ((0, 0), (0, 0), (0, Bp - B), (0, 0)))

    out = pl.pallas_call(
        conv3_head_kernel,
        out_shape=jax.ShapeDtypeStruct((Bp, 128), jnp.float32),
        grid=(nb,),
        in_specs=[
            pl.BlockSpec((4, Ho * Wo, tb, K), lambda i: (0, 0, i, 0)),
            pl.BlockSpec((K, 128), lambda i: (0, 0)),
            pl.BlockSpec((1, 128), lambda i: (0, 0)),
            pl.BlockSpec((Ho * Wo, 128, 256), lambda i: (0, 0, 0)),
            pl.BlockSpec((1, 256), lambda i: (0, 0)),
            pl.BlockSpec((256, 128), lambda i: (0, 0)),
            pl.BlockSpec((1, 128), lambda i: (0, 0)),
        ],
        out_specs=pl.BlockSpec((tb, 128), lambda i: (i, 0)),
        compiler_params=pltpu.CompilerParams(
            dimension_semantics=("parallel",),
            vmem_limit_bytes=_VMEM_LIMIT),
    )(cols, w3_col, b3_row, fc1_p, fc1_b, fc2_p, fc2_b)
    return out[:B, :10]


# ---------------- one-time parameter repack (outside the jitted hot path) ----------------

def prepack_params(params):
    def conv_pack(w, b):
        Cout, Cin = w.shape[0], w.shape[1]
        # (dh, dw, ci) feature ordering matches the im2col stacking above.
        w_col = jnp.transpose(w, (2, 3, 1, 0)).reshape(9 * Cin, Cout)
        return w_col.astype(jnp.bfloat16), b.reshape(1, Cout).astype(jnp.float32)

    w1c, b1c = conv_pack(params["w1"], params["b1"])
    w2c, b2c = conv_pack(params["w2"], params["b2"])
    w3c, b3c = conv_pack(params["w3"], params["b3"])

    # fc1: (256, 1152) with columns ordered (c, h, w) [PyTorch CHW flatten]
    #   -> (9, 128, 256) indexed [pooled pixel p = 3h + w, channel c, out].
    fc1_p = jnp.transpose(params["fc1_w"].reshape(256, 128, 9),
                          (2, 1, 0)).astype(jnp.bfloat16)
    fc1_b = params["fc1_b"].reshape(1, 256).astype(jnp.float32)

    # fc2: transposed + zero-padded 10 -> 128 output lanes (lane-dense store).
    fc2_p = jnp.zeros((256, 128), jnp.float32).at[:, :10].set(params["fc2_w"].T)
    fc2_b = jnp.zeros((1, 128), jnp.float32).at[0, :10].set(params["fc2_b"])

    return {"w1c": w1c, "b1c": b1c, "w2c": w2c, "b2c": b2c,
            "w3c": w3c, "b3c": b3c,
            "fc1_p": fc1_p, "fc1_b": fc1_b,
            "fc2_p": fc2_p.astype(jnp.bfloat16), "fc2_b": fc2_b}


@jax.jit
def mnist_classifier_forward(x_nchw, packed):
    x = jnp.transpose(x_nchw, (0, 2, 3, 1))                       # NCHW -> NHWC
    x = conv_relu_pool_stage(x, packed["w1c"], packed["b1c"])     # (B, 14, 14, 32)
    x = conv_relu_pool_stage(x, packed["w2c"], packed["b2c"])     # (B, 7, 7, 64)
    return conv3_and_head(x, packed["w3c"], packed["b3c"],
                          packed["fc1_p"], packed["fc1_b"],
                          packed["fc2_p"], packed["fc2_b"])       # (B, 10)


# -------------------- deterministic parameter init (synthetic) --------------------

def init_params(key):
    ks = jax.random.split(key, 10)

    def u(k, shape, fan_in):
        bound = 1.0 / math.sqrt(fan_in)
        return jax.random.uniform(k, shape, jnp.float32, -bound, bound)

    return {
        "w1": u(ks[0], (32, 1, 3, 3), 1 * 9),    "b1": u(ks[1], (32,), 1 * 9),
        "w2": u(ks[2], (64, 32, 3, 3), 32 * 9),  "b2": u(ks[3], (64,), 32 * 9),
        "w3": u(ks[4], (128, 64, 3, 3), 64 * 9), "b3": u(ks[5], (128,), 64 * 9),
        "fc1_w": u(ks[6], (256, 128 * 3 * 3), 128 * 3 * 3),
        "fc1_b": u(ks[7], (256,), 128 * 3 * 3),
        "fc2_w": u(ks[8], (10, 256), 256),
        "fc2_b": u(ks[9], (10,), 256),
    }


# -------------------- pure-JAX references (sanity checks) --------------------

def _ref_pool(x):
    return jax.lax.reduce_window(x, -jnp.inf, jax.lax.max,
                                 (1, 1, 2, 2), (1, 1, 2, 2), "VALID")


def ref_forward_f32(x_nchw, params):
    """Exact f32 semantics of the PyTorch module."""
    def conv(x, w, b):
        y = jax.lax.conv_general_dilated(
            x, w, window_strides=(1, 1), padding=((1, 1), (1, 1)),
            dimension_numbers=("NCHW", "OIHW", "NCHW"),
            precision=jax.lax.Precision.HIGHEST)
        return y + b.reshape(1, -1, 1, 1)

    x = _ref_pool(jax.nn.relu(conv(x_nchw, params["w1"], params["b1"])))
    x = _ref_pool(jax.nn.relu(conv(x, params["w2"], params["b2"])))
    x = _ref_pool(jax.nn.relu(conv(x, params["w3"], params["b3"])))
    feat = x.reshape(x.shape[0], -1)
    h = jnp.dot(feat, params["fc1_w"].T,
                precision=jax.lax.Precision.HIGHEST) + params["fc1_b"]
    return jnp.dot(h, params["fc2_w"].T,
                   precision=jax.lax.Precision.HIGHEST) + params["fc2_b"]


def ref_forward_bf16(x_nchw, params):
    """Emulates the kernels' numerics: bf16 MXU operands, f32 accumulate/epilogue."""
    bf = jnp.bfloat16

    def conv(x, w, b):
        y = jax.lax.conv_general_dilated(
            x.astype(bf), w.astype(bf), window_strides=(1, 1),
            padding=((1, 1), (1, 1)),
            dimension_numbers=("NCHW", "OIHW", "NCHW"),
            preferred_element_type=jnp.float32)
        return y + b.reshape(1, -1, 1, 1)

    x = _ref_pool(jax.nn.relu(conv(x_nchw, params["w1"], params["b1"])))
    x = _ref_pool(jax.nn.relu(conv(x, params["w2"], params["b2"])))
    x = _ref_pool(jax.nn.relu(conv(x, params["w3"], params["b3"])))
    feat = x.reshape(x.shape[0], -1)
    h = jnp.dot(feat.astype(bf), params["fc1_w"].T.astype(bf),
                preferred_element_type=jnp.float32) + params["fc1_b"]
    return jnp.dot(h.astype(bf), params["fc2_w"].T.astype(bf),
                   preferred_element_type=jnp.float32) + params["fc2_b"]


if __name__ == "__main__":
    key = jax.random.PRNGKey(0)
    kx, kp = jax.random.split(key)
    # MNIST-shaped input: the Linear(128*3*3, 256) layer pins spatial size to 28x28.
    x = jax.random.normal(kx, (2, 1, 28, 28), jnp.float32)
    params = init_params(kp)
    packed = prepack_params(params)

    out = jax.block_until_ready(mnist_classifier_forward(x, packed))
    assert out.shape == (2, 10) and out.dtype == jnp.float32

    # Tight check against a reference that emulates the kernels' bf16-MXU numerics.
    ref_b = ref_forward_bf16(x, params)
    assert jnp.allclose(out, ref_b, rtol=2e-3, atol=2e-3), \
        float(jnp.max(jnp.abs(out - ref_b)))
    # Looser check against the pure-f32 module semantics (bf16 rounding budget).
    ref_f = ref_forward_f32(x, params)
    assert jnp.allclose(out, ref_f, rtol=5e-2, atol=5e-2), \
        float(jnp.max(jnp.abs(out - ref_f)))

    print("KERNEL_OK")
</pallas_src>

<mosaic_0001>
module attributes {stable_mosaic.version = 11 : i64} {
  func.func @conv_relu_pool_kernel(%arg0: i32, %arg1: memref<1x1024x9xbf16, #tpu.memory_space<vmem>>, %arg2: memref<9x32xbf16, #tpu.memory_space<vmem>>, %arg3: memref<1x32xf32, #tpu.memory_space<vmem>>, %arg4: memref<1x256x32xf32, #tpu.memory_space<vmem>>) attributes {dimension_semantics = [#tpu.dimension_semantics<parallel>], iteration_bounds = array<i64: 2>, scalar_prefetch = 0 : i64, scratch_operands = 0 : i64, tpu.core_type = #tpu.core_type<tc>, window_params = [{transform_indices = @transform_0, window_bounds = array<i64: 1, 1024, 9>}, {pipeline_mode = #tpu.pipeline_mode<synchronous>, transform_indices = @transform_1, window_bounds = array<i64: 9, 32>}, {pipeline_mode = #tpu.pipeline_mode<synchronous>, transform_indices = @transform_2, window_bounds = array<i64: 1, 32>}, {transform_indices = @transform_3, window_bounds = array<i64: 1, 256, 32>}]} {
    %c0 = arith.constant 0 : index
    %c0_0 = arith.constant 0 : index
    %c0_1 = arith.constant 0 : index
    %0 = vector.load %arg1[%c0, %c0_0, %c0_1] : memref<1x1024x9xbf16, #tpu.memory_space<vmem>>, vector<1x1024x9xbf16>
    %1 = vector.shape_cast %0 : vector<1x1024x9xbf16> to vector<1024x9xbf16>
    %c0_2 = arith.constant 0 : index
    %c0_3 = arith.constant 0 : index
    %2 = vector.load %arg2[%c0_2, %c0_3] : memref<9x32xbf16, #tpu.memory_space<vmem>>, vector<9x32xbf16>
    %cst = arith.constant dense<0.000000e+00> : vector<1024x32xf32>
    %3 = tpu.matmul %1, %2, %cst {dimension_numbers = #tpu.dot_dimension_numbers<[1], [0], [0], [1], [0, 0, 1, 1], [], []>} : vector<1024x9xbf16>, vector<9x32xbf16>, vector<1024x32xf32> -> vector<1024x32xf32>
    %4 = vector.extract_strided_slice %3 {offsets = [0, 0], sizes = [256, 32], strides = [1, 1]} : vector<1024x32xf32> to vector<256x32xf32>
    %5 = vector.extract_strided_slice %3 {offsets = [256, 0], sizes = [256, 32], strides = [1, 1]} : vector<1024x32xf32> to vector<256x32xf32>
    %6 = arith.maximumf %4, %5 : vector<256x32xf32>
    %7 = vector.extract_strided_slice %3 {offsets = [512, 0], sizes = [256, 32], strides = [1, 1]} : vector<1024x32xf32> to vector<256x32xf32>
    %8 = vector.extract_strided_slice %3 {offsets = [768, 0], sizes = [256, 32], strides = [1, 1]} : vector<1024x32xf32> to vector<256x32xf32>
    %9 = arith.maximumf %7, %8 : vector<256x32xf32>
    %10 = arith.maximumf %6, %9 : vector<256x32xf32>
    %c0_4 = arith.constant 0 : index
    %c0_5 = arith.constant 0 : index
    %11 = vector.load %arg3[%c0_4, %c0_5] : memref<1x32xf32, #tpu.memory_space<vmem>>, vector<1x32xf32>
    %12 = vector.broadcast %11 : vector<1x32xf32> to vector<256x32xf32>
    %13 = arith.addf %10, %12 : vector<256x32xf32>
    %cst_6 = arith.constant 0.000000e+00 : f32
    %14 = vector.broadcast %cst_6 : f32 to vector<256x32xf32>
    %15 = arith.maximumf %13, %14 : vector<256x32xf32>
    %c0_7 = arith.constant 0 : index
    %c0_8 = arith.constant 0 : index
    %c0_9 = arith.constant 0 : index
    %16 = vector.load %arg4[%c0_7, %c0_8, %c0_9] : memref<1x256x32xf32, #tpu.memory_space<vmem>>, vector<1x256x32xf32>
    %17 = vector.shape_cast %16 : vector<1x256x32xf32> to vector<256x32xf32>
    %18 = vector.shape_cast %15 : vector<256x32xf32> to vector<1x256x32xf32>
    tpu.vector_store %arg4[%c0_7, %c0_8, %c0_9], %18 {strides = array<i32>} : memref<1x256x32xf32, #tpu.memory_space<vmem>>, vector<1x256x32xf32>,
    return
  }
  func.func @transform_0(%arg0: i32) -> (i32, i32, i32) {
    %c0_i32 = arith.constant 0 : i32
    %c0_i32_0 = arith.constant 0 : i32
    %c0_i32_1 = arith.constant 0 : i32
    return %arg0, %c0_i32, %c0_i32_0 : i32, i32, i32
  }
  func.func @transform_1(%arg0: i32) -> (i32, i32) {
    %c0_i32 = arith.constant 0 : i32
    %c0_i32_0 = arith.constant 0 : i32
    %c0_i32_1 = arith.constant 0 : i32
    return %c0_i32, %c0_i32_0 : i32, i32
  }
  func.func @transform_2(%arg0: i32) -> (i32, i32) {
    %c0_i32 = arith.constant 0 : i32
    %c0_i32_0 = arith.constant 0 : i32
    %c0_i32_1 = arith.constant 0 : i32
    return %c0_i32, %c0_i32_0 : i32, i32
  }
  func.func @transform_3(%arg0: i32) -> (i32, i32, i32) {
    %c0_i32 = arith.constant 0 : i32
    %c0_i32_0 = arith.constant 0 : i32
    %c0_i32_1 = arith.constant 0 : i32
    return %arg0, %c0_i32, %c0_i32_0 : i32, i32, i32
  }
}

module attributes {stable_mosaic.version = 11 : i64} {
  func.func @conv_relu_pool_kernel(%arg0: i32, %arg1: memref<1x416x288xbf16, #tpu.memory_space<vmem>>, %arg2: memref<288x64xbf16, #tpu.memory_space<vmem>>, %arg3: memref<1x64xf32, #tpu.memory_space<vmem>>, %arg4: memref<1x104x64xf32, #tpu.memory_space<vmem>>) attributes {dimension_semantics = [#tpu.dimension_semantics<parallel>], iteration_bounds = array<i64: 1>, scalar_prefetch = 0 : i64, scratch_operands = 0 : i64, tpu.core_type = #tpu.core_type<tc>, window_params = [{transform_indices = @transform_0, window_bounds = array<i64: 1, 416, 288>}, {pipeline_mode = #tpu.pipeline_mode<synchronous>, transform_indices = @transform_1, window_bounds = array<i64: 288, 64>}, {pipeline_mode = #tpu.pipeline_mode<synchronous>, transform_indices = @transform_2, window_bounds = array<i64: 1, 64>}, {transform_indices = @transform_3, window_bounds = array<i64: 1, 104, 64>}]} {
    %c0 = arith.constant 0 : index
    %c0_0 = arith.constant 0 : index
    %c0_1 = arith.constant 0 : index
    %0 = vector.load %arg1[%c0, %c0_0, %c0_1] : memref<1x416x288xbf16, #tpu.memory_space<vmem>>, vector<1x416x288xbf16>
    %1 = vector.shape_cast %0 : vector<1x416x288xbf16> to vector<416x288xbf16>
    %c0_2 = arith.constant 0 : index
    %c0_3 = arith.constant 0 : index
    %2 = vector.load %arg2[%c0_2, %c0_3] : memref<288x64xbf16, #tpu.memory_space<vmem>>, vector<288x64xbf16>
    %cst = arith.constant dense<0.000000e+00> : vector<416x64xf32>
    %3 = tpu.matmul %1, %2, %cst {dimension_numbers = #tpu.dot_dimension_numbers<[1], [0], [0], [1], [0, 0, 1, 1], [], []>} : vector<416x288xbf16>, vector<288x64xbf16>, vector<416x64xf32> -> vector<416x64xf32>
    %4 = vector.extract_strided_slice %3 {offsets = [0, 0], sizes = [104, 64], strides = [1, 1]} : vector<416x64xf32> to vector<104x64xf32>
    %5 = vector.extract_strided_slice %3 {offsets = [104, 0], sizes = [104, 64], strides = [1, 1]} : vector<416x64xf32> to vector<104x64xf32>
    %6 = arith.maximumf %4, %5 : vector<104x64xf32>
    %7 = vector.extract_strided_slice %3 {offsets = [208, 0], sizes = [104, 64], strides = [1, 1]} : vector<416x64xf32> to vector<104x64xf32>
    %8 = vector.extract_strided_slice %3 {offsets = [312, 0], sizes = [104, 64], strides = [1, 1]} : vector<416x64xf32> to vector<104x64xf32>
    %9 = arith.maximumf %7, %8 : vector<104x64xf32>
    %10 = arith.maximumf %6, %9 : vector<104x64xf32>
    %c0_4 = arith.constant 0 : index
    %c0_5 = arith.constant 0 : index
    %11 = vector.load %arg3[%c0_4, %c0_5] : memref<1x64xf32, #tpu.memory_space<vmem>>, vector<1x64xf32>
    %12 = vector.broadcast %11 : vector<1x64xf32> to vector<104x64xf32>
    %13 = arith.addf %10, %12 : vector<104x64xf32>
    %cst_6 = arith.constant 0.000000e+00 : f32
    %14 = vector.broadcast %cst_6 : f32 to vector<104x64xf32>
    %15 = arith.maximumf %13, %14 : vector<104x64xf32>
    %c0_7 = arith.constant 0 : index
    %c0_8 = arith.constant 0 : index
    %c0_9 = arith.constant 0 : index
    %16 = vector.load %arg4[%c0_7, %c0_8, %c0_9] : memref<1x104x64xf32, #tpu.memory_space<vmem>>, vector<1x104x64xf32>
    %17 = vector.shape_cast %16 : vector<1x104x64xf32> to vector<104x64xf32>
    %18 = vector.shape_cast %15 : vector<104x64xf32> to vector<1x104x64xf32>
    tpu.vector_store %arg4[%c0_7, %c0_8, %c0_9], %18 {strides = array<i32>} : memref<1x104x64xf32, #tpu.memory_space<vmem>>, vector<1x104x64xf32>,
    return
  }
  func.func @transform_0(%arg0: i32) -> (i32, i32, i32) {
    %c0_i32 = arith.constant 0 : i32
    %c0_i32_0 = arith.constant 0 : i32
    %c0_i32_1 = arith.constant 0 : i32
    return %arg0, %c0_i32, %c0_i32_0 : i32, i32, i32
  }
  func.func @transform_1(%arg0: i32) -> (i32, i32) {
    %c0_i32 = arith.constant 0 : i32
    %c0_i32_0 = arith.constant 0 : i32
    %c0_i32_1 = arith.constant 0 : i32
    return %c0_i32, %c0_i32_0 : i32, i32
  }
  func.func @transform_2(%arg0: i32) -> (i32, i32) {
    %c0_i32 = arith.constant 0 : i32
    %c0_i32_0 = arith.constant 0 : i32
    %c0_i32_1 = arith.constant 0 : i32
    return %c0_i32, %c0_i32_0 : i32, i32
  }
  func.func @transform_3(%arg0: i32) -> (i32, i32, i32) {
    %c0_i32 = arith.constant 0 : i32
    %c0_i32_0 = arith.constant 0 : i32
    %c0_i32_1 = arith.constant 0 : i32
    return %arg0, %c0_i32, %c0_i32_0 : i32, i32, i32
  }
}

module attributes {stable_mosaic.version = 11 : i64} {
  func.func @conv3_head_kernel(%arg0: i32, %arg1: memref<4x9x8x576xbf16, #tpu.memory_space<vmem>>, %arg2: memref<576x128xbf16, #tpu.memory_space<vmem>>, %arg3: memref<1x128xf32, #tpu.memory_space<vmem>>, %arg4: memref<9x128x256xbf16, #tpu.memory_space<vmem>>, %arg5: memref<1x256xf32, #tpu.memory_space<vmem>>, %arg6: memref<256x128xbf16, #tpu.memory_space<vmem>>, %arg7: memref<1x128xf32, #tpu.memory_space<vmem>>, %arg8: memref<8x128xf32, #tpu.memory_space<vmem>>) attributes {dimension_semantics = [#tpu.dimension_semantics<parallel>], iteration_bounds = array<i64: 1>, scalar_prefetch = 0 : i64, scratch_operands = 0 : i64, tpu.core_type = #tpu.core_type<tc>, window_params = [{transform_indices = @transform_0, window_bounds = array<i64: 4, 9, 8, 576>}, {pipeline_mode = #tpu.pipeline_mode<synchronous>, transform_indices = @transform_1, window_bounds = array<i64: 576, 128>}, {pipeline_mode = #tpu.pipeline_mode<synchronous>, transform_indices = @transform_2, window_bounds = array<i64: 1, 128>}, {pipeline_mode = #tpu.pipeline_mode<synchronous>, transform_indices = @transform_3, window_bounds = array<i64: 9, 128, 256>}, {pipeline_mode = #tpu.pipeline_mode<synchronous>, transform_indices = @transform_4, window_bounds = array<i64: 1, 256>}, {pipeline_mode = #tpu.pipeline_mode<synchronous>, transform_indices = @transform_5, window_bounds = array<i64: 256, 128>}, {pipeline_mode = #tpu.pipeline_mode<synchronous>, transform_indices = @transform_6, window_bounds = array<i64: 1, 128>}, {transform_indices = @transform_7, window_bounds = array<i64: 8, 128>}]} {
    %c0 = arith.constant 0 : index
    %c0_0 = arith.constant 0 : index
    %0 = vector.load %arg2[%c0, %c0_0] : memref<576x128xbf16, #tpu.memory_space<vmem>>, vector<576x128xbf16>
    %c0_1 = arith.constant 0 : index
    %c0_2 = arith.constant 0 : index
    %1 = vector.load %arg3[%c0_1, %c0_2] : memref<1x128xf32, #tpu.memory_space<vmem>>, vector<1x128xf32>
    %cst = arith.constant 0.000000e+00 : f32
    %2 = vector.broadcast %cst : f32 to vector<8x256xf32>
    %c0_3 = arith.constant 0 : index
    %c0_4 = arith.constant 0 : index
    %c0_5 = arith.constant 0 : index
    %c0_6 = arith.constant 0 : index
    %3 = vector.load %arg1[%c0_3, %c0_4, %c0_5, %c0_6] : memref<4x9x8x576xbf16, #tpu.memory_space<vmem>>, vector<1x1x8x576xbf16>
    %4 = vector.shape_cast %3 : vector<1x1x8x576xbf16> to vector<8x576xbf16>
    %cst_7 = arith.constant dense<0.000000e+00> : vector<8x128xf32>
    %5 = tpu.matmul %4, %0, %cst_7 {dimension_numbers = #tpu.dot_dimension_numbers<[1], [0], [0], [1], [0, 0, 1, 1], [], []>} : vector<8x576xbf16>, vector<576x128xbf16>, vector<8x128xf32> -> vector<8x128xf32>
    %c1 = arith.constant 1 : index
    %c0_8 = arith.constant 0 : index
    %c0_9 = arith.constant 0 : index
    %c0_10 = arith.constant 0 : index
    %6 = vector.load %arg1[%c1, %c0_8, %c0_9, %c0_10] : memref<4x9x8x576xbf16, #tpu.memory_space<vmem>>, vector<1x1x8x576xbf16>
    %7 = vector.shape_cast %6 : vector<1x1x8x576xbf16> to vector<8x576xbf16>
    %cst_11 = arith.constant dense<0.000000e+00> : vector<8x128xf32>
    %8 = tpu.matmul %7, %0, %cst_11 {dimension_numbers = #tpu.dot_dimension_numbers<[1], [0], [0], [1], [0, 0, 1, 1], [], []>} : vector<8x576xbf16>, vector<576x128xbf16>, vector<8x128xf32> -> vector<8x128xf32>
    %9 = arith.maximumf %5, %8 : vector<8x128xf32>
    %c2 = arith.constant 2 : index
    %c0_12 = arith.constant 0 : index
    %c0_13 = arith.constant 0 : index
    %c0_14 = arith.constant 0 : index
    %10 = vector.load %arg1[%c2, %c0_12, %c0_13, %c0_14] : memref<4x9x8x576xbf16, #tpu.memory_space<vmem>>, vector<1x1x8x576xbf16>
    %11 = vector.shape_cast %10 : vector<1x1x8x576xbf16> to vector<8x576xbf16>
    %cst_15 = arith.constant dense<0.000000e+00> : vector<8x128xf32>
    %12 = tpu.matmul %11, %0, %cst_15 {dimension_numbers = #tpu.dot_dimension_numbers<[1], [0], [0], [1], [0, 0, 1, 1], [], []>} : vector<8x576xbf16>, vector<576x128xbf16>, vector<8x128xf32> -> vector<8x128xf32>
    %13 = arith.maximumf %9, %12 : vector<8x128xf32>
    %c3 = arith.constant 3 : index
    %c0_16 = arith.constant 0 : index
    %c0_17 = arith.constant 0 : index
    %c0_18 = arith.constant 0 : index
    %14 = vector.load %arg1[%c3, %c0_16, %c0_17, %c0_18] : memref<4x9x8x576xbf16, #tpu.memory_space<vmem>>, vector<1x1x8x576xbf16>
    %15 = vector.shape_cast %14 : vector<1x1x8x576xbf16> to vector<8x576xbf16>
    %cst_19 = arith.constant dense<0.000000e+00> : vector<8x128xf32>
    %16 = tpu.matmul %15, %0, %cst_19 {dimension_numbers = #tpu.dot_dimension_numbers<[1], [0], [0], [1], [0, 0, 1, 1], [], []>} : vector<8x576xbf16>, vector<576x128xbf16>, vector<8x128xf32> -> vector<8x128xf32>
    %17 = arith.maximumf %13, %16 : vector<8x128xf32>
    %18 = vector.broadcast %1 : vector<1x128xf32> to vector<8x128xf32>
    %19 = arith.addf %17, %18 : vector<8x128xf32>
    %cst_20 = arith.constant 0.000000e+00 : f32
    %20 = vector.broadcast %cst_20 : f32 to vector<8x128xf32>
    %21 = arith.maximumf %19, %20 : vector<8x128xf32>
    %22 = arith.truncf %21 : vector<8x128xf32> to vector<8x128xbf16>
    %c0_21 = arith.constant 0 : index
    %c0_22 = arith.constant 0 : index
    %c0_23 = arith.constant 0 : index
    %23 = vector.load %arg4[%c0_21, %c0_22, %c0_23] : memref<9x128x256xbf16, #tpu.memory_space<vmem>>, vector<1x128x256xbf16>
    %24 = vector.shape_cast %23 : vector<1x128x256xbf16> to vector<128x256xbf16>
    %cst_24 = arith.constant dense<0.000000e+00> : vector<8x256xf32>
    %25 = tpu.matmul %22, %24, %cst_24 {dimension_numbers = #tpu.dot_dimension_numbers<[1], [0], [0], [1], [0, 0, 1, 1], [], []>} : vector<8x128xbf16>, vector<128x256xbf16>, vector<8x256xf32> -> vector<8x256xf32>
    %26 = arith.addf %2, %25 : vector<8x256xf32>
    %c0_25 = arith.constant 0 : index
    %c1_26 = arith.constant 1 : index
    %c0_27 = arith.constant 0 : index
    %c0_28 = arith.constant 0 : index
    %27 = vector.load %arg1[%c0_25, %c1_26, %c0_27, %c0_28] : memref<4x9x8x576xbf16, #tpu.memory_space<vmem>>, vector<1x1x8x576xbf16>
    %28 = vector.shape_cast %27 : vector<1x1x8x576xbf16> to vector<8x576xbf16>
    %cst_29 = arith.constant dense<0.000000e+00> : vector<8x128xf32>
    %29 = tpu.matmul %28, %0, %cst_29 {dimension_numbers = #tpu.dot_dimension_numbers<[1], [0], [0], [1], [0, 0, 1, 1], [], []>} : vector<8x576xbf16>, vector<576x128xbf16>, vector<8x128xf32> -> vector<8x128xf32>
    %c1_30 = arith.constant 1 : index
    %c1_31 = arith.constant 1 : index
    %c0_32 = arith.constant 0 : index
    %c0_33 = arith.constant 0 : index
    %30 = vector.load %arg1[%c1_30, %c1_31, %c0_32, %c0_33] : memref<4x9x8x576xbf16, #tpu.memory_space<vmem>>, vector<1x1x8x576xbf16>
    %31 = vector.shape_cast %30 : vector<1x1x8x576xbf16> to vector<8x576xbf16>
    %cst_34 = arith.constant dense<0.000000e+00> : vector<8x128xf32>
    %32 = tpu.matmul %31, %0, %cst_34 {dimension_numbers = #tpu.dot_dimension_numbers<[1], [0], [0], [1], [0, 0, 1, 1], [], []>} : vector<8x576xbf16>, vector<576x128xbf16>, vector<8x128xf32> -> vector<8x128xf32>
    %33 = arith.maximumf %29, %32 : vector<8x128xf32>
    %c2_35 = arith.constant 2 : index
    %c1_36 = arith.constant 1 : index
    %c0_37 = arith.constant 0 : index
    %c0_38 = arith.constant 0 : index
    %34 = vector.load %arg1[%c2_35, %c1_36, %c0_37, %c0_38] : memref<4x9x8x576xbf16, #tpu.memory_space<vmem>>, vector<1x1x8x576xbf16>
    %35 = vector.shape_cast %34 : vector<1x1x8x576xbf16> to vector<8x576xbf16>
    %cst_39 = arith.constant dense<0.000000e+00> : vector<8x128xf32>
    %36 = tpu.matmul %35, %0, %cst_39 {dimension_numbers = #tpu.dot_dimension_numbers<[1], [0], [0], [1], [0, 0, 1, 1], [], []>} : vector<8x576xbf16>, vector<576x128xbf16>, vector<8x128xf32> -> vector<8x128xf32>
    %37 = arith.maximumf %33, %36 : vector<8x128xf32>
    %c3_40 = arith.constant 3 : index
    %c1_41 = arith.constant 1 : index
    %c0_42 = arith.constant 0 : index
    %c0_43 = arith.constant 0 : index
    %38 = vector.load %arg1[%c3_40, %c1_41, %c0_42, %c0_43] : memref<4x9x8x576xbf16, #tpu.memory_space<vmem>>, vector<1x1x8x576xbf16>
    %39 = vector.shape_cast %38 : vector<1x1x8x576xbf16> to vector<8x576xbf16>
    %cst_44 = arith.constant dense<0.000000e+00> : vector<8x128xf32>
    %40 = tpu.matmul %39, %0, %cst_44 {dimension_numbers = #tpu.dot_dimension_numbers<[1], [0], [0], [1], [0, 0, 1, 1], [], []>} : vector<8x576xbf16>, vector<576x128xbf16>, vector<8x128xf32> -> vector<8x128xf32>
    %41 = arith.maximumf %37, %40 : vector<8x128xf32>
    %42 = vector.broadcast %1 : vector<1x128xf32> to vector<8x128xf32>
    %43 = arith.addf %41, %42 : vector<8x128xf32>
    %cst_45 = arith.constant 0.000000e+00 : f32
    %44 = vector.broadcast %cst_45 : f32 to vector<8x128xf32>
    %45 = arith.maximumf %43, %44 : vector<8x128xf32>
    %46 = arith.truncf %45 : vector<8x128xf32> to vector<8x128xbf16>
    %c1_46 = arith.constant 1 : index
    %c0_47 = arith.constant 0 : index
    %c0_48 = arith.constant 0 : index
    %47 = vector.load %arg4[%c1_46, %c0_47, %c0_48] : memref<9x128x256xbf16, #tpu.memory_space<vmem>>, vector<1x128x256xbf16>
    %48 = vector.shape_cast %47 : vector<1x128x256xbf16> to vector<128x256xbf16>
    %cst_49 = arith.constant dense<0.000000e+00> : vector<8x256xf32>
    %49 = tpu.matmul %46, %48, %cst_49 {dimension_numbers = #tpu.dot_dimension_numbers<[1], [0], [0], [1], [0, 0, 1, 1], [], []>} : vector<8x128xbf16>, vector<128x256xbf16>, vector<8x256xf32> -> vector<8x256xf32>
    %50 = arith.addf %26, %49 : vector<8x256xf32>
    %c0_50 = arith.constant 0 : index
    %c2_51 = arith.constant 2 : index
    %c0_52 = arith.constant 0 : index
    %c0_53 = arith.constant 0 : index
    %51 = vector.load %arg1[%c0_50, %c2_51, %c0_52, %c0_53] : memref<4x9x8x576xbf16, #tpu.memory_space<vmem>>, vector<1x1x8x576xbf16>
    %52 = vector.shape_cast %51 : vector<1x1x8x576xbf16> to vector<8x576xbf16>
    %cst_54 = arith.constant dense<0.000000e+00> : vector<8x128xf32>
    %53 = tpu.matmul %52, %0, %cst_54 {dimension_numbers = #tpu.dot_dimension_numbers<[1], [0], [0], [1], [0, 0, 1, 1], [], []>} : vector<8x576xbf16>, vector<576x128xbf16>, vector<8x128xf32> -> vector<8x128xf32>
    %c1_55 = arith.constant 1 : index
    %c2_56 = arith.constant 2 : index
    %c0_57 = arith.constant 0 : index
    %c0_58 = arith.constant 0 : index
    %54 = vector.load %arg1[%c1_55, %c2_56, %c0_57, %c0_58] : memref<4x9x8x576xbf16, #tpu.memory_space<vmem>>, vector<1x1x8x576xbf16>
    %55 = vector.shape_cast %54 : vector<1x1x8x576xbf16> to vector<8x576xbf16>
    %cst_59 = arith.constant dense<0.000000e+00> : vector<8x128xf32>
    %56 = tpu.matmul %55, %0, %cst_59 {dimension_numbers = #tpu.dot_dimension_numbers<[1], [0], [0], [1], [0, 0, 1, 1], [], []>} : vector<8x576xbf16>, vector<576x128xbf16>, vector<8x128xf32> -> vector<8x128xf32>
    %57 = arith.maximumf %53, %56 : vector<8x128xf32>
    %c2_60 = arith.constant 2 : index
    %c2_61 = arith.constant 2 : index
    %c0_62 = arith.constant 0 : index
    %c0_63 = arith.constant 0 : index
    %58 = vector.load %arg1[%c2_60, %c2_61, %c0_62, %c0_63] : memref<4x9x8x576xbf16, #tpu.memory_space<vmem>>, vector<1x1x8x576xbf16>
    %59 = vector.shape_cast %58 : vector<1x1x8x576xbf16> to vector<8x576xbf16>
    %cst_64 = arith.constant dense<0.000000e+00> : vector<8x128xf32>
    %60 = tpu.matmul %59, %0, %cst_64 {dimension_numbers = #tpu.dot_dimension_numbers<[1], [0], [0], [1], [0, 0, 1, 1], [], []>} : vector<8x576xbf16>, vector<576x128xbf16>, vector<8x128xf32> -> vector<8x128xf32>
    %61 = arith.maximumf %57, %60 : vector<8x128xf32>
    %c3_65 = arith.constant 3 : index
    %c2_66 = arith.constant 2 : index
    %c0_67 = arith.constant 0 : index
    %c0_68 = arith.constant 0 : index
    %62 = vector.load %arg1[%c3_65, %c2_66, %c0_67, %c0_68] : memref<4x9x8x576xbf16, #tpu.memory_space<vmem>>, vector<1x1x8x576xbf16>
    %63 = vector.shape_cast %62 : vector<1x1x8x576xbf16> to vector<8x576xbf16>
    %cst_69 = arith.constant dense<0.000000e+00> : vector<8x128xf32>
    %64 = tpu.matmul %63, %0, %cst_69 {dimension_numbers = #tpu.dot_dimension_numbers<[1], [0], [0], [1], [0, 0, 1, 1], [], []>} : vector<8x576xbf16>, vector<576x128xbf16>, vector<8x128xf32> -> vector<8x128xf32>
    %65 = arith.maximumf %61, %64 : vector<8x128xf32>
    %66 = vector.broadcast %1 : vector<1x128xf32> to vector<8x128xf32>
    %67 = arith.addf %65, %66 : vector<8x128xf32>
    %cst_70 = arith.constant 0.000000e+00 : f32
    %68 = vector.broadcast %cst_70 : f32 to vector<8x128xf32>
    %69 = arith.maximumf %67, %68 : vector<8x128xf32>
    %70 = arith.truncf %69 : vector<8x128xf32> to vector<8x128xbf16>
    %c2_71 = arith.constant 2 : index
    %c0_72 = arith.constant 0 : index
    %c0_73 = arith.constant 0 : index
    %71 = vector.load %arg4[%c2_71, %c0_72, %c0_73] : memref<9x128x256xbf16, #tpu.memory_space<vmem>>, vector<1x128x256xbf16>
    %72 = vector.shape_cast %71 : vector<1x128x256xbf16> to vector<128x256xbf16>
    %cst_74 = arith.constant dense<0.000000e+00> : vector<8x256xf32>
    %73 = tpu.matmul %70, %72, %cst_74 {dimension_numbers = #tpu.dot_dimension_numbers<[1], [0], [0], [1], [0, 0, 1, 1], [], []>} : vector<8x128xbf16>, vector<128x256xbf16>, vector<8x256xf32> -> vector<8x256xf32>
    %74 = arith.addf %50, %73 : vector<8x256xf32>
    %c0_75 = arith.constant 0 : index
    %c3_76 = arith.constant 3 : index
    %c0_77 = arith.constant 0 : index
    %c0_78 = arith.constant 0 : index
    %75 = vector.load %arg1[%c0_75, %c3_76, %c0_77, %c0_78] : memref<4x9x8x576xbf16, #tpu.memory_space<vmem>>, vector<1x1x8x576xbf16>
    %76 = vector.shape_cast %75 : vector<1x1x8x576xbf16> to vector<8x576xbf16>
    %cst_79 = arith.constant dense<0.000000e+00> : vector<8x128xf32>
    %77 = tpu.matmul %76, %0, %cst_79 {dimension_numbers = #tpu.dot_dimension_numbers<[1], [0], [0], [1], [0, 0, 1, 1], [], []>} : vector<8x576xbf16>, vector<576x128xbf16>, vector<8x128xf32> -> vector<8x128xf32>
    %c1_80 = arith.constant 1 : index
    %c3_81 = arith.constant 3 : index
    %c0_82 = arith.constant 0 : index
    %c0_83 = arith.constant 0 : index
    %78 = vector.load %arg1[%c1_80, %c3_81, %c0_82, %c0_83] : memref<4x9x8x576xbf16, #tpu.memory_space<vmem>>, vector<1x1x8x576xbf16>
    %79 = vector.shape_cast %78 : vector<1x1x8x576xbf16> to vector<8x576xbf16>
    %cst_84 = arith.constant dense<0.000000e+00> : vector<8x128xf32>
    %80 = tpu.matmul %79, %0, %cst_84 {dimension_numbers = #tpu.dot_dimension_numbers<[1], [0], [0], [1], [0, 0, 1, 1], [], []>} : vector<8x576xbf16>, vector<576x128xbf16>, vector<8x128xf32> -> vector<8x128xf32>
    %81 = arith.maximumf %77, %80 : vector<8x128xf32>
    %c2_85 = arith.constant 2 : index
    %c3_86 = arith.constant 3 : index
    %c0_87 = arith.constant 0 : index
    %c0_88 = arith.constant 0 : index
    %82 = vector.load %arg1[%c2_85, %c3_86, %c0_87, %c0_88] : memref<4x9x8x576xbf16, #tpu.memory_space<vmem>>, vector<1x1x8x576xbf16>
    %83 = vector.shape_cast %82 : vector<1x1x8x576xbf16> to vector<8x576xbf16>
    %cst_89 = arith.constant dense<0.000000e+00> : vector<8x128xf32>
    %84 = tpu.matmul %83, %0, %cst_89 {dimension_numbers = #tpu.dot_dimension_numbers<[1], [0], [0], [1], [0, 0, 1, 1], [], []>} : vector<8x576xbf16>, vector<576x128xbf16>, vector<8x128xf32> -> vector<8x128xf32>
    %85 = arith.maximumf %81, %84 : vector<8x128xf32>
    %c3_90 = arith.constant 3 : index
    %c3_91 = arith.constant 3 : index
    %c0_92 = arith.constant 0 : index
    %c0_93 = arith.constant 0 : index
    %86 = vector.load %arg1[%c3_90, %c3_91, %c0_92, %c0_93] : memref<4x9x8x576xbf16, #tpu.memory_space<vmem>>, vector<1x1x8x576xbf16>
    %87 = vector.shape_cast %86 : vector<1x1x8x576xbf16> to vector<8x576xbf16>
    %cst_94 = arith.constant dense<0.000000e+00> : vector<8x128xf32>
    %88 = tpu.matmul %87, %0, %cst_94 {dimension_numbers = #tpu.dot_dimension_numbers<[1], [0], [0], [1], [0, 0, 1, 1], [], []>} : vector<8x576xbf16>, vector<576x128xbf16>, vector<8x128xf32> -> vector<8x128xf32>
    %89 = arith.maximumf %85, %88 : vector<8x128xf32>
    %90 = vector.broadcast %1 : vector<1x128xf32> to vector<8x128xf32>
    %91 = arith.addf %89, %90 : vector<8x128xf32>
    %cst_95 = arith.constant 0.000000e+00 : f32
    %92 = vector.broadcast %cst_95 : f32 to vector<8x128xf32>
    %93 = arith.maximumf %91, %92 : vector<8x128xf32>
    %94 = arith.truncf %93 : vector<8x128xf32> to vector<8x128xbf16>
    %c3_96 = arith.constant 3 : index
    %c0_97 = arith.constant 0 : index
    %c0_98 = arith.constant 0 : index
    %95 = vector.load %arg4[%c3_96, %c0_97, %c0_98] : memref<9x128x256xbf16, #tpu.memory_space<vmem>>, vector<1x128x256xbf16>
    %96 = vector.shape_cast %95 : vector<1x128x256xbf16> to vector<128x256xbf16>
    %cst_99 = arith.constant dense<0.000000e+00> : vector<8x256xf32>
    %97 = tpu.matmul %94, %96, %cst_99 {dimension_numbers = #tpu.dot_dimension_numbers<[1], [0], [0], [1], [0, 0, 1, 1], [], []>} : vector<8x128xbf16>, vector<128x256xbf16>, vector<8x256xf32> -> vector<8x256xf32>
    %98 = arith.addf %74, %97 : vector<8x256xf32>
    %c0_100 = arith.constant 0 : index
    %c4 = arith.constant 4 : index
    %c0_101 = arith.constant 0 : index
    %c0_102 = arith.constant 0 : index
    %99 = vector.load %arg1[%c0_100, %c4, %c0_101, %c0_102] : memref<4x9x8x576xbf16, #tpu.memory_space<vmem>>, vector<1x1x8x576xbf16>
    %100 = vector.shape_cast %99 : vector<1x1x8x576xbf16> to vector<8x576xbf16>
    %cst_103 = arith.constant dense<0.000000e+00> : vector<8x128xf32>
    %101 = tpu.matmul %100, %0, %cst_103 {dimension_numbers = #tpu.dot_dimension_numbers<[1], [0], [0], [1], [0, 0, 1, 1], [], []>} : vector<8x576xbf16>, vector<576x128xbf16>, vector<8x128xf32> -> vector<8x128xf32>
    %c1_104 = arith.constant 1 : index
    %c4_105 = arith.constant 4 : index
    %c0_106 = arith.constant 0 : index
    %c0_107 = arith.constant 0 : index
    %102 = vector.load %arg1[%c1_104, %c4_105, %c0_106, %c0_107] : memref<4x9x8x576xbf16, #tpu.memory_space<vmem>>, vector<1x1x8x576xbf16>
    %103 = vector.shape_cast %102 : vector<1x1x8x576xbf16> to vector<8x576xbf16>
    %cst_108 = arith.constant dense<0.000000e+00> : vector<8x128xf32>
    %104 = tpu.matmul %103, %0, %cst_108 {dimension_numbers = #tpu.dot_dimension_numbers<[1], [0], [0], [1], [0, 0, 1, 1], [], []>} : vector<8x576xbf16>, vector<576x128xbf16>, vector<8x128xf32> -> vector<8x128xf32>
    %105 = arith.maximumf %101, %104 : vector<8x128xf32>
    %c2_109 = arith.constant 2 : index
    %c4_110 = arith.constant 4 : index
    %c0_111 = arith.constant 0 : index
    %c0_112 = arith.constant 0 : index
    %106 = vector.load %arg1[%c2_109, %c4_110, %c0_111, %c0_112] : memref<4x9x8x576xbf16, #tpu.memory_space<vmem>>, vector<1x1x8x576xbf16>
    %107 = vector.shape_cast %106 : vector<1x1x8x576xbf16> to vector<8x576xbf16>
    %cst_113 = arith.constant dense<0.000000e+00> : vector<8x128xf32>
    %108 = tpu.matmul %107, %0, %cst_113 {dimension_numbers = #tpu.dot_dimension_numbers<[1], [0], [0], [1], [0, 0, 1, 1], [], []>} : vector<8x576xbf16>, vector<576x128xbf16>, vector<8x128xf32> -> vector<8x128xf32>
    %109 = arith.maximumf %105, %108 : vector<8x128xf32>
    %c3_114 = arith.constant 3 : index
    %c4_115 = arith.constant 4 : index
    %c0_116 = arith.constant 0 : index
    %c0_117 = arith.constant 0 : index
    %110 = vector.load %arg1[%c3_114, %c4_115, %c0_116, %c0_117] : memref<4x9x8x576xbf16, #tpu.memory_space<vmem>>, vector<1x1x8x576xbf16>
    %111 = vector.shape_cast %110 : vector<1x1x8x576xbf16> to vector<8x576xbf16>
    %cst_118 = arith.constant dense<0.000000e+00> : vector<8x128xf32>
    %112 = tpu.matmul %111, %0, %cst_118 {dimension_numbers = #tpu.dot_dimension_numbers<[1], [0], [0], [1], [0, 0, 1, 1], [], []>} : vector<8x576xbf16>, vector<576x128xbf16>, vector<8x128xf32> -> vector<8x128xf32>
    %113 = arith.maximumf %109, %112 : vector<8x128xf32>
    %114 = vector.broadcast %1 : vector<1x128xf32> to vector<8x128xf32>
    %115 = arith.addf %113, %114 : vector<8x128xf32>
    %cst_119 = arith.constant 0.000000e+00 : f32
    %116 = vector.broadcast %cst_119 : f32 to vector<8x128xf32>
    %117 = arith.maximumf %115, %116 : vector<8x128xf32>
    %118 = arith.truncf %117 : vector<8x128xf32> to vector<8x128xbf16>
    %c4_120 = arith.constant 4 : index
    %c0_121 = arith.constant 0 : index
    %c0_122 = arith.constant 0 : index
    %119 = vector.load %arg4[%c4_120, %c0_121, %c0_122] : memref<9x128x256xbf16, #tpu.memory_space<vmem>>, vector<1x128x256xbf16>
    %120 = vector.shape_cast %119 : vector<1x128x256xbf16> to vector<128x256xbf16>
    %cst_123 = arith.constant dense<0.000000e+00> : vector<8x256xf32>
    %121 = tpu.matmul %118, %120, %cst_123 {dimension_numbers = #tpu.dot_dimension_numbers<[1], [0], [0], [1], [0, 0, 1, 1], [], []>} : vector<8x128xbf16>, vector<128x256xbf16>, vector<8x256xf32> -> vector<8x256xf32>
    %122 = arith.addf %98, %121 : vector<8x256xf32>
    %c0_124 = arith.constant 0 : index
    %c5 = arith.constant 5 : index
    %c0_125 = arith.constant 0 : index
    %c0_126 = arith.constant 0 : index
    %123 = vector.load %arg1[%c0_124, %c5, %c0_125, %c0_126] : memref<4x9x8x576xbf16, #tpu.memory_space<vmem>>, vector<1x1x8x576xbf16>
    %124 = vector.shape_cast %123 : vector<1x1x8x576xbf16> to vector<8x576xbf16>
    %cst_127 = arith.constant dense<0.000000e+00> : vector<8x128xf32>
    %125 = tpu.matmul %124, %0, %cst_127 {dimension_numbers = #tpu.dot_dimension_numbers<[1], [0], [0], [1], [0, 0, 1, 1], [], []>} : vector<8x576xbf16>, vector<576x128xbf16>, vector<8x128xf32> -> vector<8x128xf32>
    %c1_128 = arith.constant 1 : index
    %c5_129 = arith.constant 5 : index
    %c0_130 = arith.constant 0 : index
    %c0_131 = arith.constant 0 : index
    %126 = vector.load %arg1[%c1_128, %c5_129, %c0_130, %c0_131] : memref<4x9x8x576xbf16, #tpu.memory_space<vmem>>, vector<1x1x8x576xbf16>
    %127 = vector.shape_cast %126 : vector<1x1x8x576xbf16> to vector<8x576xbf16>
    %cst_132 = arith.constant dense<0.000000e+00> : vector<8x128xf32>
    %128 = tpu.matmul %127, %0, %cst_132 {dimension_numbers = #tpu.dot_dimension_numbers<[1], [0], [0], [1], [0, 0, 1, 1], [], []>} : vector<8x576xbf16>, vector<576x128xbf16>, vector<8x128xf32> -> vector<8x128xf32>
    %129 = arith.maximumf %125, %128 : vector<8x128xf32>
    %c2_133 = arith.constant 2 : index
    %c5_134 = arith.constant 5 : index
    %c0_135 = arith.constant 0 : index
    %c0_136 = arith.constant 0 : index
    %130 = vector.load %arg1[%c2_133, %c5_134, %c0_135, %c0_136] : memref<4x9x8x576xbf16, #tpu.memory_space<vmem>>, vector<1x1x8x576xbf16>
    %131 = vector.shape_cast %130 : vector<1x1x8x576xbf16> to vector<8x576xbf16>
    %cst_137 = arith.constant dense<0.000000e+00> : vector<8x128xf32>
    %132 = tpu.matmul %131, %0, %cst_137 {dimension_numbers = #tpu.dot_dimension_numbers<[1], [0], [0], [1], [0, 0, 1, 1], [], []>} : vector<8x576xbf16>, vector<576x128xbf16>, vector<8x128xf32> -> vector<8x128xf32>
    %133 = arith.maximumf %129, %132 : vector<8x128xf32>
    %c3_138 = arith.constant 3 : index
    %c5_139 = arith.constant 5 : index
    %c0_140 = arith.constant 0 : index
    %c0_141 = arith.constant 0 : index
    %134 = vector.load %arg1[%c3_138, %c5_139, %c0_140, %c0_141] : memref<4x9x8x576xbf16, #tpu.memory_space<vmem>>, vector<1x1x8x576xbf16>
    %135 = vector.shape_cast %134 : vector<1x1x8x576xbf16> to vector<8x576xbf16>
    %cst_142 = arith.constant dense<0.000000e+00> : vector<8x128xf32>
    %136 = tpu.matmul %135, %0, %cst_142 {dimension_numbers = #tpu.dot_dimension_numbers<[1], [0], [0], [1], [0, 0, 1, 1], [], []>} : vector<8x576xbf16>, vector<576x128xbf16>, vector<8x128xf32> -> vector<8x128xf32>
    %137 = arith.maximumf %133, %136 : vector<8x128xf32>
    %138 = vector.broadcast %1 : vector<1x128xf32> to vector<8x128xf32>
    %139 = arith.addf %137, %138 : vector<8x128xf32>
    %cst_143 = arith.constant 0.000000e+00 : f32
    %140 = vector.broadcast %cst_143 : f32 to vector<8x128xf32>
    %141 = arith.maximumf %139, %140 : vector<8x128xf32>
    %142 = arith.truncf %141 : vector<8x128xf32> to vector<8x128xbf16>
    %c5_144 = arith.constant 5 : index
    %c0_145 = arith.constant 0 : index
    %c0_146 = arith.constant 0 : index
    %143 = vector.load %arg4[%c5_144, %c0_145, %c0_146] : memref<9x128x256xbf16, #tpu.memory_space<vmem>>, vector<1x128x256xbf16>
    %144 = vector.shape_cast %143 : vector<1x128x256xbf16> to vector<128x256xbf16>
    %cst_147 = arith.constant dense<0.000000e+00> : vector<8x256xf32>
    %145 = tpu.matmul %142, %144, %cst_147 {dimension_numbers = #tpu.dot_dimension_numbers<[1], [0], [0], [1], [0, 0, 1, 1], [], []>} : vector<8x128xbf16>, vector<128x256xbf16>, vector<8x256xf32> -> vector<8x256xf32>
    %146 = arith.addf %122, %145 : vector<8x256xf32>
    %c0_148 = arith.constant 0 : index
    %c6 = arith.constant 6 : index
    %c0_149 = arith.constant 0 : index
    %c0_150 = arith.constant 0 : index
    %147 = vector.load %arg1[%c0_148, %c6, %c0_149, %c0_150] : memref<4x9x8x576xbf16, #tpu.memory_space<vmem>>, vector<1x1x8x576xbf16>
    %148 = vector.shape_cast %147 : vector<1x1x8x576xbf16> to vector<8x576xbf16>
    %cst_151 = arith.constant dense<0.000000e+00> : vector<8x128xf32>
    %149 = tpu.matmul %148, %0, %cst_151 {dimension_numbers = #tpu.dot_dimension_numbers<[1], [0], [0], [1], [0, 0, 1, 1], [], []>} : vector<8x576xbf16>, vector<576x128xbf16>, vector<8x128xf32> -> vector<8x128xf32>
    %c1_152 = arith.constant 1 : index
    %c6_153 = arith.constant 6 : index
    %c0_154 = arith.constant 0 : index
    %c0_155 = arith.constant 0 : index
    %150 = vector.load %arg1[%c1_152, %c6_153, %c0_154, %c0_155] : memref<4x9x8x576xbf16, #tpu.memory_space<vmem>>, vector<1x1x8x576xbf16>
    %151 = vector.shape_cast %150 : vector<1x1x8x576xbf16> to vector<8x576xbf16>
    %cst_156 = arith.constant dense<0.000000e+00> : vector<8x128xf32>
    %152 = tpu.matmul %151, %0, %cst_156 {dimension_numbers = #tpu.dot_dimension_numbers<[1], [0], [0], [1], [0, 0, 1, 1], [], []>} : vector<8x576xbf16>, vector<576x128xbf16>, vector<8x128xf32> -> vector<8x128xf32>
    %153 = arith.maximumf %149, %152 : vector<8x128xf32>
    %c2_157 = arith.constant 2 : index
    %c6_158 = arith.constant 6 : index
    %c0_159 = arith.constant 0 : index
    %c0_160 = arith.constant 0 : index
    %154 = vector.load %arg1[%c2_157, %c6_158, %c0_159, %c0_160] : memref<4x9x8x576xbf16, #tpu.memory_space<vmem>>, vector<1x1x8x576xbf16>
    %155 = vector.shape_cast %154 : vector<1x1x8x576xbf16> to vector<8x576xbf16>
    %cst_161 = arith.constant dense<0.000000e+00> : vector<8x128xf32>
    %156 = tpu.matmul %155, %0, %cst_161 {dimension_numbers = #tpu.dot_dimension_numbers<[1], [0], [0], [1], [0, 0, 1, 1], [], []>} : vector<8x576xbf16>, vector<576x128xbf16>, vector<8x128xf32> -> vector<8x128xf32>
    %157 = arith.maximumf %153, %156 : vector<8x128xf32>
    %c3_162 = arith.constant 3 : index
    %c6_163 = arith.constant 6 : index
    %c0_164 = arith.constant 0 : index
    %c0_165 = arith.constant 0 : index
    %158 = vector.load %arg1[%c3_162, %c6_163, %c0_164, %c0_165] : memref<4x9x8x576xbf16, #tpu.memory_space<vmem>>, vector<1x1x8x576xbf16>
    %159 = vector.shape_cast %158 : vector<1x1x8x576xbf16> to vector<8x576xbf16>
    %cst_166 = arith.constant dense<0.000000e+00> : vector<8x128xf32>
    %160 = tpu.matmul %159, %0, %cst_166 {dimension_numbers = #tpu.dot_dimension_numbers<[1], [0], [0], [1], [0, 0, 1, 1], [], []>} : vector<8x576xbf16>, vector<576x128xbf16>, vector<8x128xf32> -> vector<8x128xf32>
    %161 = arith.maximumf %157, %160 : vector<8x128xf32>
    %162 = vector.broadcast %1 : vector<1x128xf32> to vector<8x128xf32>
    %163 = arith.addf %161, %162 : vector<8x128xf32>
    %cst_167 = arith.constant 0.000000e+00 : f32
    %164 = vector.broadcast %cst_167 : f32 to vector<8x128xf32>
    %165 = arith.maximumf %163, %164 : vector<8x128xf32>
    %166 = arith.truncf %165 : vector<8x128xf32> to vector<8x128xbf16>
    %c6_168 = arith.constant 6 : index
    %c0_169 = arith.constant 0 : index
    %c0_170 = arith.constant 0 : index
    %167 = vector.load %arg4[%c6_168, %c0_169, %c0_170] : memref<9x128x256xbf16, #tpu.memory_space<vmem>>, vector<1x128x256xbf16>
    %168 = vector.shape_cast %167 : vector<1x128x256xbf16> to vector<128x256xbf16>
    %cst_171 = arith.constant dense<0.000000e+00> : vector<8x256xf32>
    %169 = tpu.matmul %166, %168, %cst_171 {dimension_numbers = #tpu.dot_dimension_numbers<[1], [0], [0], [1], [0, 0, 1, 1], [], []>} : vector<8x128xbf16>, vector<128x256xbf16>, vector<8x256xf32> -> vector<8x256xf32>
    %170 = arith.addf %146, %169 : vector<8x256xf32>
    %c0_172 = arith.constant 0 : index
    %c7 = arith.constant 7 : index
    %c0_173 = arith.constant 0 : index
    %c0_174 = arith.constant 0 : index
    %171 = vector.load %arg1[%c0_172, %c7, %c0_173, %c0_174] : memref<4x9x8x576xbf16, #tpu.memory_space<vmem>>, vector<1x1x8x576xbf16>
    %172 = vector.shape_cast %171 : vector<1x1x8x576xbf16> to vector<8x576xbf16>
    %cst_175 = arith.constant dense<0.000000e+00> : vector<8x128xf32>
    %173 = tpu.matmul %172, %0, %cst_175 {dimension_numbers = #tpu.dot_dimension_numbers<[1], [0], [0], [1], [0, 0, 1, 1], [], []>} : vector<8x576xbf16>, vector<576x128xbf16>, vector<8x128xf32> -> vector<8x128xf32>
    %c1_176 = arith.constant 1 : index
    %c7_177 = arith.constant 7 : index
    %c0_178 = arith.constant 0 : index
    %c0_179 = arith.constant 0 : index
    %174 = vector.load %arg1[%c1_176, %c7_177, %c0_178, %c0_179] : memref<4x9x8x576xbf16, #tpu.memory_space<vmem>>, vector<1x1x8x576xbf16>
    %175 = vector.shape_cast %174 : vector<1x1x8x576xbf16> to vector<8x576xbf16>
    %cst_180 = arith.constant dense<0.000000e+00> : vector<8x128xf32>
    %176 = tpu.matmul %175, %0, %cst_180 {dimension_numbers = #tpu.dot_dimension_numbers<[1], [0], [0], [1], [0, 0, 1, 1], [], []>} : vector<8x576xbf16>, vector<576x128xbf16>, vector<8x128xf32> -> vector<8x128xf32>
    %177 = arith.maximumf %173, %176 : vector<8x128xf32>
    %c2_181 = arith.constant 2 : index
    %c7_182 = arith.constant 7 : index
    %c0_183 = arith.constant 0 : index
    %c0_184 = arith.constant 0 : index
    %178 = vector.load %arg1[%c2_181, %c7_182, %c0_183, %c0_184] : memref<4x9x8x576xbf16, #tpu.memory_space<vmem>>, vector<1x1x8x576xbf16>
    %179 = vector.shape_cast %178 : vector<1x1x8x576xbf16> to vector<8x576xbf16>
    %cst_185 = arith.constant dense<0.000000e+00> : vector<8x128xf32>
    %180 = tpu.matmul %179, %0, %cst_185 {dimension_numbers = #tpu.dot_dimension_numbers<[1], [0], [0], [1], [0, 0, 1, 1], [], []>} : vector<8x576xbf16>, vector<576x128xbf16>, vector<8x128xf32> -> vector<8x128xf32>
    %181 = arith.maximumf %177, %180 : vector<8x128xf32>
    %c3_186 = arith.constant 3 : index
    %c7_187 = arith.constant 7 : index
    %c0_188 = arith.constant 0 : index
    %c0_189 = arith.constant 0 : index
    %182 = vector.load %arg1[%c3_186, %c7_187, %c0_188, %c0_189] : memref<4x9x8x576xbf16, #tpu.memory_space<vmem>>, vector<1x1x8x576xbf16>
    %183 = vector.shape_cast %182 : vector<1x1x8x576xbf16> to vector<8x576xbf16>
    %cst_190 = arith.constant dense<0.000000e+00> : vector<8x128xf32>
    %184 = tpu.matmul %183, %0, %cst_190 {dimension_numbers = #tpu.dot_dimension_numbers<[1], [0], [0], [1], [0, 0, 1, 1], [], []>} : vector<8x576xbf16>, vector<576x128xbf16>, vector<8x128xf32> -> vector<8x128xf32>
    %185 = arith.maximumf %181, %184 : vector<8x128xf32>
    %186 = vector.broadcast %1 : vector<1x128xf32> to vector<8x128xf32>
    %187 = arith.addf %185, %186 : vector<8x128xf32>
    %cst_191 = arith.constant 0.000000e+00 : f32
    %188 = vector.broadcast %cst_191 : f32 to vector<8x128xf32>
    %189 = arith.maximumf %187, %188 : vector<8x128xf32>
    %190 = arith.truncf %189 : vector<8x128xf32> to vector<8x128xbf16>
    %c7_192 = arith.constant 7 : index
    %c0_193 = arith.constant 0 : index
    %c0_194 = arith.constant 0 : index
    %191 = vector.load %arg4[%c7_192, %c0_193, %c0_194] : memref<9x128x256xbf16, #tpu.memory_space<vmem>>, vector<1x128x256xbf16>
    %192 = vector.shape_cast %191 : vector<1x128x256xbf16> to vector<128x256xbf16>
    %cst_195 = arith.constant dense<0.000000e+00> : vector<8x256xf32>
    %193 = tpu.matmul %190, %192, %cst_195 {dimension_numbers = #tpu.dot_dimension_numbers<[1], [0], [0], [1], [0, 0, 1, 1], [], []>} : vector<8x128xbf16>, vector<128x256xbf16>, vector<8x256xf32> -> vector<8x256xf32>
    %194 = arith.addf %170, %193 : vector<8x256xf32>
    %c0_196 = arith.constant 0 : index
    %c8 = arith.constant 8 : index
    %c0_197 = arith.constant 0 : index
    %c0_198 = arith.constant 0 : index
    %195 = vector.load %arg1[%c0_196, %c8, %c0_197, %c0_198] : memref<4x9x8x576xbf16, #tpu.memory_space<vmem>>, vector<1x1x8x576xbf16>
    %196 = vector.shape_cast %195 : vector<1x1x8x576xbf16> to vector<8x576xbf16>
    %cst_199 = arith.constant dense<0.000000e+00> : vector<8x128xf32>
    %197 = tpu.matmul %196, %0, %cst_199 {dimension_numbers = #tpu.dot_dimension_numbers<[1], [0], [0], [1], [0, 0, 1, 1], [], []>} : vector<8x576xbf16>, vector<576x128xbf16>, vector<8x128xf32> -> vector<8x128xf32>
    %c1_200 = arith.constant 1 : index
    %c8_201 = arith.constant 8 : index
    %c0_202 = arith.constant 0 : index
    %c0_203 = arith.constant 0 : index
    %198 = vector.load %arg1[%c1_200, %c8_201, %c0_202, %c0_203] : memref<4x9x8x576xbf16, #tpu.memory_space<vmem>>, vector<1x1x8x576xbf16>
    %199 = vector.shape_cast %198 : vector<1x1x8x576xbf16> to vector<8x576xbf16>
    %cst_204 = arith.constant dense<0.000000e+00> : vector<8x128xf32>
    %200 = tpu.matmul %199, %0, %cst_204 {dimension_numbers = #tpu.dot_dimension_numbers<[1], [0], [0], [1], [0, 0, 1, 1], [], []>} : vector<8x576xbf16>, vector<576x128xbf16>, vector<8x128xf32> -> vector<8x128xf32>
    %201 = arith.maximumf %197, %200 : vector<8x128xf32>
    %c2_205 = arith.constant 2 : index
    %c8_206 = arith.constant 8 : index
    %c0_207 = arith.constant 0 : index
    %c0_208 = arith.constant 0 : index
    %202 = vector.load %arg1[%c2_205, %c8_206, %c0_207, %c0_208] : memref<4x9x8x576xbf16, #tpu.memory_space<vmem>>, vector<1x1x8x576xbf16>
    %203 = vector.shape_cast %202 : vector<1x1x8x576xbf16> to vector<8x576xbf16>
    %cst_209 = arith.constant dense<0.000000e+00> : vector<8x128xf32>
    %204 = tpu.matmul %203, %0, %cst_209 {dimension_numbers = #tpu.dot_dimension_numbers<[1], [0], [0], [1], [0, 0, 1, 1], [], []>} : vector<8x576xbf16>, vector<576x128xbf16>, vector<8x128xf32> -> vector<8x128xf32>
    %205 = arith.maximumf %201, %204 : vector<8x128xf32>
    %c3_210 = arith.constant 3 : index
    %c8_211 = arith.constant 8 : index
    %c0_212 = arith.constant 0 : index
    %c0_213 = arith.constant 0 : index
    %206 = vector.load %arg1[%c3_210, %c8_211, %c0_212, %c0_213] : memref<4x9x8x576xbf16, #tpu.memory_space<vmem>>, vector<1x1x8x576xbf16>
    %207 = vector.shape_cast %206 : vector<1x1x8x576xbf16> to vector<8x576xbf16>
    %cst_214 = arith.constant dense<0.000000e+00> : vector<8x128xf32>
    %208 = tpu.matmul %207, %0, %cst_214 {dimension_numbers = #tpu.dot_dimension_numbers<[1], [0], [0], [1], [0, 0, 1, 1], [], []>} : vector<8x576xbf16>, vector<576x128xbf16>, vector<8x128xf32> -> vector<8x128xf32>
    %209 = arith.maximumf %205, %208 : vector<8x128xf32>
    %210 = vector.broadcast %1 : vector<1x128xf32> to vector<8x128xf32>
    %211 = arith.addf %209, %210 : vector<8x128xf32>
    %cst_215 = arith.constant 0.000000e+00 : f32
    %212 = vector.broadcast %cst_215 : f32 to vector<8x128xf32>
    %213 = arith.maximumf %211, %212 : vector<8x128xf32>
    %214 = arith.truncf %213 : vector<8x128xf32> to vector<8x128xbf16>
    %c8_216 = arith.constant 8 : index
    %c0_217 = arith.constant 0 : index
    %c0_218 = arith.constant 0 : index
    %215 = vector.load %arg4[%c8_216, %c0_217, %c0_218] : memref<9x128x256xbf16, #tpu.memory_space<vmem>>, vector<1x128x256xbf16>
    %216 = vector.shape_cast %215 : vector<1x128x256xbf16> to vector<128x256xbf16>
    %cst_219 = arith.constant dense<0.000000e+00> : vector<8x256xf32>
    %217 = tpu.matmul %214, %216, %cst_219 {dimension_numbers = #tpu.dot_dimension_numbers<[1], [0], [0], [1], [0, 0, 1, 1], [], []>} : vector<8x128xbf16>, vector<128x256xbf16>, vector<8x256xf32> -> vector<8x256xf32>
    %218 = arith.addf %194, %217 : vector<8x256xf32>
    %c0_220 = arith.constant 0 : index
    %c0_221 = arith.constant 0 : index
    %219 = vector.load %arg5[%c0_220, %c0_221] : memref<1x256xf32, #tpu.memory_space<vmem>>, vector<1x256xf32>
    %220 = vector.broadcast %219 : vector<1x256xf32> to vector<8x256xf32>
    %221 = arith.addf %218, %220 : vector<8x256xf32>
    %222 = arith.truncf %221 : vector<8x256xf32> to vector<8x256xbf16>
    %c0_222 = arith.constant 0 : index
    %c0_223 = arith.constant 0 : index
    %223 = vector.load %arg6[%c0_222, %c0_223] : memref<256x128xbf16, #tpu.memory_space<vmem>>, vector<256x128xbf16>
    %cst_224 = arith.constant dense<0.000000e+00> : vector<8x128xf32>
    %224 = tpu.matmul %222, %223, %cst_224 {dimension_numbers = #tpu.dot_dimension_numbers<[1], [0], [0], [1], [0, 0, 1, 1], [], []>} : vector<8x256xbf16>, vector<256x128xbf16>, vector<8x128xf32> -> vector<8x128xf32>
    %c0_225 = arith.constant 0 : index
    %c0_226 = arith.constant 0 : index
    %225 = vector.load %arg7[%c0_225, %c0_226] : memref<1x128xf32, #tpu.memory_space<vmem>>, vector<1x128xf32>
    %226 = vector.broadcast %225 : vector<1x128xf32> to vector<8x128xf32>
    %227 = arith.addf %224, %226 : vector<8x128xf32>
    %c0_227 = arith.constant 0 : index
    %c0_228 = arith.constant 0 : index
    %228 = vector.load %arg8[%c0_227, %c0_228] : memref<8x128xf32, #tpu.memory_space<vmem>>, vector<8x128xf32>
    tpu.vector_store %arg8[%c0_227, %c0_228], %227 {strides = array<i32>} : memref<8x128xf32, #tpu.memory_space<vmem>>, vector<8x128xf32>,
    return
  }
  func.func @transform_0(%arg0: i32) -> (i32, i32, i32, i32) {
    %c0_i32 = arith.constant 0 : i32
    %c0_i32_0 = arith.constant 0 : i32
    %c0_i32_1 = arith.constant 0 : i32
    %c0_i32_2 = arith.constant 0 : i32
    return %c0_i32, %c0_i32_0, %arg0, %c0_i32_1 : i32, i32, i32, i32
  }
  func.func @transform_1(%arg0: i32) -> (i32, i32) {
    %c0_i32 = arith.constant 0 : i32
    %c0_i32_0 = arith.constant 0 : i32
    %c0_i32_1 = arith.constant 0 : i32
    return %c0_i32, %c0_i32_0 : i32, i32
  }
  func.func @transform_2(%arg0: i32) -> (i32, i32) {
    %c0_i32 = arith.constant 0 : i32
    %c0_i32_0 = arith.constant 0 : i32
    %c0_i32_1 = arith.constant 0 : i32
    return %c0_i32, %c0_i32_0 : i32, i32
  }
  func.func @transform_3(%arg0: i32) -> (i32, i32, i32) {
    %c0_i32 = arith.constant 0 : i32
    %c0_i32_0 = arith.constant 0 : i32
    %c0_i32_1 = arith.constant 0 : i32
    %c0_i32_2 = arith.constant 0 : i32
    return %c0_i32, %c0_i32_0, %c0_i32_1 : i32, i32, i32
  }
  func.func @transform_4(%arg0: i32) -> (i32, i32) {
    %c0_i32 = arith.constant 0 : i32
    %c0_i32_0 = arith.constant 0 : i32
    %c0_i32_1 = arith.constant 0 : i32
    return %c0_i32, %c0_i32_0 : i32, i32
  }
  func.func @transform_5(%arg0: i32) -> (i32, i32) {
    %c0_i32 = arith.constant 0 : i32
    %c0_i32_0 = arith.constant 0 : i32
    %c0_i32_1 = arith.constant 0 : i32
    return %c0_i32, %c0_i32_0 : i32, i32
  }
  func.func @transform_6(%arg0: i32) -> (i32, i32) {
    %c0_i32 = arith.constant 0 : i32
    %c0_i32_0 = arith.constant 0 : i32
    %c0_i32_1 = arith.constant 0 : i32
    return %c0_i32, %c0_i32_0 : i32, i32
  }
  func.func @transform_7(%arg0: i32) -> (i32, i32) {
    %c0_i32 = arith.constant 0 : i32
    %c0_i32_0 = arith.constant 0 : i32
    return %arg0, %c0_i32 : i32, i32
  }
}

</mosaic_0001>

<bundles_post_ra>
// kernel: mnist_classifier_forward.3
= control target key start
LH: loop header
LB: loop body
LE: loop exit
PB: predicated region body
PF: predicated region fallthrough
CT: control target
= control target key end

     0   :  { %s2070_s12 = smov 0   ;;  %s2519_s0 = inlined_call_operand.vmem [shape: bf16[2,1024,9], index: 0, kind: input, shape index: {}]   ;;  %s2520_s1 = inlined_call_operand.vmem [shape: bf16[9,32], index: 1, kind: input, shape index: {}]   ;;  %s2521_s2 = inlined_call_operand.vmem [shape: f32[1,32], index: 2, kind: input, shape index: {}]   ;;  %s2522_s3 = inlined_call_operand.vmem [shape: f32[2,256,32], index: 3, kind: output, shape index: {}]  }
   0x1 LB: > { %s1627_s13 = sadd.s32 4294967295, %s2047_s12   ;;  %p1631_p0 = scmp.ge.s32.totalorder %s2047_s12, 1  ;;  %s2047_s12 = sphi %s2070_s12, %s13_s12  }
   0x2   : > { %p137_p1 = scmp.lt.s32.totalorder %s2047_s12, 3 }
   0x4   : > { %p138_p2 = pnand %p1631_p0, %p137_p1 }
   0x6   : > { %141 = sbr.rel (%p138_p2) target bundleno = 349 (0x15d), region = 32 }
   0xb   : > { %v1976_v0 = vld [vmem:[%s2520_s1] sm:$0x1f]   ;;  %vm820_vm0 = vcmask 1043456   ;;  %vm821_vm1 = vcmask 1044480   ;;  %p161_p3 = scmp.lt.s32.totalorder %s1627_s13, 1  ;;  %v2049_v1 = vmov 65535  }
   0xc   : > { %v822_v2 = vsel %vm820_vm0, 4294967295, %v2049_v1  ;;  %vm627_vm2 = vcmask 72704   ;;  %vm1539_vm3 = vcmask 261120  }
   0xd   : > { %v823_v3 = vsel %vm821_vm1, %v822_v2, 0  ;;  %s2550_s13 = smov (!%p161_p3, %s1627_s13), 1 }
   0xe   : > { %v825_v4 = vand.u32 %v1976_v0, %v823_v3  ;;  %s1768_s16 = sshll.u32 %s2550_s13, 9  ;;  %s1769_s22 = sshll.u32 %s2550_s13, 8 }
   0xf   : > { %s2087_s19 = scalar_lea.vmem %s2519_s0, %s1768_s16  ;;  %s2361_s25 = scalar_lea.vmem %s2522_s3, %s1769_s22 }
  0x10   : > { %1835 = vmatprep.subr.bf16.mxu0 %v825_v4  ;;  %1965 = vmatprep.subr.bf16.mxu1 %v825_v4  ;;  %v1977_v5 = vld [vmem:[%s2087_s19] sm:$0xff]   ;;  %v1979_v7 = vld [vmem:[%s2087_s19 + $0x8] sm:$0xff]   ;;  %v1981_v9 = vld [vmem:[%s2087_s19 + $0x10] sm:$0xff]  }
  0x11   : > { %1836 = vmatpush3.bf16.msra.mxu0 %v825_v4  ;;  %1966 = vmatpush3.bf16.msra.mxu1 %v825_v4  ;;  %v1978_v6 = vld [vmem:[%s2087_s19 + $0x100] sm:$0xff]   ;;  %v1980_v8 = vld [vmem:[%s2087_s19 + $0x108] sm:$0xff]   ;;  %v1982_v10 = vld [vmem:[%s2087_s19 + $0x110] sm:$0xff]  }
  0x12   : > { %1837 = vmatprep.mubr.msk.bf16.mxu0 %vm627_vm2, %v1977_v5  ;;  %1901 = vmatprep.mubr.msk.bf16.mxu1 %vm627_vm2, %v1978_v6  ;;  %v1983_v11 = vld [vmem:[%s2087_s19 + $0x18] sm:$0xff]   ;;  %v1985_v13 = vld [vmem:[%s2087_s19 + $0x20] sm:$0xff]   ;;  %v1987_v15 = vld [vmem:[%s2087_s19 + $0x28] sm:$0xff]  }
  0x13   : > { %v1984_v12 = vld [vmem:[%s2087_s19 + $0x118] sm:$0xff]   ;;  %v1986_v14 = vld [vmem:[%s2087_s19 + $0x120] sm:$0xff]   ;;  %v1988_v16 = vld [vmem:[%s2087_s19 + $0x128] sm:$0xff]  }
  0x14   : > { %1838 = vmatmul.mubr.msk.bf16.vlgmr.msra.gmra.mxu0 %vm627_vm2, %v1979_v7  ;;  %1902 = vmatmul.mubr.msk.bf16.vlgmr.msra.gmra.mxu1 %vm627_vm2, %v1980_v8  ;;  %v1989_v17 = vld [vmem:[%s2087_s19 + $0x30] sm:$0xff]   ;;  %v1991_v19 = vld [vmem:[%s2087_s19 + $0x38] sm:$0xff]   ;;  %v1993_v21 = vld [vmem:[%s2087_s19 + $0x40] sm:$0xff]  }
  0x15   : > { %1841 = vmatprep.mubr.msk.bf16.mxu0 %vm627_vm2, %v1981_v9  ;;  %1905 = vmatprep.mubr.msk.bf16.mxu1 %vm627_vm2, %v1982_v10  ;;  %v1990_v18 = vld [vmem:[%s2087_s19 + $0x130] sm:$0xff]   ;;  %v1992_v20 = vld [vmem:[%s2087_s19 + $0x138] sm:$0xff]   ;;  %v1994_v22 = vld [vmem:[%s2087_s19 + $0x140] sm:$0xff]  }
  0x16   : > { %v1995_v23 = vld [vmem:[%s2087_s19 + $0x48] sm:$0xff]   ;;  %v1997_v25 = vld [vmem:[%s2087_s19 + $0x50] sm:$0xff]   ;;  %v1999_v27 = vld [vmem:[%s2087_s19 + $0x58] sm:$0xff]  }
  0x17   : > { %v1996_v24 = vld [vmem:[%s2087_s19 + $0x148] sm:$0xff]   ;;  %v1998_v26 = vld [vmem:[%s2087_s19 + $0x150] sm:$0xff]   ;;  %v2000_v28 = vld [vmem:[%s2087_s19 + $0x158] sm:$0xff]  }
  0x18   : > { %v2001_v29 = vld [vmem:[%s2087_s19 + $0x60] sm:$0xff]   ;;  %v2003_v31 = vld [vmem:[%s2087_s19 + $0x68] sm:$0xff]   ;;  %v2005_v33 = vld [vmem:[%s2087_s19 + $0x70] sm:$0xff]  }
  0x19   : > { %v2002_v30 = vld [vmem:[%s2087_s19 + $0x160] sm:$0xff]   ;;  %v2004_v32 = vld [vmem:[%s2087_s19 + $0x168] sm:$0xff]   ;;  %v2006_v34 = vld [vmem:[%s2087_s19 + $0x170] sm:$0xff]  }
  0x1a   : > { %v2007_v35 = vld [vmem:[%s2087_s19 + $0x78] sm:$0xff]   ;;  %v2009_v37 = vld [vmem:[%s2087_s19 + $0x80] sm:$0xff]   ;;  %v2011_v39 = vld [vmem:[%s2087_s19 + $0x88] sm:$0xff]  }
  0x1b   : > { %v2008_v36 = vld [vmem:[%s2087_s19 + $0x178] sm:$0xff]   ;;  %v2010_v38 = vld [vmem:[%s2087_s19 + $0x180] sm:$0xff]   ;;  %v2012_v40 = vld [vmem:[%s2087_s19 + $0x188] sm:$0xff]  }
  0x1c   : > { %1842 = vmatmul.mubr.msk.bf16.gmra.mxu0 %vm627_vm2, %v1983_v11  ;;  %1906 = vmatmul.mubr.msk.bf16.gmra.mxu1 %vm627_vm2, %v1984_v12  ;;  %v2013_v41 = vld [vmem:[%s2087_s19 + $0x90] sm:$0xff]   ;;  %v2015_v43 = vld [vmem:[%s2087_s19 + $0x98] sm:$0xff]   ;;  %v2017_v45 = vld [vmem:[%s2087_s19 + $0xa0] sm:$0xff]  }
  0x1d   : > { %1845 = vmatprep.mubr.msk.bf16.mxu0 %vm627_vm2, %v1985_v13  ;;  %1909 = vmatprep.mubr.msk.bf16.mxu1 %vm627_vm2, %v1986_v14  ;;  %v2014_v42 = vld [vmem:[%s2087_s19 + $0x190] sm:$0xff]   ;;  %v2016_v44 = vld [vmem:[%s2087_s19 + $0x198] sm:$0xff]   ;;  %v2018_v46 = vld [vmem:[%s2087_s19 + $0x1a0] sm:$0xff]  }
  0x1e   : > { %v2019_v47 = vld [vmem:[%s2087_s19 + $0xa8] sm:$0xff]   ;;  %v2021_v49 = vld [vmem:[%s2087_s19 + $0xb0] sm:$0xff]   ;;  %v2023_v51 = vld [vmem:[%s2087_s19 + $0xb8] sm:$0xff]  }
  0x1f   : > { %v2020_v48 = vld [vmem:[%s2087_s19 + $0x1a8] sm:$0xff]   ;;  %v2022_v50 = vld [vmem:[%s2087_s19 + $0x1b0] sm:$0xff]   ;;  %v2024_v52 = vld [vmem:[%s2087_s19 + $0x1b8] sm:$0xff]  }
  0x20   : > { %v2025_v53 = vld [vmem:[%s2087_s19 + $0xc0] sm:$0xff]   ;;  %v2027_v55 = vld [vmem:[%s2087_s19 + $0xc8] sm:$0xff]   ;;  %v2029_v57 = vld [vmem:[%s2087_s19 + $0xd0] sm:$0xff]  }
  0x21   : > { %v2026_v54 = vld [vmem:[%s2087_s19 + $0x1c0] sm:$0xff]   ;;  %v2028_v56 = vld [vmem:[%s2087_s19 + $0x1c8] sm:$0xff]   ;;  %v2030_v58 = vld [vmem:[%s2087_s19 + $0x1d0] sm:$0xff]  }
  0x22   : > { %v2031_v59 = vld [vmem:[%s2087_s19 + $0xd8] sm:$0xff]   ;;  %v2033_v61 = vld [vmem:[%s2087_s19 + $0xe0] sm:$0xff]   ;;  %v2035_v63 = vld [vmem:[%s2087_s19 + $0xe8] sm:$0xff]  }
  0x23   : > { %v2032_v60 = vld [vmem:[%s2087_s19 + $0x1d8] sm:$0xff]   ;;  %v2034_v62 = vld [vmem:[%s2087_s19 + $0x1e0] sm:$0xff]   ;;  %v2036_v0 = vld [vmem:[%s2087_s19 + $0x1e8] sm:$0xff]  }
  0x24   : > { %1846 = vmatmul.mubr.msk.bf16.gmra.mxu0 %vm627_vm2, %v1987_v15  ;;  %1910 = vmatmul.mubr.msk.bf16.gmra.mxu1 %vm627_vm2, %v1988_v16  ;;  %v2037_v1 = vld [vmem:[%s2087_s19 + $0xf0] sm:$0xff]   ;;  %v2039_v3 = vld [vmem:[%s2087_s19 + $0xf8] sm:$0xff]  }
  0x25   : > { %1849 = vmatprep.mubr.msk.bf16.mxu0 %vm627_vm2, %v1989_v17  ;;  %1913 = vmatprep.mubr.msk.bf16.mxu1 %vm627_vm2, %v1990_v18  ;;  %v2038_v2 = vld [vmem:[%s2087_s19 + $0x1f0] sm:$0xff]   ;;  %v2040_v4 = vld [vmem:[%s2087_s19 + $0x1f8] sm:$0xff]  }
  0x2c   : > { %1850 = vmatmul.mubr.msk.bf16.gmra.mxu0 %vm627_vm2, %v1991_v19  ;;  %1914 = vmatmul.mubr.msk.bf16.gmra.mxu1 %vm627_vm2, %v1992_v20 }
  0x2d   : > { %1853 = vmatprep.mubr.msk.bf16.mxu0 %vm627_vm2, %v1993_v21  ;;  %1917 = vmatprep.mubr.msk.bf16.mxu1 %vm627_vm2, %v1994_v22 }
  0x34   : > { %1854 = vmatmul.mubr.msk.bf16.gmra.mxu0 %vm627_vm2, %v1995_v23  ;;  %1918 = vmatmul.mubr.msk.bf16.gmra.mxu1 %vm627_vm2, %v1996_v24 }
  0x35   : > { %1857 = vmatprep.mubr.msk.bf16.mxu0 %vm627_vm2, %v1997_v25  ;;  %1921 = vmatprep.mubr.msk.bf16.mxu1 %vm627_vm2, %v1998_v26 }
  0x3c   : > { %1858 = vmatmul.mubr.msk.bf16.gmra.mxu0 %vm627_vm2, %v1999_v27  ;;  %1922 = vmatmul.mubr.msk.bf16.gmra.mxu1 %vm627_vm2, %v2000_v28 }
  0x3d   : > { %1861 = vmatprep.mubr.msk.bf16.mxu0 %vm627_vm2, %v2001_v29  ;;  %1925 = vmatprep.mubr.msk.bf16.mxu1 %vm627_vm2, %v2002_v30 }
  0x44   : > { %1862 = vmatmul.mubr.msk.bf16.gmra.mxu0 %vm627_vm2, %v2003_v31  ;;  %1926 = vmatmul.mubr.msk.bf16.gmra.mxu1 %vm627_vm2, %v2004_v32 }
  0x45   : > { %1865 = vmatprep.mubr.msk.bf16.mxu0 %vm627_vm2, %v2005_v33  ;;  %1929 = vmatprep.mubr.msk.bf16.mxu1 %vm627_vm2, %v2006_v34 }
  0x4c   : > { %1866 = vmatmul.mubr.msk.bf16.gmra.mxu0 %vm627_vm2, %v2007_v35  ;;  %1930 = vmatmul.mubr.msk.bf16.gmra.mxu1 %vm627_vm2, %v2008_v36 }
  0x4d   : > { %1869 = vmatprep.mubr.msk.bf16.mxu0 %vm627_vm2, %v2009_v37  ;;  %1933 = vmatprep.mubr.msk.bf16.mxu1 %vm627_vm2, %v2010_v38 }
  0x54   : > { %1870 = vmatmul.mubr.msk.bf16.gmra.mxu0 %vm627_vm2, %v2011_v39  ;;  %1934 = vmatmul.mubr.msk.bf16.gmra.mxu1 %vm627_vm2, %v2012_v40 }
  0x55   : > { %1873 = vmatprep.mubr.msk.bf16.mxu0 %vm627_vm2, %v2013_v41  ;;  %1937 = vmatprep.mubr.msk.bf16.mxu1 %vm627_vm2, %v2014_v42 }
  0x5c   : > { %1874 = vmatmul.mubr.msk.bf16.gmra.mxu0 %vm627_vm2, %v2015_v43  ;;  %1938 = vmatmul.mubr.msk.bf16.gmra.mxu1 %vm627_vm2, %v2016_v44 }
  0x5d   : > { %1877 = vmatprep.mubr.msk.bf16.mxu0 %vm627_vm2, %v2017_v45  ;;  %1941 = vmatprep.mubr.msk.bf16.mxu1 %vm627_vm2, %v2018_v46 }
  0x64   : > { %1878 = vmatmul.mubr.msk.bf16.gmra.mxu0 %vm627_vm2, %v2019_v47  ;;  %1942 = vmatmul.mubr.msk.bf16.gmra.mxu1 %vm627_vm2, %v2020_v48 }
  0x65   : > { %1881 = vmatprep.mubr.msk.bf16.mxu0 %vm627_vm2, %v2021_v49  ;;  %1945 = vmatprep.mubr.msk.bf16.mxu1 %vm627_vm2, %v2022_v50 }
  0x6c   : > { %1882 = vmatmul.mubr.msk.bf16.gmra.mxu0 %vm627_vm2, %v2023_v51  ;;  %1946 = vmatmul.mubr.msk.bf16.gmra.mxu1 %vm627_vm2, %v2024_v52 }
  0x6d   : > { %1885 = vmatprep.mubr.msk.bf16.mxu0 %vm627_vm2, %v2025_v53  ;;  %1949 = vmatprep.mubr.msk.bf16.mxu1 %vm627_vm2, %v2026_v54 }
  0x74   : > { %1886 = vmatmul.mubr.msk.bf16.gmra.mxu0 %vm627_vm2, %v2027_v55  ;;  %1950 = vmatmul.mubr.msk.bf16.gmra.mxu1 %vm627_vm2, %v2028_v56 }
  0x75   : > { %1889 = vmatprep.mubr.msk.bf16.mxu0 %vm627_vm2, %v2029_v57  ;;  %1953 = vmatprep.mubr.msk.bf16.mxu1 %vm627_vm2, %v2030_v58 }
  0x7c   : > { %1890 = vmatmul.mubr.msk.bf16.gmra.mxu0 %vm627_vm2, %v2031_v59  ;;  %1954 = vmatmul.mubr.msk.bf16.gmra.mxu1 %vm627_vm2, %v2032_v60 }
  0x7d   : > { %1893 = vmatprep.mubr.msk.bf16.mxu0 %vm627_vm2, %v2033_v61  ;;  %1957 = vmatprep.mubr.msk.bf16.mxu1 %vm627_vm2, %v2034_v62 }
  0x84   : > { %1894 = vmatmul.mubr.msk.bf16.gmra.mxu0 %vm627_vm2, %v2035_v63  ;;  %1958 = vmatmul.mubr.msk.bf16.gmra.mxu1 %vm627_vm2, %v2036_v0 }
  0x85   : > { %1897 = vmatprep.mubr.msk.bf16.mxu0 %vm627_vm2, %v2037_v1  ;;  %1961 = vmatprep.mubr.msk.bf16.mxu1 %vm627_vm2, %v2038_v2 }
  0x8c   : > { %1898 = vmatmul.mubr.msk.bf16.gmra.mxu0 %vm627_vm2, %v2039_v3  ;;  %1962 = vmatmul.mubr.msk.bf16.gmra.mxu1 %vm627_vm2, %v2040_v4 }
  0xd4   : > { %v2217_v5 = vpop.f32.mrf.mxu0  ;;  %v2219_v6 = vpop.f32.mrf.mxu1 }
  0xd6   : > { %v2221_v7 = vpop.f32.mrf.mxu0  ;;  %v2223_v8 = vpop.f32.mrf.mxu1 }
  0xd8   : > { %v2225_v9 = vpop.f32.mrf.mxu0  ;;  %v2227_v10 = vpop.f32.mrf.mxu1 }
  0xda   : > { %v2229_v11 = vpop.f32.mrf.mxu0  ;;  %v2231_v12 = vpop.f32.mrf.mxu1 }
  0xdc   : > { %v2233_v13 = vpop.f32.mrf.mxu0  ;;  %v2235_v14 = vpop.f32.mrf.mxu1 }
  0xde   : > { %v2237_v15 = vpop.f32.mrf.mxu0  ;;  %v2239_v16 = vpop.f32.mrf.mxu1 }
  0xe0   : > { %v2241_v17 = vpop.f32.mrf.mxu0  ;;  %v2243_v18 = vpop.f32.mrf.mxu1 }
  0xe2   : > { %v2245_v19 = vpop.f32.mrf.mxu0  ;;  %v2247_v20 = vpop.f32.mrf.mxu1 }
  0xe4   : > { %v2249_v21 = vpop.f32.mrf.mxu0  ;;  %v2251_v22 = vpop.f32.mrf.mxu1 }
  0xe6   : > { %v2253_v23 = vpop.f32.mrf.mxu0  ;;  %v2255_v24 = vpop.f32.mrf.mxu1 }
  0xe8   : > { %v2257_v25 = vpop.f32.mrf.mxu0  ;;  %v2259_v26 = vpop.f32.mrf.mxu1 }
  0xea   : > { %v2261_v27 = vpop.f32.mrf.mxu0  ;;  %v2263_v28 = vpop.f32.mrf.mxu1 }
  0xec   : > { %v2265_v29 = vpop.f32.mrf.mxu0  ;;  %v2267_v30 = vpop.f32.mrf.mxu1 }
  0xee   : > { %v2269_v31 = vpop.f32.mrf.mxu0  ;;  %v2271_v32 = vpop.f32.mrf.mxu1 }
  0xf0   : > { %v2273_v33 = vpop.f32.mrf.mxu0  ;;  %v2275_v34 = vpop.f32.mrf.mxu1 }
  0xf2   : > { %v2277_v35 = vpop.f32.mrf.mxu0  ;;  %v2279_v36 = vpop.f32.mrf.mxu1 }
  0xf4   : > { %v2281_v37 = vpop.f32.mrf.mxu0  ;;  %v2283_v38 = vpop.f32.mrf.mxu1 }
  0xf6   : > { %v2285_v39 = vpop.f32.mrf.mxu0  ;;  %v2287_v40 = vpop.f32.mrf.mxu1 }
  0xf8   : > { %v2289_v41 = vpop.f32.mrf.mxu0  ;;  %v2291_v42 = vpop.f32.mrf.mxu1 }
  0xfa   : > { %v2293_v43 = vpop.f32.mrf.mxu0  ;;  %v2295_v44 = vpop.f32.mrf.mxu1 }
  0xfc   : > { %v2297_v45 = vpop.f32.mrf.mxu0  ;;  %v2299_v46 = vpop.f32.mrf.mxu1 }
  0xfe   : > { %v2301_v47 = vpop.f32.mrf.mxu0  ;;  %v2303_v48 = vpop.f32.mrf.mxu1 }
 0x100   : > { %v2305_v49 = vpop.f32.mrf.mxu0  ;;  %v2307_v50 = vpop.f32.mrf.mxu1 }
 0x102   : > { %v2309_v51 = vpop.f32.mrf.mxu0  ;;  %v2311_v52 = vpop.f32.mrf.mxu1 }
 0x104   : > { %v2313_v53 = vpop.f32.mrf.mxu0  ;;  %v2315_v54 = vpop.f32.mrf.mxu1 }
 0x106   : > { %v2317_v55 = vpop.f32.mrf.mxu0  ;;  %v2319_v56 = vpop.f32.mrf.mxu1 }
 0x107   : > { %2523 = vst [vmem:[#allocation2_spill] sm:$0xff] %v2319_v56 }
 0x108   : > { %v2321_v57 = vpop.f32.mrf.mxu0  ;;  %v2323_v58 = vpop.f32.mrf.mxu1 }
 0x109   : > { %2524 = vst [vmem:[#allocation3_spill] sm:$0xff] %v2321_v57  ;;  %2525 = vst [vmem:[#allocation4_spill] sm:$0xff] %v2323_v58 }
 0x10a   : > { %v2325_v59 = vpop.f32.mrf.mxu0  ;;  %v2327_v60 = vpop.f32.mrf.mxu1 }
 0x10b   : > { %2526 = vst [vmem:[#allocation5_spill] sm:$0xff] %v2325_v59  ;;  %2527 = vst [vmem:[#allocation6_spill] sm:$0xff] %v2327_v60 }
 0x10c   : > { %v2329_v61 = vpop.f32.mrf.mxu0  ;;  %v2331_v62 = vpop.f32.mrf.mxu1 }
 0x10d   : > { %2528 = vst [vmem:[#allocation7_spill] sm:$0xff] %v2329_v61  ;;  %2529 = vst [vmem:[#allocation8_spill] sm:$0xff] %v2331_v62 }
 0x10e   : > { %v2333_v63 = vpop.f32.mrf.mxu0  ;;  %v2335_v0 = vpop.f32.mrf.mxu1 }
 0x10f   : > { %2530 = vst [vmem:[#allocation9_spill] sm:$0xff] %v2333_v63  ;;  %2531 = vst [vmem:[#allocation10_spill] sm:$0xff] %v2335_v0  ;;  %v2350_v63 = vld [vmem:[%s2521_s2] ss:$0 sm:$0xff] }
 0x110   : > { %v2337_v1 = vpop.f32.mrf.mxu0  ;;  %v2339_v2 = vpop.f32.mrf.mxu1 }
 0x111   : > { %2532 = vst [vmem:[#allocation11_spill] sm:$0xff] %v2337_v1  ;;  %2533 = vst [vmem:[#allocation12_spill] sm:$0xff] %v2339_v2 }
 0x112   : > { %v2341_v3 = vpop.f32.mrf.mxu0  ;;  %v2343_v4 = vpop.f32.mrf.mxu1 }
 0x113   : > { %2534 = vst [vmem:[#allocation13_spill] sm:$0xff] %v2341_v3  ;;  %2535 = vst [vmem:[#allocation14_spill] sm:$0xff] %v2343_v4 }
 0x114   : > { %v1871_v59 = vpop.f32.mrf.mxu0  ;;  %v1935_v58 = vpop.f32.mrf.mxu1 }
 0x115   : > { %v1374_v60 = vmax.f32 %v2217_v5, %v1871_v59  ;;  %v1406_v61 = vmax.f32 %v2219_v6, %v1935_v58 }
 0x116   : > { %v989_v57 = vpop.f32.mrf.mxu0  ;;  %v1245_v0 = vpop.f32.mrf.mxu1 }
 0x117   : > { %v1372_v1 = vmax.f32 %v2221_v7, %v989_v57  ;;  %v1438_v2 = vmax.f32 %v1374_v60, %v1406_v61  ;;  %v1404_v3 = vmax.f32 %v2223_v8, %v1245_v0 }
 0x118   : > { %v1872_v4 = vpop.f32.mrf.mxu0  ;;  %v1936_v5 = vpop.f32.mrf.mxu1 }
 0x119   : > { %v1375_v62 = vmax.f32 %v2225_v9, %v1872_v4  ;;  %v1477_v59 = vadd.f32 %v2350_v63, %v1438_v2  ;;  %v1436_v6 = vmax.f32 %v1372_v1, %v1404_v3  ;;  %v1407_v58 = vmax.f32 %v2227_v10, %v1936_v5 }
 0x11a   : > { %v992_v56 = vpop.f32.mrf.mxu0  ;;  %v1248_v8 = vpop.f32.mrf.mxu1 }
 0x11b   : > { %v1373_v7 = vmax.f32 %v2229_v11, %v992_v56  ;;  %v1509_v57 = vmax.f32 %v1477_v59, 0.0  ;;  %v1475_v9 = vadd.f32 %v2350_v63, %v1436_v6  ;;  %v1439_v60 = vmax.f32 %v1375_v62, %v1407_v58 }
 0x11c   : > { %v1405_v61 = vmax.f32 %v2231_v12, %v1248_v8  ;;  %v1875_v0 = vpop.f32.mrf.mxu0  ;;  %v1939_v1 = vpop.f32.mrf.mxu1 }
 0x11d   : > { %v1378_v10 = vmax.f32 %v2233_v13, %v1875_v0  ;;  %1542 = vst.msk [vmem:[%s2361_s25 + $0x10] sm:$0xff] %vm1539_vm3, %v1509_v57  ;;  %v1507_v2 = vmax.f32 %v1475_v9, 0.0  ;;  %v1478_v3 = vadd.f32 %v2350_v63, %v1439_v60  ;;  %v1410_v11 = vmax.f32 %v2235_v14, %v1939_v1 }
 0x11e   : > { %v1437_v4 = vmax.f32 %v1373_v7, %v1405_v61  ;;  %v1005_v56 = vpop.f32.mrf.mxu0  ;;  %v1261_v59 = vpop.f32.mrf.mxu1 }
 0x11f   : > { %v1376_v5 = vmax.f32 %v2237_v15, %v1005_v56  ;;  %1540 = vst.msk [vmem:[%s2361_s25] sm:$0xff] %vm1539_vm3, %v1507_v2  ;;  %v1510_v12 = vmax.f32 %v1478_v3, 0.0  ;;  %v1442_v62 = vmax.f32 %v1378_v10, %v1410_v11  ;;  %v1408_v6 = vmax.f32 %v2239_v16, %v1261_v59 }
 0x120   : > { %v1476_v13 = vadd.f32 %v2350_v63, %v1437_v4  ;;  %v1876_v58 = vpop.f32.mrf.mxu0  ;;  %v1940_v57 = vpop.f32.mrf.mxu1 }
 0x121   : > { %v1379_v8 = vmax.f32 %v2241_v17, %v1876_v58  ;;  %1543 = vst.msk [vmem:[%s2361_s25 + $0x18] sm:$0xff] %vm1539_vm3, %v1510_v12  ;;  %v1481_v15 = vadd.f32 %v2350_v63, %v1442_v62  ;;  %v1440_v7 = vmax.f32 %v1376_v5, %v1408_v6  ;;  %v1411_v9 = vmax.f32 %v2243_v18, %v1940_v57 }
 0x122   : > { %v1508_v14 = vmax.f32 %v1476_v13, 0.0  ;;  %v1008_v60 = vpop.f32.mrf.mxu0  ;;  %v1264_v0 = vpop.f32.mrf.mxu1 }
 0x123   : > { %v1377_v61 = vmax.f32 %v2245_v19, %v1008_v60  ;;  %v1513_v16 = vmax.f32 %v1481_v15, 0.0  ;;  %v1479_v17 = vadd.f32 %v2350_v63, %v1440_v7  ;;  %v1443_v10 = vmax.f32 %v1379_v8, %v1411_v9 }
 0x124   : > { %1541 = vst.msk [vmem:[%s2361_s25 + $0x8] sm:$0xff] %vm1539_vm3, %v1508_v14  ;;  %v1409_v1 = vmax.f32 %v2247_v20, %v1264_v0  ;;  %v1879_v2 = vpop.f32.mrf.mxu0  ;;  %v1943_v4 = vpop.f32.mrf.mxu1 }
 0x125   : > { %v1382_v3 = vmax.f32 %v2249_v21, %v1879_v2  ;;  %1546 = vst.msk [vmem:[%s2361_s25 + $0x30] sm:$0xff] %vm1539_vm3, %v1513_v16  ;;  %v1511_v18 = vmax.f32 %v1479_v17, 0.0  ;;  %v1482_v19 = vadd.f32 %v2350_v63, %v1443_v10  ;;  %v1414_v56 = vmax.f32 %v2251_v22, %v1943_v4 }
 0x126   : > { %v1441_v11 = vmax.f32 %v1377_v61, %v1409_v1  ;;  %v1021_v5 = vpop.f32.mrf.mxu0  ;;  %v1277_v12 = vpop.f32.mrf.mxu1 }
 0x127   : > { %v1380_v59 = vmax.f32 %v2253_v23, %v1021_v5  ;;  %1544 = vst.msk [vmem:[%s2361_s25 + $0x20] sm:$0xff] %vm1539_vm3, %v1511_v18  ;;  %v1514_v20 = vmax.f32 %v1482_v19, 0.0  ;;  %v1446_v13 = vmax.f32 %v1382_v3, %v1414_v56  ;;  %v1412_v62 = vmax.f32 %v2255_v24, %v1277_v12 }
 0x128   : > { %v1480_v21 = vadd.f32 %v2350_v63, %v1441_v11  ;;  %v1880_v6 = vpop.f32.mrf.mxu0  ;;  %v1944_v8 = vpop.f32.mrf.mxu1 }
 0x129   : > { %v1383_v58 = vmax.f32 %v2257_v25, %v1880_v6  ;;  %1547 = vst.msk [vmem:[%s2361_s25 + $0x38] sm:$0xff] %vm1539_vm3, %v1514_v20  ;;  %v1485_v23 = vadd.f32 %v2350_v63, %v1446_v13  ;;  %v1444_v57 = vmax.f32 %v1380_v59, %v1412_v62  ;;  %v1415_v14 = vmax.f32 %v2259_v26, %v1944_v8 }
 0x12a   : > { %v1512_v22 = vmax.f32 %v1480_v21, 0.0  ;;  %v1024_v15 = vpop.f32.mrf.mxu0  ;;  %v1280_v9 = vpop.f32.mrf.mxu1 }
 0x12b   : > { %v1381_v7 = vmax.f32 %v2261_v27, %v1024_v15  ;;  %v1517_v24 = vmax.f32 %v1485_v23, 0.0  ;;  %v1483_v25 = vadd.f32 %v2350_v63, %v1444_v57  ;;  %v1447_v60 = vmax.f32 %v1383_v58, %v1415_v14 }
 0x12c   : > { %1545 = vst.msk [vmem:[%s2361_s25 + $0x28] sm:$0xff] %vm1539_vm3, %v1512_v22  ;;  %v1413_v61 = vmax.f32 %v2263_v28, %v1280_v9  ;;  %v1883_v0 = vpop.f32.mrf.mxu0  ;;  %v1947_v17 = vpop.f32.mrf.mxu1 }
 0x12d   : > { %v1386_v16 = vmax.f32 %v2265_v29, %v1883_v0  ;;  %1550 = vst.msk [vmem:[%s2361_s25 + $0x50] sm:$0xff] %vm1539_vm3, %v1517_v24  ;;  %v1515_v26 = vmax.f32 %v1483_v25, 0.0  ;;  %v1486_v27 = vadd.f32 %v2350_v63, %v1447_v60  ;;  %v1418_v1 = vmax.f32 %v2267_v30, %v1947_v17 }
 0x12e   : > { %v1445_v10 = vmax.f32 %v1381_v7, %v1413_v61  ;;  %v1037_v2 = vpop.f32.mrf.mxu0  ;;  %v1293_v4 = vpop.f32.mrf.mxu1 }
 0x12f   : > { %v1384_v3 = vmax.f32 %v2269_v31, %v1037_v2  ;;  %1548 = vst.msk [vmem:[%s2361_s25 + $0x40] sm:$0xff] %vm1539_vm3, %v1515_v26  ;;  %v1518_v28 = vmax.f32 %v1486_v27, 0.0  ;;  %v1450_v18 = vmax.f32 %v1386_v16, %v1418_v1  ;;  %v1416_v19 = vmax.f32 %v2271_v32, %v1293_v4 }
 0x130   : > { %v1484_v29 = vadd.f32 %v2350_v63, %v1445_v10  ;;  %v1884_v11 = vpop.f32.mrf.mxu0  ;;  %v1948_v5 = vpop.f32.mrf.mxu1 }
 0x131   : > { %v1387_v56 = vmax.f32 %v2273_v33, %v1884_v11  ;;  %1551 = vst.msk [vmem:[%s2361_s25 + $0x58] sm:$0xff] %vm1539_vm3, %v1518_v28  ;;  %v1489_v31 = vadd.f32 %v2350_v63, %v1450_v18  ;;  %v1448_v59 = vmax.f32 %v1384_v3, %v1416_v19  ;;  %v1419_v12 = vmax.f32 %v2275_v34, %v1948_v5 }
 0x132   : > { %v1516_v30 = vmax.f32 %v1484_v29, 0.0  ;;  %v1040_v20 = vpop.f32.mrf.mxu0  ;;  %v1296_v13 = vpop.f32.mrf.mxu1 }
 0x133   : > { %v1385_v21 = vmax.f32 %v2277_v35, %v1040_v20  ;;  %v1521_v32 = vmax.f32 %v1489_v31, 0.0  ;;  %v1487_v33 = vadd.f32 %v2350_v63, %v1448_v59  ;;  %v1451_v62 = vmax.f32 %v1387_v56, %v1419_v12 }
 0x134   : > { %1549 = vst.msk [vmem:[%s2361_s25 + $0x48] sm:$0xff] %vm1539_vm3, %v1516_v30  ;;  %v1417_v6 = vmax.f32 %v2279_v36, %v1296_v13  ;;  %v1887_v58 = vpop.f32.mrf.mxu0  ;;  %v1951_v22 = vpop.f32.mrf.mxu1 }
 0x135   : > { %v1390_v8 = vmax.f32 %v2281_v37, %v1887_v58  ;;  %1554 = vst.msk [vmem:[%s2361_s25 + $0x70] sm:$0xff] %vm1539_vm3, %v1521_v32  ;;  %v1519_v34 = vmax.f32 %v1487_v33, 0.0  ;;  %v1490_v35 = vadd.f32 %v2350_v63, %v1451_v62  ;;  %v1422_v57 = vmax.f32 %v2283_v38, %v1951_v22 }
 0x136   : > { %v1449_v23 = vmax.f32 %v1385_v21, %v1417_v6  ;;  %v1053_v14 = vpop.f32.mrf.mxu0  ;;  %v1309_v7 = vpop.f32.mrf.mxu1 }
 0x137   : > { %v1388_v15 = vmax.f32 %v2285_v39, %v1053_v14  ;;  %1552 = vst.msk [vmem:[%s2361_s25 + $0x60] sm:$0xff] %vm1539_vm3, %v1519_v34  ;;  %v1522_v36 = vmax.f32 %v1490_v35, 0.0  ;;  %v1454_v9 = vmax.f32 %v1390_v8, %v1422_v57  ;;  %v1420_v24 = vmax.f32 %v2287_v40, %v1309_v7 }
 0x138   : > { %v1488_v37 = vadd.f32 %v2350_v63, %v1449_v23  ;;  %v1888_v25 = vpop.f32.mrf.mxu0  ;;  %v1952_v61 = vpop.f32.mrf.mxu1 }
 0x139   : > { %v1391_v60 = vmax.f32 %v2289_v41, %v1888_v25  ;;  %1555 = vst.msk [vmem:[%s2361_s25 + $0x78] sm:$0xff] %vm1539_vm3, %v1522_v36  ;;  %v1493_v39 = vadd.f32 %v2350_v63, %v1454_v9  ;;  %v1452_v0 = vmax.f32 %v1388_v15, %v1420_v24  ;;  %v1423_v16 = vmax.f32 %v2291_v42, %v1952_v61  ;;  %v2536_v15 = vld [vmem:[#allocation2_spill] sm:$0xff] }
 0x13a   : > { %v1520_v38 = vmax.f32 %v1488_v37, 0.0  ;;  %v1056_v17 = vpop.f32.mrf.mxu0  ;;  %v1312_v27 = vpop.f32.mrf.mxu1  ;;  %v2537_v37 = vld [vmem:[#allocation3_spill] sm:$0xff] }
 0x13b   : > { %v1389_v26 = vmax.f32 %v2293_v43, %v1056_v17  ;;  %v1525_v40 = vmax.f32 %v1493_v39, 0.0  ;;  %v1491_v41 = vadd.f32 %v2350_v63, %v1452_v0  ;;  %v1455_v10 = vmax.f32 %v1391_v60, %v1423_v16  ;;  %v2538_v60 = vld [vmem:[#allocation4_spill] sm:$0xff]  ;;  %v2539_v39 = vld [vmem:[#allocation5_spill] sm:$0xff] }
 0x13c   : > { %1553 = vst.msk [vmem:[%s2361_s25 + $0x68] sm:$0xff] %vm1539_vm3, %v1520_v38  ;;  %v1421_v1 = vmax.f32 %v2295_v44, %v1312_v27  ;;  %v1891_v2 = vpop.f32.mrf.mxu0  ;;  %v1955_v4 = vpop.f32.mrf.mxu1 }
 0x13d   : > { %v1394_v3 = vmax.f32 %v2297_v45, %v1891_v2  ;;  %1558 = vst.msk [vmem:[%s2361_s25 + $0x90] sm:$0xff] %vm1539_vm3, %v1525_v40  ;;  %v1523_v42 = vmax.f32 %v1491_v41, 0.0  ;;  %v1494_v43 = vadd.f32 %v2350_v63, %v1455_v10  ;;  %v1426_v29 = vmax.f32 %v2299_v46, %v1955_v4  ;;  %v2540_v40 = vld [vmem:[#allocation6_spill] sm:$0xff] }
 0x13e   : > { %v1453_v28 = vmax.f32 %v1389_v26, %v1421_v1  ;;  %v1069_v18 = vpop.f32.mrf.mxu0  ;;  %v1325_v11 = vpop.f32.mrf.mxu1  ;;  %v2541_v1 = vld [vmem:[#allocation7_spill] sm:$0xff] }
 0x13f   : > { %v1392_v19 = vmax.f32 %v2301_v47, %v1069_v18  ;;  %1556 = vst.msk [vmem:[%s2361_s25 + $0x80] sm:$0xff] %vm1539_vm3, %v1523_v42  ;;  %v1526_v44 = vmax.f32 %v1494_v43, 0.0  ;;  %v1458_v56 = vmax.f32 %v1394_v3, %v1426_v29  ;;  %v1424_v5 = vmax.f32 %v2303_v48, %v1325_v11 }
 0x140   : > { %v1492_v45 = vadd.f32 %v2350_v63, %v1453_v28  ;;  %v1892_v30 = vpop.f32.mrf.mxu0  ;;  %v1956_v59 = vpop.f32.mrf.mxu1  ;;  %v2542_v28 = vld [vmem:[#allocation8_spill] sm:$0xff] }
 0x141   : > { %v1395_v31 = vmax.f32 %v2305_v49, %v1892_v30  ;;  %1559 = vst.msk [vmem:[%s2361_s25 + $0x98] sm:$0xff] %vm1539_vm3, %v1526_v44  ;;  %v1497_v47 = vadd.f32 %v2350_v63, %v1458_v56  ;;  %v1456_v12 = vmax.f32 %v1392_v19, %v1424_v5  ;;  %v1427_v20 = vmax.f32 %v2307_v50, %v1956_v59  ;;  %v2543_v19 = vld [vmem:[#allocation9_spill] sm:$0xff]  ;;  %v2544_v30 = vld [vmem:[#allocation10_spill] sm:$0xff] }
 0x142   : > { %v1524_v46 = vmax.f32 %v1492_v45, 0.0  ;;  %v1072_v21 = vpop.f32.mrf.mxu0  ;;  %v1328_v32 = vpop.f32.mrf.mxu1 }
 0x143   : > { %v1393_v13 = vmax.f32 %v2309_v51, %v1072_v21  ;;  %v1529_v48 = vmax.f32 %v1497_v47, 0.0  ;;  %v1495_v49 = vadd.f32 %v2350_v63, %v1456_v12  ;;  %v1459_v33 = vmax.f32 %v1395_v31, %v1427_v20 }
 0x144   : > { %1557 = vst.msk [vmem:[%s2361_s25 + $0x88] sm:$0xff] %vm1539_vm3, %v1524_v46  ;;  %v1425_v62 = vmax.f32 %v2311_v52, %v1328_v32  ;;  %v1895_v6 = vpop.f32.mrf.mxu0  ;;  %v1959_v8 = vpop.f32.mrf.mxu1  ;;  %v2545_v46 = vld [vmem:[#allocation11_spill] sm:$0xff]  ;;  %v2546_v32 = vld [vmem:[#allocation12_spill] sm:$0xff] }
 0x145   : > { %v1398_v58 = vmax.f32 %v2313_v53, %v1895_v6  ;;  %1562 = vst.msk [vmem:[%s2361_s25 + $0xb0] sm:$0xff] %vm1539_vm3, %v1529_v48  ;;  %v1527_v50 = vmax.f32 %v1495_v49, 0.0  ;;  %v1498_v51 = vadd.f32 %v2350_v63, %v1459_v33  ;;  %v1430_v34 = vmax.f32 %v2315_v54, %v1959_v8  ;;  %v2547_v33 = vld [vmem:[#allocation13_spill] sm:$0xff] }
 0x146   : > { %v1457_v22 = vmax.f32 %v1393_v13, %v1425_v62  ;;  %v1085_v35 = vpop.f32.mrf.mxu0  ;;  %v1341_v57 = vpop.f32.mrf.mxu1 }
 0x147   : > { %v1396_v23 = vmax.f32 %v2317_v55, %v1085_v35  ;;  %1560 = vst.msk [vmem:[%s2361_s25 + $0xa0] sm:$0xff] %vm1539_vm3, %v1527_v50  ;;  %v1530_v52 = vmax.f32 %v1498_v51, 0.0  ;;  %v1462_v14 = vmax.f32 %v1398_v58, %v1430_v34  ;;  %v1428_v7 = vmax.f32 %v2536_v15, %v1341_v57  ;;  %v2548_v51 = vld [vmem:[#allocation14_spill] sm:$0xff] }
 0x148   : > { %v1496_v53 = vadd.f32 %v2350_v63, %v1457_v22  ;;  %v1896_v36 = vpop.f32.mrf.mxu0  ;;  %v1960_v24 = vpop.f32.mrf.mxu1 }
 0x149   : > { %v1399_v9 = vmax.f32 %v2537_v37, %v1896_v36  ;;  %1563 = vst.msk [vmem:[%s2361_s25 + $0xb8] sm:$0xff] %vm1539_vm3, %v1530_v52  ;;  %v1501_v55 = vadd.f32 %v2350_v63, %v1462_v14  ;;  %v1460_v25 = vmax.f32 %v1396_v23, %v1428_v7  ;;  %v1431_v61 = vmax.f32 %v2538_v60, %v1960_v24 }
 0x14a   : > { %v1528_v54 = vmax.f32 %v1496_v53, 0.0  ;;  %v1088_v38 = vpop.f32.mrf.mxu0  ;;  %v1344_v16 = vpop.f32.mrf.mxu1 }
 0x14b   : > { %v1397_v0 = vmax.f32 %v2539_v39, %v1088_v38  ;;  %v1533_v17 = vmax.f32 %v1501_v55, 0.0  ;;  %v1499_v26 = vadd.f32 %v2350_v63, %v1460_v25  ;;  %v1463_v27 = vmax.f32 %v1399_v9, %v1431_v61 }
 0x14c   : > { %1561 = vst.msk [vmem:[%s2361_s25 + $0xa8] sm:$0xff] %vm1539_vm3, %v1528_v54  ;;  %v1429_v41 = vmax.f32 %v2540_v40, %v1344_v16  ;;  %v1899_v10 = vpop.f32.mrf.mxu0  ;;  %v1963_v3 = vpop.f32.mrf.mxu1 }
 0x14d   : > { %v1402_v2 = vmax.f32 %v2541_v1, %v1899_v10  ;;  %1566 = vst.msk [vmem:[%s2361_s25 + $0xd0] sm:$0xff] %vm1539_vm3, %v1533_v17  ;;  %v1531_v4 = vmax.f32 %v1499_v26, 0.0  ;;  %v1502_v42 = vadd.f32 %v2350_v63, %v1463_v27  ;;  %v1434_v29 = vmax.f32 %v2542_v28, %v1963_v3 }
 0x14e   : > { %v1461_v43 = vmax.f32 %v1397_v0, %v1429_v41  ;;  %v1101_v18 = vpop.f32.mrf.mxu0  ;;  %v1357_v44 = vpop.f32.mrf.mxu1 }
 0x14f   : > { %v1400_v11 = vmax.f32 %v2543_v19, %v1101_v18  ;;  %1564 = vst.msk [vmem:[%s2361_s25 + $0xc0] sm:$0xff] %vm1539_vm3, %v1531_v4  ;;  %v1534_v45 = vmax.f32 %v1502_v42, 0.0  ;;  %v1466_v5 = vmax.f32 %v1402_v2, %v1434_v29  ;;  %v1432_v31 = vmax.f32 %v2544_v30, %v1357_v44 }
 0x150   : > { %v1500_v56 = vadd.f32 %v2350_v63, %v1461_v43  ;;  %v1900_v59 = vpop.f32.mrf.mxu0  ;;  %v1964_v12 = vpop.f32.mrf.mxu1 }
 0x151   : > { %v1403_v47 = vmax.f32 %v2545_v46, %v1900_v59  ;;  %1567 = vst.msk [vmem:[%s2361_s25 + $0xd8] sm:$0xff] %vm1539_vm3, %v1534_v45  ;;  %v1505_v21 = vadd.f32 %v2350_v63, %v1466_v5  ;;  %v1464_v13 = vmax.f32 %v1400_v11, %v1432_v31  ;;  %v1435_v48 = vmax.f32 %v2546_v32, %v1964_v12 }
 0x152   : > { %v1532_v20 = vmax.f32 %v1500_v56, 0.0  ;;  %v1104_v49 = vpop.f32.mrf.mxu0  ;;  %v1360_v6 = vpop.f32.mrf.mxu1 }
 0x153   : > { %v1401_v62 = vmax.f32 %v2547_v33, %v1104_v49  ;;  %v1537_v58 = vmax.f32 %v1505_v21, 0.0  ;;  %v1503_v8 = vadd.f32 %v2350_v63, %v1464_v13  ;;  %v1467_v50 = vmax.f32 %v1403_v47, %v1435_v48 }
 0x154   : > { %1565 = vst.msk [vmem:[%s2361_s25 + $0xc8] sm:$0xff] %vm1539_vm3, %v1532_v20  ;;  %v1433_v22 = vmax.f32 %v2548_v51, %v1360_v6 }
 0x155   : > { %1570 = vst.msk [vmem:[%s2361_s25 + $0xf0] sm:$0xff] %vm1539_vm3, %v1537_v58  ;;  %v1535_v34 = vmax.f32 %v1503_v8, 0.0  ;;  %v1506_v35 = vadd.f32 %v2350_v63, %v1467_v50 }
 0x156   : > { %v1465_v23 = vmax.f32 %v1401_v62, %v1433_v22 }
 0x157   : > { %1568 = vst.msk [vmem:[%s2361_s25 + $0xe0] sm:$0xff] %vm1539_vm3, %v1535_v34  ;;  %v1538_v57 = vmax.f32 %v1506_v35, 0.0 }
 0x158   : > { %v1504_v52 = vadd.f32 %v2350_v63, %v1465_v23 }
 0x159   : > { %1571 = vst.msk [vmem:[%s2361_s25 + $0xf8] sm:$0xff] %vm1539_vm3, %v1538_v57 }
 0x15a   : > { %v1536_v53 = vmax.f32 %v1504_v52, 0.0 }
 0x15c   : > { %1569 = vst.msk [vmem:[%s2361_s25 + $0xe8] sm:$0xff] %vm1539_vm3, %v1536_v53 }
 0x15d PF: > { %s13_s12 = sadd.s32 1, %s2047_s12  }
 0x15e   : > { %p10_p4 = scmp.ge.s32.totalorder %s13_s12, 4  }
 0x160   :  { %12 = sbr.rel (!%p10_p4) target bundleno = 1 (0x1), region = 62 }

// kernel: mnist_classifier_forward.4
= control target key start
LH: loop header
LB: loop body
LE: loop exit
PB: predicated region body
PF: predicated region fallthrough
CT: control target
= control target key end

     0   :  { %v1666_v0 = vmov 0   ;;  %vm653_vm0 = vcmask 261120   ;;  %vm1286_vm1 = vcmask 523264   ;;  %s2277_s1 = inlined_call_operand.vmem [shape: bf16[288,64], index: 1, kind: input, shape index: {}]   ;;  %s2278_s0 = inlined_call_operand.vmem [shape: bf16[1,416,288], index: 0, kind: input, shape index: {}]   ;;  %s2279_s2 = inlined_call_operand.vmem [shape: f32[1,64], index: 2, kind: input, shape index: {}]   ;;  %s2280_s3 = inlined_call_operand.vmem [shape: f32[1,104,64], index: 3, kind: output, shape index: {}]  }
   0x1   :  { %732 = vmatprep.subr.bf16.mxu0 %v1666_v0  ;;  %1511 = vmatprep.subr.bf16.mxu1 %v1666_v0  ;;  %v1544_v1 = vld [vmem:[%s2277_s1 + $0x38] sm:$0xff]   ;;  %v1545_v2 = vld [vmem:[%s2277_s1 + $0x30] sm:$0xff]   ;;  %v1546_v3 = vld [vmem:[%s2277_s1 + $0x28] sm:$0xff]  }
   0x2   :  { %733 = vmatpush1.bf16.msra.mxu0 %v1544_v1  ;;  %1527 = vmatpush1.bf16.msra.mxu1 %v1544_v1  ;;  %v1547_v4 = vld [vmem:[%s2277_s1 + $0x20] sm:$0xff]   ;;  %v1548_v5 = vld [vmem:[%s2277_s1 + $0x18] sm:$0xff]   ;;  %v1549_v7 = vld [vmem:[%s2277_s1 + $0x10] sm:$0xff]  }
   0x3   :  { %734 = vmatprep.subr.bf16.mxu0 %v1666_v0  ;;  %1512 = vmatprep.subr.bf16.mxu1 %v1666_v0  ;;  %v1562_v6 = vld [vmem:[%s2278_s0 + $0x4] ss:$12 sps:$4 sm:$0xff]   ;;  %v1550_v9 = vld [vmem:[%s2277_s1 + $0x8] sm:$0xff]   ;;  %v1552_v11 = vld [vmem:[%s2277_s1 + $0x78] sm:$0xff]  }
   0x4   :  { %v1565_v8 = vld [vmem:[%s2278_s0 + $0x1e4] ss:$12 sps:$4 sm:$0xff]   ;;  %764 = vmatprep.mubr.bf16.mxu0 %v1562_v6  ;;  %v1554_v13 = vld [vmem:[%s2277_s1 + $0x68] sm:$0xff]   ;;  %v1556_v15 = vld [vmem:[%s2277_s1 + $0x58] sm:$0xff]  }
   0x5   :  { %924 = vmatprep.mubr.bf16.mxu1 %v1565_v8  ;;  %v1551_v10 = vld [vmem:[%s2277_s1] sm:$0xff]   ;;  %v1553_v12 = vld [vmem:[%s2277_s1 + $0x70] sm:$0xff]   ;;  %v1558_v17 = vld [vmem:[%s2277_s1 + $0x48] sm:$0xff]  }
   0x6   :  { %735 = vmatpush1.bf16.msra.mxu0 %v1545_v2  ;;  %1528 = vmatpush1.bf16.msra.mxu1 %v1545_v2  ;;  %v1555_v14 = vld [vmem:[%s2277_s1 + $0x60] sm:$0xff]   ;;  %v1557_v16 = vld [vmem:[%s2277_s1 + $0x50] sm:$0xff]   ;;  %v1566_v19 = vld [vmem:[%s2277_s1 + $0x88] sm:$0xff]  }
   0x7   :  { %736 = vmatprep.subr.bf16.mxu0 %v1666_v0  ;;  %1513 = vmatprep.subr.bf16.mxu1 %v1666_v0  ;;  %v1559_v18 = vld [vmem:[%s2277_s1 + $0x40] sm:$0xff]   ;;  %v1567_v22 = vld [vmem:[%s2278_s0 + $0x1c] ss:$12 sps:$4 sm:$0xff]   ;;  %v1579_v31 = vld [vmem:[%s2278_s0 + $0x4c] ss:$12 sps:$4 sm:$0xff]  }
   0x8   :  { %v1560_v20 = vld [vmem:[%s2278_s0] ss:$12 sps:$4 sm:$0xff]   ;;  %v1569_v23 = vld [vmem:[%s2278_s0 + $0x1fc] ss:$12 sps:$4 sm:$0xff]   ;;  %v1571_v25 = vld [vmem:[%s2278_s0 + $0x18] ss:$12 sps:$4 sm:$0xff]  }
   0x9   :  { %v1563_v21 = vld [vmem:[%s2278_s0 + $0x1e0] ss:$12 sps:$4 sm:$0xff]   ;;  %v1572_v26 = vld [vmem:[%s2278_s0 + $0x1f8] ss:$12 sps:$4 sm:$0xff]   ;;  %v1577_v29 = vld [vmem:[%s2278_s0 + $0x30] ss:$12 sps:$4 sm:$0xff]  }
   0xa   :  { %737 = vmatpush1.bf16.msra.mxu0 %v1546_v3  ;;  %1529 = vmatpush1.bf16.msra.mxu1 %v1546_v3  ;;  %v1585_v24 = vld [vmem:[%s2277_s1 + $0x80] sm:$0xff]   ;;  %v1578_v30 = vld [vmem:[%s2278_s0 + $0x210] ss:$12 sps:$4 sm:$0xff]   ;;  %v1581_v32 = vld [vmem:[%s2278_s0 + $0x22c] ss:$12 sps:$4 sm:$0xff]  }
   0xb   :  { %738 = vmatprep.subr.bf16.mxu0 %v1666_v0  ;;  %1514 = vmatprep.subr.bf16.mxu1 %v1666_v0  ;;  %v1573_v27 = vld [vmem:[%s2278_s0 + $0x34] ss:$12 sps:$4 sm:$0xff]   ;;  %v1586_v35 = vld [vmem:[%s2278_s0 + $0x64] ss:$12 sps:$4 sm:$0xff]   ;;  %v1592_v39 = vld [vmem:[%s2278_s0 + $0x7c] ss:$12 sps:$4 sm:$0xff]  }
   0xc   :  { %v1575_v28 = vld [vmem:[%s2278_s0 + $0x214] ss:$12 sps:$4 sm:$0xff]   ;;  %v1588_v36 = vld [vmem:[%s2278_s0 + $0x244] ss:$12 sps:$4 sm:$0xff]   ;;  %v1594_v40 = vld [vmem:[%s2278_s0 + $0x25c] ss:$12 sps:$4 sm:$0xff]  }
   0xd   :  { %v1583_v33 = vld [vmem:[%s2278_s0 + $0x48] ss:$12 sps:$4 sm:$0xff]   ;;  %v1590_v37 = vld [vmem:[%s2278_s0 + $0x60] ss:$12 sps:$4 sm:$0xff]   ;;  %v1596_v41 = vld [vmem:[%s2278_s0 + $0x78] ss:$12 sps:$4 sm:$0xff]  }
   0xe   :  { %739 = vmatpush1.bf16.msra.mxu0 %v1547_v4  ;;  %1530 = vmatpush1.bf16.msra.mxu1 %v1547_v4  ;;  %v1584_v34 = vld [vmem:[%s2278_s0 + $0x228] ss:$12 sps:$4 sm:$0xff]   ;;  %v1591_v38 = vld [vmem:[%s2278_s0 + $0x240] ss:$12 sps:$4 sm:$0xff]   ;;  %v1597_v42 = vld [vmem:[%s2278_s0 + $0x258] ss:$12 sps:$4 sm:$0xff]  }
   0xf   :  { %740 = vmatprep.subr.bf16.mxu0 %v1666_v0  ;;  %1515 = vmatprep.subr.bf16.mxu1 %v1666_v0  ;;  %v1598_v43 = vld [vmem:[%s2278_s0 + $0x94] ss:$12 sps:$4 sm:$0xff]   ;;  %v1601_v45 = vld [vmem:[%s2278_s0 + $0x90] ss:$12 sps:$4 sm:$0xff]   ;;  %v1603_v47 = vld [vmem:[%s2278_s0 + $0xac] ss:$12 sps:$4 sm:$0xff]  }
  0x10   :  { %v1600_v44 = vld [vmem:[%s2278_s0 + $0x8] ss:$12 sps:$4 sm:$0xff]   ;;  %v1602_v46 = vld [vmem:[%s2278_s0 + $0x20] ss:$12 sps:$4 sm:$0xff]   ;;  %v1605_v48 = vld [vmem:[%s2278_s0 + $0x38] ss:$12 sps:$4 sm:$0xff]  }
  0x11   :  { %v1606_v49 = vld [vmem:[%s2278_s0 + $0xa8] ss:$12 sps:$4 sm:$0xff]   ;;  %v1607_v50 = vld [vmem:[%s2278_s0 + $0x50] ss:$12 sps:$4 sm:$0xff]   ;;  %v1611_v53 = vld [vmem:[%s2278_s0 + $0xc0] ss:$12 sps:$4 sm:$0xff]  }
  0x12   :  { %741 = vmatpush1.bf16.msra.mxu0 %v1548_v5  ;;  %1531 = vmatpush1.bf16.msra.mxu1 %v1548_v5  ;;  %v1608_v51 = vld [vmem:[%s2278_s0 + $0xc4] ss:$12 sps:$4 sm:$0xff]   ;;  %v1610_v52 = vld [vmem:[%s2278_s0 + $0x68] ss:$12 sps:$4 sm:$0xff]   ;;  %v1612_v54 = vld [vmem:[%s2278_s0 + $0x80] ss:$12 sps:$4 sm:$0xff]  }
  0x13   :  { %742 = vmatprep.subr.bf16.mxu0 %v1666_v0  ;;  %1516 = vmatprep.subr.bf16.mxu1 %v1666_v0  ;;  %v1613_v55 = vld [vmem:[%s2278_s0 + $0xdc] ss:$12 sps:$4 sm:$0xff]   ;;  %v1615_v56 = vld [vmem:[%s2278_s0 + $0x98] ss:$12 sps:$4 sm:$0xff]   ;;  %v1618_v59 = vld [vmem:[%s2278_s0 + $0xf4] ss:$12 sps:$4 sm:$0xff]  }
  0x14   :  { %v1616_v57 = vld [vmem:[%s2278_s0 + $0xd8] ss:$12 sps:$4 sm:$0xff]   ;;  %v1617_v58 = vld [vmem:[%s2278_s0 + $0xb0] ss:$12 sps:$4 sm:$0xff]   ;;  %v1620_v60 = vld [vmem:[%s2278_s0 + $0xc8] ss:$12 sps:$4 sm:$0xff]  }
  0x15   :  { %v1621_v61 = vld [vmem:[%s2278_s0 + $0xf0] ss:$12 sps:$4 sm:$0xff]   ;;  %v1622_v62 = vld [vmem:[%s2278_s0 + $0xe0] ss:$12 sps:$4 sm:$0xff]   ;;  %v1626_v1 = vld [vmem:[%s2278_s0 + $0x108] ss:$12 sps:$4 sm:$0xff]  }
  0x16   :  { %743 = vmatpush1.bf16.msra.mxu0 %v1549_v7  ;;  %1532 = vmatpush1.bf16.msra.mxu1 %v1549_v7  ;;  %v1623_v63 = vld [vmem:[%s2278_s0 + $0x10c] ss:$12 sps:$4 sm:$0xff]   ;;  %v1627_v2 = vld [vmem:[%s2278_s0 + $0x110] ss:$12 sps:$4 sm:$0xff]   ;;  %v1630_v4 = vld [vmem:[%s2278_s0 + $0x128] ss:$12 sps:$4 sm:$0xff]  }
  0x17   :  { %744 = vmatprep.subr.bf16.mxu0 %v1666_v0  ;;  %1517 = vmatprep.subr.bf16.mxu1 %v1666_v0  ;;  %v1628_v3 = vld [vmem:[%s2278_s0 + $0x124] ss:$12 sps:$4 sm:$0xff]   ;;  %v1631_v5 = vld [vmem:[%s2278_s0 + $0x120] ss:$12 sps:$4 sm:$0xff]   ;;  %v1633_v7 = vld [vmem:[%s2278_s0 + $0x13c] ss:$12 sps:$4 sm:$0xff]  }
  0x18   :  { %v1632_v6 = vld [vmem:[%s2278_s0 + $0x140] ss:$12 sps:$4 sm:$0xff]   ;;  %v1635_v8 = vld [vmem:[%s2278_s0 + $0x158] ss:$12 sps:$4 sm:$0xff]  }
  0x1a   :  { %745 = vmatpush1.bf16.msra.mxu0 %v1550_v9  ;;  %1533 = vmatpush1.bf16.msra.mxu1 %v1550_v9  ;;  %v1636_v9 = vld [vmem:[%s2278_s0 + $0x138] ss:$12 sps:$4 sm:$0xff]  }
  0x1b   :  { %746 = vmatprep.subr.bf16.mxu0 %v1666_v0  ;;  %1518 = vmatprep.subr.bf16.mxu1 %v1666_v0 }
  0x1e   :  { %747 = vmatpush1.bf16.msra.mxu0 %v1551_v10  ;;  %1534 = vmatpush1.bf16.msra.mxu1 %v1551_v10  ;;  %v1637_v10 = vld [vmem:[%s2278_s0 + $0x170] ss:$12 sps:$4 sm:$0xff]  }
  0x1f   :  { %748 = vmatprep.subr.bf16.mxu0 %v1666_v0  ;;  %1519 = vmatprep.subr.bf16.mxu1 %v1666_v0 }
  0x22   :  { %749 = vmatpush2.bf16.msra.mxu0 %v1552_v11  ;;  %1535 = vmatpush2.bf16.msra.mxu1 %v1552_v11  ;;  %v1638_v11 = vld [vmem:[%s2278_s0 + $0x154] ss:$12 sps:$4 sm:$0xff]  }
  0x23   :  { %750 = vmatprep.subr.bf16.mxu0 %v1666_v0  ;;  %1520 = vmatprep.subr.bf16.mxu1 %v1666_v0 }
  0x26   :  { %751 = vmatpush2.bf16.msra.mxu0 %v1553_v12  ;;  %1536 = vmatpush2.bf16.msra.mxu1 %v1553_v12  ;;  %v1640_v12 = vld [vmem:[%s2278_s0 + $0x188] ss:$12 sps:$4 sm:$0xff]  }
  0x27   :  { %752 = vmatprep.subr.bf16.mxu0 %v1666_v0  ;;  %1521 = vmatprep.subr.bf16.mxu1 %v1666_v0 }
  0x2a   :  { %753 = vmatpush2.bf16.msra.mxu0 %v1554_v13  ;;  %1537 = vmatpush2.bf16.msra.mxu1 %v1554_v13  ;;  %v1641_v13 = vld [vmem:[%s2278_s0 + $0x150] ss:$12 sps:$4 sm:$0xff]  }
  0x2b   :  { %754 = vmatprep.subr.bf16.mxu0 %v1666_v0  ;;  %1522 = vmatprep.subr.bf16.mxu1 %v1666_v0 }
  0x2e   :  { %755 = vmatpush2.bf16.msra.mxu0 %v1555_v14  ;;  %1538 = vmatpush2.bf16.msra.mxu1 %v1555_v14  ;;  %v1642_v14 = vld [vmem:[%s2278_s0 + $0x1a0] ss:$12 sps:$4 sm:$0xff]  }
  0x2f   :  { %756 = vmatprep.subr.bf16.mxu0 %v1666_v0  ;;  %1523 = vmatprep.subr.bf16.mxu1 %v1666_v0 }
  0x32   :  { %757 = vmatpush2.bf16.msra.mxu0 %v1556_v15  ;;  %1539 = vmatpush2.bf16.msra.mxu1 %v1556_v15  ;;  %v1643_v15 = vld [vmem:[%s2278_s0 + $0x16c] ss:$12 sps:$4 sm:$0xff]  }
  0x33   :  { %758 = vmatprep.subr.bf16.mxu0 %v1666_v0  ;;  %1524 = vmatprep.subr.bf16.mxu1 %v1666_v0 }
  0x36   :  { %759 = vmatpush2.bf16.msra.mxu0 %v1557_v16  ;;  %1540 = vmatpush2.bf16.msra.mxu1 %v1557_v16  ;;  %v1645_v16 = vld [vmem:[%s2278_s0 + $0x1b8] ss:$12 sps:$4 sm:$0xff]  }
  0x37   :  { %760 = vmatprep.subr.bf16.mxu0 %v1666_v0  ;;  %1525 = vmatprep.subr.bf16.mxu1 %v1666_v0 }
  0x3a   :  { %761 = vmatpush2.bf16.msra.mxu0 %v1558_v17  ;;  %1541 = vmatpush2.bf16.msra.mxu1 %v1558_v17  ;;  %v1646_v17 = vld [vmem:[%s2278_s0 + $0x168] ss:$12 sps:$4 sm:$0xff]  }
  0x3b   :  { %762 = vmatprep.subr.bf16.mxu0 %v1666_v0  ;;  %1526 = vmatprep.subr.bf16.mxu1 %v1666_v0  ;;  %v1625_v0 = vld [vmem:[%s2278_s0 + $0xf8] ss:$12 sps:$4 sm:$0xff]  }
  0x3e   :  { %763 = vmatpush2.bf16.msra.mxu0 %v1559_v18  ;;  %1542 = vmatpush2.bf16.msra.mxu1 %v1559_v18  ;;  %v1647_v18 = vld [vmem:[%s2278_s0 + $0x1d0] ss:$12 sps:$4 sm:$0xff]  }
  0x3f   :  { %1455 = vmatprep.subr.bf16.mxu1 %v1566_v19 }
  0x41   :  { %765 = vmatmul.mubr.bf16.vlgmr.msra.gmra.mxu0 %v1560_v20  ;;  %925 = vmatmul.mubr.bf16.vlgmr.msra.gmra.mxu1 %v1563_v21  ;;  %v1650_v20 = vld [vmem:[%s2278_s0 + $0x1e8] ss:$12 sps:$4 sm:$0xff]   ;;  %v1651_v21 = vld [vmem:[%s2278_s0 + $0x180] ss:$12 sps:$4 sm:$0xff]  }
  0x42   :  { %1456 = vmatpush3.bf16.msra.mxu1 %v1566_v19  ;;  %772 = vmatprep.mubr.bf16.mxu0 %v1567_v22  ;;  %v1648_v19 = vld [vmem:[%s2278_s0 + $0x184] ss:$12 sps:$4 sm:$0xff]   ;;  %v1652_v22 = vld [vmem:[%s2278_s0 + $0x200] ss:$12 sps:$4 sm:$0xff]  }
  0x43   :  { %932 = vmatprep.mubr.bf16.mxu1 %v1569_v23  ;;  %1457 = vmatprep.subr.bf16.mxu1 %v1585_v24  ;;  %v1653_v23 = vld [vmem:[%s2278_s0 + $0x19c] ss:$12 sps:$4 sm:$0xff]  }
  0x46   :  { %1458 = vmatpush3.bf16.msra.mxu1 %v1585_v24  ;;  %v1655_v24 = vld [vmem:[%s2278_s0 + $0x218] ss:$12 sps:$4 sm:$0xff]  }
  0x49   :  { %773 = vmatmul.mubr.bf16.gmra.mxu0 %v1571_v25  ;;  %933 = vmatmul.mubr.bf16.gmra.mxu1 %v1572_v26  ;;  %v1656_v25 = vld [vmem:[%s2278_s0 + $0x198] ss:$12 sps:$4 sm:$0xff]   ;;  %v1657_v26 = vld [vmem:[%s2278_s0 + $0x230] ss:$12 sps:$4 sm:$0xff]  }
  0x4a   :  { %780 = vmatprep.mubr.bf16.mxu0 %v1573_v27  ;;  %940 = vmatprep.mubr.bf16.mxu1 %v1575_v28  ;;  %v1658_v27 = vld [vmem:[%s2278_s0 + $0x1b4] ss:$12 sps:$4 sm:$0xff]  }
  0x4b   :  { %v1660_v28 = vld [vmem:[%s2278_s0 + $0x248] ss:$12 sps:$4 sm:$0xff]  }
  0x51   :  { %781 = vmatmul.mubr.bf16.gmra.mxu0 %v1577_v29  ;;  %941 = vmatmul.mubr.bf16.gmra.mxu1 %v1578_v30  ;;  %v1661_v29 = vld [vmem:[%s2278_s0 + $0x1b0] ss:$12 sps:$4 sm:$0xff]   ;;  %v1662_v30 = vld [vmem:[%s2278_s0 + $0x260] ss:$12 sps:$4 sm:$0xff]  }
  0x52   :  { %788 = vmatprep.mubr.bf16.mxu0 %v1579_v31  ;;  %948 = vmatprep.mubr.bf16.mxu1 %v1581_v32  ;;  %v1663_v31 = vld [vmem:[%s2278_s0 + $0x1cc] ss:$12 sps:$4 sm:$0xff]   ;;  %v1665_v32 = vld [vmem:[%s2278_s0 + $0x1c8] ss:$12 sps:$4 sm:$0xff]  }
  0x59   :  { %789 = vmatmul.mubr.bf16.gmra.mxu0 %v1583_v33  ;;  %949 = vmatmul.mubr.bf16.gmra.mxu1 %v1584_v34 }
  0x5a   :  { %796 = vmatprep.mubr.bf16.mxu0 %v1586_v35  ;;  %956 = vmatprep.mubr.bf16.mxu1 %v1588_v36 }
  0x61   :  { %797 = vmatmul.mubr.bf16.gmra.mxu0 %v1590_v37  ;;  %957 = vmatmul.mubr.bf16.gmra.mxu1 %v1591_v38 }
  0x62   :  { %804 = vmatprep.mubr.bf16.mxu0 %v1592_v39  ;;  %964 = vmatprep.mubr.bf16.mxu1 %v1594_v40 }
  0x69   :  { %805 = vmatmul.mubr.bf16.gmra.mxu0 %v1596_v41  ;;  %965 = vmatmul.mubr.bf16.gmra.mxu1 %v1597_v42 }
  0x6a   :  { %812 = vmatprep.mubr.bf16.mxu0 %v1598_v43  ;;  %1459 = vmatprep.mubr.msk.bf16.mxu1 %vm653_vm0, %v1600_v44 }
  0x71   :  { %813 = vmatmul.mubr.bf16.gmra.mxu0 %v1601_v45  ;;  %1460 = vmatmul.mubr.msk.bf16.vlgmr.msra.gmra.mxu1 %vm653_vm0, %v1602_v46 }
  0x72   :  { %820 = vmatprep.mubr.bf16.mxu0 %v1603_v47  ;;  %1463 = vmatprep.mubr.msk.bf16.mxu1 %vm653_vm0, %v1605_v48 }
  0x79   :  { %821 = vmatmul.mubr.bf16.gmra.mxu0 %v1606_v49  ;;  %1464 = vmatmul.mubr.msk.bf16.gmra.mxu1 %vm653_vm0, %v1607_v50 }
  0x7a   :  { %828 = vmatprep.mubr.bf16.mxu0 %v1608_v51  ;;  %1467 = vmatprep.mubr.msk.bf16.mxu1 %vm653_vm0, %v1610_v52 }
  0x81   :  { %829 = vmatmul.mubr.bf16.gmra.mxu0 %v1611_v53  ;;  %1468 = vmatmul.mubr.msk.bf16.gmra.mxu1 %vm653_vm0, %v1612_v54 }
  0x82   :  { %836 = vmatprep.mubr.bf16.mxu0 %v1613_v55  ;;  %1471 = vmatprep.mubr.msk.bf16.mxu1 %vm653_vm0, %v1615_v56 }
  0x89   :  { %837 = vmatmul.mubr.bf16.gmra.mxu0 %v1616_v57  ;;  %1472 = vmatmul.mubr.msk.bf16.gmra.mxu1 %vm653_vm0, %v1617_v58 }
  0x8a   :  { %844 = vmatprep.mubr.bf16.mxu0 %v1618_v59  ;;  %1475 = vmatprep.mubr.msk.bf16.mxu1 %vm653_vm0, %v1620_v60 }
  0x91   :  { %845 = vmatmul.mubr.bf16.gmra.mxu0 %v1621_v61  ;;  %1476 = vmatmul.mubr.msk.bf16.gmra.mxu1 %vm653_vm0, %v1622_v62 }
  0x92   :  { %852 = vmatprep.mubr.bf16.mxu0 %v1623_v63  ;;  %1479 = vmatprep.mubr.msk.bf16.mxu1 %vm653_vm0, %v1625_v0 }
  0x99   :  { %853 = vmatmul.mubr.bf16.gmra.mxu0 %v1626_v1  ;;  %1480 = vmatmul.mubr.msk.bf16.gmra.mxu1 %vm653_vm0, %v1627_v2 }
  0x9a   :  { %860 = vmatprep.mubr.bf16.mxu0 %v1628_v3  ;;  %1483 = vmatprep.mubr.msk.bf16.mxu1 %vm653_vm0, %v1630_v4 }
  0xa1   :  { %861 = vmatmul.mubr.bf16.gmra.mxu0 %v1631_v5  ;;  %1484 = vmatmul.mubr.msk.bf16.gmra.mxu1 %vm653_vm0, %v1632_v6 }
  0xa2   :  { %868 = vmatprep.mubr.bf16.mxu0 %v1633_v7  ;;  %1487 = vmatprep.mubr.msk.bf16.mxu1 %vm653_vm0, %v1635_v8 }
  0xa9   :  { %869 = vmatmul.mubr.bf16.gmra.mxu0 %v1636_v9  ;;  %1488 = vmatmul.mubr.msk.bf16.gmra.mxu1 %vm653_vm0, %v1637_v10 }
  0xaa   :  { %876 = vmatprep.mubr.bf16.mxu0 %v1638_v11  ;;  %1491 = vmatprep.mubr.msk.bf16.mxu1 %vm653_vm0, %v1640_v12 }
  0xb1   :  { %877 = vmatmul.mubr.bf16.gmra.mxu0 %v1641_v13  ;;  %1492 = vmatmul.mubr.msk.bf16.gmra.mxu1 %vm653_vm0, %v1642_v14 }
  0xb2   :  { %884 = vmatprep.mubr.bf16.mxu0 %v1643_v15  ;;  %1495 = vmatprep.mubr.msk.bf16.mxu1 %vm653_vm0, %v1645_v16 }
  0xb9   :  { %885 = vmatmul.mubr.bf16.gmra.mxu0 %v1646_v17  ;;  %1496 = vmatmul.mubr.msk.bf16.gmra.mxu1 %vm653_vm0, %v1647_v18 }
  0xba   :  { %892 = vmatprep.mubr.bf16.mxu0 %v1648_v19  ;;  %1499 = vmatprep.mubr.msk.bf16.mxu1 %vm653_vm0, %v1650_v20 }
  0xc1   :  { %893 = vmatmul.mubr.bf16.gmra.mxu0 %v1651_v21  ;;  %1500 = vmatmul.mubr.msk.bf16.gmra.mxu1 %vm653_vm0, %v1652_v22 }
  0xc2   :  { %900 = vmatprep.mubr.bf16.mxu0 %v1653_v23  ;;  %1503 = vmatprep.mubr.msk.bf16.mxu1 %vm653_vm0, %v1655_v24 }
  0xc9   :  { %901 = vmatmul.mubr.bf16.gmra.mxu0 %v1656_v25  ;;  %1504 = vmatmul.mubr.msk.bf16.gmra.mxu1 %vm653_vm0, %v1657_v26 }
  0xca   :  { %908 = vmatprep.mubr.bf16.mxu0 %v1658_v27  ;;  %1507 = vmatprep.mubr.msk.bf16.mxu1 %vm653_vm0, %v1660_v28 }
  0xd1   :  { %909 = vmatmul.mubr.bf16.gmra.mxu0 %v1661_v29  ;;  %1508 = vmatmul.mubr.msk.bf16.gmra.mxu1 %vm653_vm0, %v1662_v30 }
  0xd2   :  { %916 = vmatprep.mubr.bf16.mxu0 %v1663_v31 }
  0xd9   :  { %917 = vmatmul.mubr.bf16.gmra.mxu0 %v1665_v32 }
 0x101   :  { %v766_v33 = vpop.f32.mrf.mxu0  ;;  %v2033_v34 = vpop.f32.mrf.mxu1 }
 0x103   :  { %v768_v35 = vpop.f32.mrf.mxu0  ;;  %v928_v36 = vpop.f32.mrf.mxu1 }
 0x105   :  { %v769_v37 = vpop.f32.mrf.mxu0  ;;  %v2035_v38 = vpop.f32.mrf.mxu1 }
 0x107   :  { %v771_v39 = vpop.f32.mrf.mxu0  ;;  %v931_v40 = vpop.f32.mrf.mxu1 }
 0x109   :  { %v774_v41 = vpop.f32.mrf.mxu0  ;;  %v2037_v42 = vpop.f32.mrf.mxu1 }
 0x10b   :  { %v776_v43 = vpop.f32.mrf.mxu0  ;;  %v936_v44 = vpop.f32.mrf.mxu1 }
 0x10d   :  { %v777_v45 = vpop.f32.mrf.mxu0  ;;  %v2039_v46 = vpop.f32.mrf.mxu1 }
 0x10f   :  { %v779_v47 = vpop.f32.mrf.mxu0  ;;  %v939_v48 = vpop.f32.mrf.mxu1 }
 0x111   :  { %v782_v49 = vpop.f32.mrf.mxu0  ;;  %v2041_v50 = vpop.f32.mrf.mxu1 }
 0x113   :  { %v784_v51 = vpop.f32.mrf.mxu0  ;;  %v944_v52 = vpop.f32.mrf.mxu1 }
 0x115   :  { %v785_v53 = vpop.f32.mrf.mxu0  ;;  %v2043_v54 = vpop.f32.mrf.mxu1 }
 0x117   :  { %v787_v55 = vpop.f32.mrf.mxu0  ;;  %v947_v56 = vpop.f32.mrf.mxu1 }
 0x119   :  { %v790_v57 = vpop.f32.mrf.mxu0  ;;  %v2045_v58 = vpop.f32.mrf.mxu1 }
 0x11b   :  { %v792_v59 = vpop.f32.mrf.mxu0  ;;  %v952_v60 = vpop.f32.mrf.mxu1 }
 0x11d   :  { %v793_v61 = vpop.f32.mrf.mxu0  ;;  %v2047_v62 = vpop.f32.mrf.mxu1 }
 0x11f   :  { %v795_v63 = vpop.f32.mrf.mxu0  ;;  %v955_v0 = vpop.f32.mrf.mxu1 }
 0x121   :  { %v798_v1 = vpop.f32.mrf.mxu0  ;;  %v2049_v2 = vpop.f32.mrf.mxu1 }
 0x123   :  { %v800_v3 = vpop.f32.mrf.mxu0  ;;  %v960_v4 = vpop.f32.mrf.mxu1 }
 0x125   :  { %v801_v5 = vpop.f32.mrf.mxu0  ;;  %v2051_v6 = vpop.f32.mrf.mxu1 }
 0x126   :  { %2283 = vst [vmem:[#allocation2_spill] sm:$0xff] %v2051_v6 }
 0x127   :  { %v803_v7 = vpop.f32.mrf.mxu0  ;;  %v963_v8 = vpop.f32.mrf.mxu1 }
 0x129   :  { %v806_v9 = vpop.f32.mrf.mxu0  ;;  %v2053_v10 = vpop.f32.mrf.mxu1 }
 0x12b   :  { %v808_v11 = vpop.f32.mrf.mxu0  ;;  %v968_v12 = vpop.f32.mrf.mxu1 }
 0x12d   :  { %v809_v13 = vpop.f32.mrf.mxu0  ;;  %v2055_v14 = vpop.f32.mrf.mxu1 }
 0x12e   :  { %2284 = vst [vmem:[#allocation3_spill] sm:$0xff] %v2055_v14 }
 0x12f   :  { %v811_v15 = vpop.f32.mrf.mxu0  ;;  %v971_v16 = vpop.f32.mrf.mxu1 }
 0x131   :  { %v814_v17 = vpop.f32.mrf.mxu0  ;;  %v1461_v18 = vpop.f32.mrf.mxu1 }
 0x132   :  { %v2057_v19 = vadd.f32 %v1461_v18, %v774_v41 }
 0x133   :  { %v816_v20 = vpop.f32.mrf.mxu0  ;;  %v1007_v21 = vpop.f32.mrf.mxu1 }
 0x134   :  { %v2059_v22 = vadd.f32 %v1007_v21, %v766_v33 }
 0x135   :  { %v817_v23 = vpop.f32.mrf.mxu0  ;;  %v1462_v24 = vpop.f32.mrf.mxu1 }
 0x136   :  { %2285 = vst [vmem:[#allocation4_spill] sm:$0xff] %v2059_v22  ;;  %v2061_v25 = vadd.f32 %v1462_v24, %v777_v45 }
 0x137   :  { %v819_v26 = vpop.f32.mrf.mxu0  ;;  %v1010_v27 = vpop.f32.mrf.mxu1 }
 0x138   :  { %v2063_v28 = vadd.f32 %v1010_v27, %v769_v37 }
 0x139   :  { %v822_v29 = vpop.f32.mrf.mxu0  ;;  %v1465_v30 = vpop.f32.mrf.mxu1 }
 0x13a   :  { %v2065_v31 = vadd.f32 %v1465_v30, %v790_v57 }
 0x13b   :  { %v824_v32 = vpop.f32.mrf.mxu0  ;;  %v1023_v35 = vpop.f32.mrf.mxu1 }
 0x13c   :  { %v2067_v36 = vadd.f32 %v1023_v35, %v782_v49 }
 0x13d   :  { %v825_v39 = vpop.f32.mrf.mxu0  ;;  %v1466_v40 = vpop.f32.mrf.mxu1 }
 0x13e   :  { %v2069_v33 = vadd.f32 %v1466_v40, %v793_v61 }
 0x13f   :  { %v827_v41 = vpop.f32.mrf.mxu0  ;;  %v1026_v43 = vpop.f32.mrf.mxu1 }
 0x140   :  { %v2071_v44 = vadd.f32 %v1026_v43, %v785_v53 }
 0x141   :  { %v830_v45 = vpop.f32.mrf.mxu0  ;;  %v1469_v47 = vpop.f32.mrf.mxu1 }
 0x142   :  { %v2073_v37 = vadd.f32 %v1469_v47, %v806_v9 }
 0x143   :  { %v832_v48 = vpop.f32.mrf.mxu0  ;;  %v1039_v51 = vpop.f32.mrf.mxu1 }
 0x144   :  { %2286 = vst [vmem:[#allocation5_spill] sm:$0xff] %v2073_v37  ;;  %v2075_v52 = vadd.f32 %v1039_v51, %v798_v1 }
 0x145   :  { %v833_v55 = vpop.f32.mrf.mxu0  ;;  %v1470_v56 = vpop.f32.mrf.mxu1 }
 0x146   :  { %v2077_v49 = vadd.f32 %v1470_v56, %v809_v13 }
 0x147   :  { %v835_v57 = vpop.f32.mrf.mxu0  ;;  %v1042_v59 = vpop.f32.mrf.mxu1 }
 0x148   :  { %2287 = vst [vmem:[#allocation6_spill] sm:$0xff] %v2077_v49  ;;  %v2079_v60 = vadd.f32 %v1042_v59, %v801_v5 }
 0x149   :  { %v838_v61 = vpop.f32.mrf.mxu0  ;;  %v1473_v63 = vpop.f32.mrf.mxu1 }
 0x14a   :  { %v2081_v53 = vadd.f32 %v1473_v63, %v822_v29 }
 0x14b   :  { %v840_v0 = vpop.f32.mrf.mxu0  ;;  %v1055_v3 = vpop.f32.mrf.mxu1 }
 0x14c   :  { %v2085_v7 = vadd.f32 %v1055_v3, %v814_v17 }
 0x14d   :  { %v841_v1 = vpop.f32.mrf.mxu0  ;;  %v1474_v8 = vpop.f32.mrf.mxu1 }
 0x14e   :  { %2288 = vst [vmem:[#allocation7_spill] sm:$0xff] %v2085_v7  ;;  %v2087_v9 = vadd.f32 %v1474_v8, %v825_v39 }
 0x14f   :  { %v843_v11 = vpop.f32.mrf.mxu0  ;;  %v1058_v12 = vpop.f32.mrf.mxu1 }
 0x150   :  { %v2091_v13 = vadd.f32 %v1058_v12, %v817_v23 }
 0x151   :  { %v2093_v15 = vpop.f32.mrf.mxu0  ;;  %v1477_v16 = vpop.f32.mrf.mxu1 }
 0x152   :  { %2289 = vst [vmem:[#allocation8_spill] sm:$0xff] %v2091_v13  ;;  %v2097_v20 = vadd.f32 %v1477_v16, %v838_v61 }
 0x153   :  { %v848_v17 = vpop.f32.mrf.mxu0  ;;  %v1071_v21 = vpop.f32.mrf.mxu1 }
 0x154   :  { %v2101_v26 = vadd.f32 %v1071_v21, %v830_v45 }
 0x155   :  { %v2103_v27 = vpop.f32.mrf.mxu0  ;;  %v1478_v29 = vpop.f32.mrf.mxu1 }
 0x156   :  { %v1217_v23 = vmax.f32 %v2061_v25, %v2101_v26  ;;  %v2107_v30 = vadd.f32 %v1478_v29, %v841_v1 }
 0x157   :  { %v851_v32 = vpop.f32.mrf.mxu0  ;;  %v1074_v35 = vpop.f32.mrf.mxu1 }
 0x158   :  { %v2111_v40 = vadd.f32 %v1074_v35, %v833_v55 }
 0x159   :  { %v2113_v41 = vpop.f32.mrf.mxu0  ;;  %v2115_v43 = vpop.f32.mrf.mxu1 }
 0x15b   :  { %v856_v47 = vpop.f32.mrf.mxu0  ;;  %v1087_v48 = vpop.f32.mrf.mxu1 }
 0x15d   :  { %v2119_v51 = vpop.f32.mrf.mxu0  ;;  %v2121_v25 = vpop.f32.mrf.mxu1 }
 0x15f   :  { %v859_v56 = vpop.f32.mrf.mxu0  ;;  %v2123_v57 = vpop.f32.mrf.mxu1 }
 0x161   :  { %v2125_v59 = vpop.f32.mrf.mxu0  ;;  %v2127_v55 = vpop.f32.mrf.mxu1 }
 0x162   :  { %2290 = vst [vmem:[#allocation9_spill] sm:$0xff] %v2127_v55 }
 0x163   :  { %v864_v61 = vpop.f32.mrf.mxu0  ;;  %v2129_v63 = vpop.f32.mrf.mxu1 }
 0x165   :  { %v2131_v0 = vpop.f32.mrf.mxu0  ;;  %v1486_v3 = vpop.f32.mrf.mxu1 }
 0x166   :  { %2291 = vst [vmem:[#allocation10_spill] sm:$0xff] %v2131_v0 }
 0x167   :  { %v867_v1 = vpop.f32.mrf.mxu0  ;;  %v2133_v8 = vpop.f32.mrf.mxu1 }
 0x168   :  { %2292 = vst [vmem:[#allocation11_spill] sm:$0xff] %v2133_v8 }
 0x169   :  { %v2135_v11 = vpop.f32.mrf.mxu0  ;;  %v1489_v12 = vpop.f32.mrf.mxu1 }
 0x16a   :  { %2293 = vst [vmem:[#allocation12_spill] sm:$0xff] %v2135_v11 }
 0x16b   :  { %v872_v16 = vpop.f32.mrf.mxu0  ;;  %v1119_v17 = vpop.f32.mrf.mxu1 }
 0x16d   :  { %v873_v21 = vpop.f32.mrf.mxu0  ;;  %v1490_v26 = vpop.f32.mrf.mxu1 }
 0x16e   :  { %v1115_v6 = vadd.f32 %v1486_v3, %v873_v21  ;;  %v1088_v21 = vadd.f32 %v1087_v48, %v2093_v15  ;;  %v2299_v15 = vmax.f32 %v2057_v19, %v2087_v9 }
 0x16f   :  { %v875_v29 = vpop.f32.mrf.mxu0  ;;  %v1122_v32 = vpop.f32.mrf.mxu1 }
 0x171   :  { %v878_v35 = vpop.f32.mrf.mxu0  ;;  %v2137_v47 = vpop.f32.mrf.mxu1 }
 0x173   :  { %v880_v56 = vpop.f32.mrf.mxu0  ;;  %v2139_v61 = vpop.f32.mrf.mxu1 }
 0x175   :  { %v881_v18 = vpop.f32.mrf.mxu0  ;;  %v2141_v39 = vpop.f32.mrf.mxu1 }
 0x176   :  { %v1123_v7 = vadd.f32 %v1122_v32, %v881_v18  ;;  %v1120_v32 = vadd.f32 %v1119_v17, %v878_v35 }
 0x177   :  { %v883_v1 = vpop.f32.mrf.mxu0  ;;  %v1138_v24 = vpop.f32.mrf.mxu1 }
 0x179   :  { %v886_v5 = vpop.f32.mrf.mxu0  ;;  %v2143_v45 = vpop.f32.mrf.mxu1 }
 0x17a   :  { %2294 = vst [vmem:[#allocation13_spill] sm:$0xff] %v2143_v45 }
 0x17b   :  { %v888_v16 = vpop.f32.mrf.mxu0  ;;  %v2145_v4 = vpop.f32.mrf.mxu1 }
 0x17c   :  { %2295 = vst [vmem:[#allocation14_spill] sm:$0xff] %v2145_v4  ;;  %v2156_v16 = vld [vmem:[%s2279_s2] ss:$0 sm:$0xff]  ;;  %v1128_v4 = vadd.f32 %v1489_v12, %v886_v5 }
 0x17d   :  { %v889_v13 = vpop.f32.mrf.mxu0  ;;  %v2147_v29 = vpop.f32.mrf.mxu1 }
 0x17e   :  { %2296 = vst [vmem:[#allocation15_spill] sm:$0xff] %v2147_v29  ;;  %v1131_v12 = vadd.f32 %v1490_v26, %v889_v13  ;;  %v1221_v13 = vmax.f32 %v2069_v33, %v1088_v21 }
 0x17f   :  { %v891_v22 = vpop.f32.mrf.mxu0  ;;  %v2149_v55 = vpop.f32.mrf.mxu1 }
 0x181   :  { %v894_v56 = vpop.f32.mrf.mxu0  ;;  %v1501_v11 = vpop.f32.mrf.mxu1 }
 0x182   :  { %v1176_v14 = vadd.f32 %v1501_v11, %v2037_v42 }
 0x183   :  { %v896_v37 = vpop.f32.mrf.mxu0  ;;  %v1167_v1 = vpop.f32.mrf.mxu1 }
 0x184   :  { %v1230_v8 = vmax.f32 %v1123_v7, %v1176_v14  ;;  %v1168_v45 = vadd.f32 %v1167_v1, %v2033_v34  ;;  %v2297_v34 = vmax.f32 %v2063_v28, %v2081_v53 }
 0x185   :  { %v897_v29 = vpop.f32.mrf.mxu0  ;;  %v1502_v22 = vpop.f32.mrf.mxu1 }
 0x186   :  { %v1243_v0 = vmax.f32 %v1217_v23, %v1230_v8  ;;  %v1228_v49 = vmax.f32 %v1115_v6, %v1168_v45  ;;  %v1179_v18 = vadd.f32 %v1502_v22, %v2039_v46  ;;  %v2298_v45 = vmax.f32 %v2067_v36, %v2111_v40 }
 0x187   :  { %v899_v42 = vpop.f32.mrf.mxu0  ;;  %v1170_v37 = vpop.f32.mrf.mxu1  ;;  %v1139_v17 = vadd.f32 %v1138_v24, %v897_v29 }
 0x188   :  { %v1263_v3 = vadd.f32 %v2156_v16, %v1243_v0  ;;  %v1241_v14 = vmax.f32 %v2297_v34, %v1228_v49  ;;  %v1231_v7 = vmax.f32 %v1128_v4, %v1179_v18  ;;  %v1171_v11 = vadd.f32 %v1170_v37, %v2035_v38 }
 0x189   :  { %v902_v5 = vpop.f32.mrf.mxu0  ;;  %v1505_v23 = vpop.f32.mrf.mxu1  ;;  %v2300_v18 = vmax.f32 %v2071_v44, %v2097_v20 }
 0x18a   :  { %v1276_v6 = vmax.f32 %v1263_v3, 0.0  ;;  %v1261_v46 = vadd.f32 %v2156_v16, %v1241_v14  ;;  %v1244_v8 = vmax.f32 %v2298_v45, %v1231_v7  ;;  %v1229_v0 = vmax.f32 %v1120_v32, %v1171_v11  ;;  %v2304_v45 = vld [vmem:[#allocation11_spill] sm:$0xff] }
 0x18b   :  { %v1192_v28 = vadd.f32 %v1505_v23, %v2045_v58  ;;  %v904_v49 = vpop.f32.mrf.mxu0  ;;  %v1183_v53 = vpop.f32.mrf.mxu1  ;;  %v1091_v58 = vadd.f32 %v2123_v57, %v2103_v27  ;;  %v1144_v9 = vadd.f32 %v2137_v47, %v902_v5  ;;  %v1136_v27 = vadd.f32 %v2139_v61, %v894_v56 }
 0x18c   :  { %1290 = vst.msk [vmem:[%s2280_s3 + $0x18] sm:$0xff] %vm1286_vm1, %v1276_v6  ;;  %v1274_v38 = vmax.f32 %v1261_v46, 0.0  ;;  %v1264_v4 = vadd.f32 %v2156_v16, %v1244_v8  ;;  %v1242_v36 = vmax.f32 %v2299_v15, %v1229_v0  ;;  %v1184_v40 = vadd.f32 %v1183_v53, %v2041_v50  ;;  %v2303_v46 = vld [vmem:[#allocation10_spill] sm:$0xff] }
 0x18d   :  { %v1234_v24 = vmax.f32 %v1139_v17, %v1192_v28  ;;  %v905_v48 = vpop.f32.mrf.mxu0  ;;  %v1506_v26 = vpop.f32.mrf.mxu1  ;;  %v1096_v47 = vadd.f32 %v2115_v43, %v2113_v41  ;;  %v2301_v11 = vmax.f32 %v2065_v31, %v2107_v30  ;;  %v1099_v6 = vadd.f32 %v2121_v25, %v2119_v51  ;;  %v2302_v51 = vld [vmem:[#allocation6_spill] sm:$0xff] }
 0x18e   :  { %1288 = vst.msk [vmem:[%s2280_s3 + $0x8] sm:$0xff] %vm1286_vm1, %v1274_v38  ;;  %v1277_v35 = vmax.f32 %v1264_v4, 0.0  ;;  %v1262_v29 = vadd.f32 %v2156_v16, %v1242_v36  ;;  %v1232_v19 = vmax.f32 %v1131_v12, %v1184_v40  ;;  %v1195_v33 = vadd.f32 %v1506_v26, %v2047_v62  ;;  %v2305_v12 = vld [vmem:[#allocation14_spill] sm:$0xff]  ;;  %v2307_v40 = vld [vmem:[#allocation5_spill] sm:$0xff] }
 0x18f   :  { %v1247_v50 = vmax.f32 %v1221_v13, %v1234_v24  ;;  %v907_v1 = vpop.f32.mrf.mxu0  ;;  %v1186_v22 = vpop.f32.mrf.mxu1  ;;  %v1222_v62 = vmax.f32 %v2075_v52, %v1091_v58  ;;  %v1147_v7 = vadd.f32 %v2141_v39, %v905_v48  ;;  %v1223_v23 = vmax.f32 %v2079_v60, %v1096_v47  ;;  %v2306_v15 = vld [vmem:[#allocation2_spill] sm:$0xff] }
 0x190   :  { %1291 = vst.msk [vmem:[%s2280_s3 + $0x20] sm:$0xff] %vm1286_vm1, %v1277_v35  ;;  %v1275_v57 = vmax.f32 %v1262_v29, 0.0  ;;  %v1245_v32 = vmax.f32 %v2300_v18, %v1232_v19  ;;  %v1187_v42 = vadd.f32 %v1186_v22, %v2043_v54  ;;  %v1235_v61 = vmax.f32 %v1144_v9, %v1195_v33  ;;  %v2309_v35 = vld [vmem:[#allocation13_spill] sm:$0xff]  ;;  %v2310_v19 = vld [vmem:[#allocation7_spill] sm:$0xff] }
 0x191   :  { %v1267_v37 = vadd.f32 %v2156_v16, %v1247_v50  ;;  %v910_v56 = vpop.f32.mrf.mxu0  ;;  %v1509_v3 = vpop.f32.mrf.mxu1  ;;  %v1104_v54 = vadd.f32 %v2129_v63, %v2125_v59  ;;  %v1107_v8 = vadd.f32 %v2304_v45, %v2303_v46  ;;  %v2312_v18 = vld [vmem:[#allocation9_spill] sm:$0xff] }
 0x192   :  { %1289 = vst.msk [vmem:[%s2280_s3 + $0x10] sm:$0xff] %vm1286_vm1, %v1275_v57  ;;  %v1265_v44 = vadd.f32 %v2156_v16, %v1245_v32  ;;  %v1233_v20 = vmax.f32 %v1136_v27, %v1187_v42  ;;  %v1248_v41 = vmax.f32 %v1222_v62, %v1235_v61  ;;  %v1208_v31 = vadd.f32 %v1509_v3, %v2053_v10  ;;  %v2311_v57 = vld [vmem:[#allocation12_spill] sm:$0xff]  ;;  %v2313_v61 = vld [vmem:[#allocation15_spill] sm:$0xff] }
 0x193   :  { %v1280_v34 = vmax.f32 %v1267_v37, 0.0  ;;  %v912_v43 = vpop.f32.mrf.mxu0  ;;  %v1199_v52 = vpop.f32.mrf.mxu1  ;;  %v1225_v25 = vmax.f32 %v2302_v51, %v1104_v54  ;;  %v1152_v17 = vadd.f32 %v2305_v12, %v910_v56  ;;  %v1224_v10 = vmax.f32 %v2307_v40, %v1099_v6 }
 0x194   :  { %v1278_v14 = vmax.f32 %v1265_v44, 0.0  ;;  %v1246_v21 = vmax.f32 %v2301_v11, %v1233_v20  ;;  %v1200_v5 = vadd.f32 %v1199_v52, %v2049_v2  ;;  %v1268_v59 = vadd.f32 %v2156_v16, %v1248_v41  ;;  %v2314_v41 = vld [vmem:[#allocation4_spill] sm:$0xff] }
 0x195   :  { %1294 = vst.msk [vmem:[%s2280_s3 + $0x38] sm:$0xff] %vm1286_vm1, %v1280_v34  ;;  %v913_v63 = vpop.f32.mrf.mxu0  ;;  %v1510_v39 = vpop.f32.mrf.mxu1  ;;  %v1226_v9 = vmax.f32 %v2310_v19, %v1107_v8  ;;  %v1112_v32 = vadd.f32 %v2312_v18, %v2311_v57  ;;  %v2315_v43 = vld [vmem:[#allocation8_spill] sm:$0xff] }
 0x196   :  { %1292 = vst.msk [vmem:[%s2280_s3 + $0x28] sm:$0xff] %vm1286_vm1, %v1278_v14  ;;  %v1266_v2 = vadd.f32 %v2156_v16, %v1246_v21  ;;  %v1236_v60 = vmax.f32 %v1147_v7, %v1200_v5  ;;  %v1155_v30 = vadd.f32 %v2149_v55, %v913_v63  ;;  %v1281_v0 = vmax.f32 %v1268_v59, 0.0  ;;  %v2308_v55 = vld [vmem:[#allocation3_spill] sm:$0xff] }
 0x197   :  { %v915_v28 = vpop.f32.mrf.mxu0  ;;  %v1202_v49 = vpop.f32.mrf.mxu1  ;;  %v1211_v13 = vadd.f32 %v1510_v39, %v2308_v55  ;;  %v2316_v52 = vmax.f32 %v2314_v41, %v2315_v43 }
 0x198   :  { %v1279_v53 = vmax.f32 %v1266_v2, 0.0  ;;  %v1249_v38 = vmax.f32 %v1223_v23, %v1236_v60  ;;  %v1238_v4 = vmax.f32 %v1155_v30, %v1208_v31  ;;  %v1203_v36 = vadd.f32 %v1202_v49, %v2306_v15  ;;  %1295 = vst.msk [vmem:[%s2280_s3 + $0x40] sm:$0xff] %vm1286_vm1, %v1281_v0 }
 0x199   :  { %v918_v58 = vpop.f32.mrf.mxu0 }
 0x19a   :  { %1293 = vst.msk [vmem:[%s2280_s3 + $0x30] sm:$0xff] %vm1286_vm1, %v1279_v53  ;;  %v1269_v24 = vadd.f32 %v2156_v16, %v1249_v38  ;;  %v1251_v48 = vmax.f32 %v1225_v25, %v1238_v4  ;;  %v1237_v26 = vmax.f32 %v1152_v17, %v1203_v36  ;;  %v1160_v29 = vadd.f32 %v2309_v35, %v918_v58 }
 0x19b   :  { %v920_v50 = vpop.f32.mrf.mxu0 }
 0x19c   :  { %v1282_v33 = vmax.f32 %v1269_v24, 0.0  ;;  %v1271_v1 = vadd.f32 %v2156_v16, %v1251_v48  ;;  %v1250_v22 = vmax.f32 %v1224_v10, %v1237_v26  ;;  %v1239_v27 = vmax.f32 %v1160_v29, %v1211_v13 }
 0x19d   :  { %v921_v42 = vpop.f32.mrf.mxu0 }
 0x19e   :  { %1296 = vst.msk [vmem:[%s2280_s3 + $0x48] sm:$0xff] %vm1286_vm1, %v1282_v33  ;;  %v1284_v47 = vmax.f32 %v1271_v1, 0.0  ;;  %v1270_v62 = vadd.f32 %v2156_v16, %v1250_v22  ;;  %v1252_v37 = vmax.f32 %v1226_v9, %v1239_v27  ;;  %v1163_v56 = vadd.f32 %v2313_v61, %v921_v42 }
 0x19f   :  { %v923_v3 = vpop.f32.mrf.mxu0 }
 0x1a0   :  { %1298 = vst.msk [vmem:[%s2280_s3 + $0x58] sm:$0xff] %vm1286_vm1, %v1284_v47  ;;  %v1283_v44 = vmax.f32 %v1270_v62, 0.0  ;;  %v1272_v20 = vadd.f32 %v2156_v16, %v1252_v37  ;;  %v1227_v54 = vmax.f32 %v1112_v32, %v1163_v56 }
 0x1a2   :  { %1297 = vst.msk [vmem:[%s2280_s3 + $0x50] sm:$0xff] %vm1286_vm1, %v1283_v44  ;;  %v1285_v34 = vmax.f32 %v1272_v20, 0.0  ;;  %v1240_v14 = vmax.f32 %v2316_v52, %v1227_v54 }
 0x1a4   :  { %1299 = vst.msk [vmem:[%s2280_s3 + $0x60] sm:$0xff] %vm1286_vm1, %v1285_v34  ;;  %v1260_v7 = vadd.f32 %v2156_v16, %v1240_v14 }
 0x1a6   :  { %v1273_v11 = vmax.f32 %v1260_v7, 0.0 }
 0x1a8   :  { %1287 = vst.msk [vmem:[%s2280_s3] sm:$0xff] %vm1286_vm1, %v1273_v11 }

// kernel: mnist_classifier_forward.5
= control target key start
LH: loop header
LB: loop body
LE: loop exit
PB: predicated region body
PF: predicated region fallthrough
CT: control target
= control target key end

     0   :  { %v10495_v39 = vmov 0.0   ;;  %vm10496_vm0 = vmmov 0   ;;  %vm336_vm1 = vcmask 523264   ;;  %s14188_s1 = inlined_call_operand.vmem [shape: bf16[576,128], index: 1, kind: input, shape index: {}]   ;;  %s14189_s0 = inlined_call_operand.vmem [shape: bf16[4,9,8,576], index: 0, kind: input, shape index: {}]   ;;  %s14190_s3 = inlined_call_operand.vmem [shape: bf16[9,128,256], index: 3, kind: input, shape index: {}]   ;;  %s14191_s2 = inlined_call_operand.vmem [shape: f32[1,128], index: 2, kind: input, shape index: {}]   ;;  %s14192_s5 = inlined_call_operand.vmem [shape: bf16[256,128], index: 5, kind: input, shape index: {}]   ;;  %s14193_s4 = inlined_call_operand.vmem [shape: f32[1,256], index: 4, kind: input, shape index: {}]   ;;  %s14194_s6 = inlined_call_operand.vmem [shape: f32[1,128], index: 6, kind: input, shape index: {}]   ;;  %s14195_s7 = inlined_call_operand.vmem [shape: f32[8,128], index: 7, kind: output, shape index: {}]  }
   0x1   :  { %v10541_v0 = vld [vmem:[%s14188_s1 + $0x78] sm:$0xff]   ;;  %v10564_v4 = vld [vmem:[%s14188_s1 + $0x70] sm:$0xff]   ;;  %v10588_v8 = vld [vmem:[%s14188_s1 + $0x68] sm:$0xff]  }
   0x2   :  { %v10546_v1 = vld [vmem:[%s14188_s1 + $0xf8] sm:$0xff]   ;;  %7658 = vmatprep.subr.bf16.mxu0 %v10541_v0  ;;  %v10570_v5 = vld [vmem:[%s14188_s1 + $0xf0] sm:$0xff]   ;;  %v10594_v9 = vld [vmem:[%s14188_s1 + $0xe8] sm:$0xff]  }
   0x3   :  { %v10552_v2 = vld [vmem:[%s14188_s1 + $0x38] sm:$0xff]   ;;  %7680 = vmatprep.subr.bf16.mxu1 %v10546_v1  ;;  %v10576_v6 = vld [vmem:[%s14188_s1 + $0x30] sm:$0xff]   ;;  %v10600_v10 = vld [vmem:[%s14188_s1 + $0x28] sm:$0xff]  }
   0x4   :  { %v10558_v3 = vld [vmem:[%s14188_s1 + $0xb8] sm:$0xff]   ;;  %7659 = vmatpush3.bf16.msra.mxu0 %v10552_v2  ;;  %v10582_v7 = vld [vmem:[%s14188_s1 + $0xb0] sm:$0xff]   ;;  %v10606_v11 = vld [vmem:[%s14188_s1 + $0xa8] sm:$0xff]  }
   0x5   :  { %7681 = vmatpush3.bf16.msra.mxu1 %v10558_v3  ;;  %7660 = vmatprep.subr.bf16.mxu0 %v10564_v4  ;;  %v10612_v12 = vld [vmem:[%s14188_s1 + $0x60] sm:$0xff]   ;;  %v10636_v16 = vld [vmem:[%s14188_s1 + $0x58] sm:$0xff]   ;;  %v10660_v20 = vld [vmem:[%s14188_s1 + $0x50] sm:$0xff]  }
   0x6   :  { %7682 = vmatprep.subr.bf16.mxu1 %v10570_v5  ;;  %v10618_v13 = vld [vmem:[%s14188_s1 + $0xe0] sm:$0xff]   ;;  %v10642_v17 = vld [vmem:[%s14188_s1 + $0xd8] sm:$0xff]   ;;  %v10666_v21 = vld [vmem:[%s14188_s1 + $0xd0] sm:$0xff]  }
   0x7   :  { %v10624_v14 = vld [vmem:[%s14188_s1 + $0x20] sm:$0xff]   ;;  %v10648_v18 = vld [vmem:[%s14188_s1 + $0x18] sm:$0xff]   ;;  %v10672_v22 = vld [vmem:[%s14188_s1 + $0x10] sm:$0xff]  }
   0x8   :  { %7661 = vmatpush3.bf16.msra.mxu0 %v10576_v6  ;;  %v10630_v15 = vld [vmem:[%s14188_s1 + $0xa0] sm:$0xff]   ;;  %v10654_v19 = vld [vmem:[%s14188_s1 + $0x98] sm:$0xff]   ;;  %v10678_v23 = vld [vmem:[%s14188_s1 + $0x90] sm:$0xff]  }
   0x9   :  { %7683 = vmatpush3.bf16.msra.mxu1 %v10582_v7  ;;  %7662 = vmatprep.subr.bf16.mxu0 %v10588_v8  ;;  %v10684_v24 = vld [vmem:[%s14188_s1 + $0x48] sm:$0xff]   ;;  %v10708_v28 = vld [vmem:[%s14188_s1 + $0x40] sm:$0xff]   ;;  %v10739_v38 = vld [vmem:[%s14188_s1 + $0x118] sm:$0xff]  }
   0xa   :  { %7684 = vmatprep.subr.bf16.mxu1 %v10594_v9  ;;  %v10690_v25 = vld [vmem:[%s14188_s1 + $0xc8] sm:$0xff]   ;;  %v10714_v29 = vld [vmem:[%s14188_s1 + $0xc0] sm:$0xff]   ;;  %v10748_v40 = vld [vmem:[%s14188_s1 + $0x110] sm:$0xff]  }
   0xb   :  { %v10696_v26 = vld [vmem:[%s14188_s1 + $0x8] sm:$0xff]   ;;  %v10720_v30 = vld [vmem:[%s14188_s1] sm:$0xff]   ;;  %v7053_v41 = vld [vmem:[%s14189_s0 + $0xb4] sm:$0xff] }
   0xc   :  { %7663 = vmatpush3.bf16.msra.mxu0 %v10600_v10  ;;  %v10702_v27 = vld [vmem:[%s14188_s1 + $0x88] sm:$0xff]   ;;  %v10726_v31 = vld [vmem:[%s14188_s1 + $0x80] sm:$0xff]   ;;  %v7057_v42 = vcombine.high %v7053_v41, %v7053_v41  ;;  %v9919_v45 = vld [vmem:[%s14189_s0 + $0x10] ss:$0 sps:$4 sm:$0xff]   ;;  %v7056_v48 = vcombine.low %v7053_v41, %v7053_v41 }
   0xd   :  { %7685 = vmatpush3.bf16.msra.mxu1 %v10606_v11  ;;  %7664 = vmatprep.subr.bf16.mxu0 %v10612_v12  ;;  %v100_v32 = vld [vmem:[%s14189_s0] sm:$0xff]  ;;  %v101_v33 = vld [vmem:[%s14189_s0 + $0x8] sm:$0xff]  ;;  %v7063_v52 = vld [vmem:[%s14189_s0 + $0x170] sm:$0xff] }
   0xe   :  { %7686 = vmatprep.subr.bf16.mxu1 %v10618_v13  ;;  %v7011_v34 = vcombine.low %v100_v32, %v100_v32  ;;  %v7012_v35 = vcombine.high %v100_v32, %v100_v32  ;;  %v7013_v36 = vcombine.low %v101_v33, %v101_v33  ;;  %v7014_v37 = vcombine.high %v101_v33, %v101_v33  ;;  %v10762_v43 = vld [vmem:[%s14188_s1 + $0x108] sm:$0xff]   ;;  %v10769_v44 = vld [vmem:[%s14188_s1 + $0x100] sm:$0xff]   ;;  %v9929_v59 = vld [vmem:[%s14189_s0 + $0x178] ss:$0 sps:$4 sm:$0xff]  }
   0xf   :  { %v7054_v46 = vld [vmem:[%s14189_s0 + $0xbc] sm:$0xff]  ;;  %v9924_v50 = vld [vmem:[%s14189_s0 + $0xc4] ss:$0 sps:$4 sm:$0xff]   ;;  %v7062_v51 = vld [vmem:[%s14189_s0 + $0x168] sm:$0xff]  ;;  %v7068_v54 = vcombine.high %v7063_v52, %v7063_v52  ;;  %v7067_v56 = vcombine.low %v7063_v52, %v7063_v52 }
  0x10   :  { %7665 = vmatpush3.bf16.msra.mxu0 %v10624_v14  ;;  %372 = vmatprep.mubr.bf16.mxu0 %v7012_v35  ;;  %v7059_v47 = vcombine.high %v7054_v46, %v7054_v46  ;;  %v7058_v49 = vcombine.low %v7054_v46, %v7054_v46  ;;  %v7066_v53 = vcombine.high %v7062_v51, %v7062_v51  ;;  %v7071_v57 = vld [vmem:[%s14189_s0 + $0x21c] sm:$0xff]  ;;  %v7072_v60 = vld [vmem:[%s14189_s0 + $0x224] sm:$0xff]  ;;  %v9934_v32 = vld [vmem:[%s14189_s0 + $0x22c] ss:$0 sps:$4 sm:$0xff]  }
  0x11   :  { %7687 = vmatpush3.bf16.msra.mxu1 %v10630_v15  ;;  %7666 = vmatprep.subr.bf16.mxu0 %v10636_v16  ;;  %v7065_v55 = vcombine.low %v7062_v51, %v7062_v51  ;;  %v7075_v58 = vcombine.high %v7071_v57, %v7071_v57  ;;  %v7077_v61 = vcombine.high %v7072_v60, %v7072_v60  ;;  %v7081_v33 = vld [vmem:[%s14189_s0 + $0x14] sm:$0xff]  ;;  %v11115_v46 = vld [vmem:[%s14188_s1 + $0x28] sm:$0xff]   ;;  %v11145_v51 = vld [vmem:[%s14188_s1 + $0xa0] sm:$0xff]  }
  0x12   :  { %7688 = vmatprep.subr.bf16.mxu1 %v10642_v17  ;;  %412 = vmatprep.mubr.bf16.mxu1 %v7014_v37  ;;  %v7074_v62 = vcombine.low %v7071_v57, %v7071_v57  ;;  %v7076_v63 = vcombine.low %v7072_v60, %v7072_v60  ;;  %v7085_v35 = vcombine.high %v7081_v33, %v7081_v33  ;;  %v11151_v52 = vld [vmem:[%s14188_s1 + $0x58] sm:$0xff]  }
  0x13   :  { %v7084_v37 = vcombine.low %v7081_v33, %v7081_v33  ;;  %v11199_v33 = vld [vmem:[%s14188_s1 + $0x48] sm:$0xff]  }
  0x14   :  { %7667 = vmatpush3.bf16.msra.mxu0 %v10648_v18 }
  0x15   :  { %7689 = vmatpush3.bf16.msra.mxu1 %v10654_v19  ;;  %7668 = vmatprep.subr.bf16.mxu0 %v10660_v20 }
  0x16   :  { %7690 = vmatprep.subr.bf16.mxu1 %v10666_v21 }
  0x18   :  { %7669 = vmatpush3.bf16.msra.mxu0 %v10672_v22 }
  0x19   :  { %7691 = vmatpush3.bf16.msra.mxu1 %v10678_v23  ;;  %7670 = vmatprep.subr.bf16.mxu0 %v10684_v24 }
  0x1a   :  { %7692 = vmatprep.subr.bf16.mxu1 %v10690_v25 }
  0x1c   :  { %7671 = vmatpush3.bf16.msra.mxu0 %v10696_v26 }
  0x1d   :  { %7693 = vmatpush3.bf16.msra.mxu1 %v10702_v27  ;;  %7672 = vmatprep.subr.bf16.mxu0 %v10708_v28 }
  0x1e   :  { %7694 = vmatprep.subr.bf16.mxu1 %v10714_v29 }
  0x20   :  { %7673 = vmatpush3.bf16.msra.mxu0 %v10720_v30 }
  0x21   :  { %7695 = vmatpush3.bf16.msra.mxu1 %v10726_v31  ;;  %9444 = vmatprep.subr.bf16.mxu0 %v10495_v39 }
  0x22   :  { %7707 = vmatprep.subr.bf16.mxu1 %v10541_v0 }
  0x23   :  { %373 = vmatmul.mubr.bf16.vlgmr.msra.gmra.mxu0 %v7011_v34  ;;  %v7082_v34 = vld [vmem:[%s14189_s0 + $0x1c] sm:$0xff] }
  0x24   :  { %413 = vmatmul.mubr.bf16.vlgmr.msra.gmra.mxu1 %v7013_v36  ;;  %9445 = vmatpush3.bf16.msra.mxu0 %v10739_v38  ;;  %v7087_v36 = vcombine.high %v7082_v34, %v7082_v34  ;;  %v7086_v41 = vcombine.low %v7082_v34, %v7082_v34  ;;  %v11205_v34 = vld [vmem:[%s14188_s1 + $0xc8] sm:$0xff]  }
  0x25   :  { %7708 = vmatpush3.bf16.msra.mxu1 %v10552_v2  ;;  %9446 = vmatprep.subr.bf16.mxu0 %v10495_v39 }
  0x26   :  { %7709 = vmatprep.subr.bf16.mxu1 %v10564_v4  ;;  %9452 = vmatprep.mubr.msk.bf16.mxu0 %vm10496_vm0, %v10495_v39 }
  0x27   :  { %516 = vmatprep.mubr.bf16.mxu1 %v7057_v42  ;;  %v7090_v42 = vld [vmem:[%s14189_s0 + $0xc8] sm:$0xff] }
  0x28   :  { %9447 = vmatpush3.bf16.msra.mxu0 %v10748_v40 }
  0x29   :  { %7710 = vmatpush3.bf16.msra.mxu1 %v10576_v6  ;;  %9448 = vmatprep.subr.bf16.mxu0 %v10495_v39 }
  0x2a   :  { %7711 = vmatprep.subr.bf16.mxu1 %v10588_v8 }
  0x2c   :  { %9449 = vmatpush3.bf16.msra.mxu0 %v10762_v43 }
  0x2d   :  { %7712 = vmatpush3.bf16.msra.mxu1 %v10600_v10  ;;  %9450 = vmatprep.subr.bf16.mxu0 %v10495_v39 }
  0x2e   :  { %7713 = vmatprep.subr.bf16.mxu1 %v10612_v12 }
  0x30   :  { %9451 = vmatpush3.bf16.msra.mxu0 %v10769_v44 }
  0x31   :  { %7714 = vmatpush3.bf16.msra.mxu1 %v10624_v14  ;;  %7729 = vmatprep.subr.bf16.mxu0 %v10546_v1 }
  0x32   :  { %7715 = vmatprep.subr.bf16.mxu1 %v10636_v16 }
  0x33   :  { %9453 = vmatmul.mubr.msk.bf16.vlgmr.msra.gmra.mxu0 %vm336_vm1, %v9919_v45  ;;  %v7094_v45 = vcombine.high %v7090_v42, %v7090_v42 }
  0x34   :  { %7730 = vmatpush3.bf16.msra.mxu0 %v10558_v3  ;;  %556 = vmatprep.mubr.bf16.mxu0 %v7059_v47  ;;  %v11121_v47 = vld [vmem:[%s14188_s1 + $0xa8] sm:$0xff]  }
  0x35   :  { %7716 = vmatpush3.bf16.msra.mxu1 %v10648_v18  ;;  %7731 = vmatprep.subr.bf16.mxu0 %v10570_v5 }
  0x36   :  { %7717 = vmatprep.subr.bf16.mxu1 %v10660_v20 }
  0x38   :  { %7732 = vmatpush3.bf16.msra.mxu0 %v10582_v7 }
  0x39   :  { %7718 = vmatpush3.bf16.msra.mxu1 %v10672_v22  ;;  %7733 = vmatprep.subr.bf16.mxu0 %v10594_v9 }
  0x3a   :  { %7719 = vmatprep.subr.bf16.mxu1 %v10684_v24 }
  0x3c   :  { %7734 = vmatpush3.bf16.msra.mxu0 %v10606_v11 }
  0x3d   :  { %7720 = vmatpush3.bf16.msra.mxu1 %v10696_v26  ;;  %7735 = vmatprep.subr.bf16.mxu0 %v10618_v13 }
  0x3e   :  { %7721 = vmatprep.subr.bf16.mxu1 %v10708_v28 }
  0x40   :  { %7736 = vmatpush3.bf16.msra.mxu0 %v10630_v15 }
  0x41   :  { %7722 = vmatpush3.bf16.msra.mxu1 %v10720_v30  ;;  %7737 = vmatprep.subr.bf16.mxu0 %v10642_v17 }
  0x42   :  { %9456 = vmatprep.subr.bf16.mxu1 %v10495_v39 }
  0x44   :  { %517 = vmatmul.mubr.bf16.vlgmr.msra.gmra.mxu1 %v7056_v48  ;;  %7738 = vmatpush3.bf16.msra.mxu0 %v10654_v19  ;;  %v11127_v48 = vld [vmem:[%s14188_s1 + $0x60] sm:$0xff]  }
  0x45   :  { %9457 = vmatpush3.bf16.msra.mxu1 %v10739_v38  ;;  %7739 = vmatprep.subr.bf16.mxu0 %v10666_v21 }
  0x46   :  { %9458 = vmatprep.subr.bf16.mxu1 %v10495_v39  ;;  %9464 = vmatprep.mubr.msk.bf16.mxu1 %vm10496_vm0, %v10495_v39 }
  0x48   :  { %7740 = vmatpush3.bf16.msra.mxu0 %v10678_v23 }
  0x49   :  { %9459 = vmatpush3.bf16.msra.mxu1 %v10748_v40  ;;  %7741 = vmatprep.subr.bf16.mxu0 %v10690_v25 }
  0x4a   :  { %9460 = vmatprep.subr.bf16.mxu1 %v10495_v39 }
  0x4c   :  { %7742 = vmatpush3.bf16.msra.mxu0 %v10702_v27 }
  0x4d   :  { %9461 = vmatpush3.bf16.msra.mxu1 %v10762_v43  ;;  %7743 = vmatprep.subr.bf16.mxu0 %v10714_v29 }
  0x4e   :  { %9462 = vmatprep.subr.bf16.mxu1 %v10495_v39 }
  0x50   :  { %7744 = vmatpush3.bf16.msra.mxu0 %v10726_v31 }
  0x51   :  { %9463 = vmatpush3.bf16.msra.mxu1 %v10769_v44  ;;  %7756 = vmatprep.subr.bf16.mxu0 %v10541_v0 }
  0x52   :  { %7778 = vmatprep.subr.bf16.mxu1 %v10546_v1 }
  0x53   :  { %557 = vmatmul.mubr.bf16.vlgmr.msra.gmra.mxu0 %v7058_v49  ;;  %v11133_v49 = vld [vmem:[%s14188_s1 + $0xe0] sm:$0xff]  }
  0x54   :  { %9465 = vmatmul.mubr.msk.bf16.vlgmr.msra.gmra.mxu1 %vm336_vm1, %v9924_v50  ;;  %7757 = vmatpush3.bf16.msra.mxu0 %v10552_v2  ;;  %v11139_v50 = vld [vmem:[%s14188_s1 + $0x20] sm:$0xff]  }
  0x55   :  { %7779 = vmatpush3.bf16.msra.mxu1 %v10558_v3  ;;  %7758 = vmatprep.subr.bf16.mxu0 %v10564_v4 }
  0x56   :  { %7780 = vmatprep.subr.bf16.mxu1 %v10570_v5  ;;  %661 = vmatprep.mubr.bf16.mxu0 %v7066_v53  ;;  %v11157_v53 = vld [vmem:[%s14188_s1 + $0xd8] sm:$0xff]  }
  0x57   :  { %701 = vmatprep.mubr.bf16.mxu1 %v7068_v54 }
  0x58   :  { %7759 = vmatpush3.bf16.msra.mxu0 %v10576_v6 }
  0x59   :  { %7781 = vmatpush3.bf16.msra.mxu1 %v10582_v7  ;;  %7760 = vmatprep.subr.bf16.mxu0 %v10588_v8 }
  0x5a   :  { %7782 = vmatprep.subr.bf16.mxu1 %v10594_v9 }
  0x5c   :  { %7761 = vmatpush3.bf16.msra.mxu0 %v10600_v10 }
  0x5d   :  { %7783 = vmatpush3.bf16.msra.mxu1 %v10606_v11  ;;  %7762 = vmatprep.subr.bf16.mxu0 %v10612_v12 }
  0x5e   :  { %7784 = vmatprep.subr.bf16.mxu1 %v10618_v13 }
  0x60   :  { %7763 = vmatpush3.bf16.msra.mxu0 %v10624_v14 }
  0x61   :  { %7785 = vmatpush3.bf16.msra.mxu1 %v10630_v15  ;;  %7764 = vmatprep.subr.bf16.mxu0 %v10636_v16 }
  0x62   :  { %7786 = vmatprep.subr.bf16.mxu1 %v10642_v17 }
  0x64   :  { %7765 = vmatpush3.bf16.msra.mxu0 %v10648_v18 }
  0x65   :  { %7787 = vmatpush3.bf16.msra.mxu1 %v10654_v19  ;;  %7766 = vmatprep.subr.bf16.mxu0 %v10660_v20 }
  0x66   :  { %7788 = vmatprep.subr.bf16.mxu1 %v10666_v21 }
  0x68   :  { %7767 = vmatpush3.bf16.msra.mxu0 %v10672_v22 }
  0x69   :  { %7789 = vmatpush3.bf16.msra.mxu1 %v10678_v23  ;;  %7768 = vmatprep.subr.bf16.mxu0 %v10684_v24 }
  0x6a   :  { %7790 = vmatprep.subr.bf16.mxu1 %v10690_v25 }
  0x6c   :  { %7769 = vmatpush3.bf16.msra.mxu0 %v10696_v26 }
  0x6d   :  { %7791 = vmatpush3.bf16.msra.mxu1 %v10702_v27  ;;  %7770 = vmatprep.subr.bf16.mxu0 %v10708_v28 }
  0x6e   :  { %7792 = vmatprep.subr.bf16.mxu1 %v10714_v29 }
  0x70   :  { %7771 = vmatpush3.bf16.msra.mxu0 %v10720_v30 }
  0x71   :  { %7793 = vmatpush3.bf16.msra.mxu1 %v10726_v31  ;;  %9468 = vmatprep.subr.bf16.mxu0 %v10495_v39 }
  0x72   :  { %7805 = vmatprep.subr.bf16.mxu1 %v10541_v0 }
  0x73   :  { %662 = vmatmul.mubr.bf16.vlgmr.msra.gmra.mxu0 %v7065_v55  ;;  %v11163_v55 = vld [vmem:[%s14188_s1 + $0x18] sm:$0xff]  }
  0x74   :  { %702 = vmatmul.mubr.bf16.vlgmr.msra.gmra.mxu1 %v7067_v56  ;;  %9469 = vmatpush3.bf16.msra.mxu0 %v10739_v38  ;;  %v11169_v56 = vld [vmem:[%s14188_s1 + $0x98] sm:$0xff]  }
  0x75   :  { %7806 = vmatpush3.bf16.msra.mxu1 %v10552_v2  ;;  %9470 = vmatprep.subr.bf16.mxu0 %v10495_v39 }
  0x76   :  { %7807 = vmatprep.subr.bf16.mxu1 %v10564_v4  ;;  %9476 = vmatprep.mubr.msk.bf16.mxu0 %vm10496_vm0, %v10495_v39 }
  0x77   :  { %806 = vmatprep.mubr.bf16.mxu1 %v7075_v58  ;;  %v11175_v58 = vld [vmem:[%s14188_s1 + $0x50] sm:$0xff]  }
  0x78   :  { %9471 = vmatpush3.bf16.msra.mxu0 %v10748_v40 }
  0x79   :  { %7808 = vmatpush3.bf16.msra.mxu1 %v10576_v6  ;;  %9472 = vmatprep.subr.bf16.mxu0 %v10495_v39 }
  0x7a   :  { %7809 = vmatprep.subr.bf16.mxu1 %v10588_v8 }
  0x7c   :  { %9473 = vmatpush3.bf16.msra.mxu0 %v10762_v43 }
  0x7d   :  { %7810 = vmatpush3.bf16.msra.mxu1 %v10600_v10  ;;  %9474 = vmatprep.subr.bf16.mxu0 %v10495_v39 }
  0x7e   :  { %7811 = vmatprep.subr.bf16.mxu1 %v10612_v12 }
  0x80   :  { %9475 = vmatpush3.bf16.msra.mxu0 %v10769_v44 }
  0x81   :  { %7812 = vmatpush3.bf16.msra.mxu1 %v10624_v14  ;;  %7827 = vmatprep.subr.bf16.mxu0 %v10546_v1 }
  0x82   :  { %7813 = vmatprep.subr.bf16.mxu1 %v10636_v16 }
  0x83   :  { %9477 = vmatmul.mubr.msk.bf16.vlgmr.msra.gmra.mxu0 %vm336_vm1, %v9929_v59  ;;  %v11181_v59 = vld [vmem:[%s14188_s1 + $0xd0] sm:$0xff]  }
  0x84   :  { %7828 = vmatpush3.bf16.msra.mxu0 %v10558_v3  ;;  %846 = vmatprep.mubr.bf16.mxu0 %v7077_v61 }
  0x85   :  { %7814 = vmatpush3.bf16.msra.mxu1 %v10648_v18  ;;  %7829 = vmatprep.subr.bf16.mxu0 %v10570_v5 }
  0x86   :  { %7815 = vmatprep.subr.bf16.mxu1 %v10660_v20 }
  0x88   :  { %7830 = vmatpush3.bf16.msra.mxu0 %v10582_v7 }
  0x89   :  { %7816 = vmatpush3.bf16.msra.mxu1 %v10672_v22  ;;  %7831 = vmatprep.subr.bf16.mxu0 %v10594_v9 }
  0x8a   :  { %7817 = vmatprep.subr.bf16.mxu1 %v10684_v24 }
  0x8c   :  { %7832 = vmatpush3.bf16.msra.mxu0 %v10606_v11 }
  0x8d   :  { %7818 = vmatpush3.bf16.msra.mxu1 %v10696_v26  ;;  %7833 = vmatprep.subr.bf16.mxu0 %v10618_v13 }
  0x8e   :  { %7819 = vmatprep.subr.bf16.mxu1 %v10708_v28 }
  0x90   :  { %7834 = vmatpush3.bf16.msra.mxu0 %v10630_v15 }
  0x91   :  { %7820 = vmatpush3.bf16.msra.mxu1 %v10720_v30  ;;  %7835 = vmatprep.subr.bf16.mxu0 %v10642_v17 }
  0x92   :  { %9480 = vmatprep.subr.bf16.mxu1 %v10495_v39 }
  0x94   :  { %807 = vmatmul.mubr.bf16.vlgmr.msra.gmra.mxu1 %v7074_v62  ;;  %7836 = vmatpush3.bf16.msra.mxu0 %v10654_v19  ;;  %v11187_v62 = vld [vmem:[%s14188_s1 + $0x10] sm:$0xff]  }
  0x95   :  { %9481 = vmatpush3.bf16.msra.mxu1 %v10739_v38  ;;  %7837 = vmatprep.subr.bf16.mxu0 %v10666_v21 }
  0x96   :  { %9482 = vmatprep.subr.bf16.mxu1 %v10495_v39  ;;  %9488 = vmatprep.mubr.msk.bf16.mxu1 %vm10496_vm0, %v10495_v39 }
  0x98   :  { %7838 = vmatpush3.bf16.msra.mxu0 %v10678_v23 }
  0x99   :  { %9483 = vmatpush3.bf16.msra.mxu1 %v10748_v40  ;;  %7839 = vmatprep.subr.bf16.mxu0 %v10690_v25 }
  0x9a   :  { %9484 = vmatprep.subr.bf16.mxu1 %v10495_v39 }
  0x9c   :  { %7840 = vmatpush3.bf16.msra.mxu0 %v10702_v27 }
  0x9d   :  { %9485 = vmatpush3.bf16.msra.mxu1 %v10762_v43  ;;  %7841 = vmatprep.subr.bf16.mxu0 %v10714_v29 }
  0x9e   :  { %9486 = vmatprep.subr.bf16.mxu1 %v10495_v39 }
  0xa0   :  { %7842 = vmatpush3.bf16.msra.mxu0 %v10726_v31 }
  0xa1   :  { %9487 = vmatpush3.bf16.msra.mxu1 %v10769_v44  ;;  %7854 = vmatprep.subr.bf16.mxu0 %v10541_v0 }
  0xa2   :  { %7876 = vmatprep.subr.bf16.mxu1 %v10546_v1 }
  0xa3   :  { %847 = vmatmul.mubr.bf16.vlgmr.msra.gmra.mxu0 %v7076_v63  ;;  %v11193_v63 = vld [vmem:[%s14188_s1 + $0x90] sm:$0xff]  }
  0xa4   :  { %9489 = vmatmul.mubr.msk.bf16.vlgmr.msra.gmra.mxu1 %vm336_vm1, %v9934_v32  ;;  %7855 = vmatpush3.bf16.msra.mxu0 %v10552_v2 }
  0xa5   :  { %7877 = vmatpush3.bf16.msra.mxu1 %v10558_v3  ;;  %7856 = vmatprep.subr.bf16.mxu0 %v10564_v4 }
  0xa6   :  { %7878 = vmatprep.subr.bf16.mxu1 %v10570_v5  ;;  %976 = vmatprep.mubr.bf16.mxu0 %v7085_v35  ;;  %v11211_v35 = vld [vmem:[%s14188_s1 + $0x8] sm:$0xff]  }
  0xa7   :  { %1016 = vmatprep.mubr.bf16.mxu1 %v7087_v36  ;;  %v11217_v36 = vld [vmem:[%s14188_s1 + $0x88] sm:$0xff]  }
  0xa8   :  { %7857 = vmatpush3.bf16.msra.mxu0 %v10576_v6 }
  0xa9   :  { %7879 = vmatpush3.bf16.msra.mxu1 %v10582_v7  ;;  %7858 = vmatprep.subr.bf16.mxu0 %v10588_v8 }
  0xaa   :  { %7880 = vmatprep.subr.bf16.mxu1 %v10594_v9 }
  0xac   :  { %7859 = vmatpush3.bf16.msra.mxu0 %v10600_v10 }
  0xad   :  { %7881 = vmatpush3.bf16.msra.mxu1 %v10606_v11  ;;  %7860 = vmatprep.subr.bf16.mxu0 %v10612_v12 }
  0xae   :  { %7882 = vmatprep.subr.bf16.mxu1 %v10618_v13 }
  0xb0   :  { %7861 = vmatpush3.bf16.msra.mxu0 %v10624_v14 }
  0xb1   :  { %7883 = vmatpush3.bf16.msra.mxu1 %v10630_v15  ;;  %7862 = vmatprep.subr.bf16.mxu0 %v10636_v16 }
  0xb2   :  { %7884 = vmatprep.subr.bf16.mxu1 %v10642_v17 }
  0xb4   :  { %7863 = vmatpush3.bf16.msra.mxu0 %v10648_v18 }
  0xb5   :  { %7885 = vmatpush3.bf16.msra.mxu1 %v10654_v19  ;;  %7864 = vmatprep.subr.bf16.mxu0 %v10660_v20 }
  0xb6   :  { %7886 = vmatprep.subr.bf16.mxu1 %v10666_v21 }
  0xb8   :  { %7865 = vmatpush3.bf16.msra.mxu0 %v10672_v22 }
  0xb9   :  { %7887 = vmatpush3.bf16.msra.mxu1 %v10678_v23  ;;  %7866 = vmatprep.subr.bf16.mxu0 %v10684_v24 }
  0xba   :  { %7888 = vmatprep.subr.bf16.mxu1 %v10690_v25 }
  0xbc   :  { %7867 = vmatpush3.bf16.msra.mxu0 %v10696_v26 }
  0xbd   :  { %7889 = vmatpush3.bf16.msra.mxu1 %v10702_v27  ;;  %7868 = vmatprep.subr.bf16.mxu0 %v10708_v28 }
  0xbe   :  { %7890 = vmatprep.subr.bf16.mxu1 %v10714_v29 }
  0xc0   :  { %7869 = vmatpush3.bf16.msra.mxu0 %v10720_v30 }
  0xc1   :  { %7891 = vmatpush3.bf16.msra.mxu1 %v10726_v31  ;;  %9492 = vmatprep.subr.bf16.mxu0 %v10495_v39 }
  0xc2   :  { %7903 = vmatprep.subr.bf16.mxu1 %v10541_v0  ;;  %v9939_v0 = vld [vmem:[%s14189_s0 + $0x24] ss:$0 sps:$4 sm:$0xff]  }
  0xc3   :  { %977 = vmatmul.mubr.bf16.vlgmr.msra.gmra.mxu0 %v7084_v37  ;;  %v11223_v37 = vld [vmem:[%s14188_s1 + $0x40] sm:$0xff]  }
  0xc4   :  { %1017 = vmatmul.mubr.bf16.vlgmr.msra.gmra.mxu1 %v7086_v41  ;;  %9493 = vmatpush3.bf16.msra.mxu0 %v10739_v38  ;;  %v11229_v41 = vld [vmem:[%s14188_s1 + $0xc0] sm:$0xff]  }
  0xc5   :  { %7904 = vmatpush3.bf16.msra.mxu1 %v10552_v2  ;;  %9494 = vmatprep.subr.bf16.mxu0 %v10495_v39  ;;  %v10989_v2 = vld [vmem:[%s14189_s0 + $0xd0] sm:$0xff] }
  0xc6   :  { %7905 = vmatprep.subr.bf16.mxu1 %v10564_v4  ;;  %9500 = vmatprep.mubr.msk.bf16.mxu0 %vm10496_vm0, %v10495_v39  ;;  %v7096_v4 = vcombine.high %v10989_v2, %v10989_v2 }
  0xc7   :  { %1120 = vmatprep.mubr.bf16.mxu1 %v7094_v45 }
  0xc8   :  { %9495 = vmatpush3.bf16.msra.mxu0 %v10748_v40 }
  0xc9   :  { %7906 = vmatpush3.bf16.msra.mxu1 %v10576_v6  ;;  %9496 = vmatprep.subr.bf16.mxu0 %v10495_v39 }
  0xca   :  { %7907 = vmatprep.subr.bf16.mxu1 %v10588_v8 }
  0xcc   :  { %9497 = vmatpush3.bf16.msra.mxu0 %v10762_v43 }
  0xcd   :  { %7908 = vmatpush3.bf16.msra.mxu1 %v10600_v10  ;;  %9498 = vmatprep.subr.bf16.mxu0 %v10495_v39 }
  0xce   :  { %7909 = vmatprep.subr.bf16.mxu1 %v10612_v12 }
  0xd0   :  { %9499 = vmatpush3.bf16.msra.mxu0 %v10769_v44 }
  0xd1   :  { %7910 = vmatpush3.bf16.msra.mxu1 %v10624_v14  ;;  %7925 = vmatprep.subr.bf16.mxu0 %v10546_v1  ;;  %v7093_v1 = vcombine.low %v7090_v42, %v7090_v42 }
  0xd2   :  { %7911 = vmatprep.subr.bf16.mxu1 %v10636_v16  ;;  %v11034_v16 = vld [vmem:[%s14189_s0 + $0x17c] sm:$0xff] }
  0xd3   :  { %9501 = vmatmul.mubr.msk.bf16.vlgmr.msra.gmra.mxu0 %vm336_vm1, %v9939_v0  ;;  %v7102_v42 = vcombine.low %v11034_v16, %v11034_v16  ;;  %v11239_v0 = vld [vmem:[%s14189_s0 + $0x230] sm:$0xff] }
  0xd4   :  { %7926 = vmatpush3.bf16.msra.mxu0 %v10558_v3  ;;  %1160 = vmatprep.mubr.bf16.mxu0 %v7096_v4  ;;  %v11250_v4 = vld [vmem:[%s14188_s1 + $0x80] sm:$0xff]  }
  0xd5   :  { %7912 = vmatpush3.bf16.msra.mxu1 %v10648_v18  ;;  %7927 = vmatprep.subr.bf16.mxu0 %v10570_v5  ;;  %v7095_v18 = vcombine.low %v10989_v2, %v10989_v2  ;;  %v11244_v2 = vld [vmem:[%s14188_s1] sm:$0xff]  }
  0xd6   :  { %7913 = vmatprep.subr.bf16.mxu1 %v10660_v20  ;;  %v11054_v20 = vld [vmem:[%s14188_s1 + $0xf8] sm:$0xff]  }
  0xd8   :  { %7928 = vmatpush3.bf16.msra.mxu0 %v10582_v7 }
  0xd9   :  { %7914 = vmatpush3.bf16.msra.mxu1 %v10672_v22  ;;  %7929 = vmatprep.subr.bf16.mxu0 %v10594_v9 }
  0xda   :  { %7915 = vmatprep.subr.bf16.mxu1 %v10684_v24 }
  0xdc   :  { %7930 = vmatpush3.bf16.msra.mxu0 %v10606_v11 }
  0xdd   :  { %7916 = vmatpush3.bf16.msra.mxu1 %v10696_v26  ;;  %7931 = vmatprep.subr.bf16.mxu0 %v10618_v13  ;;  %v11073_v26 = vld [vmem:[%s14188_s1 + $0xb8] sm:$0xff]  }
  0xde   :  { %7917 = vmatprep.subr.bf16.mxu1 %v10708_v28  ;;  %v11079_v28 = vld [vmem:[%s14188_s1 + $0x70] sm:$0xff]  }
  0xe0   :  { %7932 = vmatpush3.bf16.msra.mxu0 %v10630_v15  ;;  %v9944_v15 = vld [vmem:[%s14189_s0 + $0xd8] ss:$0 sps:$4 sm:$0xff]  }
  0xe1   :  { %7918 = vmatpush3.bf16.msra.mxu1 %v10720_v30  ;;  %7933 = vmatprep.subr.bf16.mxu0 %v10642_v17  ;;  %v11039_v17 = vld [vmem:[%s14189_s0 + $0x184] sm:$0xff] }
  0xe2   :  { %9504 = vmatprep.subr.bf16.mxu1 %v10495_v39  ;;  %v7105_v22 = vcombine.high %v11039_v17, %v11039_v17  ;;  %v7104_v45 = vcombine.low %v11039_v17, %v11039_v17  ;;  %v11282_v17 = vld [vmem:[%s14188_s1 + $0x108] sm:$0xff]  }
  0xe3   :  { %v7674_v3 = vpop.f32.mrf.mxu0 }
  0xe4   :  { %v7696_v5 = vpop.f32.mrf.mxu1  ;;  %1121 = vmatmul.mubr.bf16.vlgmr.msra.gmra.mxu1 %v7093_v1  ;;  %7934 = vmatpush3.bf16.msra.mxu0 %v10654_v19  ;;  %v11048_v19 = vld [vmem:[%s14188_s1 + $0x78] sm:$0xff]   ;;  %v7112_v1 = vcombine.high %v11239_v0, %v11239_v0 }
  0xe5   :  { %9505 = vmatpush3.bf16.msra.mxu1 %v10739_v38  ;;  %v7675_v6 = vpop.f32.mrf.mxu0  ;;  %7935 = vmatprep.subr.bf16.mxu0 %v10666_v21  ;;  %v7103_v21 = vcombine.high %v11034_v16, %v11034_v16  ;;  %v11097_v38 = vld [vmem:[%s14188_s1 + $0xb0] sm:$0xff]  }
  0xe6   :  { %v7697_v7 = vpop.f32.mrf.mxu1  ;;  %9506 = vmatprep.subr.bf16.mxu1 %v10495_v39  ;;  %v7676_v8 = vadd.f32 %v7675_v6, %v7674_v3  ;;  %9512 = vmatprep.mubr.msk.bf16.mxu1 %vm10496_vm0, %v10495_v39  ;;  %v11260_v6 = vld [vmem:[%s14188_s1 + $0x118] sm:$0xff]  }
  0xe7   :  { %v7698_v9 = vadd.f32 %v7697_v7, %v7696_v5  ;;  %v7677_v10 = vpop.f32.mrf.mxu0 }
  0xe8   :  { %v7699_v11 = vpop.f32.mrf.mxu1  ;;  %7936 = vmatpush3.bf16.msra.mxu0 %v10678_v23 }
  0xe9   :  { %9507 = vmatpush3.bf16.msra.mxu1 %v10748_v40  ;;  %v415_v12 = vadd.f32 %v7698_v9, %v7676_v8  ;;  %v7678_v13 = vpop.f32.mrf.mxu0  ;;  %7937 = vmatprep.subr.bf16.mxu0 %v10690_v25  ;;  %v11067_v25 = vld [vmem:[%s14188_s1 + $0x38] sm:$0xff]  }
  0xea   :  { %v7700_v14 = vpop.f32.mrf.mxu1  ;;  %9508 = vmatprep.subr.bf16.mxu1 %v10495_v39  ;;  %v11271_v13 = vld [vmem:[%s14188_s1 + $0x110] sm:$0xff]  }
  0xec   :  { %7938 = vmatpush3.bf16.msra.mxu0 %v10702_v27 }
  0xed   :  { %9509 = vmatpush3.bf16.msra.mxu1 %v10762_v43  ;;  %7939 = vmatprep.subr.bf16.mxu0 %v10714_v29  ;;  %v11085_v29 = vld [vmem:[%s14188_s1 + $0xf0] sm:$0xff]   ;;  %v11103_v43 = vld [vmem:[%s14188_s1 + $0x68] sm:$0xff]  }
  0xee   :  { %9510 = vmatprep.subr.bf16.mxu1 %v10495_v39 }
  0xf0   :  { %7940 = vmatpush3.bf16.msra.mxu0 %v10726_v31  ;;  %v11091_v31 = vld [vmem:[%s14188_s1 + $0x30] sm:$0xff]  }
  0xf1   :  { %9511 = vmatpush3.bf16.msra.mxu1 %v10769_v44  ;;  %7952 = vmatprep.subr.bf16.mxu0 %v11048_v19  ;;  %v11109_v44 = vld [vmem:[%s14188_s1 + $0xe8] sm:$0xff]  }
  0xf2   :  { %7974 = vmatprep.subr.bf16.mxu1 %v11054_v20 }
  0xf3   :  { %v454_v23 = vpop.f32.mrf.mxu0  ;;  %1161 = vmatmul.mubr.bf16.vlgmr.msra.gmra.mxu0 %v7095_v18 }
  0xf4   :  { %9513 = vmatmul.mubr.msk.bf16.vlgmr.msra.gmra.mxu1 %vm336_vm1, %v9944_v15  ;;  %v11062_v24 = vadd.f32 %v454_v23, %v415_v12  ;;  %7953 = vmatpush3.bf16.msra.mxu0 %v11067_v25  ;;  %v11299_v23 = vld [vmem:[%s14188_s1 + $0x100] sm:$0xff]  }
  0xf5   :  { %7975 = vmatpush3.bf16.msra.mxu1 %v11073_v26  ;;  %v9454_v27 = vpop.f32.mrf.mxu0  ;;  %7954 = vmatprep.subr.bf16.mxu0 %v11079_v28 }
  0xf6   :  { %7976 = vmatprep.subr.bf16.mxu1 %v11085_v29  ;;  %1265 = vmatprep.mubr.bf16.mxu0 %v7103_v21  ;;  %v9949_v21 = vld [vmem:[%s14189_s0 + $0x18c] ss:$0 sps:$4 sm:$0xff]  }
  0xf7   :  { %1305 = vmatprep.mubr.bf16.mxu1 %v7105_v22  ;;  %v457_v30 = vpop.f32.mrf.mxu0  ;;  %v7109_v22 = vld [vmem:[%s14189_s0 + $0x238] sm:$0xff] }
  0xf8   :  { %7955 = vmatpush3.bf16.msra.mxu0 %v11091_v31  ;;  %v7114_v27 = vcombine.high %v7109_v22, %v7109_v22  ;;  %v7111_v30 = vcombine.low %v11239_v0, %v11239_v0  ;;  %v9957_v0 = vld [vmem:[%s14190_s3 + $0x74] ss:$8 sps:$4 sm:$0xff]  }
  0xf9   :  { %7977 = vmatpush3.bf16.msra.mxu1 %v11097_v38  ;;  %v9455_v40 = vpop.f32.mrf.mxu0  ;;  %7956 = vmatprep.subr.bf16.mxu0 %v11103_v43 }
  0xfa   :  { %7978 = vmatprep.subr.bf16.mxu1 %v11109_v44 }
  0xfc   :  { %7957 = vmatpush3.bf16.msra.mxu0 %v11115_v46 }
  0xfd   :  { %7979 = vmatpush3.bf16.msra.mxu1 %v11121_v47  ;;  %7958 = vmatprep.subr.bf16.mxu0 %v11127_v48 }
  0xfe   :  { %7980 = vmatprep.subr.bf16.mxu1 %v11133_v49 }
 0x100   :  { %7959 = vmatpush3.bf16.msra.mxu0 %v11139_v50 }
 0x101   :  { %7981 = vmatpush3.bf16.msra.mxu1 %v11145_v51  ;;  %7960 = vmatprep.subr.bf16.mxu0 %v11151_v52 }
 0x102   :  { %7982 = vmatprep.subr.bf16.mxu1 %v11157_v53 }
 0x104   :  { %v7723_v54 = vpop.f32.mrf.mxu1  ;;  %7961 = vmatpush3.bf16.msra.mxu0 %v11163_v55 }
 0x105   :  { %7983 = vmatpush3.bf16.msra.mxu1 %v11169_v56  ;;  %7962 = vmatprep.subr.bf16.mxu0 %v11175_v58 }
 0x106   :  { %v7724_v57 = vpop.f32.mrf.mxu1  ;;  %7984 = vmatprep.subr.bf16.mxu1 %v11181_v59 }
 0x107   :  { %v7725_v60 = vadd.f32 %v7724_v57, %v7723_v54 }
 0x108   :  { %v7726_v61 = vpop.f32.mrf.mxu1  ;;  %7963 = vmatpush3.bf16.msra.mxu0 %v11187_v62 }
 0x109   :  { %7985 = vmatpush3.bf16.msra.mxu1 %v11193_v63  ;;  %7964 = vmatprep.subr.bf16.mxu0 %v11199_v33 }
 0x10a   :  { %v7727_v32 = vpop.f32.mrf.mxu1  ;;  %7986 = vmatprep.subr.bf16.mxu1 %v11205_v34 }
 0x10c   :  { %7965 = vmatpush3.bf16.msra.mxu0 %v11211_v35 }
 0x10d   :  { %7987 = vmatpush3.bf16.msra.mxu1 %v11217_v36  ;;  %7966 = vmatprep.subr.bf16.mxu0 %v11223_v37 }
 0x10e   :  { %7988 = vmatprep.subr.bf16.mxu1 %v11229_v41 }
 0x110   :  { %7967 = vmatpush3.bf16.msra.mxu0 %v11244_v2 }
 0x111   :  { %7989 = vmatpush3.bf16.msra.mxu1 %v11250_v4  ;;  %9516 = vmatprep.subr.bf16.mxu0 %v10495_v39 }
 0x112   :  { %8001 = vmatprep.subr.bf16.mxu1 %v11048_v19 }
 0x113   :  { %v7745_v3 = vpop.f32.mrf.mxu0  ;;  %1266 = vmatmul.mubr.bf16.vlgmr.msra.gmra.mxu0 %v7102_v42 }
 0x114   :  { %1306 = vmatmul.mubr.bf16.vlgmr.msra.gmra.mxu1 %v7104_v45  ;;  %v598_v5 = vpop.f32.mrf.mxu1  ;;  %9517 = vmatpush3.bf16.msra.mxu0 %v11260_v6 }
 0x115   :  { %8002 = vmatpush3.bf16.msra.mxu1 %v11067_v25  ;;  %v7746_v7 = vpop.f32.mrf.mxu0  ;;  %9518 = vmatprep.subr.bf16.mxu0 %v10495_v39 }
 0x116   :  { %v9466_v8 = vpop.f32.mrf.mxu1  ;;  %8003 = vmatprep.subr.bf16.mxu1 %v11079_v28  ;;  %v7747_v9 = vadd.f32 %v7746_v7, %v7745_v3  ;;  %9524 = vmatprep.mubr.msk.bf16.mxu0 %vm10496_vm0, %v10495_v39  ;;  %v9954_v3 = vld [vmem:[%s14189_s0 + $0x240] ss:$0 sps:$4 sm:$0xff]   ;;  %v9960_v7 = vld [vmem:[%s14190_s3 + $0x64] ss:$8 sps:$4 sm:$0xff]  }
 0x117   :  { %1410 = vmatprep.mubr.bf16.mxu1 %v7112_v1  ;;  %v7748_v10 = vpop.f32.mrf.mxu0  ;;  %v7113_v1 = vcombine.low %v7109_v22, %v7109_v22  ;;  %v9966_v22 = vld [vmem:[%s14190_s3 + $0x44] ss:$8 sps:$4 sm:$0xff]  }
 0x118   :  { %v601_v11 = vpop.f32.mrf.mxu1  ;;  %v559_v12 = vadd.f32 %v7747_v9, %v7725_v60  ;;  %9519 = vmatpush3.bf16.msra.mxu0 %v11271_v13  ;;  %v9958_v9 = vld [vmem:[%s14190_s3 + $0x60] ss:$8 sps:$4 sm:$0xff]   ;;  %v10497_v10 = vmov 0  }
 0x119   :  { %8004 = vmatpush3.bf16.msra.mxu1 %v11091_v31  ;;  %v7749_v14 = vpop.f32.mrf.mxu0  ;;  %9520 = vmatprep.subr.bf16.mxu0 %v10495_v39 }
 0x11a   :  { %v9467_v15 = vpop.f32.mrf.mxu1  ;;  %8005 = vmatprep.subr.bf16.mxu1 %v11103_v43  ;;  %v11277_v16 = vadd.f32 %v598_v5, %v559_v12  ;;  %v9955_v5 = vld [vmem:[%s14190_s3 + $0x70] ss:$8 sps:$4 sm:$0xff]   ;;  %v9963_v12 = vld [vmem:[%s14190_s3 + $0x54] ss:$8 sps:$4 sm:$0xff]  }
 0x11b   :  { %v9961_v15 = vld [vmem:[%s14190_s3 + $0x50] ss:$8 sps:$4 sm:$0xff]  }
 0x11c   :  { %9521 = vmatpush3.bf16.msra.mxu0 %v11282_v17  ;;  %v604_v18 = vmax.f32 %v11062_v24, %v11277_v16  ;;  %v9982_v24 = vld [vmem:[%s14190_s3 + $0xe0] ss:$8 sps:$4 sm:$0xff]   ;;  %v9985_v16 = vld [vmem:[%s14190_s3 + $0xd0] ss:$8 sps:$4 sm:$0xff]  }
 0x11d   :  { %8006 = vmatpush3.bf16.msra.mxu1 %v11115_v46  ;;  %9522 = vmatprep.subr.bf16.mxu0 %v10495_v39 }
 0x11e   :  { %8007 = vmatprep.subr.bf16.mxu1 %v11127_v48 }
 0x120   :  { %9523 = vmatpush3.bf16.msra.mxu0 %v11299_v23 }
 0x121   :  { %8008 = vmatpush3.bf16.msra.mxu1 %v11139_v50  ;;  %8023 = vmatprep.subr.bf16.mxu0 %v11054_v20 }
 0x122   :  { %8009 = vmatprep.subr.bf16.mxu1 %v11151_v52 }
 0x123   :  { %9525 = vmatmul.mubr.msk.bf16.vlgmr.msra.gmra.mxu0 %vm336_vm1, %v9949_v21 }
 0x124   :  { %8024 = vmatpush3.bf16.msra.mxu0 %v11073_v26  ;;  %1450 = vmatprep.mubr.bf16.mxu0 %v7114_v27  ;;  %v9964_v27 = vld [vmem:[%s14190_s3 + $0x40] ss:$8 sps:$4 sm:$0xff]  }
 0x125   :  { %8010 = vmatpush3.bf16.msra.mxu1 %v11163_v55  ;;  %8025 = vmatprep.subr.bf16.mxu0 %v11085_v29 }
 0x126   :  { %8011 = vmatprep.subr.bf16.mxu1 %v11175_v58 }
 0x128   :  { %8026 = vmatpush3.bf16.msra.mxu0 %v11097_v38 }
 0x129   :  { %8012 = vmatpush3.bf16.msra.mxu1 %v11187_v62  ;;  %8027 = vmatprep.subr.bf16.mxu0 %v11109_v44 }
 0x12a   :  { %8013 = vmatprep.subr.bf16.mxu1 %v11199_v33 }
 0x12c   :  { %8028 = vmatpush3.bf16.msra.mxu0 %v11121_v47 }
 0x12d   :  { %8014 = vmatpush3.bf16.msra.mxu1 %v11211_v35  ;;  %8029 = vmatprep.subr.bf16.mxu0 %v11133_v49 }
 0x12e   :  { %8015 = vmatprep.subr.bf16.mxu1 %v11223_v37 }
 0x130   :  { %8030 = vmatpush3.bf16.msra.mxu0 %v11145_v51 }
 0x131   :  { %8016 = vmatpush3.bf16.msra.mxu1 %v11244_v2  ;;  %8031 = vmatprep.subr.bf16.mxu0 %v11157_v53 }
 0x132   :  { %9528 = vmatprep.subr.bf16.mxu1 %v10495_v39 }
 0x133   :  { %v11324_v40 = vpop.f32.mrf.mxu0 }
 0x134   :  { %v11326_v54 = vpop.f32.mrf.mxu1  ;;  %1411 = vmatmul.mubr.bf16.vlgmr.msra.gmra.mxu1 %v7111_v30  ;;  %8032 = vmatpush3.bf16.msra.mxu0 %v11169_v56  ;;  %v9969_v30 = vld [vmem:[%s14190_s3 + $0x34] ss:$8 sps:$4 sm:$0xff]  }
 0x135   :  { %9529 = vmatpush3.bf16.msra.mxu1 %v11260_v6  ;;  %v11330_v57 = vpop.f32.mrf.mxu0  ;;  %8033 = vmatprep.subr.bf16.mxu0 %v11181_v59 }
 0x136   :  { %v11332_v60 = vpop.f32.mrf.mxu1  ;;  %9530 = vmatprep.subr.bf16.mxu1 %v10495_v39  ;;  %9536 = vmatprep.mubr.msk.bf16.mxu1 %vm10496_vm0, %v10495_v39 }
 0x137   :  { %v7775_v61 = vpop.f32.mrf.mxu0 }
 0x138   :  { %v7797_v32 = vpop.f32.mrf.mxu1  ;;  %8034 = vmatpush3.bf16.msra.mxu0 %v11193_v63  ;;  %v9967_v61 = vld [vmem:[%s14190_s3 + $0x30] ss:$8 sps:$4 sm:$0xff]  }
 0x139   :  { %9531 = vmatpush3.bf16.msra.mxu1 %v11271_v13  ;;  %v7776_v42 = vpop.f32.mrf.mxu0  ;;  %8035 = vmatprep.subr.bf16.mxu0 %v11205_v34  ;;  %v9972_v32 = vld [vmem:[%s14190_s3 + $0x24] ss:$8 sps:$4 sm:$0xff]  }
 0x13a   :  { %v7798_v45 = vpop.f32.mrf.mxu1  ;;  %9532 = vmatprep.subr.bf16.mxu1 %v10495_v39 }
 0x13b   :  { %v9970_v45 = vld [vmem:[%s14190_s3 + $0x20] ss:$8 sps:$4 sm:$0xff]  }
 0x13c   :  { %8036 = vmatpush3.bf16.msra.mxu0 %v11217_v36 }
 0x13d   :  { %9533 = vmatpush3.bf16.msra.mxu1 %v11282_v17  ;;  %8037 = vmatprep.subr.bf16.mxu0 %v11229_v41 }
 0x13e   :  { %9534 = vmatprep.subr.bf16.mxu1 %v10495_v39 }
 0x140   :  { %8038 = vmatpush3.bf16.msra.mxu0 %v11250_v4 }
 0x141   :  { %9535 = vmatpush3.bf16.msra.mxu1 %v11299_v23 }
 0x142   :  { %1720 = vmatprep.subr.bf16.mxu1 %v9957_v0 }
 0x143   :  { %v743_v8 = vpop.f32.mrf.mxu0  ;;  %1451 = vmatmul.mubr.bf16.vlgmr.msra.gmra.mxu0 %v7113_v1  ;;  %v9975_v1 = vld [vmem:[%s14190_s3 + $0x14] ss:$8 sps:$4 sm:$0xff]  }
 0x144   :  { %9537 = vmatmul.mubr.msk.bf16.vlgmr.msra.gmra.mxu1 %vm336_vm1, %v9954_v3  ;;  %1631 = vmatprep.mubr.bf16.mxu0 %v10497_v10 }
 0x145   :  { %1721 = vmatpush1.bf16.msra.mxu1 %v9955_v5  ;;  %1752 = vmatprep.mubr.bf16.mxu1 %v10497_v10  ;;  %v9478_v11 = vpop.f32.mrf.mxu0  ;;  %v9973_v5 = vld [vmem:[%s14190_s3 + $0x10] ss:$8 sps:$4 sm:$0xff]  }
 0x146   :  { %1722 = vmatprep.subr.bf16.mxu1 %v9960_v7  ;;  %v9976_v11 = vld [vmem:[%s14190_s3] ss:$8 sps:$4 sm:$0xff]  }
 0x147   :  { %v746_v14 = vpop.f32.mrf.mxu0 }
 0x148   :  { %v7796_v14 = vadd.f32 %v11332_v60, %v11326_v54  ;;  %v9981_v54 = vld [vmem:[%s14190_s3 + $0xf4] ss:$8 sps:$4 sm:$0xff]  }
 0x149   :  { %1723 = vmatpush1.bf16.msra.mxu1 %v9958_v9  ;;  %v9479_v21 = vpop.f32.mrf.mxu0  ;;  %v9978_v9 = vld [vmem:[%s14190_s3 + $0x4] ss:$8 sps:$4 sm:$0xff]   ;;  %1599 = vmatprep.subr.bf16.mxu0 %v9981_v54 }
 0x14a   :  { %1724 = vmatprep.subr.bf16.mxu1 %v9963_v12  ;;  %v7774_v12 = vadd.f32 %v11330_v57, %v11324_v40  ;;  %v9979_v40 = vld [vmem:[%s14190_s3 + $0xf0] ss:$8 sps:$4 sm:$0xff]  }
 0x14b   :  { %1600 = vmatpush1.bf16.msra.mxu0 %v9979_v40 }
 0x14d   :  { %1725 = vmatpush1.bf16.msra.mxu1 %v9961_v15 }
 0x14e   :  { %1726 = vmatprep.subr.bf16.mxu1 %v9966_v22  ;;  %v704_v22 = vadd.f32 %v7796_v14, %v7774_v12  ;;  %v9984_v14 = vld [vmem:[%s14190_s3 + $0xe4] ss:$8 sps:$4 sm:$0xff]  }
 0x14f   :  { %1601 = vmatprep.subr.bf16.mxu0 %v9984_v14 }
 0x150   :  { %1602 = vmatpush1.bf16.msra.mxu0 %v9982_v24 }
 0x151   :  { %1727 = vmatpush1.bf16.msra.mxu1 %v9964_v27 }
 0x152   :  { %1728 = vmatprep.subr.bf16.mxu1 %v9969_v30 }
 0x154   :  { %v7821_v42 = vpop.f32.mrf.mxu1 }
 0x155   :  { %1729 = vmatpush1.bf16.msra.mxu1 %v9967_v61  ;;  %v744_v61 = vadd.f32 %v743_v8, %v704_v22  ;;  %v11419_v8 = vld [vmem:[%s14191_s2] ss:$0 sm:$0xff]  ;;  %v9993_v22 = vld [vmem:[%s14190_s3 + $0xb4] ss:$8 sps:$4 sm:$0xff]  }
 0x156   :  { %v7822_v0 = vpop.f32.mrf.mxu1  ;;  %1730 = vmatprep.subr.bf16.mxu1 %v9972_v32 }
 0x157   :  { %v7823_v32 = vadd.f32 %v7822_v0, %v7821_v42  ;;  %v749_v57 = vmax.f32 %v604_v18, %v744_v61  ;;  %v9987_v18 = vld [vmem:[%s14190_s3 + $0xd4] ss:$8 sps:$4 sm:$0xff]  }
 0x158   :  { %v7824_v3 = vpop.f32.mrf.mxu1  ;;  %1603 = vmatprep.subr.bf16.mxu0 %v9987_v18 }
 0x159   :  { %1731 = vmatpush1.bf16.msra.mxu1 %v9970_v45  ;;  %1604 = vmatpush1.bf16.msra.mxu0 %v9985_v16 }
 0x15a   :  { %v7825_v7 = vpop.f32.mrf.mxu1  ;;  %1732 = vmatprep.subr.bf16.mxu1 %v9975_v1 }
 0x15d   :  { %1733 = vmatpush1.bf16.msra.mxu1 %v9973_v5 }
 0x15e   :  { %1734 = vmatprep.subr.bf16.mxu1 %v9978_v9 }
 0x161   :  { %1735 = vmatpush1.bf16.msra.mxu1 %v9976_v11 }
 0x162   :  { %8072 = vmatprep.subr.bf16.mxu1 %v11054_v20 }
 0x163   :  { %v7843_v15 = vpop.f32.mrf.mxu0 }
 0x164   :  { %v888_v21 = vpop.f32.mrf.mxu1 }
 0x165   :  { %v7844_v27 = vpop.f32.mrf.mxu0 }
 0x166   :  { %v9490_v30 = vpop.f32.mrf.mxu1  ;;  %v7845_v45 = vadd.f32 %v7844_v27, %v7843_v15  ;;  %v9990_v15 = vld [vmem:[%s14190_s3 + $0xc4] ss:$8 sps:$4 sm:$0xff]   ;;  %v9991_v27 = vld [vmem:[%s14190_s3 + $0xb0] ss:$8 sps:$4 sm:$0xff]  }
 0x167   :  { %v7846_v1 = vpop.f32.mrf.mxu0  ;;  %1605 = vmatprep.subr.bf16.mxu0 %v9990_v15 }
 0x168   :  { %v891_v3 = vpop.f32.mrf.mxu1  ;;  %v849_v5 = vadd.f32 %v7845_v45, %v7823_v32  ;;  %v9996_v1 = vld [vmem:[%s14190_s3 + $0xa4] ss:$8 sps:$4 sm:$0xff]  }
 0x169   :  { %v7847_v7 = vpop.f32.mrf.mxu0 }
 0x16a   :  { %v9491_v9 = vpop.f32.mrf.mxu1  ;;  %v889_v60 = vadd.f32 %v888_v21, %v849_v5  ;;  %v9988_v21 = vld [vmem:[%s14190_s3 + $0xc0] ss:$8 sps:$4 sm:$0xff]  }
 0x16b   :  { %1606 = vmatpush1.bf16.msra.mxu0 %v9988_v21  ;;  %v9994_v7 = vld [vmem:[%s14190_s3 + $0xa0] ss:$8 sps:$4 sm:$0xff]  }
 0x16c   :  { %v894_v42 = vmax.f32 %v749_v57, %v889_v60  ;;  %1607 = vmatprep.subr.bf16.mxu0 %v9993_v22 }
 0x16e   :  { %v901_v0 = vadd.f32 %v11419_v8, %v894_v42  ;;  %v9999_v42 = vld [vmem:[%s14190_s3 + $0x94] ss:$8 sps:$4 sm:$0xff]  }
 0x16f   :  { %1608 = vmatpush1.bf16.msra.mxu0 %v9991_v27 }
 0x170   :  { %v902_v11 = vmax.f32 %v901_v0, 0.0  ;;  %1609 = vmatprep.subr.bf16.mxu0 %v9996_v1  ;;  %v9997_v0 = vld [vmem:[%s14190_s3 + $0x90] ss:$8 sps:$4 sm:$0xff]  }
 0x172   :  { %v903_v12 = vpack.c.bf16 %v902_v11, %v902_v11  ;;  %v10000_v11 = vld [vmem:[%s14190_s3 + $0x80] ss:$8 sps:$4 sm:$0xff]  }
 0x173   :  { %1610 = vmatpush1.bf16.msra.mxu0 %v9994_v7 }
 0x174   :  { %1753 = vmatmul.mubr.bf16.vlgmr.msra.gmra.mxu1 %v903_v12  ;;  %1611 = vmatprep.subr.bf16.mxu0 %v9999_v42  ;;  %v10002_v12 = vld [vmem:[%s14190_s3 + $0x84] ss:$8 sps:$4 sm:$0xff]  }
 0x175   :  { %8073 = vmatpush3.bf16.msra.mxu1 %v11073_v26 }
 0x176   :  { %8074 = vmatprep.subr.bf16.mxu1 %v11085_v29 }
 0x177   :  { %1612 = vmatpush1.bf16.msra.mxu0 %v9997_v0 }
 0x178   :  { %1613 = vmatprep.subr.bf16.mxu0 %v10002_v12 }
 0x179   :  { %8075 = vmatpush3.bf16.msra.mxu1 %v11097_v38 }
 0x17a   :  { %8076 = vmatprep.subr.bf16.mxu1 %v11109_v44 }
 0x17b   :  { %1614 = vmatpush1.bf16.msra.mxu0 %v10000_v11 }
 0x17c   :  { %8050 = vmatprep.subr.bf16.mxu0 %v11048_v19 }
 0x17d   :  { %8077 = vmatpush3.bf16.msra.mxu1 %v11121_v47 }
 0x17e   :  { %8078 = vmatprep.subr.bf16.mxu1 %v11133_v49 }
 0x181   :  { %8079 = vmatpush3.bf16.msra.mxu1 %v11145_v51 }
 0x182   :  { %8080 = vmatprep.subr.bf16.mxu1 %v11157_v53 }
 0x183   :  { %v7870_v30 = vpop.f32.mrf.mxu0 }
 0x184   :  { %v7892_v61 = vpop.f32.mrf.mxu1 }
 0x185   :  { %v7871_v32 = vpop.f32.mrf.mxu0  ;;  %8081 = vmatpush3.bf16.msra.mxu1 %v11169_v56 }
 0x186   :  { %v7893_v45 = vpop.f32.mrf.mxu1  ;;  %v7872_v3 = vadd.f32 %v7871_v32, %v7870_v30  ;;  %8082 = vmatprep.subr.bf16.mxu1 %v11181_v59  ;;  %v7166_v32 = vld [vmem:[%s14189_s0 + $0x30] sm:$0xff] }
 0x187   :  { %v7894_v5 = vadd.f32 %v7893_v45, %v7892_v61  ;;  %v7873_v9 = vpop.f32.mrf.mxu0  ;;  %v7170_v45 = vcombine.low %v7166_v32, %v7166_v32  ;;  %v7171_v1 = vcombine.high %v7166_v32, %v7166_v32 }
 0x188   :  { %v7895_v40 = vpop.f32.mrf.mxu1 }
 0x189   :  { %v1019_v54 = vadd.f32 %v7894_v5, %v7872_v3  ;;  %v7874_v57 = vpop.f32.mrf.mxu0  ;;  %8083 = vmatpush3.bf16.msra.mxu1 %v11193_v63  ;;  %1857 = vmatprep.mubr.bf16.mxu1 %v7171_v1 }
 0x18a   :  { %v7896_v60 = vpop.f32.mrf.mxu1  ;;  %8084 = vmatprep.subr.bf16.mxu1 %v11205_v34 }
 0x18d   :  { %8085 = vmatpush3.bf16.msra.mxu1 %v11217_v36 }
 0x18e   :  { %8086 = vmatprep.subr.bf16.mxu1 %v11229_v41 }
 0x191   :  { %8087 = vmatpush3.bf16.msra.mxu1 %v11250_v4 }
 0x192   :  { %8099 = vmatprep.subr.bf16.mxu1 %v11048_v19 }
 0x193   :  { %v1058_v14 = vpop.f32.mrf.mxu0 }
 0x194   :  { %v11481_v24 = vadd.f32 %v1058_v14, %v1019_v54  ;;  %1858 = vmatmul.mubr.bf16.vlgmr.msra.gmra.mxu1 %v7170_v45  ;;  %v7174_v14 = vld [vmem:[%s14189_s0 + $0xdc] sm:$0xff] }
 0x195   :  { %v9502_v16 = vpop.f32.mrf.mxu0  ;;  %8100 = vmatpush3.bf16.msra.mxu1 %v11067_v25 }
 0x196   :  { %8101 = vmatprep.subr.bf16.mxu1 %v11079_v28  ;;  %v7177_v16 = vcombine.low %v7174_v14, %v7174_v14 }
 0x197   :  { %v1061_v18 = vpop.f32.mrf.mxu0 }
 0x198   :  { %v7178_v18 = vcombine.high %v7174_v14, %v7174_v14 }
 0x199   :  { %v9503_v15 = vpop.f32.mrf.mxu0  ;;  %8102 = vmatpush3.bf16.msra.mxu1 %v11091_v31 }
 0x19a   :  { %8103 = vmatprep.subr.bf16.mxu1 %v11103_v43  ;;  %1961 = vmatprep.mubr.bf16.mxu1 %v7178_v18 }
 0x19d   :  { %8104 = vmatpush3.bf16.msra.mxu1 %v11115_v46 }
 0x19e   :  { %8105 = vmatprep.subr.bf16.mxu1 %v11127_v48 }
 0x1a1   :  { %8106 = vmatpush3.bf16.msra.mxu1 %v11139_v50 }
 0x1a2   :  { %8107 = vmatprep.subr.bf16.mxu1 %v11151_v52 }
 0x1a4   :  { %v7919_v21 = vpop.f32.mrf.mxu1 }
 0x1a5   :  { %8108 = vmatpush3.bf16.msra.mxu1 %v11163_v55 }
 0x1a6   :  { %v7920_v22 = vpop.f32.mrf.mxu1  ;;  %8109 = vmatprep.subr.bf16.mxu1 %v11175_v58 }
 0x1a7   :  { %v7921_v27 = vadd.f32 %v7920_v22, %v7919_v21 }
 0x1a8   :  { %v7922_v30 = vpop.f32.mrf.mxu1 }
 0x1a9   :  { %8110 = vmatpush3.bf16.msra.mxu1 %v11187_v62 }
 0x1aa   :  { %v7923_v61 = vpop.f32.mrf.mxu1  ;;  %8111 = vmatprep.subr.bf16.mxu1 %v11199_v33 }
 0x1ad   :  { %8112 = vmatpush3.bf16.msra.mxu1 %v11211_v35 }
 0x1ae   :  { %8113 = vmatprep.subr.bf16.mxu1 %v11223_v37 }
 0x1b1   :  { %8114 = vmatpush3.bf16.msra.mxu1 %v11244_v2 }
 0x1b2   :  { %9552 = vmatprep.subr.bf16.mxu1 %v10495_v39 }
 0x1b3   :  { %v7941_v3 = vpop.f32.mrf.mxu0 }
 0x1b4   :  { %v1202_v5 = vpop.f32.mrf.mxu1  ;;  %1962 = vmatmul.mubr.bf16.vlgmr.msra.gmra.mxu1 %v7177_v16 }
 0x1b5   :  { %v7942_v7 = vpop.f32.mrf.mxu0  ;;  %9553 = vmatpush3.bf16.msra.mxu1 %v11260_v6  ;;  %9560 = vmatprep.mubr.msk.bf16.mxu1 %vm10496_vm0, %v10495_v39 }
 0x1b6   :  { %v9514_v9 = vpop.f32.mrf.mxu1  ;;  %v7943_v40 = vadd.f32 %v7942_v7, %v7941_v3  ;;  %9554 = vmatprep.subr.bf16.mxu1 %v10495_v39  ;;  %v10012_v3 = vld [vmem:[%s14189_s0 + $0xec] ss:$0 sps:$4 sm:$0xff]  }
 0x1b7   :  { %v7944_v54 = vpop.f32.mrf.mxu0 }
 0x1b8   :  { %v1205_v57 = vpop.f32.mrf.mxu1  ;;  %v1163_v60 = vadd.f32 %v7943_v40, %v7921_v27 }
 0x1b9   :  { %v7945_v42 = vpop.f32.mrf.mxu0  ;;  %9555 = vmatpush3.bf16.msra.mxu1 %v11271_v13 }
 0x1ba   :  { %v9515_v0 = vpop.f32.mrf.mxu1  ;;  %v11489_v11 = vadd.f32 %v1202_v5, %v1163_v60  ;;  %9556 = vmatprep.subr.bf16.mxu1 %v10495_v39 }
 0x1bb   :  { %v7184_v0 = vld [vmem:[%s14189_s0 + $0x198] sm:$0xff] }
 0x1bc   :  { %v1208_v12 = vmax.f32 %v11481_v24, %v11489_v11  ;;  %v7188_v14 = vcombine.low %v7184_v0, %v7184_v0  ;;  %v7189_v16 = vcombine.high %v7184_v0, %v7184_v0 }
 0x1bd   :  { %9557 = vmatpush3.bf16.msra.mxu1 %v11282_v17 }
 0x1be   :  { %9558 = vmatprep.subr.bf16.mxu1 %v10495_v39 }
 0x1c1   :  { %9559 = vmatpush3.bf16.msra.mxu1 %v11299_v23 }
 0x1c2   :  { %8170 = vmatprep.subr.bf16.mxu1 %v11054_v20 }
 0x1c4   :  { %9561 = vmatmul.mubr.msk.bf16.vlgmr.msra.gmra.mxu1 %vm336_vm1, %v10012_v3 }
 0x1c5   :  { %8171 = vmatpush3.bf16.msra.mxu1 %v11073_v26  ;;  %2146 = vmatprep.mubr.bf16.mxu1 %v7189_v16 }
 0x1c6   :  { %8172 = vmatprep.subr.bf16.mxu1 %v11085_v29 }
 0x1c9   :  { %8173 = vmatpush3.bf16.msra.mxu1 %v11097_v38 }
 0x1ca   :  { %8174 = vmatprep.subr.bf16.mxu1 %v11109_v44 }
 0x1cd   :  { %8175 = vmatpush3.bf16.msra.mxu1 %v11121_v47 }
 0x1ce   :  { %8176 = vmatprep.subr.bf16.mxu1 %v11133_v49 }
 0x1d1   :  { %8177 = vmatpush3.bf16.msra.mxu1 %v11145_v51 }
 0x1d2   :  { %8178 = vmatprep.subr.bf16.mxu1 %v11157_v53 }
 0x1d3   :  { %v7968_v15 = vpop.f32.mrf.mxu0 }
 0x1d4   :  { %v7990_v21 = vpop.f32.mrf.mxu1 }
 0x1d5   :  { %v7969_v22 = vpop.f32.mrf.mxu0  ;;  %8179 = vmatpush3.bf16.msra.mxu1 %v11169_v56 }
 0x1d6   :  { %v7991_v27 = vpop.f32.mrf.mxu1  ;;  %8180 = vmatprep.subr.bf16.mxu1 %v11181_v59  ;;  %v7970_v60 = vadd.f32 %v7969_v22, %v7968_v15 }
 0x1d7   :  { %v7971_v30 = vpop.f32.mrf.mxu0  ;;  %v7992_v42 = vadd.f32 %v7991_v27, %v7990_v21 }
 0x1d8   :  { %v7993_v61 = vpop.f32.mrf.mxu1 }
 0x1d9   :  { %v7972_v32 = vpop.f32.mrf.mxu0  ;;  %8181 = vmatpush3.bf16.msra.mxu1 %v11193_v63  ;;  %v1308_v61 = vadd.f32 %v7992_v42, %v7970_v60 }
 0x1da   :  { %v7994_v45 = vpop.f32.mrf.mxu1  ;;  %8182 = vmatprep.subr.bf16.mxu1 %v11205_v34 }
 0x1dd   :  { %8183 = vmatpush3.bf16.msra.mxu1 %v11217_v36 }
 0x1de   :  { %8184 = vmatprep.subr.bf16.mxu1 %v11229_v41 }
 0x1e1   :  { %8185 = vmatpush3.bf16.msra.mxu1 %v11250_v4 }
 0x1e2   :  { %8197 = vmatprep.subr.bf16.mxu1 %v11048_v19 }
 0x1e3   :  { %v1347_v1 = vpop.f32.mrf.mxu0 }
 0x1e4   :  { %2147 = vmatmul.mubr.bf16.vlgmr.msra.gmra.mxu1 %v7188_v14  ;;  %v1348_v3 = vadd.f32 %v1347_v1, %v1308_v61  ;;  %v10022_v14 = vld [vmem:[%s14189_s0 + $0x254] ss:$0 sps:$4 sm:$0xff]  }
 0x1e5   :  { %v9526_v5 = vpop.f32.mrf.mxu0  ;;  %8198 = vmatpush3.bf16.msra.mxu1 %v11067_v25 }
 0x1e6   :  { %8199 = vmatprep.subr.bf16.mxu1 %v11079_v28 }
 0x1e7   :  { %v1350_v7 = vpop.f32.mrf.mxu0 }
 0x1e9   :  { %v9527_v9 = vpop.f32.mrf.mxu0  ;;  %8200 = vmatpush3.bf16.msra.mxu1 %v11091_v31 }
 0x1ea   :  { %8201 = vmatprep.subr.bf16.mxu1 %v11103_v43 }
 0x1ed   :  { %8202 = vmatpush3.bf16.msra.mxu1 %v11115_v46 }
 0x1ee   :  { %8203 = vmatprep.subr.bf16.mxu1 %v11127_v48 }
 0x1f1   :  { %8204 = vmatpush3.bf16.msra.mxu1 %v11139_v50 }
 0x1f2   :  { %8205 = vmatprep.subr.bf16.mxu1 %v11151_v52 }
 0x1f4   :  { %v8017_v20 = vpop.f32.mrf.mxu1 }
 0x1f5   :  { %8206 = vmatpush3.bf16.msra.mxu1 %v11163_v55 }
 0x1f6   :  { %v8018_v40 = vpop.f32.mrf.mxu1  ;;  %8207 = vmatprep.subr.bf16.mxu1 %v11175_v58 }
 0x1f7   :  { %v8019_v15 = vadd.f32 %v8018_v40, %v8017_v20  ;;  %v7165_v40 = vld [vmem:[%s14189_s0 + $0x28] sm:$0xff] }
 0x1f8   :  { %v8020_v54 = vpop.f32.mrf.mxu1  ;;  %v7169_v42 = vcombine.high %v7165_v40, %v7165_v40  ;;  %v7168_v0 = vcombine.low %v7165_v40, %v7165_v40 }
 0x1f9   :  { %v1353_v54 = vmax.f32 %v1208_v12, %v1348_v3  ;;  %8208 = vmatpush3.bf16.msra.mxu1 %v11187_v62  ;;  %v11760_v3 = vld [vmem:[%s14188_s1 + $0xa0] sm:$0xff]  }
 0x1fa   :  { %v8021_v57 = vpop.f32.mrf.mxu1  ;;  %8209 = vmatprep.subr.bf16.mxu1 %v11199_v33 }
 0x1fd   :  { %8210 = vmatpush3.bf16.msra.mxu1 %v11211_v35 }
 0x1fe   :  { %8211 = vmatprep.subr.bf16.mxu1 %v11223_v37 }
 0x201   :  { %8212 = vmatpush3.bf16.msra.mxu1 %v11244_v2 }
 0x202   :  { %9576 = vmatprep.subr.bf16.mxu1 %v10495_v39 }
 0x203   :  { %v8039_v18 = vpop.f32.mrf.mxu0 }
 0x204   :  { %v1492_v30 = vpop.f32.mrf.mxu1 }
 0x205   :  { %v8040_v32 = vpop.f32.mrf.mxu0 }
 0x206   :  { %v9538_v45 = vpop.f32.mrf.mxu1  ;;  %v8041_v21 = vadd.f32 %v8040_v32, %v8039_v18 }
 0x207   :  { %v8042_v22 = vpop.f32.mrf.mxu0  ;;  %v11754_v45 = vld [vmem:[%s14188_s1 + $0xe0] sm:$0xff]  }
 0x208   :  { %v1495_v27 = vpop.f32.mrf.mxu1  ;;  %v1453_v5 = vadd.f32 %v8041_v21, %v8019_v15  ;;  %v11766_v15 = vld [vmem:[%s14188_s1 + $0xd8] sm:$0xff]  }
 0x209   :  { %v8043_v7 = vpop.f32.mrf.mxu0  ;;  %v11772_v21 = vld [vmem:[%s14188_s1 + $0x98] sm:$0xff]   ;;  %v11780_v27 = vld [vmem:[%s14188_s1 + $0xd0] sm:$0xff]  }
 0x20a   :  { %v9539_v9 = vpop.f32.mrf.mxu1  ;;  %v1493_v57 = vadd.f32 %v1492_v30, %v1453_v5 }
 0x20c   :  { %v1498_v1 = vmax.f32 %v1353_v54, %v1493_v57 }
 0x20e   :  { %v1499_v20 = vadd.f32 %v11419_v8, %v1498_v1  ;;  %v7192_v8 = vld [vmem:[%s14189_s0 + $0x244] sm:$0xff] }
 0x20f   :  { %v7195_v11 = vcombine.low %v7192_v8, %v7192_v8  ;;  %v7196_v12 = vcombine.high %v7192_v8, %v7192_v8  ;;  %v10026_v8 = vld [vmem:[%s14190_s3 + $0x160] ss:$8 sps:$4 sm:$0xff]  }
 0x210   :  { %v1500_v60 = vmax.f32 %v1499_v20, 0.0 }
 0x211   :  { %2251 = vmatprep.mubr.bf16.mxu1 %v7196_v12  ;;  %v10029_v12 = vld [vmem:[%s14190_s3 + $0x150] ss:$8 sps:$4 sm:$0xff]  }
 0x212   :  { %v1501_v24 = vpack.c.bf16 %v1500_v60, %v1500_v60  ;;  %2252 = vmatmul.mubr.bf16.vlgmr.msra.gmra.mxu1 %v7195_v11  ;;  %v10031_v11 = vld [vmem:[%s14190_s3 + $0x154] ss:$8 sps:$4 sm:$0xff]  }
 0x213   :  { %9577 = vmatpush3.bf16.msra.mxu1 %v11260_v6  ;;  %9584 = vmatprep.mubr.msk.bf16.mxu1 %vm10496_vm0, %v10495_v39 }
 0x214   :  { %1632 = vmatmul.mubr.bf16.vlgmr.msra.gmra.mxu0 %v1501_v24  ;;  %9578 = vmatprep.subr.bf16.mxu1 %v10495_v39  ;;  %v10028_v24 = vld [vmem:[%s14190_s3 + $0x164] ss:$8 sps:$4 sm:$0xff]  }
 0x215   :  { %8051 = vmatpush3.bf16.msra.mxu0 %v11067_v25  ;;  %1817 = vmatprep.mubr.bf16.mxu0 %v7169_v42 }
 0x216   :  { %8052 = vmatprep.subr.bf16.mxu0 %v11079_v28 }
 0x217   :  { %9579 = vmatpush3.bf16.msra.mxu1 %v11271_v13 }
 0x218   :  { %9580 = vmatprep.subr.bf16.mxu1 %v10495_v39 }
 0x219   :  { %8053 = vmatpush3.bf16.msra.mxu0 %v11091_v31 }
 0x21a   :  { %8054 = vmatprep.subr.bf16.mxu0 %v11103_v43 }
 0x21b   :  { %9581 = vmatpush3.bf16.msra.mxu1 %v11282_v17 }
 0x21c   :  { %9582 = vmatprep.subr.bf16.mxu1 %v10495_v39 }
 0x21d   :  { %8055 = vmatpush3.bf16.msra.mxu0 %v11115_v46 }
 0x21e   :  { %8056 = vmatprep.subr.bf16.mxu0 %v11127_v48 }
 0x21f   :  { %9583 = vmatpush3.bf16.msra.mxu1 %v11299_v23 }
 0x220   :  { %8246 = vmatprep.subr.bf16.mxu1 %v11048_v19 }
 0x221   :  { %8057 = vmatpush3.bf16.msra.mxu0 %v11139_v50 }
 0x222   :  { %8058 = vmatprep.subr.bf16.mxu0 %v11151_v52  ;;  %9585 = vmatmul.mubr.msk.bf16.vlgmr.msra.gmra.mxu1 %vm336_vm1, %v10022_v14 }
 0x223   :  { %8247 = vmatpush3.bf16.msra.mxu1 %v11067_v25  ;;  %v7175_v25 = vld [vmem:[%s14189_s0 + $0xe4] sm:$0xff] }
 0x224   :  { %8248 = vmatprep.subr.bf16.mxu1 %v11079_v28  ;;  %v10007_v28 = vld [vmem:[%s14189_s0 + $0x38] ss:$0 sps:$4 sm:$0xff]  }
 0x225   :  { %8059 = vmatpush3.bf16.msra.mxu0 %v11163_v55 }
 0x226   :  { %8060 = vmatprep.subr.bf16.mxu0 %v11175_v58 }
 0x227   :  { %8249 = vmatpush3.bf16.msra.mxu1 %v11091_v31  ;;  %v7180_v31 = vcombine.high %v7175_v25, %v7175_v25 }
 0x228   :  { %8250 = vmatprep.subr.bf16.mxu1 %v11103_v43  ;;  %v11626_v43 = vld [vmem:[%s14188_s1 + $0xf8] sm:$0xff]  }
 0x229   :  { %8061 = vmatpush3.bf16.msra.mxu0 %v11187_v62 }
 0x22a   :  { %8062 = vmatprep.subr.bf16.mxu0 %v11199_v33 }
 0x22b   :  { %8251 = vmatpush3.bf16.msra.mxu1 %v11115_v46 }
 0x22c   :  { %8252 = vmatprep.subr.bf16.mxu1 %v11127_v48 }
 0x22d   :  { %8063 = vmatpush3.bf16.msra.mxu0 %v11211_v35 }
 0x22e   :  { %8064 = vmatprep.subr.bf16.mxu0 %v11223_v37 }
 0x22f   :  { %8253 = vmatpush3.bf16.msra.mxu1 %v11139_v50 }
 0x230   :  { %8254 = vmatprep.subr.bf16.mxu1 %v11151_v52 }
 0x231   :  { %8065 = vmatpush3.bf16.msra.mxu0 %v11244_v2 }
 0x232   :  { %9540 = vmatprep.subr.bf16.mxu0 %v10495_v39 }
 0x233   :  { %8255 = vmatpush3.bf16.msra.mxu1 %v11163_v55 }
 0x234   :  { %1818 = vmatmul.mubr.bf16.vlgmr.msra.gmra.mxu0 %v7168_v0  ;;  %v11597_v16 = vpop.f32.mrf.mxu1  ;;  %8256 = vmatprep.subr.bf16.mxu1 %v11175_v58  ;;  %v10034_v0 = vld [vmem:[%s14190_s3 + $0x144] ss:$8 sps:$4 sm:$0xff]  }
 0x235   :  { %9541 = vmatpush3.bf16.msra.mxu0 %v11260_v6  ;;  %9548 = vmatprep.mubr.msk.bf16.mxu0 %vm10496_vm0, %v10495_v39 }
 0x236   :  { %v11602_v18 = vpop.f32.mrf.mxu1  ;;  %9542 = vmatprep.subr.bf16.mxu0 %v10495_v39 }
 0x237   :  { %8257 = vmatpush3.bf16.msra.mxu1 %v11187_v62 }
 0x238   :  { %v1758_v30 = vpop.f32.mrf.mxu1  ;;  %8258 = vmatprep.subr.bf16.mxu1 %v11199_v33 }
 0x239   :  { %9543 = vmatpush3.bf16.msra.mxu0 %v11271_v13  ;;  %v10032_v30 = vld [vmem:[%s14190_s3 + $0x140] ss:$8 sps:$4 sm:$0xff]  }
 0x23a   :  { %v1759_v19 = vpop.f32.mrf.mxu1  ;;  %9544 = vmatprep.subr.bf16.mxu0 %v10495_v39 }
 0x23b   :  { %8259 = vmatpush3.bf16.msra.mxu1 %v11211_v35 }
 0x23c   :  { %8260 = vmatprep.subr.bf16.mxu1 %v11223_v37 }
 0x23d   :  { %9545 = vmatpush3.bf16.msra.mxu0 %v11282_v17 }
 0x23e   :  { %9546 = vmatprep.subr.bf16.mxu0 %v10495_v39 }
 0x23f   :  { %8261 = vmatpush3.bf16.msra.mxu1 %v11244_v2 }
 0x240   :  { %9588 = vmatprep.subr.bf16.mxu1 %v10495_v39 }
 0x241   :  { %9547 = vmatpush3.bf16.msra.mxu0 %v11299_v23 }
 0x242   :  { %8121 = vmatprep.subr.bf16.mxu0 %v11626_v43 }
 0x244   :  { %9549 = vmatmul.mubr.msk.bf16.vlgmr.msra.gmra.mxu0 %vm336_vm1, %v10007_v28 }
 0x245   :  { %8122 = vmatpush3.bf16.msra.mxu0 %v11073_v26  ;;  %2001 = vmatprep.mubr.bf16.mxu0 %v7180_v31  ;;  %v7183_v26 = vld [vmem:[%s14189_s0 + $0x190] sm:$0xff] }
 0x246   :  { %8123 = vmatprep.subr.bf16.mxu0 %v11085_v29  ;;  %v7179_v29 = vcombine.low %v7175_v25, %v7175_v25 }
 0x249   :  { %8124 = vmatpush3.bf16.msra.mxu0 %v11097_v38  ;;  %v7187_v38 = vcombine.high %v7183_v26, %v7183_v26 }
 0x24a   :  { %8125 = vmatprep.subr.bf16.mxu0 %v11109_v44  ;;  %v11661_v44 = vld [vmem:[%s14188_s1 + $0x78] sm:$0xff]  }
 0x24d   :  { %8126 = vmatpush3.bf16.msra.mxu0 %v11121_v47  ;;  %v11667_v47 = vld [vmem:[%s14188_s1 + $0x38] sm:$0xff]  }
 0x24e   :  { %8127 = vmatprep.subr.bf16.mxu0 %v11133_v49  ;;  %v11673_v49 = vld [vmem:[%s14188_s1 + $0x70] sm:$0xff]  }
 0x251   :  { %8128 = vmatpush3.bf16.msra.mxu0 %v11145_v51  ;;  %v11679_v51 = vld [vmem:[%s14188_s1 + $0x30] sm:$0xff]  }
 0x252   :  { %8129 = vmatprep.subr.bf16.mxu0 %v11157_v53  ;;  %v11685_v53 = vld [vmem:[%s14188_s1 + $0x68] sm:$0xff]  }
 0x255   :  { %8130 = vmatpush3.bf16.msra.mxu0 %v11169_v56  ;;  %v8088_v56 = vpop.f32.mrf.mxu1 }
 0x256   :  { %8131 = vmatprep.subr.bf16.mxu0 %v11181_v59 }
 0x257   :  { %v8089_v59 = vpop.f32.mrf.mxu1 }
 0x258   :  { %v11694_v61 = vadd.f32 %v8089_v59, %v8088_v56 }
 0x259   :  { %8132 = vmatpush3.bf16.msra.mxu0 %v11193_v63  ;;  %v8091_v32 = vpop.f32.mrf.mxu1 }
 0x25a   :  { %8133 = vmatprep.subr.bf16.mxu0 %v11205_v34  ;;  %v10040_v32 = vld [vmem:[%s14190_s3 + $0x124] ss:$8 sps:$4 sm:$0xff]  }
 0x25d   :  { %8134 = vmatpush3.bf16.msra.mxu0 %v11217_v36 }
 0x25e   :  { %8135 = vmatprep.subr.bf16.mxu0 %v11229_v41 }
 0x261   :  { %8136 = vmatpush3.bf16.msra.mxu0 %v11250_v4 }
 0x262   :  { %8148 = vmatprep.subr.bf16.mxu0 %v11661_v44 }
 0x264   :  { %2002 = vmatmul.mubr.bf16.vlgmr.msra.gmra.mxu0 %v7179_v29  ;;  %v10035_v29 = vld [vmem:[%s14190_s3 + $0x130] ss:$8 sps:$4 sm:$0xff]  }
 0x265   :  { %8149 = vmatpush3.bf16.msra.mxu0 %v11667_v47  ;;  %2106 = vmatprep.mubr.bf16.mxu0 %v7187_v38 }
 0x266   :  { %8150 = vmatprep.subr.bf16.mxu0 %v11673_v49 }
 0x269   :  { %8151 = vmatpush3.bf16.msra.mxu0 %v11679_v51 }
 0x26a   :  { %8152 = vmatprep.subr.bf16.mxu0 %v11685_v53 }
 0x26d   :  { %8153 = vmatpush3.bf16.msra.mxu0 %v11115_v46  ;;  %v8092_v46 = vpop.f32.mrf.mxu1 }
 0x26e   :  { %8154 = vmatprep.subr.bf16.mxu0 %v11127_v48  ;;  %v7186_v48 = vcombine.low %v7183_v26, %v7183_v26  ;;  %v10037_v26 = vld [vmem:[%s14190_s3 + $0x134] ss:$8 sps:$4 sm:$0xff]  }
 0x271   :  { %8155 = vmatpush3.bf16.msra.mxu0 %v11139_v50  ;;  %v7193_v50 = vld [vmem:[%s14189_s0 + $0x24c] sm:$0xff] }
 0x272   :  { %8156 = vmatprep.subr.bf16.mxu0 %v11151_v52  ;;  %v10017_v52 = vld [vmem:[%s14189_s0 + $0x1a0] ss:$0 sps:$4 sm:$0xff]   ;;  %v7197_v54 = vcombine.low %v7193_v50, %v7193_v50 }
 0x275   :  { %8157 = vmatpush3.bf16.msra.mxu0 %v11163_v55  ;;  %v7198_v55 = vcombine.high %v7193_v50, %v7193_v50 }
 0x276   :  { %8158 = vmatprep.subr.bf16.mxu0 %v11175_v58  ;;  %v11722_v58 = vld [vmem:[%s14188_s1 + $0xb8] sm:$0xff]  }
 0x279   :  { %8159 = vmatpush3.bf16.msra.mxu0 %v11187_v62  ;;  %v8115_v62 = vpop.f32.mrf.mxu1 }
 0x27a   :  { %8160 = vmatprep.subr.bf16.mxu0 %v11199_v33  ;;  %v11728_v33 = vld [vmem:[%s14188_s1 + $0xf0] sm:$0xff]  }
 0x27d   :  { %8161 = vmatpush3.bf16.msra.mxu0 %v11211_v35  ;;  %v8116_v35 = vpop.f32.mrf.mxu1 }
 0x27e   :  { %8162 = vmatprep.subr.bf16.mxu0 %v11223_v37  ;;  %v11731_v37 = vadd.f32 %v8116_v35, %v8115_v62 }
 0x281   :  { %8163 = vmatpush3.bf16.msra.mxu0 %v11244_v2  ;;  %v11736_v2 = vld [vmem:[%s14188_s1 + $0xb0] sm:$0xff]  }
 0x282   :  { %9564 = vmatprep.subr.bf16.mxu0 %v10495_v39 }
 0x284   :  { %2107 = vmatmul.mubr.bf16.vlgmr.msra.gmra.mxu0 %v7186_v48  ;;  %v10038_v48 = vld [vmem:[%s14190_s3 + $0x120] ss:$8 sps:$4 sm:$0xff]  }
 0x285   :  { %9565 = vmatpush3.bf16.msra.mxu0 %v11260_v6  ;;  %9572 = vmatprep.mubr.msk.bf16.mxu0 %vm10496_vm0, %v10495_v39  ;;  %v8118_v6 = vpop.f32.mrf.mxu1 }
 0x286   :  { %9566 = vmatprep.subr.bf16.mxu0 %v10495_v39  ;;  %v10043_v6 = vld [vmem:[%s14190_s3 + $0x114] ss:$8 sps:$4 sm:$0xff]  }
 0x289   :  { %9567 = vmatpush3.bf16.msra.mxu0 %v11271_v13  ;;  %v11742_v13 = vld [vmem:[%s14188_s1 + $0xe8] sm:$0xff]  }
 0x28a   :  { %9568 = vmatprep.subr.bf16.mxu0 %v10495_v39 }
 0x28d   :  { %9569 = vmatpush3.bf16.msra.mxu0 %v11282_v17  ;;  %v8119_v17 = vpop.f32.mrf.mxu1 }
 0x28e   :  { %9570 = vmatprep.subr.bf16.mxu0 %v10495_v39  ;;  %v10041_v17 = vld [vmem:[%s14190_s3 + $0x110] ss:$8 sps:$4 sm:$0xff]  }
 0x28f   :  { %v11775_v22 = vpop.f32.mrf.mxu1 }
 0x291   :  { %9571 = vmatpush3.bf16.msra.mxu0 %v11299_v23  ;;  %v11748_v23 = vld [vmem:[%s14188_s1 + $0xa8] sm:$0xff]   ;;  %v9562_v5 = vpop.f32.mrf.mxu1 }
 0x292   :  { %8219 = vmatprep.subr.bf16.mxu0 %v11626_v43 }
 0x293   :  { %v2046_v7 = vpop.f32.mrf.mxu1 }
 0x294   :  { %9573 = vmatmul.mubr.msk.bf16.vlgmr.msra.gmra.mxu0 %vm336_vm1, %v10017_v52  ;;  %v10044_v7 = vld [vmem:[%s14190_s3 + $0x100] ss:$8 sps:$4 sm:$0xff]  }
 0x295   :  { %8220 = vmatpush3.bf16.msra.mxu0 %v11722_v58  ;;  %2291 = vmatprep.mubr.bf16.mxu0 %v7198_v55  ;;  %v9563_v9 = vpop.f32.mrf.mxu1 }
 0x296   :  { %8221 = vmatprep.subr.bf16.mxu0 %v11728_v33  ;;  %v7233_v9 = vld [vmem:[%s14189_s0 + $0x3c] sm:$0xff] }
 0x299   :  { %8222 = vmatpush3.bf16.msra.mxu0 %v11736_v2 }
 0x29a   :  { %8223 = vmatprep.subr.bf16.mxu0 %v11742_v13 }
 0x29d   :  { %8224 = vmatpush3.bf16.msra.mxu0 %v11748_v23 }
 0x29e   :  { %8225 = vmatprep.subr.bf16.mxu0 %v11754_v45 }
 0x2a1   :  { %8226 = vmatpush3.bf16.msra.mxu0 %v11760_v3 }
 0x2a2   :  { %8227 = vmatprep.subr.bf16.mxu0 %v11766_v15 }
 0x2a4   :  { %v8186_v57 = vpop.f32.mrf.mxu1 }
 0x2a5   :  { %8228 = vmatpush3.bf16.msra.mxu0 %v11772_v21 }
 0x2a6   :  { %8229 = vmatprep.subr.bf16.mxu0 %v11780_v27  ;;  %v8187_v1 = vpop.f32.mrf.mxu1 }
 0x2a7   :  { %v11789_v20 = vadd.f32 %v8187_v1, %v8186_v57  ;;  %v7237_v57 = vcombine.high %v7233_v9, %v7233_v9  ;;  %v11855_v1 = vld [vmem:[%s14188_s1 + $0x118] sm:$0xff]  }
 0x2a8   :  { %v8189_v40 = vpop.f32.mrf.mxu1 }
 0x2a9   :  { %8230 = vmatpush3.bf16.msra.mxu0 %v11193_v63  ;;  %2539 = vmatprep.mubr.bf16.mxu1 %v7237_v57 }
 0x2aa   :  { %8231 = vmatprep.subr.bf16.mxu0 %v11205_v34  ;;  %v8190_v63 = vpop.f32.mrf.mxu1 }
 0x2ad   :  { %8232 = vmatpush3.bf16.msra.mxu0 %v11217_v36 }
 0x2ae   :  { %8233 = vmatprep.subr.bf16.mxu0 %v11229_v41  ;;  %v10023_v41 = vld [vmem:[%s14190_s3 + $0x170] ss:$8 sps:$4 sm:$0xff]  }
 0x2b1   :  { %8234 = vmatpush3.bf16.msra.mxu0 %v11250_v4  ;;  %v10025_v4 = vld [vmem:[%s14190_s3 + $0x174] ss:$8 sps:$4 sm:$0xff]  }
 0x2b2   :  { %2440 = vmatprep.subr.bf16.mxu0 %v10025_v4 }
 0x2b4   :  { %2292 = vmatmul.mubr.bf16.vlgmr.msra.gmra.mxu0 %v7197_v54  ;;  %v7236_v54 = vcombine.low %v7233_v9, %v7233_v9 }
 0x2b5   :  { %2472 = vmatprep.mubr.bf16.mxu0 %v10497_v10  ;;  %2441 = vmatpush1.bf16.msra.mxu0 %v10023_v41 }
 0x2b6   :  { %2442 = vmatprep.subr.bf16.mxu0 %v10028_v24  ;;  %2540 = vmatmul.mubr.bf16.vlgmr.msra.gmra.mxu1 %v7236_v54  ;;  %v11873_v24 = vld [vmem:[%s14188_s1 + $0x108] sm:$0xff]  }
 0x2b7   :  { %9589 = vmatpush3.bf16.msra.mxu1 %v11855_v1  ;;  %9596 = vmatprep.mubr.msk.bf16.mxu1 %vm10496_vm0, %v10495_v39 }
 0x2b8   :  { %9590 = vmatprep.subr.bf16.mxu1 %v10495_v39 }
 0x2b9   :  { %2443 = vmatpush1.bf16.msra.mxu0 %v10026_v8  ;;  %v11880_v8 = vld [vmem:[%s14188_s1 + $0x100] sm:$0xff]  }
 0x2ba   :  { %2444 = vmatprep.subr.bf16.mxu0 %v10031_v11  ;;  %v10049_v11 = vld [vmem:[%s14189_s0 + $0x4c] ss:$0 sps:$4 sm:$0xff]  }
 0x2bd   :  { %2445 = vmatpush1.bf16.msra.mxu0 %v10029_v12  ;;  %v11895_v12 = vld [vmem:[%s14188_s1 + $0x28] sm:$0xff]  }
 0x2be   :  { %2446 = vmatprep.subr.bf16.mxu0 %v10034_v0  ;;  %v11901_v0 = vld [vmem:[%s14188_s1 + $0x60] sm:$0xff]  }
 0x2c1   :  { %2447 = vmatpush1.bf16.msra.mxu0 %v10032_v30 }
 0x2c2   :  { %2448 = vmatprep.subr.bf16.mxu0 %v10037_v26  ;;  %v11919_v26 = vld [vmem:[%s14188_s1 + $0x18] sm:$0xff]  }
 0x2c5   :  { %2449 = vmatpush1.bf16.msra.mxu0 %v10035_v29 }
 0x2c6   :  { %2450 = vmatprep.subr.bf16.mxu0 %v10040_v32 }
 0x2c9   :  { %2451 = vmatpush1.bf16.msra.mxu0 %v10038_v48  ;;  %v11933_v48 = vld [vmem:[%s14188_s1 + $0x10] sm:$0xff]  }
 0x2ca   :  { %2452 = vmatprep.subr.bf16.mxu0 %v10043_v6 }
 0x2cd   :  { %2453 = vmatpush1.bf16.msra.mxu0 %v10041_v17 }
 0x2d2   :  { %v8213_v14 = vpop.f32.mrf.mxu1 }
 0x2d4   :  { %v11791_v60 = vpop.f32.mrf.mxu0  ;;  %v8214_v19 = vpop.f32.mrf.mxu1 }
 0x2d5   :  { %v11819_v25 = vadd.f32 %v8214_v19, %v8213_v14  ;;  %v11907_v14 = vld [vmem:[%s14188_s1 + $0x20] sm:$0xff]   ;;  %v11913_v19 = vld [vmem:[%s14188_s1 + $0x58] sm:$0xff]  }
 0x2d6   :  { %v11793_v34 = vpop.f32.mrf.mxu0  ;;  %v8216_v28 = vpop.f32.mrf.mxu1 }
 0x2d8   :  { %v1637_v42 = vpop.f32.mrf.mxu0  ;;  %v8217_v31 = vpop.f32.mrf.mxu1 }
 0x2da   :  { %v1638_v36 = vpop.f32.mrf.mxu0 }
 0x2db   :  { %v11866_v36 = vld [vmem:[%s14188_s1 + $0x110] sm:$0xff]  }
 0x2dc   :  { %9591 = vmatpush3.bf16.msra.mxu1 %v11866_v36 }
 0x2dd   :  { %9592 = vmatprep.subr.bf16.mxu1 %v10495_v39 }
 0x2e0   :  { %9593 = vmatpush3.bf16.msra.mxu1 %v11873_v24 }
 0x2e1   :  { %9594 = vmatprep.subr.bf16.mxu1 %v10495_v39 }
 0x2e2   :  { %v11827_v59 = vpop.f32.mrf.mxu1 }
 0x2e4   :  { %v9586_v52 = vpop.f32.mrf.mxu1  ;;  %9595 = vmatpush3.bf16.msra.mxu1 %v11880_v8 }
 0x2e5   :  { %8295 = vmatprep.subr.bf16.mxu1 %v11661_v44 }
 0x2e6   :  { %v2336_v35 = vpop.f32.mrf.mxu1 }
 0x2e7   :  { %9597 = vmatmul.mubr.msk.bf16.vlgmr.msra.gmra.mxu1 %vm336_vm1, %v10049_v11 }
 0x2e8   :  { %v9587_v5 = vpop.f32.mrf.mxu1  ;;  %8296 = vmatpush3.bf16.msra.mxu1 %v11667_v47 }
 0x2e9   :  { %8297 = vmatprep.subr.bf16.mxu1 %v11673_v49  ;;  %v10056_v5 = vld [vmem:[%s14189_s0 + $0x100] ss:$0 sps:$4 sm:$0xff]  }
 0x2ec   :  { %8298 = vmatpush3.bf16.msra.mxu1 %v11679_v51 }
 0x2ed   :  { %8299 = vmatprep.subr.bf16.mxu1 %v11685_v53 }
 0x2f0   :  { %8300 = vmatpush3.bf16.msra.mxu1 %v11895_v12 }
 0x2f1   :  { %8301 = vmatprep.subr.bf16.mxu1 %v11901_v0 }
 0x2f4   :  { %v8066_v38 = vpop.f32.mrf.mxu0  ;;  %8302 = vmatpush3.bf16.msra.mxu1 %v11907_v14 }
 0x2f5   :  { %8303 = vmatprep.subr.bf16.mxu1 %v11913_v19 }
 0x2f6   :  { %v8067_v56 = vpop.f32.mrf.mxu0 }
 0x2f7   :  { %v8068_v46 = vadd.f32 %v8067_v56, %v8066_v38  ;;  %v11925_v38 = vld [vmem:[%s14188_s1 + $0x50] sm:$0xff]  }
 0x2f8   :  { %v8069_v50 = vpop.f32.mrf.mxu0  ;;  %8304 = vmatpush3.bf16.msra.mxu1 %v11919_v26 }
 0x2f9   :  { %v1860_v55 = vadd.f32 %v11694_v61, %v8068_v46  ;;  %v10046_v61 = vld [vmem:[%s14190_s3 + $0x104] ss:$8 sps:$4 sm:$0xff]   ;;  %8305 = vmatprep.subr.bf16.mxu1 %v11925_v38 }
 0x2fa   :  { %v8070_v62 = vpop.f32.mrf.mxu0  ;;  %2454 = vmatprep.subr.bf16.mxu0 %v10046_v61  ;;  %v11939_v50 = vld [vmem:[%s14188_s1 + $0x48] sm:$0xff]  }
 0x2fb   :  { %2455 = vmatpush1.bf16.msra.mxu0 %v10044_v7  ;;  %v11961_v62 = vld [vmem:[%s14188_s1] sm:$0xff]  }
 0x2fc   :  { %8268 = vmatprep.subr.bf16.mxu0 %v11626_v43  ;;  %8306 = vmatpush3.bf16.msra.mxu1 %v11933_v48 }
 0x2fd   :  { %8307 = vmatprep.subr.bf16.mxu1 %v11939_v50 }
 0x304   :  { %v1899_v40 = vpop.f32.mrf.mxu0 }
 0x305   :  { %v11861_v63 = vadd.f32 %v1899_v40, %v1860_v55  ;;  %v7242_v55 = vld [vmem:[%s14189_s0 + $0xf0] sm:$0xff] }
 0x306   :  { %v9550_v42 = vpop.f32.mrf.mxu0  ;;  %v7245_v35 = vcombine.low %v7242_v55, %v7242_v55  ;;  %v7246_v6 = vcombine.high %v7242_v55, %v7242_v55 }
 0x308   :  { %v1902_v41 = vpop.f32.mrf.mxu0  ;;  %2683 = vmatprep.mubr.bf16.mxu1 %v7246_v6 }
 0x30a   :  { %v9551_v4 = vpop.f32.mrf.mxu0 }
 0x324   :  { %v8137_v30 = vpop.f32.mrf.mxu0 }
 0x326   :  { %v8138_v28 = vpop.f32.mrf.mxu0 }
 0x327   :  { %v8139_v31 = vadd.f32 %v8138_v28, %v8137_v30  ;;  %v11993_v30 = vld [vmem:[%s14188_s1 + $0x90] sm:$0xff]   ;;  %v12005_v28 = vld [vmem:[%s14188_s1 + $0x88] sm:$0xff]  }
 0x328   :  { %v8140_v29 = vpop.f32.mrf.mxu0 }
 0x329   :  { %v2004_v56 = vadd.f32 %v8139_v31, %v11731_v37  ;;  %v11946_v37 = vld [vmem:[%s14188_s1 + $0x8] sm:$0xff]   ;;  %v12011_v31 = vld [vmem:[%s14188_s1 + $0xc0] sm:$0xff]  }
 0x32a   :  { %v8141_v32 = vpop.f32.mrf.mxu0  ;;  %8308 = vmatpush3.bf16.msra.mxu1 %v11946_v37  ;;  %v7252_v29 = vld [vmem:[%s14189_s0 + $0x1ac] sm:$0xff] }
 0x32b   :  { %v2044_v46 = vadd.f32 %v11775_v22, %v2004_v56  ;;  %v11952_v22 = vld [vmem:[%s14188_s1 + $0x40] sm:$0xff]   ;;  %v7256_v56 = vcombine.low %v7252_v29, %v7252_v29  ;;  %v7257_v32 = vcombine.high %v7252_v29, %v7252_v29 }
 0x32c   :  { %8309 = vmatprep.subr.bf16.mxu1 %v11952_v22 }
 0x32d   :  { %v2049_v52 = vmax.f32 %v11861_v63, %v2044_v46  ;;  %v12020_v46 = vld [vmem:[%s14188_s1 + $0x80] sm:$0xff]  }
 0x32e   :  { %8310 = vmatpush3.bf16.msra.mxu1 %v11961_v62 }
 0x32f   :  { %9600 = vmatprep.subr.bf16.mxu1 %v10495_v39 }
 0x331   :  { %2684 = vmatmul.mubr.bf16.vlgmr.msra.gmra.mxu1 %v7245_v35 }
 0x332   :  { %9601 = vmatpush3.bf16.msra.mxu1 %v11855_v1  ;;  %9608 = vmatprep.mubr.msk.bf16.mxu1 %vm10496_vm0, %v10495_v39 }
 0x333   :  { %9602 = vmatprep.subr.bf16.mxu1 %v10495_v39 }
 0x336   :  { %9603 = vmatpush3.bf16.msra.mxu1 %v11866_v36 }
 0x337   :  { %9604 = vmatprep.subr.bf16.mxu1 %v10495_v39 }
 0x33a   :  { %9605 = vmatpush3.bf16.msra.mxu1 %v11873_v24 }
 0x33b   :  { %9606 = vmatprep.subr.bf16.mxu1 %v10495_v39 }
 0x33e   :  { %9607 = vmatpush3.bf16.msra.mxu1 %v11880_v8 }
 0x33f   :  { %8366 = vmatprep.subr.bf16.mxu1 %v11626_v43 }
 0x341   :  { %9609 = vmatmul.mubr.msk.bf16.vlgmr.msra.gmra.mxu1 %vm336_vm1, %v10056_v5 }
 0x342   :  { %8367 = vmatpush3.bf16.msra.mxu1 %v11722_v58  ;;  %2868 = vmatprep.mubr.bf16.mxu1 %v7257_v32  ;;  %v7251_v32 = vld [vmem:[%s14189_s0 + $0x1a4] sm:$0xff] }
 0x343   :  { %8368 = vmatprep.subr.bf16.mxu1 %v11728_v33 }
 0x344   :  { %v8164_v17 = vpop.f32.mrf.mxu0 }
 0x346   :  { %v8165_v7 = vpop.f32.mrf.mxu0  ;;  %8369 = vmatpush3.bf16.msra.mxu1 %v11736_v2 }
 0x347   :  { %8370 = vmatprep.subr.bf16.mxu1 %v11742_v13  ;;  %v8166_v54 = vadd.f32 %v8165_v7, %v8164_v17 }
 0x348   :  { %v8167_v61 = vpop.f32.mrf.mxu0 }
 0x349   :  { %v2149_v57 = vadd.f32 %v11789_v20, %v8166_v54  ;;  %v11999_v20 = vld [vmem:[%s14188_s1 + $0xc8] sm:$0xff]  }
 0x34a   :  { %v8168_v9 = vpop.f32.mrf.mxu0  ;;  %8371 = vmatpush3.bf16.msra.mxu1 %v11748_v23 }
 0x34b   :  { %8372 = vmatprep.subr.bf16.mxu1 %v11754_v45  ;;  %v12041_v9 = vld [vmem:[%s14191_s2] ss:$0 sm:$0xff] }
 0x34e   :  { %8373 = vmatpush3.bf16.msra.mxu1 %v11760_v3 }
 0x34f   :  { %8374 = vmatprep.subr.bf16.mxu1 %v11766_v15 }
 0x352   :  { %8375 = vmatpush3.bf16.msra.mxu1 %v11772_v21 }
 0x353   :  { %8376 = vmatprep.subr.bf16.mxu1 %v11780_v27 }
 0x354   :  { %v2188_v40 = vpop.f32.mrf.mxu0 }
 0x355   :  { %v2189_v63 = vadd.f32 %v2188_v40, %v2149_v57  ;;  %v7234_v57 = vld [vmem:[%s14189_s0 + $0x44] sm:$0xff]  ;;  %v7260_v40 = vld [vmem:[%s14189_s0 + $0x258] sm:$0xff] }
 0x356   :  { %v9574_v42 = vpop.f32.mrf.mxu0  ;;  %8377 = vmatpush3.bf16.msra.mxu1 %v11993_v30  ;;  %v7238_v29 = vcombine.low %v7234_v57, %v7234_v57 }
 0x357   :  { %v2194_v41 = vmax.f32 %v2049_v52, %v2189_v63  ;;  %8378 = vmatprep.subr.bf16.mxu1 %v11999_v20  ;;  %v7263_v42 = vcombine.low %v7260_v40, %v7260_v40 }
 0x358   :  { %v2191_v4 = vpop.f32.mrf.mxu0 }
 0x359   :  { %v10066_v4 = vld [vmem:[%s14189_s0 + $0x268] ss:$0 sps:$4 sm:$0xff]  }
 0x35a   :  { %v9575_v11 = vpop.f32.mrf.mxu0  ;;  %8379 = vmatpush3.bf16.msra.mxu1 %v12005_v28 }
 0x35b   :  { %8380 = vmatprep.subr.bf16.mxu1 %v12011_v31  ;;  %v7243_v11 = vld [vmem:[%s14189_s0 + $0xf8] sm:$0xff] }
 0x35e   :  { %8381 = vmatpush3.bf16.msra.mxu1 %v12020_v46 }
 0x35f   :  { %8393 = vmatprep.subr.bf16.mxu1 %v11661_v44 }
 0x361   :  { %2869 = vmatmul.mubr.bf16.vlgmr.msra.gmra.mxu1 %v7256_v56  ;;  %v7248_v56 = vcombine.high %v7243_v11, %v7243_v11 }
 0x362   :  { %8394 = vmatpush3.bf16.msra.mxu1 %v11667_v47 }
 0x363   :  { %8395 = vmatprep.subr.bf16.mxu1 %v11673_v49 }
 0x366   :  { %8396 = vmatpush3.bf16.msra.mxu1 %v11679_v51 }
 0x367   :  { %8397 = vmatprep.subr.bf16.mxu1 %v11685_v53 }
 0x36a   :  { %8398 = vmatpush3.bf16.msra.mxu1 %v11895_v12 }
 0x36b   :  { %8399 = vmatprep.subr.bf16.mxu1 %v11901_v0 }
 0x36e   :  { %8400 = vmatpush3.bf16.msra.mxu1 %v11907_v14 }
 0x36f   :  { %8401 = vmatprep.subr.bf16.mxu1 %v11913_v19 }
 0x372   :  { %8402 = vmatpush3.bf16.msra.mxu1 %v11919_v26 }
 0x373   :  { %8403 = vmatprep.subr.bf16.mxu1 %v11925_v38 }
 0x374   :  { %v8235_v52 = vpop.f32.mrf.mxu0 }
 0x376   :  { %v8236_v55 = vpop.f32.mrf.mxu0  ;;  %8404 = vmatpush3.bf16.msra.mxu1 %v11933_v48 }
 0x377   :  { %v8237_v35 = vadd.f32 %v8236_v55, %v8235_v52  ;;  %8405 = vmatprep.subr.bf16.mxu1 %v11939_v50  ;;  %v7247_v52 = vcombine.low %v7243_v11, %v7243_v11  ;;  %v7255_v55 = vcombine.high %v7251_v32, %v7251_v32 }
 0x378   :  { %v8238_v6 = vpop.f32.mrf.mxu0 }
 0x379   :  { %v2294_v17 = vadd.f32 %v8237_v35, %v11819_v25  ;;  %v8262_v35 = vpop.f32.mrf.mxu1 }
 0x37a   :  { %v8239_v5 = vpop.f32.mrf.mxu0  ;;  %8406 = vmatpush3.bf16.msra.mxu1 %v11946_v37 }
 0x37b   :  { %v2334_v7 = vadd.f32 %v11827_v59, %v2294_v17  ;;  %8407 = vmatprep.subr.bf16.mxu1 %v11952_v22  ;;  %v7239_v59 = vcombine.high %v7234_v57, %v7234_v57  ;;  %v8263_v6 = vpop.f32.mrf.mxu1 }
 0x37c   :  { %v12124_v17 = vadd.f32 %v8263_v6, %v8262_v35 }
 0x37d   :  { %v2339_v61 = vmax.f32 %v2194_v41, %v2334_v7  ;;  %v7264_v41 = vcombine.high %v7260_v40, %v7260_v40  ;;  %v8265_v5 = vpop.f32.mrf.mxu1  ;;  %v7261_v40 = vld [vmem:[%s14189_s0 + $0x260] sm:$0xff] }
 0x37e   :  { %8408 = vmatpush3.bf16.msra.mxu1 %v11961_v62  ;;  %v7265_v6 = vcombine.low %v7261_v40, %v7261_v40 }
 0x37f   :  { %v2340_v54 = vadd.f32 %v12041_v9, %v2339_v61  ;;  %9624 = vmatprep.subr.bf16.mxu1 %v10495_v39  ;;  %2973 = vmatprep.mubr.bf16.mxu1 %v7264_v41  ;;  %v8266_v7 = vpop.f32.mrf.mxu1 }
 0x381   :  { %v2341_v25 = vmax.f32 %v2340_v54, 0.0  ;;  %2974 = vmatmul.mubr.bf16.vlgmr.msra.gmra.mxu1 %v7263_v42  ;;  %v7266_v42 = vcombine.high %v7261_v40, %v7261_v40  ;;  %v10072_v40 = vld [vmem:[%s14190_s3 + $0x1e4] ss:$8 sps:$4 sm:$0xff]  }
 0x382   :  { %9625 = vmatpush3.bf16.msra.mxu1 %v11855_v1  ;;  %9632 = vmatprep.mubr.msk.bf16.mxu1 %vm10496_vm0, %v10495_v39 }
 0x383   :  { %v2342_v63 = vpack.c.bf16 %v2341_v25, %v2341_v25  ;;  %9626 = vmatprep.subr.bf16.mxu1 %v10495_v39 }
 0x385   :  { %2473 = vmatmul.mubr.bf16.vlgmr.msra.gmra.mxu0 %v2342_v63  ;;  %v10061_v63 = vld [vmem:[%s14189_s0 + $0x1b4] ss:$0 sps:$4 sm:$0xff]  }
 0x386   :  { %8269 = vmatpush3.bf16.msra.mxu0 %v11722_v58  ;;  %2579 = vmatprep.mubr.bf16.mxu0 %v7239_v59  ;;  %v7254_v59 = vcombine.low %v7251_v32, %v7251_v32 }
 0x387   :  { %8270 = vmatprep.subr.bf16.mxu0 %v11728_v33  ;;  %9627 = vmatpush3.bf16.msra.mxu1 %v11866_v36 }
 0x388   :  { %9628 = vmatprep.subr.bf16.mxu1 %v10495_v39 }
 0x38a   :  { %8271 = vmatpush3.bf16.msra.mxu0 %v11736_v2 }
 0x38b   :  { %8272 = vmatprep.subr.bf16.mxu0 %v11742_v13  ;;  %9629 = vmatpush3.bf16.msra.mxu1 %v11873_v24 }
 0x38c   :  { %9630 = vmatprep.subr.bf16.mxu1 %v10495_v39 }
 0x38e   :  { %8273 = vmatpush3.bf16.msra.mxu0 %v11748_v23 }
 0x38f   :  { %8274 = vmatprep.subr.bf16.mxu0 %v11754_v45  ;;  %9631 = vmatpush3.bf16.msra.mxu1 %v11880_v8 }
 0x390   :  { %8442 = vmatprep.subr.bf16.mxu1 %v11661_v44 }
 0x392   :  { %8275 = vmatpush3.bf16.msra.mxu0 %v11760_v3  ;;  %9633 = vmatmul.mubr.msk.bf16.vlgmr.msra.gmra.mxu1 %vm336_vm1, %v10066_v4 }
 0x393   :  { %8276 = vmatprep.subr.bf16.mxu0 %v11766_v15  ;;  %8443 = vmatpush3.bf16.msra.mxu1 %v11667_v47 }
 0x394   :  { %8444 = vmatprep.subr.bf16.mxu1 %v11673_v49 }
 0x396   :  { %8277 = vmatpush3.bf16.msra.mxu0 %v11772_v21 }
 0x397   :  { %8278 = vmatprep.subr.bf16.mxu0 %v11780_v27  ;;  %8445 = vmatpush3.bf16.msra.mxu1 %v11679_v51 }
 0x398   :  { %8446 = vmatprep.subr.bf16.mxu1 %v11685_v53 }
 0x39a   :  { %8279 = vmatpush3.bf16.msra.mxu0 %v11993_v30 }
 0x39b   :  { %8280 = vmatprep.subr.bf16.mxu0 %v11999_v20  ;;  %8447 = vmatpush3.bf16.msra.mxu1 %v11895_v12 }
 0x39c   :  { %8448 = vmatprep.subr.bf16.mxu1 %v11901_v0 }
 0x39e   :  { %8281 = vmatpush3.bf16.msra.mxu0 %v12005_v28 }
 0x39f   :  { %8282 = vmatprep.subr.bf16.mxu0 %v12011_v31  ;;  %8449 = vmatpush3.bf16.msra.mxu1 %v11907_v14 }
 0x3a0   :  { %8450 = vmatprep.subr.bf16.mxu1 %v11913_v19 }
 0x3a2   :  { %8283 = vmatpush3.bf16.msra.mxu0 %v12020_v46 }
 0x3a3   :  { %8317 = vmatprep.subr.bf16.mxu0 %v11626_v43  ;;  %8451 = vmatpush3.bf16.msra.mxu1 %v11919_v26 }
 0x3a4   :  { %8452 = vmatprep.subr.bf16.mxu1 %v11925_v38 }
 0x3a5   :  { %2580 = vmatmul.mubr.bf16.vlgmr.msra.gmra.mxu0 %v7238_v29 }
 0x3a6   :  { %8318 = vmatpush3.bf16.msra.mxu0 %v11722_v58  ;;  %2723 = vmatprep.mubr.bf16.mxu0 %v7248_v56 }
 0x3a7   :  { %8319 = vmatprep.subr.bf16.mxu0 %v11728_v33  ;;  %8453 = vmatpush3.bf16.msra.mxu1 %v11933_v48  ;;  %v12133_v61 = vpop.f32.mrf.mxu1 }
 0x3a8   :  { %8454 = vmatprep.subr.bf16.mxu1 %v11939_v50 }
 0x3a9   :  { %v9598_v54 = vpop.f32.mrf.mxu1 }
 0x3aa   :  { %8320 = vmatpush3.bf16.msra.mxu0 %v11736_v2 }
 0x3ab   :  { %8321 = vmatprep.subr.bf16.mxu0 %v11742_v13  ;;  %8455 = vmatpush3.bf16.msra.mxu1 %v11946_v37  ;;  %v2624_v57 = vpop.f32.mrf.mxu1 }
 0x3ac   :  { %8456 = vmatprep.subr.bf16.mxu1 %v11952_v22 }
 0x3ad   :  { %v9599_v25 = vpop.f32.mrf.mxu1 }
 0x3ae   :  { %8322 = vmatpush3.bf16.msra.mxu0 %v11748_v23 }
 0x3af   :  { %8323 = vmatprep.subr.bf16.mxu0 %v11754_v45  ;;  %8457 = vmatpush3.bf16.msra.mxu1 %v11961_v62 }
 0x3b0   :  { %9636 = vmatprep.subr.bf16.mxu1 %v10495_v39 }
 0x3b2   :  { %8324 = vmatpush3.bf16.msra.mxu0 %v11760_v3 }
 0x3b3   :  { %8325 = vmatprep.subr.bf16.mxu0 %v11766_v15 }
 0x3b6   :  { %8326 = vmatpush3.bf16.msra.mxu0 %v11772_v21 }
 0x3b7   :  { %8327 = vmatprep.subr.bf16.mxu0 %v11780_v27 }
 0x3ba   :  { %8328 = vmatpush3.bf16.msra.mxu0 %v11993_v30 }
 0x3bb   :  { %8329 = vmatprep.subr.bf16.mxu0 %v11999_v20 }
 0x3be   :  { %8330 = vmatpush3.bf16.msra.mxu0 %v12005_v28 }
 0x3bf   :  { %8331 = vmatprep.subr.bf16.mxu0 %v12011_v31 }
 0x3c2   :  { %8332 = vmatpush3.bf16.msra.mxu0 %v12020_v46 }
 0x3c3   :  { %8344 = vmatprep.subr.bf16.mxu0 %v11661_v44 }
 0x3c5   :  { %2724 = vmatmul.mubr.bf16.vlgmr.msra.gmra.mxu0 %v7247_v52 }
 0x3c6   :  { %8345 = vmatpush3.bf16.msra.mxu0 %v11667_v47  ;;  %2828 = vmatprep.mubr.bf16.mxu0 %v7255_v55 }
 0x3c7   :  { %8346 = vmatprep.subr.bf16.mxu0 %v11673_v49 }
 0x3ca   :  { %8347 = vmatpush3.bf16.msra.mxu0 %v11679_v51 }
 0x3cb   :  { %8348 = vmatprep.subr.bf16.mxu0 %v11685_v53 }
 0x3ce   :  { %8349 = vmatpush3.bf16.msra.mxu0 %v11895_v12 }
 0x3cf   :  { %8350 = vmatprep.subr.bf16.mxu0 %v11901_v0 }
 0x3d2   :  { %8351 = vmatpush3.bf16.msra.mxu0 %v11907_v14 }
 0x3d3   :  { %8352 = vmatprep.subr.bf16.mxu0 %v11913_v19 }
 0x3d6   :  { %8353 = vmatpush3.bf16.msra.mxu0 %v11919_v26 }
 0x3d7   :  { %8354 = vmatprep.subr.bf16.mxu0 %v11925_v38 }
 0x3da   :  { %8355 = vmatpush3.bf16.msra.mxu0 %v11933_v48 }
 0x3db   :  { %8356 = vmatprep.subr.bf16.mxu0 %v11939_v50 }
 0x3de   :  { %8357 = vmatpush3.bf16.msra.mxu0 %v11946_v37 }
 0x3df   :  { %8358 = vmatprep.subr.bf16.mxu0 %v11952_v22 }
 0x3e2   :  { %8359 = vmatpush3.bf16.msra.mxu0 %v11961_v62 }
 0x3e3   :  { %9612 = vmatprep.subr.bf16.mxu0 %v10495_v39 }
 0x3e5   :  { %2829 = vmatmul.mubr.bf16.vlgmr.msra.gmra.mxu0 %v7254_v59  ;;  %v10067_v59 = vld [vmem:[%s14190_s3 + $0x1f0] ss:$8 sps:$4 sm:$0xff]  }
 0x3e6   :  { %9613 = vmatpush3.bf16.msra.mxu0 %v11855_v1  ;;  %9620 = vmatprep.mubr.msk.bf16.mxu0 %vm10496_vm0, %v10495_v39 }
 0x3e7   :  { %9614 = vmatprep.subr.bf16.mxu0 %v10495_v39 }
 0x3ea   :  { %9615 = vmatpush3.bf16.msra.mxu0 %v11866_v36 }
 0x3eb   :  { %9616 = vmatprep.subr.bf16.mxu0 %v10495_v39 }
 0x3ee   :  { %9617 = vmatpush3.bf16.msra.mxu0 %v11873_v24 }
 0x3ef   :  { %9618 = vmatprep.subr.bf16.mxu0 %v10495_v39 }
 0x3f1   :  { %v8311_v41 = vpop.f32.mrf.mxu1 }
 0x3f2   :  { %9619 = vmatpush3.bf16.msra.mxu0 %v11880_v8 }
 0x3f3   :  { %8415 = vmatprep.subr.bf16.mxu0 %v11626_v43  ;;  %v8312_v4 = vpop.f32.mrf.mxu1 }
 0x3f4   :  { %v12161_v11 = vadd.f32 %v8312_v4, %v8311_v41  ;;  %v10075_v41 = vld [vmem:[%s14190_s3 + $0x1d4] ss:$8 sps:$4 sm:$0xff]   ;;  %v10073_v4 = vld [vmem:[%s14190_s3 + $0x1d0] ss:$8 sps:$4 sm:$0xff]  }
 0x3f5   :  { %9621 = vmatmul.mubr.msk.bf16.vlgmr.msra.gmra.mxu0 %vm336_vm1, %v10061_v63  ;;  %v8314_v29 = vpop.f32.mrf.mxu1  ;;  %v10069_v63 = vld [vmem:[%s14190_s3 + $0x1f4] ss:$8 sps:$4 sm:$0xff]  }
 0x3f6   :  { %8416 = vmatpush3.bf16.msra.mxu0 %v11722_v58  ;;  %3013 = vmatprep.mubr.bf16.mxu0 %v7266_v42  ;;  %v10070_v42 = vld [vmem:[%s14190_s3 + $0x1e0] ss:$8 sps:$4 sm:$0xff]   ;;  %v10078_v29 = vld [vmem:[%s14190_s3 + $0x1c4] ss:$8 sps:$4 sm:$0xff]  }
 0x3f7   :  { %8417 = vmatprep.subr.bf16.mxu0 %v11728_v33  ;;  %v8315_v56 = vpop.f32.mrf.mxu1 }
 0x3f8   :  { %v1755_v56 = vadd.f32 %v11597_v16, %v11791_v60 }
 0x3fa   :  { %8418 = vmatpush3.bf16.msra.mxu0 %v11736_v2 }
 0x3fb   :  { %8419 = vmatprep.subr.bf16.mxu0 %v11742_v13 }
 0x3fe   :  { %8420 = vmatpush3.bf16.msra.mxu0 %v11748_v23 }
 0x3ff   :  { %8421 = vmatprep.subr.bf16.mxu0 %v11754_v45 }
 0x401   :  { %v12170_v32 = vpop.f32.mrf.mxu1 }
 0x402   :  { %8422 = vmatpush3.bf16.msra.mxu0 %v11760_v3 }
 0x403   :  { %8423 = vmatprep.subr.bf16.mxu0 %v11766_v15  ;;  %v9610_v52 = vpop.f32.mrf.mxu1 }
 0x405   :  { %v2768_v55 = vpop.f32.mrf.mxu1 }
 0x406   :  { %8424 = vmatpush3.bf16.msra.mxu0 %v11772_v21  ;;  %v1757_v55 = vadd.f32 %v11602_v18, %v11793_v34  ;;  %v10081_v34 = vld [vmem:[%s14190_s3 + $0x1b4] ss:$8 sps:$4 sm:$0xff]  }
 0x407   :  { %8425 = vmatprep.subr.bf16.mxu0 %v11780_v27  ;;  %v9611_v35 = vpop.f32.mrf.mxu1 }
 0x40a   :  { %8426 = vmatpush3.bf16.msra.mxu0 %v11993_v30 }
 0x40b   :  { %8427 = vmatprep.subr.bf16.mxu0 %v11999_v20 }
 0x40e   :  { %8428 = vmatpush3.bf16.msra.mxu0 %v12005_v28 }
 0x40f   :  { %8429 = vmatprep.subr.bf16.mxu0 %v12011_v31 }
 0x412   :  { %8430 = vmatpush3.bf16.msra.mxu0 %v12020_v46 }
 0x413   :  { %3162 = vmatprep.subr.bf16.mxu0 %v10069_v63 }
 0x415   :  { %3014 = vmatmul.mubr.bf16.vlgmr.msra.gmra.mxu0 %v7265_v6  ;;  %v10076_v6 = vld [vmem:[%s14190_s3 + $0x1c0] ss:$8 sps:$4 sm:$0xff]  }
 0x416   :  { %3194 = vmatprep.mubr.bf16.mxu0 %v10497_v10  ;;  %3163 = vmatpush1.bf16.msra.mxu0 %v10067_v59 }
 0x417   :  { %3164 = vmatprep.subr.bf16.mxu0 %v10072_v40  ;;  %v10079_v40 = vld [vmem:[%s14190_s3 + $0x1b0] ss:$8 sps:$4 sm:$0xff]  }
 0x41a   :  { %3165 = vmatpush1.bf16.msra.mxu0 %v10070_v42 }
 0x41b   :  { %3166 = vmatprep.subr.bf16.mxu0 %v10075_v41  ;;  %v10084_v41 = vld [vmem:[%s14190_s3 + $0x1a4] ss:$8 sps:$4 sm:$0xff]  }
 0x41e   :  { %3167 = vmatpush1.bf16.msra.mxu0 %v10073_v4  ;;  %v10082_v4 = vld [vmem:[%s14190_s3 + $0x1a0] ss:$8 sps:$4 sm:$0xff]  }
 0x41f   :  { %3168 = vmatprep.subr.bf16.mxu0 %v10078_v29 }
 0x421   :  { %v8382_v5 = vpop.f32.mrf.mxu1 }
 0x422   :  { %3169 = vmatpush1.bf16.msra.mxu0 %v10076_v6 }
 0x423   :  { %v8383_v7 = vpop.f32.mrf.mxu1  ;;  %3170 = vmatprep.subr.bf16.mxu0 %v10081_v34 }
 0x424   :  { %v12179_v54 = vadd.f32 %v8383_v7, %v8382_v5 }
 0x425   :  { %v8385_v57 = vpop.f32.mrf.mxu1 }
 0x426   :  { %3171 = vmatpush1.bf16.msra.mxu0 %v10079_v40 }
 0x427   :  { %v8386_v25 = vpop.f32.mrf.mxu1  ;;  %3172 = vmatprep.subr.bf16.mxu0 %v10084_v41 }
 0x42a   :  { %3173 = vmatpush1.bf16.msra.mxu0 %v10082_v4 }
 0x441   :  { %v8409_v7 = vpop.f32.mrf.mxu1 }
 0x443   :  { %v8410_v59 = vpop.f32.mrf.mxu1 }
 0x444   :  { %v12213_v63 = vadd.f32 %v8410_v59, %v8409_v7  ;;  %v10090_v7 = vld [vmem:[%s14190_s3 + $0x184] ss:$8 sps:$4 sm:$0xff]  }
 0x445   :  { %v2474_v52 = vpop.f32.mrf.mxu0  ;;  %v8412_v60 = vpop.f32.mrf.mxu1 }
 0x446   :  { %v12206_v35 = vadd.f32 %v2474_v52, %v1755_v56  ;;  %v10087_v52 = vld [vmem:[%s14190_s3 + $0x194] ss:$8 sps:$4 sm:$0xff]  }
 0x447   :  { %v2476_v5 = vpop.f32.mrf.mxu0  ;;  %v8413_v18 = vpop.f32.mrf.mxu1  ;;  %3174 = vmatprep.subr.bf16.mxu0 %v10087_v52 }
 0x448   :  { %v12211_v57 = vadd.f32 %v2476_v5, %v1757_v55  ;;  %v10085_v55 = vld [vmem:[%s14190_s3 + $0x190] ss:$8 sps:$4 sm:$0xff]   ;;  %v10088_v5 = vld [vmem:[%s14190_s3 + $0x180] ss:$8 sps:$4 sm:$0xff]  }
 0x449   :  { %v2478_v25 = vpop.f32.mrf.mxu0  ;;  %3175 = vmatpush1.bf16.msra.mxu0 %v10085_v55  ;;  %v7310_v55 = vld [vmem:[%s14189_s0 + $0x104] sm:$0xff] }
 0x44a   :  { %v7301_v25 = vld [vmem:[%s14189_s0 + $0x50] sm:$0xff]  ;;  %3176 = vmatprep.subr.bf16.mxu0 %v10090_v7 }
 0x44b   :  { %v2479_v16 = vpop.f32.mrf.mxu0  ;;  %v7304_v59 = vcombine.low %v7301_v25, %v7301_v25 }
 0x44c   :  { %v7305_v16 = vcombine.high %v7301_v25, %v7301_v25 }
 0x44d   :  { %3177 = vmatpush1.bf16.msra.mxu0 %v10088_v5  ;;  %v10100_v5 = vld [vmem:[%s14189_s0 + $0x114] ss:$0 sps:$4 sm:$0xff]  }
 0x44e   :  { %3261 = vmatprep.mubr.bf16.mxu1 %v7305_v16  ;;  %8464 = vmatprep.subr.bf16.mxu0 %v11626_v43  ;;  %v10093_v43 = vld [vmem:[%s14189_s0 + $0x60] ss:$0 sps:$4 sm:$0xff]  }
 0x44f   :  { %3262 = vmatmul.mubr.bf16.vlgmr.msra.gmra.mxu1 %v7304_v59 }
 0x450   :  { %9637 = vmatpush3.bf16.msra.mxu1 %v11855_v1  ;;  %9644 = vmatprep.mubr.msk.bf16.mxu1 %vm10496_vm0, %v10495_v39 }
 0x451   :  { %9638 = vmatprep.subr.bf16.mxu1 %v10495_v39 }
 0x452   :  { %v12221_v42 = vpop.f32.mrf.mxu1 }
 0x454   :  { %v9634_v29 = vpop.f32.mrf.mxu1  ;;  %9639 = vmatpush3.bf16.msra.mxu1 %v11866_v36 }
 0x455   :  { %9640 = vmatprep.subr.bf16.mxu1 %v10495_v39 }
 0x456   :  { %v3058_v56 = vpop.f32.mrf.mxu1 }
 0x458   :  { %v9635_v6 = vpop.f32.mrf.mxu1  ;;  %9641 = vmatpush3.bf16.msra.mxu1 %v11873_v24 }
 0x459   :  { %9642 = vmatprep.subr.bf16.mxu1 %v10495_v39  ;;  %v7314_v6 = vcombine.high %v7310_v55, %v7310_v55 }
 0x45c   :  { %9643 = vmatpush3.bf16.msra.mxu1 %v11880_v8 }
 0x45d   :  { %8491 = vmatprep.subr.bf16.mxu1 %v11661_v44 }
 0x45f   :  { %9645 = vmatmul.mubr.msk.bf16.vlgmr.msra.gmra.mxu1 %vm336_vm1, %v10093_v43 }
 0x460   :  { %8492 = vmatpush3.bf16.msra.mxu1 %v11667_v47  ;;  %3405 = vmatprep.mubr.bf16.mxu1 %v7314_v6  ;;  %v12380_v6 = vld [vmem:[%s14188_s1 + $0xf0] sm:$0xff]  }
 0x461   :  { %8493 = vmatprep.subr.bf16.mxu1 %v11673_v49 }
 0x464   :  { %8494 = vmatpush3.bf16.msra.mxu1 %v11679_v51 }
 0x465   :  { %v8284_v60 = vpop.f32.mrf.mxu0  ;;  %8495 = vmatprep.subr.bf16.mxu1 %v11685_v53 }
 0x467   :  { %v8285_v18 = vpop.f32.mrf.mxu0 }
 0x468   :  { %v8286_v34 = vadd.f32 %v8285_v18, %v8284_v60  ;;  %8496 = vmatpush3.bf16.msra.mxu1 %v11895_v12 }
 0x469   :  { %v8287_v40 = vpop.f32.mrf.mxu0  ;;  %8497 = vmatprep.subr.bf16.mxu1 %v11901_v0 }
 0x46a   :  { %v2582_v41 = vadd.f32 %v8286_v34, %v12124_v17  ;;  %v12347_v40 = vld [vmem:[%s14188_s1 + $0x68] sm:$0xff]  }
 0x46b   :  { %v8288_v4 = vpop.f32.mrf.mxu0 }
 0x46c   :  { %8498 = vmatpush3.bf16.msra.mxu1 %v11907_v14  ;;  %v2622_v53 = vadd.f32 %v12133_v61, %v2582_v41 }
 0x46d   :  { %8499 = vmatprep.subr.bf16.mxu1 %v11913_v19 }
 0x470   :  { %8500 = vmatpush3.bf16.msra.mxu1 %v11919_v26 }
 0x471   :  { %8501 = vmatprep.subr.bf16.mxu1 %v11925_v38 }
 0x474   :  { %8502 = vmatpush3.bf16.msra.mxu1 %v11933_v48 }
 0x475   :  { %8503 = vmatprep.subr.bf16.mxu1 %v11939_v50 }
 0x478   :  { %8504 = vmatpush3.bf16.msra.mxu1 %v11946_v37 }
 0x479   :  { %8505 = vmatprep.subr.bf16.mxu1 %v11952_v22 }
 0x47c   :  { %8506 = vmatpush3.bf16.msra.mxu1 %v11961_v62 }
 0x47d   :  { %9648 = vmatprep.subr.bf16.mxu1 %v10495_v39 }
 0x485   :  { %v8333_v44 = vpop.f32.mrf.mxu0 }
 0x487   :  { %v8334_v17 = vpop.f32.mrf.mxu0 }
 0x488   :  { %v8335_v29 = vadd.f32 %v8334_v17, %v8333_v44 }
 0x489   :  { %v8336_v47 = vpop.f32.mrf.mxu0 }
 0x48a   :  { %v2726_v49 = vadd.f32 %v8335_v29, %v12161_v11  ;;  %v7313_v11 = vcombine.low %v7310_v55, %v7310_v55 }
 0x48b   :  { %v8337_v51 = vpop.f32.mrf.mxu0 }
 0x48c   :  { %v2766_v56 = vadd.f32 %v12170_v32, %v2726_v49  ;;  %3406 = vmatmul.mubr.bf16.vlgmr.msra.gmra.mxu1 %v7313_v11  ;;  %v12294_v32 = vld [vmem:[%s14188_s1 + $0xf8] sm:$0xff]  }
 0x48d   :  { %9649 = vmatpush3.bf16.msra.mxu1 %v11855_v1  ;;  %9656 = vmatprep.mubr.msk.bf16.mxu1 %vm10496_vm0, %v10495_v39 }
 0x48e   :  { %v2771_v52 = vmax.f32 %v2622_v53, %v2766_v56  ;;  %9650 = vmatprep.subr.bf16.mxu1 %v10495_v39  ;;  %v7302_v53 = vld [vmem:[%s14189_s0 + $0x58] sm:$0xff] }
 0x491   :  { %9651 = vmatpush3.bf16.msra.mxu1 %v11866_v36 }
 0x492   :  { %9652 = vmatprep.subr.bf16.mxu1 %v10495_v39 }
 0x495   :  { %9653 = vmatpush3.bf16.msra.mxu1 %v11873_v24 }
 0x496   :  { %9654 = vmatprep.subr.bf16.mxu1 %v10495_v39 }
 0x499   :  { %9655 = vmatpush3.bf16.msra.mxu1 %v11880_v8 }
 0x49a   :  { %8562 = vmatprep.subr.bf16.mxu1 %v12294_v32 }
 0x49c   :  { %9657 = vmatmul.mubr.msk.bf16.vlgmr.msra.gmra.mxu1 %vm336_vm1, %v10100_v5  ;;  %v12396_v5 = vld [vmem:[%s14188_s1 + $0xe8] sm:$0xff]  }
 0x49d   :  { %8563 = vmatpush3.bf16.msra.mxu1 %v11722_v58 }
 0x49e   :  { %8564 = vmatprep.subr.bf16.mxu1 %v11728_v33 }
 0x4a1   :  { %8565 = vmatpush3.bf16.msra.mxu1 %v11736_v2 }
 0x4a2   :  { %8566 = vmatprep.subr.bf16.mxu1 %v11742_v13 }
 0x4a5   :  { %v8360_v61 = vpop.f32.mrf.mxu0  ;;  %8567 = vmatpush3.bf16.msra.mxu1 %v11748_v23  ;;  %v7320_v23 = vld [vmem:[%s14189_s0 + $0x1c0] sm:$0xff] }
 0x4a6   :  { %8568 = vmatprep.subr.bf16.mxu1 %v11754_v45  ;;  %v7324_v45 = vcombine.low %v7320_v23, %v7320_v23 }
 0x4a7   :  { %v8361_v7 = vpop.f32.mrf.mxu0 }
 0x4a8   :  { %v8362_v16 = vadd.f32 %v8361_v7, %v8360_v61  ;;  %v12390_v61 = vld [vmem:[%s14188_s1 + $0xb0] sm:$0xff]   ;;  %v12410_v7 = vld [vmem:[%s14188_s1 + $0xe0] sm:$0xff]  }
 0x4a9   :  { %v8363_v25 = vpop.f32.mrf.mxu0  ;;  %8569 = vmatpush3.bf16.msra.mxu1 %v11760_v3  ;;  %v7325_v3 = vcombine.high %v7320_v23, %v7320_v23 }
 0x4aa   :  { %v2871_v60 = vadd.f32 %v12179_v54, %v8362_v16  ;;  %8570 = vmatprep.subr.bf16.mxu1 %v11766_v15  ;;  %v12323_v15 = vld [vmem:[%s14188_s1 + $0x78] sm:$0xff]   ;;  %v12341_v54 = vld [vmem:[%s14188_s1 + $0x30] sm:$0xff]  }
 0x4ab   :  { %v8364_v59 = vpop.f32.mrf.mxu0  ;;  %3590 = vmatprep.mubr.bf16.mxu1 %v7325_v3  ;;  %v12424_v25 = vld [vmem:[%s14188_s1 + $0xd8] sm:$0xff]   ;;  %v12441_v16 = vld [vmem:[%s14188_s1 + $0xd0] sm:$0xff]  }
 0x4ac   :  { %v12435_v59 = vld [vmem:[%s14188_s1 + $0x98] sm:$0xff]  }
 0x4ad   :  { %8571 = vmatpush3.bf16.msra.mxu1 %v11772_v21  ;;  %v12329_v21 = vld [vmem:[%s14188_s1 + $0x38] sm:$0xff]  }
 0x4ae   :  { %8572 = vmatprep.subr.bf16.mxu1 %v11780_v27  ;;  %v12335_v27 = vld [vmem:[%s14188_s1 + $0x70] sm:$0xff]  }
 0x4b1   :  { %8573 = vmatpush3.bf16.msra.mxu1 %v11993_v30 }
 0x4b2   :  { %8574 = vmatprep.subr.bf16.mxu1 %v11999_v20 }
 0x4b5   :  { %v2910_v18 = vpop.f32.mrf.mxu0  ;;  %8575 = vmatpush3.bf16.msra.mxu1 %v12005_v28 }
 0x4b6   :  { %v2911_v58 = vadd.f32 %v2910_v18, %v2871_v60  ;;  %8576 = vmatprep.subr.bf16.mxu1 %v12011_v31  ;;  %v7306_v60 = vcombine.low %v7302_v53, %v7302_v53 }
 0x4b7   :  { %v9622_v34 = vpop.f32.mrf.mxu0 }
 0x4b8   :  { %v2916_v33 = vmax.f32 %v2771_v52, %v2911_v58  ;;  %v7319_v58 = vld [vmem:[%s14189_s0 + $0x1b8] sm:$0xff] }
 0x4b9   :  { %v2913_v2 = vpop.f32.mrf.mxu0  ;;  %8577 = vmatpush3.bf16.msra.mxu1 %v12020_v46 }
 0x4ba   :  { %8589 = vmatprep.subr.bf16.mxu1 %v12323_v15 }
 0x4bb   :  { %v9623_v13 = vpop.f32.mrf.mxu0 }
 0x4bc   :  { %3591 = vmatmul.mubr.bf16.vlgmr.msra.gmra.mxu1 %v7324_v45 }
 0x4bd   :  { %8590 = vmatpush3.bf16.msra.mxu1 %v12329_v21 }
 0x4be   :  { %8591 = vmatprep.subr.bf16.mxu1 %v12335_v27 }
 0x4c1   :  { %8592 = vmatpush3.bf16.msra.mxu1 %v12341_v54 }
 0x4c2   :  { %8593 = vmatprep.subr.bf16.mxu1 %v12347_v40 }
 0x4c5   :  { %8594 = vmatpush3.bf16.msra.mxu1 %v11895_v12 }
 0x4c6   :  { %8595 = vmatprep.subr.bf16.mxu1 %v11901_v0 }
 0x4c9   :  { %8596 = vmatpush3.bf16.msra.mxu1 %v11907_v14 }
 0x4ca   :  { %8597 = vmatprep.subr.bf16.mxu1 %v11913_v19 }
 0x4cd   :  { %8598 = vmatpush3.bf16.msra.mxu1 %v11919_v26 }
 0x4ce   :  { %8599 = vmatprep.subr.bf16.mxu1 %v11925_v38 }
 0x4d1   :  { %8600 = vmatpush3.bf16.msra.mxu1 %v11933_v48 }
 0x4d2   :  { %8601 = vmatprep.subr.bf16.mxu1 %v11939_v50 }
 0x4d5   :  { %v8431_v41 = vpop.f32.mrf.mxu0  ;;  %8602 = vmatpush3.bf16.msra.mxu1 %v11946_v37 }
 0x4d6   :  { %8603 = vmatprep.subr.bf16.mxu1 %v11952_v22 }
 0x4d7   :  { %v8432_v4 = vpop.f32.mrf.mxu0 }
 0x4d8   :  { %v8433_v43 = vadd.f32 %v8432_v4, %v8431_v41 }
 0x4d9   :  { %v8434_v44 = vpop.f32.mrf.mxu0  ;;  %8604 = vmatpush3.bf16.msra.mxu1 %v11961_v62 }
 0x4da   :  { %v3016_v17 = vadd.f32 %v8433_v43, %v12213_v63  ;;  %v7307_v63 = vcombine.high %v7302_v53, %v7302_v53  ;;  %9672 = vmatprep.subr.bf16.mxu1 %v10495_v39 }
 0x4db   :  { %v8435_v29 = vpop.f32.mrf.mxu0 }
 0x4dc   :  { %v3056_v47 = vadd.f32 %v12221_v42, %v3016_v17  ;;  %v7328_v42 = vld [vmem:[%s14189_s0 + $0x26c] sm:$0xff] }
 0x4dd   :  { %v7331_v55 = vcombine.low %v7328_v42, %v7328_v42  ;;  %v7332_v11 = vcombine.high %v7328_v42, %v7328_v42 }
 0x4de   :  { %v3061_v49 = vmax.f32 %v2916_v33, %v3056_v47  ;;  %v7323_v33 = vcombine.high %v7319_v58, %v7319_v58 }
 0x4df   :  { %3695 = vmatprep.mubr.bf16.mxu1 %v7332_v11  ;;  %v10119_v11 = vld [vmem:[%s14190_s3 + $0x254] ss:$8 sps:$4 sm:$0xff]  }
 0x4e0   :  { %v3062_v51 = vadd.f32 %v12041_v9, %v3061_v49  ;;  %v12374_v9 = vld [vmem:[%s14188_s1 + $0xb8] sm:$0xff]   ;;  %3696 = vmatmul.mubr.bf16.vlgmr.msra.gmra.mxu1 %v7331_v55 }
 0x4e1   :  { %9673 = vmatpush3.bf16.msra.mxu1 %v11855_v1  ;;  %9680 = vmatprep.mubr.msk.bf16.mxu1 %vm10496_vm0, %v10495_v39  ;;  %v12404_v1 = vld [vmem:[%s14188_s1 + $0xa8] sm:$0xff]  }
 0x4e2   :  { %v3063_v56 = vmax.f32 %v3062_v51, 0.0  ;;  %9674 = vmatprep.subr.bf16.mxu1 %v10495_v39 }
 0x4e4   :  { %v3064_v52 = vpack.c.bf16 %v3063_v56, %v3063_v56 }
 0x4e5   :  { %9675 = vmatpush3.bf16.msra.mxu1 %v11866_v36  ;;  %v12418_v36 = vld [vmem:[%s14188_s1 + $0xa0] sm:$0xff]  }
 0x4e6   :  { %3195 = vmatmul.mubr.bf16.vlgmr.msra.gmra.mxu0 %v3064_v52  ;;  %9676 = vmatprep.subr.bf16.mxu1 %v10495_v39 }
 0x4e7   :  { %8465 = vmatpush3.bf16.msra.mxu0 %v12374_v9  ;;  %3301 = vmatprep.mubr.bf16.mxu0 %v7307_v63 }
 0x4e8   :  { %8466 = vmatprep.subr.bf16.mxu0 %v12380_v6 }
 0x4e9   :  { %9677 = vmatpush3.bf16.msra.mxu1 %v11873_v24  ;;  %v10110_v24 = vld [vmem:[%s14189_s0 + $0x27c] ss:$0 sps:$4 sm:$0xff]  }
 0x4ea   :  { %9678 = vmatprep.subr.bf16.mxu1 %v10495_v39 }
 0x4eb   :  { %8467 = vmatpush3.bf16.msra.mxu0 %v12390_v61 }
 0x4ec   :  { %8468 = vmatprep.subr.bf16.mxu0 %v12396_v5 }
 0x4ed   :  { %9679 = vmatpush3.bf16.msra.mxu1 %v11880_v8  ;;  %v7311_v8 = vld [vmem:[%s14189_s0 + $0x10c] sm:$0xff] }
 0x4ee   :  { %8638 = vmatprep.subr.bf16.mxu1 %v12323_v15  ;;  %v7316_v18 = vcombine.high %v7311_v8, %v7311_v8  ;;  %v7315_v34 = vcombine.low %v7311_v8, %v7311_v8  ;;  %v10122_v8 = vld [vmem:[%s14190_s3 + $0x244] ss:$8 sps:$4 sm:$0xff]  }
 0x4ef   :  { %8469 = vmatpush3.bf16.msra.mxu0 %v12404_v1 }
 0x4f0   :  { %8470 = vmatprep.subr.bf16.mxu0 %v12410_v7  ;;  %9681 = vmatmul.mubr.msk.bf16.vlgmr.msra.gmra.mxu1 %vm336_vm1, %v10110_v24  ;;  %v10117_v24 = vld [vmem:[%s14190_s3 + $0x250] ss:$8 sps:$4 sm:$0xff]  }
 0x4f1   :  { %8639 = vmatpush3.bf16.msra.mxu1 %v12329_v21 }
 0x4f2   :  { %8640 = vmatprep.subr.bf16.mxu1 %v12335_v27 }
 0x4f3   :  { %8471 = vmatpush3.bf16.msra.mxu0 %v12418_v36 }
 0x4f4   :  { %8472 = vmatprep.subr.bf16.mxu0 %v12424_v25 }
 0x4f5   :  { %8641 = vmatpush3.bf16.msra.mxu1 %v12341_v54 }
 0x4f6   :  { %8642 = vmatprep.subr.bf16.mxu1 %v12347_v40 }
 0x4f7   :  { %8473 = vmatpush3.bf16.msra.mxu0 %v12435_v59 }
 0x4f8   :  { %8474 = vmatprep.subr.bf16.mxu0 %v12441_v16 }
 0x4f9   :  { %8643 = vmatpush3.bf16.msra.mxu1 %v11895_v12 }
 0x4fa   :  { %8644 = vmatprep.subr.bf16.mxu1 %v11901_v0 }
 0x4fb   :  { %8475 = vmatpush3.bf16.msra.mxu0 %v11993_v30 }
 0x4fc   :  { %8476 = vmatprep.subr.bf16.mxu0 %v11999_v20 }
 0x4fd   :  { %8645 = vmatpush3.bf16.msra.mxu1 %v11907_v14 }
 0x4fe   :  { %8646 = vmatprep.subr.bf16.mxu1 %v11913_v19 }
 0x4ff   :  { %8477 = vmatpush3.bf16.msra.mxu0 %v12005_v28 }
 0x500   :  { %8478 = vmatprep.subr.bf16.mxu0 %v12011_v31 }
 0x501   :  { %8647 = vmatpush3.bf16.msra.mxu1 %v11919_v26 }
 0x502   :  { %8648 = vmatprep.subr.bf16.mxu1 %v11925_v38 }
 0x503   :  { %8479 = vmatpush3.bf16.msra.mxu0 %v12020_v46 }
 0x504   :  { %8513 = vmatprep.subr.bf16.mxu0 %v12294_v32 }
 0x505   :  { %8649 = vmatpush3.bf16.msra.mxu1 %v11933_v48 }
 0x506   :  { %3302 = vmatmul.mubr.bf16.vlgmr.msra.gmra.mxu0 %v7306_v60  ;;  %8650 = vmatprep.subr.bf16.mxu1 %v11939_v50 }
 0x507   :  { %8514 = vmatpush3.bf16.msra.mxu0 %v12374_v9  ;;  %3445 = vmatprep.mubr.bf16.mxu0 %v7316_v18 }
 0x508   :  { %8515 = vmatprep.subr.bf16.mxu0 %v12380_v6 }
 0x509   :  { %8651 = vmatpush3.bf16.msra.mxu1 %v11946_v37 }
 0x50a   :  { %8652 = vmatprep.subr.bf16.mxu1 %v11952_v22 }
 0x50b   :  { %8516 = vmatpush3.bf16.msra.mxu0 %v12390_v61 }
 0x50c   :  { %8517 = vmatprep.subr.bf16.mxu0 %v12396_v5 }
 0x50d   :  { %8653 = vmatpush3.bf16.msra.mxu1 %v11961_v62 }
 0x50e   :  { %9684 = vmatprep.subr.bf16.mxu1 %v10495_v39 }
 0x50f   :  { %8518 = vmatpush3.bf16.msra.mxu0 %v12404_v1  ;;  %v8458_v2 = vpop.f32.mrf.mxu1 }
 0x510   :  { %8519 = vmatprep.subr.bf16.mxu0 %v12410_v7 }
 0x511   :  { %v8459_v13 = vpop.f32.mrf.mxu1 }
 0x512   :  { %v12491_v23 = vadd.f32 %v8459_v13, %v8458_v2 }
 0x513   :  { %8520 = vmatpush3.bf16.msra.mxu0 %v12418_v36  ;;  %v8461_v45 = vpop.f32.mrf.mxu1 }
 0x514   :  { %8521 = vmatprep.subr.bf16.mxu0 %v12424_v25 }
 0x515   :  { %v8462_v3 = vpop.f32.mrf.mxu1 }
 0x517   :  { %8522 = vmatpush3.bf16.msra.mxu0 %v12435_v59 }
 0x518   :  { %8523 = vmatprep.subr.bf16.mxu0 %v12441_v16 }
 0x51b   :  { %8524 = vmatpush3.bf16.msra.mxu0 %v11993_v30 }
 0x51c   :  { %8525 = vmatprep.subr.bf16.mxu0 %v11999_v20 }
 0x51f   :  { %8526 = vmatpush3.bf16.msra.mxu0 %v12005_v28  ;;  %v12500_v41 = vpop.f32.mrf.mxu1 }
 0x520   :  { %8527 = vmatprep.subr.bf16.mxu0 %v12011_v31 }
 0x521   :  { %v9646_v4 = vpop.f32.mrf.mxu1 }
 0x523   :  { %8528 = vmatpush3.bf16.msra.mxu0 %v12020_v46  ;;  %v3346_v43 = vpop.f32.mrf.mxu1 }
 0x524   :  { %8540 = vmatprep.subr.bf16.mxu0 %v12323_v15 }
 0x525   :  { %v9647_v44 = vpop.f32.mrf.mxu1 }
 0x526   :  { %3446 = vmatmul.mubr.bf16.vlgmr.msra.gmra.mxu0 %v7315_v34  ;;  %v10125_v44 = vld [vmem:[%s14190_s3 + $0x234] ss:$8 sps:$4 sm:$0xff]  }
 0x527   :  { %8541 = vmatpush3.bf16.msra.mxu0 %v12329_v21  ;;  %3550 = vmatprep.mubr.bf16.mxu0 %v7323_v33 }
 0x528   :  { %8542 = vmatprep.subr.bf16.mxu0 %v12335_v27 }
 0x52b   :  { %8543 = vmatpush3.bf16.msra.mxu0 %v12341_v54 }
 0x52c   :  { %8544 = vmatprep.subr.bf16.mxu0 %v12347_v40 }
 0x52f   :  { %8545 = vmatpush3.bf16.msra.mxu0 %v11895_v12  ;;  %v7322_v12 = vcombine.low %v7319_v58, %v7319_v58  ;;  %v10120_v58 = vld [vmem:[%s14190_s3 + $0x240] ss:$8 sps:$4 sm:$0xff]  }
 0x530   :  { %8546 = vmatprep.subr.bf16.mxu0 %v11901_v0  ;;  %v12512_v0 = vld [vmem:[%s14188_s1 + $0x118] sm:$0xff]  }
 0x533   :  { %8547 = vmatpush3.bf16.msra.mxu0 %v11907_v14  ;;  %v12521_v14 = vld [vmem:[%s14188_s1 + $0x110] sm:$0xff]  }
 0x534   :  { %8548 = vmatprep.subr.bf16.mxu0 %v11913_v19  ;;  %v12528_v19 = vld [vmem:[%s14188_s1 + $0x108] sm:$0xff]  }
 0x537   :  { %8549 = vmatpush3.bf16.msra.mxu0 %v11919_v26  ;;  %v7329_v26 = vld [vmem:[%s14189_s0 + $0x274] sm:$0xff] }
 0x538   :  { %8550 = vmatprep.subr.bf16.mxu0 %v11925_v38  ;;  %v10105_v38 = vld [vmem:[%s14189_s0 + $0x1c8] ss:$0 sps:$4 sm:$0xff]   ;;  %v7333_v56 = vcombine.low %v7329_v26, %v7329_v26 }
 0x53b   :  { %8551 = vmatpush3.bf16.msra.mxu0 %v11933_v48  ;;  %v12541_v48 = vld [vmem:[%s14188_s1 + $0x100] sm:$0xff]  }
 0x53c   :  { %8552 = vmatprep.subr.bf16.mxu0 %v11939_v50  ;;  %v7334_v50 = vcombine.high %v7329_v26, %v7329_v26  ;;  %v10128_v26 = vld [vmem:[%s14190_s3 + $0x224] ss:$8 sps:$4 sm:$0xff]  }
 0x53f   :  { %8553 = vmatpush3.bf16.msra.mxu0 %v11946_v37 }
 0x540   :  { %8554 = vmatprep.subr.bf16.mxu0 %v11952_v22 }
 0x543   :  { %8555 = vmatpush3.bf16.msra.mxu0 %v11961_v62 }
 0x544   :  { %9660 = vmatprep.subr.bf16.mxu0 %v10495_v39 }
 0x546   :  { %3551 = vmatmul.mubr.bf16.vlgmr.msra.gmra.mxu0 %v7322_v12  ;;  %v10123_v12 = vld [vmem:[%s14190_s3 + $0x230] ss:$8 sps:$4 sm:$0xff]  }
 0x547   :  { %9661 = vmatpush3.bf16.msra.mxu0 %v12512_v0  ;;  %9668 = vmatprep.mubr.msk.bf16.mxu0 %vm10496_vm0, %v10495_v39 }
 0x548   :  { %9662 = vmatprep.subr.bf16.mxu0 %v10495_v39 }
 0x54b   :  { %9663 = vmatpush3.bf16.msra.mxu0 %v12521_v14 }
 0x54c   :  { %9664 = vmatprep.subr.bf16.mxu0 %v10495_v39  ;;  %v8507_v37 = vpop.f32.mrf.mxu1 }
 0x54e   :  { %v8508_v22 = vpop.f32.mrf.mxu1 }
 0x54f   :  { %9665 = vmatpush3.bf16.msra.mxu0 %v12528_v19  ;;  %v12548_v62 = vadd.f32 %v8508_v22, %v8507_v37  ;;  %v10131_v22 = vld [vmem:[%s14190_s3 + $0x214] ss:$8 sps:$4 sm:$0xff]  }
 0x550   :  { %9666 = vmatprep.subr.bf16.mxu0 %v10495_v39  ;;  %v8510_v17 = vpop.f32.mrf.mxu1 }
 0x551   :  { %v10129_v17 = vld [vmem:[%s14190_s3 + $0x210] ss:$8 sps:$4 sm:$0xff]  }
 0x552   :  { %v8511_v29 = vpop.f32.mrf.mxu1 }
 0x553   :  { %9667 = vmatpush3.bf16.msra.mxu0 %v12541_v48 }
 0x554   :  { %8611 = vmatprep.subr.bf16.mxu0 %v12294_v32 }
 0x556   :  { %9669 = vmatmul.mubr.msk.bf16.vlgmr.msra.gmra.mxu0 %vm336_vm1, %v10105_v38  ;;  %v10126_v38 = vld [vmem:[%s14190_s3 + $0x220] ss:$8 sps:$4 sm:$0xff]  }
 0x557   :  { %8612 = vmatpush3.bf16.msra.mxu0 %v12374_v9  ;;  %3735 = vmatprep.mubr.bf16.mxu0 %v7334_v50 }
 0x558   :  { %8613 = vmatprep.subr.bf16.mxu0 %v12380_v6 }
 0x55b   :  { %8614 = vmatpush3.bf16.msra.mxu0 %v12390_v61 }
 0x55c   :  { %8615 = vmatprep.subr.bf16.mxu0 %v12396_v5  ;;  %v12557_v47 = vpop.f32.mrf.mxu1 }
 0x55e   :  { %v9658_v49 = vpop.f32.mrf.mxu1 }
 0x55f   :  { %8616 = vmatpush3.bf16.msra.mxu0 %v12404_v1  ;;  %v10134_v49 = vld [vmem:[%s14190_s3 + $0x204] ss:$8 sps:$4 sm:$0xff]  }
 0x560   :  { %8617 = vmatprep.subr.bf16.mxu0 %v12410_v7  ;;  %v3490_v51 = vpop.f32.mrf.mxu1 }
 0x561   :  { %v10132_v51 = vld [vmem:[%s14190_s3 + $0x200] ss:$8 sps:$4 sm:$0xff]  }
 0x562   :  { %v9659_v53 = vpop.f32.mrf.mxu1 }
 0x563   :  { %8618 = vmatpush3.bf16.msra.mxu0 %v12418_v36  ;;  %v7369_v53 = vld [vmem:[%s14189_s0 + $0x64] sm:$0xff] }
 0x564   :  { %8619 = vmatprep.subr.bf16.mxu0 %v12424_v25 }
 0x567   :  { %8620 = vmatpush3.bf16.msra.mxu0 %v12435_v59 }
 0x568   :  { %8621 = vmatprep.subr.bf16.mxu0 %v12441_v16 }
 0x56b   :  { %8622 = vmatpush3.bf16.msra.mxu0 %v11993_v30 }
 0x56c   :  { %8623 = vmatprep.subr.bf16.mxu0 %v11999_v20  ;;  %v10111_v20 = vld [vmem:[%s14190_s3 + $0x270] ss:$8 sps:$4 sm:$0xff]  }
 0x56f   :  { %8624 = vmatpush3.bf16.msra.mxu0 %v12005_v28  ;;  %v10113_v28 = vld [vmem:[%s14190_s3 + $0x274] ss:$8 sps:$4 sm:$0xff]  }
 0x570   :  { %8625 = vmatprep.subr.bf16.mxu0 %v12011_v31  ;;  %v10116_v31 = vld [vmem:[%s14190_s3 + $0x264] ss:$8 sps:$4 sm:$0xff]  }
 0x573   :  { %8626 = vmatpush3.bf16.msra.mxu0 %v12020_v46  ;;  %v10114_v46 = vld [vmem:[%s14190_s3 + $0x260] ss:$8 sps:$4 sm:$0xff]  }
 0x574   :  { %3884 = vmatprep.subr.bf16.mxu0 %v10113_v28 }
 0x576   :  { %3736 = vmatmul.mubr.bf16.vlgmr.msra.gmra.mxu0 %v7333_v56  ;;  %v7373_v56 = vcombine.high %v7369_v53, %v7369_v53 }
 0x577   :  { %3916 = vmatprep.mubr.bf16.mxu0 %v10497_v10  ;;  %3885 = vmatpush1.bf16.msra.mxu0 %v10111_v20 }
 0x578   :  { %3886 = vmatprep.subr.bf16.mxu0 %v10116_v31  ;;  %3983 = vmatprep.mubr.bf16.mxu1 %v7373_v56 }
 0x57b   :  { %3887 = vmatpush1.bf16.msra.mxu0 %v10114_v46  ;;  %v10137_v46 = vld [vmem:[%s14189_s0 + $0x74] ss:$0 sps:$4 sm:$0xff]  }
 0x57c   :  { %v8578_v63 = vpop.f32.mrf.mxu1  ;;  %3888 = vmatprep.subr.bf16.mxu0 %v10119_v11  ;;  %v12658_v11 = vld [vmem:[%s14188_s1 + $0x60] sm:$0xff]  }
 0x57e   :  { %v8579_v42 = vpop.f32.mrf.mxu1 }
 0x57f   :  { %v12566_v52 = vadd.f32 %v8579_v42, %v8578_v63  ;;  %3889 = vmatpush1.bf16.msra.mxu0 %v10117_v24  ;;  %v7372_v63 = vcombine.low %v7369_v53, %v7369_v53  ;;  %v12664_v24 = vld [vmem:[%s14188_s1 + $0x20] sm:$0xff]  }
 0x580   :  { %v8581_v55 = vpop.f32.mrf.mxu1  ;;  %3890 = vmatprep.subr.bf16.mxu0 %v10122_v8 }
 0x581   :  { %3984 = vmatmul.mubr.bf16.vlgmr.msra.gmra.mxu1 %v7372_v63 }
 0x582   :  { %v8582_v30 = vpop.f32.mrf.mxu1  ;;  %9685 = vmatpush3.bf16.msra.mxu1 %v12512_v0  ;;  %9692 = vmatprep.mubr.msk.bf16.mxu1 %vm10496_vm0, %v10495_v39 }
 0x583   :  { %3891 = vmatpush1.bf16.msra.mxu0 %v10120_v58  ;;  %9686 = vmatprep.subr.bf16.mxu1 %v10495_v39 }
 0x584   :  { %3892 = vmatprep.subr.bf16.mxu0 %v10125_v44 }
 0x586   :  { %9687 = vmatpush3.bf16.msra.mxu1 %v12521_v14 }
 0x587   :  { %3893 = vmatpush1.bf16.msra.mxu0 %v10123_v12  ;;  %9688 = vmatprep.subr.bf16.mxu1 %v10495_v39  ;;  %v12691_v12 = vld [vmem:[%s14188_s1 + $0x10] sm:$0xff]  }
 0x588   :  { %3894 = vmatprep.subr.bf16.mxu0 %v10128_v26  ;;  %v12697_v26 = vld [vmem:[%s14188_s1 + $0x48] sm:$0xff]  }
 0x58a   :  { %9689 = vmatpush3.bf16.msra.mxu1 %v12528_v19 }
 0x58b   :  { %3895 = vmatpush1.bf16.msra.mxu0 %v10126_v38  ;;  %9690 = vmatprep.subr.bf16.mxu1 %v10495_v39  ;;  %v7378_v38 = vld [vmem:[%s14189_s0 + $0x118] sm:$0xff] }
 0x58c   :  { %3896 = vmatprep.subr.bf16.mxu0 %v10131_v22  ;;  %v7382_v22 = vcombine.high %v7378_v38, %v7378_v38 }
 0x58e   :  { %9691 = vmatpush3.bf16.msra.mxu1 %v12541_v48 }
 0x58f   :  { %3897 = vmatpush1.bf16.msra.mxu0 %v10129_v17  ;;  %8687 = vmatprep.subr.bf16.mxu1 %v12323_v15 }
 0x590   :  { %3898 = vmatprep.subr.bf16.mxu0 %v10134_v49 }
 0x591   :  { %9693 = vmatmul.mubr.msk.bf16.vlgmr.msra.gmra.mxu1 %vm336_vm1, %v10137_v46  ;;  %v12750_v46 = vld [vmem:[%s14188_s1 + $0x90] sm:$0xff]  }
 0x592   :  { %8688 = vmatpush3.bf16.msra.mxu1 %v12329_v21  ;;  %4127 = vmatprep.mubr.bf16.mxu1 %v7382_v22 }
 0x593   :  { %3899 = vmatpush1.bf16.msra.mxu0 %v10132_v51  ;;  %8689 = vmatprep.subr.bf16.mxu1 %v12335_v27 }
 0x594   :  { %8660 = vmatprep.subr.bf16.mxu0 %v12294_v32 }
 0x596   :  { %8690 = vmatpush3.bf16.msra.mxu1 %v12341_v54 }
 0x597   :  { %8691 = vmatprep.subr.bf16.mxu1 %v12347_v40 }
 0x5a0   :  { %v8605_v33 = vpop.f32.mrf.mxu1 }
 0x5a2   :  { %v8606_v45 = vpop.f32.mrf.mxu1 }
 0x5a3   :  { %v12598_v3 = vadd.f32 %v8606_v45, %v8605_v33  ;;  %v12676_v33 = vld [vmem:[%s14188_s1 + $0x18] sm:$0xff]   ;;  %v12682_v45 = vld [vmem:[%s14188_s1 + $0x50] sm:$0xff]  }
 0x5a4   :  { %v8608_v43 = vpop.f32.mrf.mxu1 }
 0x5a6   :  { %v3196_v60 = vpop.f32.mrf.mxu0 }
 0x5a7   :  { %v12590_v18 = vadd.f32 %v3196_v60, %v12206_v35  ;;  %v8609_v35 = vpop.f32.mrf.mxu1  ;;  %v12670_v60 = vld [vmem:[%s14188_s1 + $0x58] sm:$0xff]  }
 0x5a8   :  { %v3198_v34 = vpop.f32.mrf.mxu0 }
 0x5a9   :  { %v12596_v2 = vadd.f32 %v3198_v34, %v12211_v57 }
 0x5aa   :  { %v3200_v13 = vpop.f32.mrf.mxu0 }
 0x5ac   :  { %v3201_v4 = vpop.f32.mrf.mxu0 }
 0x5b0   :  { %v12606_v57 = vpop.f32.mrf.mxu1 }
 0x5b2   :  { %v9682_v50 = vpop.f32.mrf.mxu1 }
 0x5b3   :  { %v12718_v50 = vld [vmem:[%s14188_s1] sm:$0xff]  }
 0x5b4   :  { %v3780_v37 = vpop.f32.mrf.mxu1 }
 0x5b5   :  { %v7381_v37 = vcombine.low %v7378_v38, %v7378_v38 }
 0x5b6   :  { %v9683_v29 = vpop.f32.mrf.mxu1 }
 0x5b7   :  { %v10144_v29 = vld [vmem:[%s14189_s0 + $0x128] ss:$0 sps:$4 sm:$0xff]  }
 0x5c6   :  { %v8480_v42 = vpop.f32.mrf.mxu0 }
 0x5c8   :  { %v8481_v55 = vpop.f32.mrf.mxu0 }
 0x5c9   :  { %v8482_v30 = vadd.f32 %v8481_v55, %v8480_v42 }
 0x5ca   :  { %v8483_v20 = vpop.f32.mrf.mxu0 }
 0x5cb   :  { %v3304_v28 = vadd.f32 %v8482_v30, %v12491_v23  ;;  %v12652_v23 = vld [vmem:[%s14188_s1 + $0x28] sm:$0xff]  }
 0x5cc   :  { %v8484_v31 = vpop.f32.mrf.mxu0  ;;  %8692 = vmatpush3.bf16.msra.mxu1 %v12652_v23 }
 0x5cd   :  { %8693 = vmatprep.subr.bf16.mxu1 %v12658_v11  ;;  %v3344_v35 = vadd.f32 %v12500_v41, %v3304_v28  ;;  %v12703_v41 = vld [vmem:[%s14188_s1 + $0x8] sm:$0xff]  }
 0x5d0   :  { %8694 = vmatpush3.bf16.msra.mxu1 %v12664_v24 }
 0x5d1   :  { %8695 = vmatprep.subr.bf16.mxu1 %v12670_v60 }
 0x5d4   :  { %8696 = vmatpush3.bf16.msra.mxu1 %v12676_v33 }
 0x5d5   :  { %8697 = vmatprep.subr.bf16.mxu1 %v12682_v45 }
 0x5d8   :  { %8698 = vmatpush3.bf16.msra.mxu1 %v12691_v12 }
 0x5d9   :  { %8699 = vmatprep.subr.bf16.mxu1 %v12697_v26 }
 0x5dc   :  { %8700 = vmatpush3.bf16.msra.mxu1 %v12703_v41 }
 0x5e6   :  { %v8529_v8 = vpop.f32.mrf.mxu0 }
 0x5e8   :  { %v8530_v58 = vpop.f32.mrf.mxu0 }
 0x5e9   :  { %v8531_v34 = vadd.f32 %v8530_v58, %v8529_v8  ;;  %v12762_v8 = vld [vmem:[%s14188_s1 + $0x88] sm:$0xff]   ;;  %v12768_v58 = vld [vmem:[%s14188_s1 + $0xc0] sm:$0xff]  }
 0x5ea   :  { %v8532_v13 = vpop.f32.mrf.mxu0 }
 0x5eb   :  { %v3448_v4 = vadd.f32 %v8531_v34, %v12548_v62  ;;  %v7388_v34 = vld [vmem:[%s14189_s0 + $0x1d4] sm:$0xff] }
 0x5ec   :  { %v8533_v43 = vpop.f32.mrf.mxu0  ;;  %v7392_v13 = vcombine.low %v7388_v34, %v7388_v34 }
 0x5ed   :  { %v3488_v44 = vadd.f32 %v12557_v47, %v3448_v4  ;;  %v12709_v47 = vld [vmem:[%s14188_s1 + $0x40] sm:$0xff]   ;;  %v7393_v4 = vcombine.high %v7388_v34, %v7388_v34  ;;  %v7387_v34 = vld [vmem:[%s14189_s0 + $0x1cc] sm:$0xff] }
 0x5ee   :  { %8701 = vmatprep.subr.bf16.mxu1 %v12709_v47  ;;  %v12777_v43 = vld [vmem:[%s14188_s1 + $0x80] sm:$0xff]  }
 0x5ef   :  { %v3493_v62 = vmax.f32 %v3344_v35, %v3488_v44  ;;  %8702 = vmatpush3.bf16.msra.mxu1 %v12718_v50 }
 0x5f0   :  { %9696 = vmatprep.subr.bf16.mxu1 %v10495_v39 }
 0x5f2   :  { %4128 = vmatmul.mubr.bf16.vlgmr.msra.gmra.mxu1 %v7381_v37 }
 0x5f3   :  { %9697 = vmatpush3.bf16.msra.mxu1 %v12512_v0  ;;  %9704 = vmatprep.mubr.msk.bf16.mxu1 %vm10496_vm0, %v10495_v39 }
 0x5f4   :  { %9698 = vmatprep.subr.bf16.mxu1 %v10495_v39 }
 0x5f7   :  { %9699 = vmatpush3.bf16.msra.mxu1 %v12521_v14 }
 0x5f8   :  { %9700 = vmatprep.subr.bf16.mxu1 %v10495_v39 }
 0x5fb   :  { %9701 = vmatpush3.bf16.msra.mxu1 %v12528_v19 }
 0x5fc   :  { %9702 = vmatprep.subr.bf16.mxu1 %v10495_v39 }
 0x5ff   :  { %9703 = vmatpush3.bf16.msra.mxu1 %v12541_v48 }
 0x600   :  { %8758 = vmatprep.subr.bf16.mxu1 %v12294_v32 }
 0x602   :  { %9705 = vmatmul.mubr.msk.bf16.vlgmr.msra.gmra.mxu1 %vm336_vm1, %v10144_v29 }
 0x603   :  { %8759 = vmatpush3.bf16.msra.mxu1 %v12374_v9  ;;  %4312 = vmatprep.mubr.bf16.mxu1 %v7393_v4  ;;  %v7391_v4 = vcombine.high %v7387_v34, %v7387_v34 }
 0x604   :  { %8760 = vmatprep.subr.bf16.mxu1 %v12380_v6 }
 0x606   :  { %v8556_v17 = vpop.f32.mrf.mxu0 }
 0x607   :  { %8761 = vmatpush3.bf16.msra.mxu1 %v12390_v61 }
 0x608   :  { %v8557_v49 = vpop.f32.mrf.mxu0  ;;  %8762 = vmatprep.subr.bf16.mxu1 %v12396_v5 }
 0x609   :  { %v8558_v56 = vadd.f32 %v8557_v49, %v8556_v17  ;;  %v12798_v49 = vld [vmem:[%s14191_s2] ss:$0 sm:$0xff] }
 0x60a   :  { %v8559_v51 = vpop.f32.mrf.mxu0 }
 0x60b   :  { %8763 = vmatpush3.bf16.msra.mxu1 %v12404_v1  ;;  %v3593_v63 = vadd.f32 %v12566_v52, %v8558_v56  ;;  %v12756_v52 = vld [vmem:[%s14188_s1 + $0xc8] sm:$0xff]   ;;  %v7396_v56 = vld [vmem:[%s14189_s0 + $0x280] sm:$0xff] }
 0x60c   :  { %v8560_v53 = vpop.f32.mrf.mxu0  ;;  %8764 = vmatprep.subr.bf16.mxu1 %v12410_v7 }
 0x60d   :  { %v7370_v53 = vld [vmem:[%s14189_s0 + $0x6c] sm:$0xff] }
 0x60f   :  { %8765 = vmatpush3.bf16.msra.mxu1 %v12418_v36 }
 0x610   :  { %8766 = vmatprep.subr.bf16.mxu1 %v12424_v25 }
 0x613   :  { %8767 = vmatpush3.bf16.msra.mxu1 %v12435_v59 }
 0x614   :  { %8768 = vmatprep.subr.bf16.mxu1 %v12441_v16 }
 0x616   :  { %v3632_v42 = vpop.f32.mrf.mxu0 }
 0x617   :  { %v3633_v55 = vadd.f32 %v3632_v42, %v3593_v63  ;;  %8769 = vmatpush3.bf16.msra.mxu1 %v12750_v46  ;;  %v7399_v42 = vcombine.low %v7396_v56, %v7396_v56 }
 0x618   :  { %v9670_v30 = vpop.f32.mrf.mxu0  ;;  %8770 = vmatprep.subr.bf16.mxu1 %v12756_v52 }
 0x619   :  { %v3638_v20 = vmax.f32 %v3493_v62, %v3633_v55  ;;  %v7400_v55 = vcombine.high %v7396_v56, %v7396_v56  ;;  %v10154_v30 = vld [vmem:[%s14189_s0 + $0x290] ss:$0 sps:$4 sm:$0xff]  }
 0x61a   :  { %v3635_v28 = vpop.f32.mrf.mxu0 }
 0x61b   :  { %8771 = vmatpush3.bf16.msra.mxu1 %v12762_v8  ;;  %v7374_v28 = vcombine.low %v7370_v53, %v7370_v53 }
 0x61c   :  { %v9671_v31 = vpop.f32.mrf.mxu0  ;;  %8772 = vmatprep.subr.bf16.mxu1 %v12768_v58 }
 0x61f   :  { %8773 = vmatpush3.bf16.msra.mxu1 %v12777_v43 }
 0x620   :  { %8785 = vmatprep.subr.bf16.mxu1 %v12323_v15 }
 0x622   :  { %4313 = vmatmul.mubr.bf16.vlgmr.msra.gmra.mxu1 %v7392_v13 }
 0x623   :  { %8786 = vmatpush3.bf16.msra.mxu1 %v12329_v21  ;;  %4417 = vmatprep.mubr.bf16.mxu1 %v7400_v55  ;;  %v10158_v55 = vld [vmem:[%s14190_s3 + $0x2e0] ss:$8 sps:$4 sm:$0xff]  }
 0x624   :  { %8787 = vmatprep.subr.bf16.mxu1 %v12335_v27 }
 0x627   :  { %8788 = vmatpush3.bf16.msra.mxu1 %v12341_v54 }
 0x628   :  { %8789 = vmatprep.subr.bf16.mxu1 %v12347_v40 }
 0x62b   :  { %8790 = vmatpush3.bf16.msra.mxu1 %v12652_v23 }
 0x62c   :  { %8791 = vmatprep.subr.bf16.mxu1 %v12658_v11 }
 0x62f   :  { %8792 = vmatpush3.bf16.msra.mxu1 %v12664_v24 }
 0x630   :  { %8793 = vmatprep.subr.bf16.mxu1 %v12670_v60 }
 0x633   :  { %8794 = vmatpush3.bf16.msra.mxu1 %v12676_v33 }
 0x634   :  { %8795 = vmatprep.subr.bf16.mxu1 %v12682_v45 }
 0x636   :  { %v8627_v35 = vpop.f32.mrf.mxu0 }
 0x637   :  { %8796 = vmatpush3.bf16.msra.mxu1 %v12691_v12 }
 0x638   :  { %v8628_v44 = vpop.f32.mrf.mxu0  ;;  %8797 = vmatprep.subr.bf16.mxu1 %v12697_v26 }
 0x639   :  { %v8629_v62 = vadd.f32 %v8628_v44, %v8627_v35 }
 0x63a   :  { %v8630_v38 = vpop.f32.mrf.mxu0 }
 0x63b   :  { %v3738_v37 = vadd.f32 %v8629_v62, %v12598_v3  ;;  %8798 = vmatpush3.bf16.msra.mxu1 %v12703_v41 }
 0x63c   :  { %v8631_v22 = vpop.f32.mrf.mxu0  ;;  %8799 = vmatprep.subr.bf16.mxu1 %v12709_v47 }
 0x63d   :  { %v3778_v17 = vadd.f32 %v12606_v57, %v3738_v37  ;;  %v7375_v57 = vcombine.high %v7370_v53, %v7370_v53  ;;  %v7397_v22 = vld [vmem:[%s14189_s0 + $0x288] sm:$0xff] }
 0x63f   :  { %v3783_v29 = vmax.f32 %v3638_v20, %v3778_v17  ;;  %8800 = vmatpush3.bf16.msra.mxu1 %v12718_v50  ;;  %v7379_v20 = vld [vmem:[%s14189_s0 + $0x120] sm:$0xff]  ;;  %v10149_v17 = vld [vmem:[%s14189_s0 + $0x1dc] ss:$0 sps:$4 sm:$0xff]  }
 0x640   :  { %9720 = vmatprep.subr.bf16.mxu1 %v10495_v39  ;;  %v7384_v31 = vcombine.high %v7379_v20, %v7379_v20  ;;  %v7383_v13 = vcombine.low %v7379_v20, %v7379_v20  ;;  %v10161_v20 = vld [vmem:[%s14190_s3 + $0x2d0] ss:$8 sps:$4 sm:$0xff]  }
 0x641   :  { %v3784_v51 = vadd.f32 %v12798_v49, %v3783_v29  ;;  %v8654_v35 = vpop.f32.mrf.mxu1  ;;  %v7402_v29 = vcombine.high %v7397_v22, %v7397_v22 }
 0x642   :  { %4418 = vmatmul.mubr.bf16.vlgmr.msra.gmra.mxu1 %v7399_v42  ;;  %v10160_v42 = vld [vmem:[%s14190_s3 + $0x2e4] ss:$8 sps:$4 sm:$0xff]  }
 0x643   :  { %v3785_v3 = vmax.f32 %v3784_v51, 0.0  ;;  %9721 = vmatpush3.bf16.msra.mxu1 %v12512_v0  ;;  %9728 = vmatprep.mubr.msk.bf16.mxu1 %vm10496_vm0, %v10495_v39  ;;  %v8655_v44 = vpop.f32.mrf.mxu1 }
 0x644   :  { %9722 = vmatprep.subr.bf16.mxu1 %v10495_v39  ;;  %v12881_v62 = vadd.f32 %v8655_v44, %v8654_v35 }
 0x645   :  { %v3786_v63 = vpack.c.bf16 %v3785_v3, %v3785_v3  ;;  %v8657_v38 = vpop.f32.mrf.mxu1 }
 0x647   :  { %3917 = vmatmul.mubr.bf16.vlgmr.msra.gmra.mxu0 %v3786_v63  ;;  %9723 = vmatpush3.bf16.msra.mxu1 %v12521_v14  ;;  %v8658_v37 = vpop.f32.mrf.mxu1  ;;  %v10157_v63 = vld [vmem:[%s14190_s3 + $0x2f4] ss:$8 sps:$4 sm:$0xff]  }
 0x648   :  { %8661 = vmatpush3.bf16.msra.mxu0 %v12374_v9  ;;  %4023 = vmatprep.mubr.bf16.mxu0 %v7375_v57 }
 0x649   :  { %8662 = vmatprep.subr.bf16.mxu0 %v12380_v6  ;;  %9724 = vmatprep.subr.bf16.mxu1 %v10495_v39 }
 0x64b   :  { %9725 = vmatpush3.bf16.msra.mxu1 %v12528_v19 }
 0x64c   :  { %8663 = vmatpush3.bf16.msra.mxu0 %v12390_v61  ;;  %9726 = vmatprep.subr.bf16.mxu1 %v10495_v39 }
 0x64d   :  { %8664 = vmatprep.subr.bf16.mxu0 %v12396_v5 }
 0x64f   :  { %9727 = vmatpush3.bf16.msra.mxu1 %v12541_v48 }
 0x650   :  { %8665 = vmatpush3.bf16.msra.mxu0 %v12404_v1  ;;  %8834 = vmatprep.subr.bf16.mxu1 %v12323_v15 }
 0x651   :  { %8666 = vmatprep.subr.bf16.mxu0 %v12410_v7 }
 0x652   :  { %9729 = vmatmul.mubr.msk.bf16.vlgmr.msra.gmra.mxu1 %vm336_vm1, %v10154_v30  ;;  %v10163_v30 = vld [vmem:[%s14190_s3 + $0x2d4] ss:$8 sps:$4 sm:$0xff]  }
 0x653   :  { %8835 = vmatpush3.bf16.msra.mxu1 %v12329_v21 }
 0x654   :  { %8667 = vmatpush3.bf16.msra.mxu0 %v12418_v36  ;;  %8836 = vmatprep.subr.bf16.mxu1 %v12335_v27 }
 0x655   :  { %8668 = vmatprep.subr.bf16.mxu0 %v12424_v25 }
 0x657   :  { %8837 = vmatpush3.bf16.msra.mxu1 %v12341_v54 }
 0x658   :  { %8669 = vmatpush3.bf16.msra.mxu0 %v12435_v59  ;;  %8838 = vmatprep.subr.bf16.mxu1 %v12347_v40 }
 0x659   :  { %8670 = vmatprep.subr.bf16.mxu0 %v12441_v16 }
 0x65b   :  { %8839 = vmatpush3.bf16.msra.mxu1 %v12652_v23 }
 0x65c   :  { %8671 = vmatpush3.bf16.msra.mxu0 %v12750_v46  ;;  %8840 = vmatprep.subr.bf16.mxu1 %v12658_v11 }
 0x65d   :  { %8672 = vmatprep.subr.bf16.mxu0 %v12756_v52 }
 0x65f   :  { %8841 = vmatpush3.bf16.msra.mxu1 %v12664_v24 }
 0x660   :  { %8673 = vmatpush3.bf16.msra.mxu0 %v12762_v8  ;;  %8842 = vmatprep.subr.bf16.mxu1 %v12670_v60 }
 0x661   :  { %8674 = vmatprep.subr.bf16.mxu0 %v12768_v58 }
 0x663   :  { %8843 = vmatpush3.bf16.msra.mxu1 %v12676_v33 }
 0x664   :  { %8675 = vmatpush3.bf16.msra.mxu0 %v12777_v43  ;;  %8844 = vmatprep.subr.bf16.mxu1 %v12682_v45 }
 0x665   :  { %8709 = vmatprep.subr.bf16.mxu0 %v12294_v32 }
 0x667   :  { %4024 = vmatmul.mubr.bf16.vlgmr.msra.gmra.mxu0 %v7374_v28  ;;  %8845 = vmatpush3.bf16.msra.mxu1 %v12691_v12  ;;  %v10166_v28 = vld [vmem:[%s14190_s3 + $0x2c4] ss:$8 sps:$4 sm:$0xff]  }
 0x668   :  { %8710 = vmatpush3.bf16.msra.mxu0 %v12374_v9  ;;  %4167 = vmatprep.mubr.bf16.mxu0 %v7384_v31 }
 0x669   :  { %8711 = vmatprep.subr.bf16.mxu0 %v12380_v6  ;;  %8846 = vmatprep.subr.bf16.mxu1 %v12697_v26 }
 0x66b   :  { %8847 = vmatpush3.bf16.msra.mxu1 %v12703_v41 }
 0x66c   :  { %8712 = vmatpush3.bf16.msra.mxu0 %v12390_v61  ;;  %8848 = vmatprep.subr.bf16.mxu1 %v12709_v47 }
 0x66d   :  { %8713 = vmatprep.subr.bf16.mxu0 %v12396_v5 }
 0x66f   :  { %8849 = vmatpush3.bf16.msra.mxu1 %v12718_v50 }
 0x670   :  { %8714 = vmatpush3.bf16.msra.mxu0 %v12404_v1  ;;  %9732 = vmatprep.subr.bf16.mxu1 %v10495_v39 }
 0x671   :  { %8715 = vmatprep.subr.bf16.mxu0 %v12410_v7 }
 0x674   :  { %8716 = vmatpush3.bf16.msra.mxu0 %v12418_v36 }
 0x675   :  { %8717 = vmatprep.subr.bf16.mxu0 %v12424_v25 }
 0x678   :  { %8718 = vmatpush3.bf16.msra.mxu0 %v12435_v59 }
 0x679   :  { %8719 = vmatprep.subr.bf16.mxu0 %v12441_v16 }
 0x67c   :  { %8720 = vmatpush3.bf16.msra.mxu0 %v12750_v46 }
 0x67d   :  { %8721 = vmatprep.subr.bf16.mxu0 %v12756_v52 }
 0x680   :  { %8722 = vmatpush3.bf16.msra.mxu0 %v12762_v8 }
 0x681   :  { %8723 = vmatprep.subr.bf16.mxu0 %v12768_v58 }
 0x684   :  { %8724 = vmatpush3.bf16.msra.mxu0 %v12777_v43 }
 0x685   :  { %8736 = vmatprep.subr.bf16.mxu0 %v12323_v15  ;;  %v12890_v15 = vpop.f32.mrf.mxu1 }
 0x687   :  { %4168 = vmatmul.mubr.bf16.vlgmr.msra.gmra.mxu0 %v7383_v13  ;;  %v10164_v13 = vld [vmem:[%s14190_s3 + $0x2c0] ss:$8 sps:$4 sm:$0xff]  }
 0x688   :  { %8737 = vmatpush3.bf16.msra.mxu0 %v12329_v21  ;;  %4272 = vmatprep.mubr.bf16.mxu0 %v7391_v4  ;;  %v9694_v21 = vpop.f32.mrf.mxu1 }
 0x689   :  { %8738 = vmatprep.subr.bf16.mxu0 %v12335_v27 }
 0x68a   :  { %v4068_v27 = vpop.f32.mrf.mxu1 }
 0x68c   :  { %8739 = vmatpush3.bf16.msra.mxu0 %v12341_v54  ;;  %v9695_v54 = vpop.f32.mrf.mxu1 }
 0x68d   :  { %8740 = vmatprep.subr.bf16.mxu0 %v12347_v40  ;;  %v7390_v40 = vcombine.low %v7387_v34, %v7387_v34 }
 0x690   :  { %8741 = vmatpush3.bf16.msra.mxu0 %v12652_v23 }
 0x691   :  { %8742 = vmatprep.subr.bf16.mxu0 %v12658_v11 }
 0x694   :  { %8743 = vmatpush3.bf16.msra.mxu0 %v12664_v24 }
 0x695   :  { %8744 = vmatprep.subr.bf16.mxu0 %v12670_v60 }
 0x698   :  { %8745 = vmatpush3.bf16.msra.mxu0 %v12676_v33 }
 0x699   :  { %8746 = vmatprep.subr.bf16.mxu0 %v12682_v45 }
 0x69c   :  { %8747 = vmatpush3.bf16.msra.mxu0 %v12691_v12 }
 0x69d   :  { %8748 = vmatprep.subr.bf16.mxu0 %v12697_v26 }
 0x6a0   :  { %8749 = vmatpush3.bf16.msra.mxu0 %v12703_v41 }
 0x6a1   :  { %8750 = vmatprep.subr.bf16.mxu0 %v12709_v47 }
 0x6a4   :  { %8751 = vmatpush3.bf16.msra.mxu0 %v12718_v50 }
 0x6a5   :  { %9708 = vmatprep.subr.bf16.mxu0 %v10495_v39 }
 0x6a7   :  { %4273 = vmatmul.mubr.bf16.vlgmr.msra.gmra.mxu0 %v7390_v40  ;;  %v10169_v40 = vld [vmem:[%s14190_s3 + $0x2b4] ss:$8 sps:$4 sm:$0xff]  }
 0x6a8   :  { %9709 = vmatpush3.bf16.msra.mxu0 %v12512_v0  ;;  %9716 = vmatprep.mubr.msk.bf16.mxu0 %vm10496_vm0, %v10495_v39 }
 0x6a9   :  { %9710 = vmatprep.subr.bf16.mxu0 %v10495_v39 }
 0x6ac   :  { %9711 = vmatpush3.bf16.msra.mxu0 %v12521_v14 }
 0x6ad   :  { %9712 = vmatprep.subr.bf16.mxu0 %v10495_v39 }
 0x6b0   :  { %9713 = vmatpush3.bf16.msra.mxu0 %v12528_v19 }
 0x6b1   :  { %9714 = vmatprep.subr.bf16.mxu0 %v10495_v39 }
 0x6b2   :  { %v8703_v51 = vpop.f32.mrf.mxu1 }
 0x6b4   :  { %9715 = vmatpush3.bf16.msra.mxu0 %v12541_v48  ;;  %v8704_v53 = vpop.f32.mrf.mxu1 }
 0x6b5   :  { %8807 = vmatprep.subr.bf16.mxu0 %v12294_v32  ;;  %v12918_v3 = vadd.f32 %v8704_v53, %v8703_v51 }
 0x6b6   :  { %v8706_v57 = vpop.f32.mrf.mxu1 }
 0x6b7   :  { %9717 = vmatmul.mubr.msk.bf16.vlgmr.msra.gmra.mxu0 %vm336_vm1, %v10149_v17  ;;  %v10172_v17 = vld [vmem:[%s14190_s3 + $0x2a4] ss:$8 sps:$4 sm:$0xff]   ;;  %v10175_v57 = vld [vmem:[%s14190_s3 + $0x294] ss:$8 sps:$4 sm:$0xff]  }
 0x6b8   :  { %8808 = vmatpush3.bf16.msra.mxu0 %v12374_v9  ;;  %4457 = vmatprep.mubr.bf16.mxu0 %v7402_v29  ;;  %v8707_v56 = vpop.f32.mrf.mxu1  ;;  %v10170_v29 = vld [vmem:[%s14190_s3 + $0x2a0] ss:$8 sps:$4 sm:$0xff]  }
 0x6b9   :  { %8809 = vmatprep.subr.bf16.mxu0 %v12380_v6  ;;  %v10173_v56 = vld [vmem:[%s14190_s3 + $0x290] ss:$8 sps:$4 sm:$0xff]  }
 0x6bc   :  { %8810 = vmatpush3.bf16.msra.mxu0 %v12390_v61 }
 0x6bd   :  { %8811 = vmatprep.subr.bf16.mxu0 %v12396_v5  ;;  %v7401_v5 = vcombine.low %v7397_v22, %v7397_v22  ;;  %v10167_v22 = vld [vmem:[%s14190_s3 + $0x2b0] ss:$8 sps:$4 sm:$0xff]  }
 0x6c0   :  { %8812 = vmatpush3.bf16.msra.mxu0 %v12404_v1 }
 0x6c1   :  { %8813 = vmatprep.subr.bf16.mxu0 %v12410_v7 }
 0x6c2   :  { %v12927_v32 = vpop.f32.mrf.mxu1 }
 0x6c4   :  { %8814 = vmatpush3.bf16.msra.mxu0 %v12418_v36  ;;  %v9706_v9 = vpop.f32.mrf.mxu1 }
 0x6c5   :  { %8815 = vmatprep.subr.bf16.mxu0 %v12424_v25 }
 0x6c6   :  { %v4212_v6 = vpop.f32.mrf.mxu1 }
 0x6c7   :  { %v10178_v6 = vld [vmem:[%s14190_s3 + $0x284] ss:$8 sps:$4 sm:$0xff]  }
 0x6c8   :  { %8816 = vmatpush3.bf16.msra.mxu0 %v12435_v59  ;;  %v9707_v61 = vpop.f32.mrf.mxu1 }
 0x6c9   :  { %8817 = vmatprep.subr.bf16.mxu0 %v12441_v16  ;;  %v10155_v16 = vld [vmem:[%s14190_s3 + $0x2f0] ss:$8 sps:$4 sm:$0xff]   ;;  %v10176_v61 = vld [vmem:[%s14190_s3 + $0x280] ss:$8 sps:$4 sm:$0xff]  }
 0x6cc   :  { %8818 = vmatpush3.bf16.msra.mxu0 %v12750_v46 }
 0x6cd   :  { %8819 = vmatprep.subr.bf16.mxu0 %v12756_v52 }
 0x6d0   :  { %8820 = vmatpush3.bf16.msra.mxu0 %v12762_v8 }
 0x6d1   :  { %8821 = vmatprep.subr.bf16.mxu0 %v12768_v58 }
 0x6d4   :  { %8822 = vmatpush3.bf16.msra.mxu0 %v12777_v43 }
 0x6d5   :  { %4606 = vmatprep.subr.bf16.mxu0 %v10157_v63 }
 0x6d7   :  { %4458 = vmatmul.mubr.bf16.vlgmr.msra.gmra.mxu0 %v7401_v5  ;;  %v7437_v5 = vld [vmem:[%s14189_s0 + $0x78] sm:$0xff] }
 0x6d8   :  { %4638 = vmatprep.mubr.bf16.mxu0 %v10497_v10  ;;  %4607 = vmatpush1.bf16.msra.mxu0 %v10155_v16 }
 0x6d9   :  { %4608 = vmatprep.subr.bf16.mxu0 %v10160_v42 }
 0x6dc   :  { %4609 = vmatpush1.bf16.msra.mxu0 %v10158_v55 }
 0x6dd   :  { %4610 = vmatprep.subr.bf16.mxu0 %v10163_v30 }
 0x6e0   :  { %4611 = vmatpush1.bf16.msra.mxu0 %v10161_v20  ;;  %v13018_v20 = vld [vmem:[%s14188_s1 + $0x78] sm:$0xff]  }
 0x6e1   :  { %4612 = vmatprep.subr.bf16.mxu0 %v10166_v28  ;;  %v13028_v28 = vld [vmem:[%s14188_s1 + $0x38] sm:$0xff]  }
 0x6e2   :  { %v8774_v1 = vpop.f32.mrf.mxu1 }
 0x6e4   :  { %v8775_v7 = vpop.f32.mrf.mxu1  ;;  %4613 = vmatpush1.bf16.msra.mxu0 %v10164_v13  ;;  %v13040_v13 = vld [vmem:[%s14188_s1 + $0x30] sm:$0xff]  }
 0x6e5   :  { %v12936_v36 = vadd.f32 %v8775_v7, %v8774_v1  ;;  %4614 = vmatprep.subr.bf16.mxu0 %v10169_v40  ;;  %v7441_v1 = vcombine.high %v7437_v5, %v7437_v5  ;;  %v13002_v7 = vld [vmem:[%s14188_s1 + $0xf8] sm:$0xff]  }
 0x6e6   :  { %v8777_v25 = vpop.f32.mrf.mxu1 }
 0x6e7   :  { %v7440_v25 = vcombine.low %v7437_v5, %v7437_v5  ;;  %4705 = vmatprep.mubr.bf16.mxu1 %v7441_v1  ;;  %v13121_v1 = vld [vmem:[%s14188_s1 + $0xa0] sm:$0xff]  }
 0x6e8   :  { %v8778_v59 = vpop.f32.mrf.mxu1  ;;  %4615 = vmatpush1.bf16.msra.mxu0 %v10167_v22 }
 0x6e9   :  { %4616 = vmatprep.subr.bf16.mxu0 %v10172_v17  ;;  %4706 = vmatmul.mubr.bf16.vlgmr.msra.gmra.mxu1 %v7440_v25 }
 0x6ea   :  { %9733 = vmatpush3.bf16.msra.mxu1 %v12512_v0  ;;  %9740 = vmatprep.mubr.msk.bf16.mxu1 %vm10496_vm0, %v10495_v39 }
 0x6eb   :  { %9734 = vmatprep.subr.bf16.mxu1 %v10495_v39 }
 0x6ec   :  { %4617 = vmatpush1.bf16.msra.mxu0 %v10170_v29  ;;  %v7446_v29 = vld [vmem:[%s14189_s0 + $0x12c] sm:$0xff] }
 0x6ed   :  { %4618 = vmatprep.subr.bf16.mxu0 %v10175_v57  ;;  %v13096_v57 = vld [vmem:[%s14188_s1 + $0xb0] sm:$0xff]  }
 0x6ee   :  { %9735 = vmatpush3.bf16.msra.mxu1 %v12521_v14 }
 0x6ef   :  { %9736 = vmatprep.subr.bf16.mxu1 %v10495_v39 }
 0x6f0   :  { %4619 = vmatpush1.bf16.msra.mxu0 %v10173_v56  ;;  %v13102_v56 = vld [vmem:[%s14188_s1 + $0xe8] sm:$0xff]  }
 0x6f1   :  { %4620 = vmatprep.subr.bf16.mxu0 %v10178_v6  ;;  %v13108_v6 = vld [vmem:[%s14188_s1 + $0xa8] sm:$0xff]  }
 0x6f2   :  { %9737 = vmatpush3.bf16.msra.mxu1 %v12528_v19 }
 0x6f3   :  { %9738 = vmatprep.subr.bf16.mxu1 %v10495_v39 }
 0x6f4   :  { %4621 = vmatpush1.bf16.msra.mxu0 %v10176_v61  ;;  %v13114_v61 = vld [vmem:[%s14188_s1 + $0xe0] sm:$0xff]  }
 0x6f5   :  { %8856 = vmatprep.subr.bf16.mxu0 %v13002_v7 }
 0x6f6   :  { %9739 = vmatpush3.bf16.msra.mxu1 %v12541_v48 }
 0x6f7   :  { %8883 = vmatprep.subr.bf16.mxu1 %v13018_v20 }
 0x702   :  { %v8801_v35 = vpop.f32.mrf.mxu1 }
 0x704   :  { %v8802_v37 = vpop.f32.mrf.mxu1 }
 0x705   :  { %v12968_v21 = vadd.f32 %v8802_v37, %v8801_v35 }
 0x706   :  { %v8804_v54 = vpop.f32.mrf.mxu1 }
 0x707   :  { %v3918_v31 = vpop.f32.mrf.mxu0 }
 0x708   :  { %v12960_v34 = vadd.f32 %v3918_v31, %v12590_v18  ;;  %v8805_v18 = vpop.f32.mrf.mxu1  ;;  %v13034_v31 = vld [vmem:[%s14188_s1 + $0x70] sm:$0xff]  }
 0x709   :  { %v3920_v4 = vpop.f32.mrf.mxu0 }
 0x70a   :  { %v12966_v44 = vadd.f32 %v3920_v4, %v12596_v2  ;;  %v13046_v4 = vld [vmem:[%s14188_s1 + $0x68] sm:$0xff]  }
 0x70b   :  { %v3922_v38 = vpop.f32.mrf.mxu0 }
 0x70d   :  { %v3923_v27 = vpop.f32.mrf.mxu0 }
 0x712   :  { %v12976_v2 = vpop.f32.mrf.mxu1 }
 0x714   :  { %v9730_v51 = vpop.f32.mrf.mxu1 }
 0x715   :  { %v7450_v51 = vcombine.high %v7446_v29, %v7446_v29 }
 0x716   :  { %v4502_v53 = vpop.f32.mrf.mxu1 }
 0x718   :  { %v9731_v9 = vpop.f32.mrf.mxu1 }
 0x727   :  { %v8676_v59 = vpop.f32.mrf.mxu0 }
 0x729   :  { %v8677_v16 = vpop.f32.mrf.mxu0 }
 0x72a   :  { %v8678_v63 = vadd.f32 %v8677_v16, %v8676_v59  ;;  %v13127_v59 = vld [vmem:[%s14188_s1 + $0xd8] sm:$0xff]  }
 0x72b   :  { %v8679_v42 = vpop.f32.mrf.mxu0 }
 0x72c   :  { %v4026_v55 = vadd.f32 %v8678_v63, %v12881_v62  ;;  %v10181_v62 = vld [vmem:[%s14189_s0 + $0x88] ss:$0 sps:$4 sm:$0xff]  }
 0x72d   :  { %v8680_v30 = vpop.f32.mrf.mxu0  ;;  %9741 = vmatmul.mubr.msk.bf16.vlgmr.msra.gmra.mxu1 %vm336_vm1, %v10181_v62 }
 0x72e   :  { %8884 = vmatpush3.bf16.msra.mxu1 %v13028_v28  ;;  %v4066_v40 = vadd.f32 %v12890_v15, %v4026_v55  ;;  %4849 = vmatprep.mubr.bf16.mxu1 %v7450_v51  ;;  %v13139_v30 = vld [vmem:[%s14188_s1 + $0xd0] sm:$0xff]  }
 0x72f   :  { %8885 = vmatprep.subr.bf16.mxu1 %v13034_v31 }
 0x732   :  { %8886 = vmatpush3.bf16.msra.mxu1 %v13040_v13 }
 0x733   :  { %8887 = vmatprep.subr.bf16.mxu1 %v13046_v4 }
 0x736   :  { %8888 = vmatpush3.bf16.msra.mxu1 %v12652_v23 }
 0x737   :  { %8889 = vmatprep.subr.bf16.mxu1 %v12658_v11 }
 0x73a   :  { %8890 = vmatpush3.bf16.msra.mxu1 %v12664_v24 }
 0x73b   :  { %8891 = vmatprep.subr.bf16.mxu1 %v12670_v60 }
 0x73e   :  { %8892 = vmatpush3.bf16.msra.mxu1 %v12676_v33 }
 0x73f   :  { %8893 = vmatprep.subr.bf16.mxu1 %v12682_v45 }
 0x742   :  { %8894 = vmatpush3.bf16.msra.mxu1 %v12691_v12 }
 0x743   :  { %8895 = vmatprep.subr.bf16.mxu1 %v12697_v26 }
 0x746   :  { %8896 = vmatpush3.bf16.msra.mxu1 %v12703_v41 }
 0x747   :  { %v8725_v35 = vpop.f32.mrf.mxu0  ;;  %8897 = vmatprep.subr.bf16.mxu1 %v12709_v47 }
 0x749   :  { %v8726_v38 = vpop.f32.mrf.mxu0 }
 0x74a   :  { %v8727_v37 = vadd.f32 %v8726_v38, %v8725_v35  ;;  %8898 = vmatpush3.bf16.msra.mxu1 %v12718_v50  ;;  %v7456_v35 = vld [vmem:[%s14189_s0 + $0x1e8] sm:$0xff] }
 0x74b   :  { %v8728_v27 = vpop.f32.mrf.mxu0  ;;  %9744 = vmatprep.subr.bf16.mxu1 %v10495_v39  ;;  %v7460_v38 = vcombine.low %v7456_v35, %v7456_v35 }
 0x74c   :  { %v4170_v54 = vadd.f32 %v8727_v37, %v12918_v3  ;;  %v7449_v3 = vcombine.low %v7446_v29, %v7446_v29  ;;  %v7461_v37 = vcombine.high %v7456_v35, %v7456_v35 }
 0x74d   :  { %v8729_v18 = vpop.f32.mrf.mxu0 }
 0x74e   :  { %v4210_v22 = vadd.f32 %v12927_v32, %v4170_v54  ;;  %4850 = vmatmul.mubr.bf16.vlgmr.msra.gmra.mxu1 %v7449_v3 }
 0x74f   :  { %9745 = vmatpush3.bf16.msra.mxu1 %v12512_v0  ;;  %9752 = vmatprep.mubr.msk.bf16.mxu1 %vm10496_vm0, %v10495_v39  ;;  %v10188_v0 = vld [vmem:[%s14189_s0 + $0x13c] ss:$0 sps:$4 sm:$0xff]  }
 0x750   :  { %v4215_v17 = vmax.f32 %v4066_v40, %v4210_v22  ;;  %9746 = vmatprep.subr.bf16.mxu1 %v10495_v39 }
 0x753   :  { %9747 = vmatpush3.bf16.msra.mxu1 %v12521_v14  ;;  %v13084_v14 = vld [vmem:[%s14188_s1 + $0xb8] sm:$0xff]  }
 0x754   :  { %9748 = vmatprep.subr.bf16.mxu1 %v10495_v39 }
 0x757   :  { %9749 = vmatpush3.bf16.msra.mxu1 %v12528_v19 }
 0x758   :  { %9750 = vmatprep.subr.bf16.mxu1 %v10495_v39 }
 0x75b   :  { %9751 = vmatpush3.bf16.msra.mxu1 %v12541_v48  ;;  %v13090_v48 = vld [vmem:[%s14188_s1 + $0xf0] sm:$0xff]  }
 0x75c   :  { %8954 = vmatprep.subr.bf16.mxu1 %v13002_v7 }
 0x75e   :  { %9753 = vmatmul.mubr.msk.bf16.vlgmr.msra.gmra.mxu1 %vm336_vm1, %v10188_v0 }
 0x75f   :  { %8955 = vmatpush3.bf16.msra.mxu1 %v13084_v14  ;;  %5034 = vmatprep.mubr.bf16.mxu1 %v7461_v37 }
 0x760   :  { %8956 = vmatprep.subr.bf16.mxu1 %v13090_v48 }
 0x763   :  { %8957 = vmatpush3.bf16.msra.mxu1 %v13096_v57 }
 0x764   :  { %8958 = vmatprep.subr.bf16.mxu1 %v13102_v56 }
 0x767   :  { %v8752_v15 = vpop.f32.mrf.mxu0  ;;  %8959 = vmatpush3.bf16.msra.mxu1 %v13108_v6 }
 0x768   :  { %8960 = vmatprep.subr.bf16.mxu1 %v13114_v61 }
 0x769   :  { %v8753_v32 = vpop.f32.mrf.mxu0 }
 0x76a   :  { %v8754_v9 = vadd.f32 %v8753_v32, %v8752_v15  ;;  %v7438_v15 = vld [vmem:[%s14189_s0 + $0x80] sm:$0xff] }
 0x76b   :  { %v8755_v19 = vpop.f32.mrf.mxu0  ;;  %8961 = vmatpush3.bf16.msra.mxu1 %v13121_v1 }
 0x76c   :  { %v4315_v5 = vadd.f32 %v12936_v36, %v8754_v9  ;;  %8962 = vmatprep.subr.bf16.mxu1 %v13127_v59  ;;  %v13133_v36 = vld [vmem:[%s14188_s1 + $0x98] sm:$0xff]   ;;  %v13192_v9 = vld [vmem:[%s14188_s1 + $0x110] sm:$0xff]  }
 0x76d   :  { %v8756_v53 = vpop.f32.mrf.mxu0 }
 0x76f   :  { %8963 = vmatpush3.bf16.msra.mxu1 %v13133_v36 }
 0x770   :  { %8964 = vmatprep.subr.bf16.mxu1 %v13139_v30 }
 0x773   :  { %8965 = vmatpush3.bf16.msra.mxu1 %v12750_v46 }
 0x774   :  { %8966 = vmatprep.subr.bf16.mxu1 %v12756_v52 }
 0x777   :  { %v4354_v25 = vpop.f32.mrf.mxu0  ;;  %8967 = vmatpush3.bf16.msra.mxu1 %v12762_v8 }
 0x778   :  { %v4355_v16 = vadd.f32 %v4354_v25, %v4315_v5  ;;  %8968 = vmatprep.subr.bf16.mxu1 %v12768_v58  ;;  %v13201_v5 = vld [vmem:[%s14188_s1 + $0x108] sm:$0xff]   ;;  %v10198_v25 = vld [vmem:[%s14189_s0 + $0x2a4] ss:$0 sps:$4 sm:$0xff]  }
 0x779   :  { %v9718_v63 = vpop.f32.mrf.mxu0 }
 0x77a   :  { %v4360_v42 = vmax.f32 %v4215_v17, %v4355_v16  ;;  %v13213_v16 = vld [vmem:[%s14188_s1 + $0x100] sm:$0xff]   ;;  %v7447_v63 = vld [vmem:[%s14189_s0 + $0x134] sm:$0xff] }
 0x77b   :  { %v4357_v55 = vpop.f32.mrf.mxu0  ;;  %8969 = vmatpush3.bf16.msra.mxu1 %v12777_v43  ;;  %v7451_v35 = vcombine.low %v7447_v63, %v7447_v63 }
 0x77c   :  { %8981 = vmatprep.subr.bf16.mxu1 %v13018_v20  ;;  %v7452_v55 = vcombine.high %v7447_v63, %v7447_v63  ;;  %v10210_v63 = vld [vmem:[%s14190_s3 + $0x344] ss:$8 sps:$4 sm:$0xff]  }
 0x77d   :  { %v9719_v62 = vpop.f32.mrf.mxu0 }
 0x77e   :  { %5035 = vmatmul.mubr.bf16.vlgmr.msra.gmra.mxu1 %v7460_v38  ;;  %v7455_v62 = vld [vmem:[%s14189_s0 + $0x1e0] sm:$0xff] }
 0x77f   :  { %8982 = vmatpush3.bf16.msra.mxu1 %v13028_v28  ;;  %v7459_v38 = vcombine.high %v7455_v62, %v7455_v62 }
 0x780   :  { %8983 = vmatprep.subr.bf16.mxu1 %v13034_v31 }
 0x783   :  { %8984 = vmatpush3.bf16.msra.mxu1 %v13040_v13 }
 0x784   :  { %8985 = vmatprep.subr.bf16.mxu1 %v13046_v4 }
 0x787   :  { %8986 = vmatpush3.bf16.msra.mxu1 %v12652_v23 }
 0x788   :  { %8987 = vmatprep.subr.bf16.mxu1 %v12658_v11 }
 0x78b   :  { %8988 = vmatpush3.bf16.msra.mxu1 %v12664_v24 }
 0x78c   :  { %8989 = vmatprep.subr.bf16.mxu1 %v12670_v60 }
 0x78f   :  { %8990 = vmatpush3.bf16.msra.mxu1 %v12676_v33 }
 0x790   :  { %8991 = vmatprep.subr.bf16.mxu1 %v12682_v45 }
 0x793   :  { %8992 = vmatpush3.bf16.msra.mxu1 %v12691_v12 }
 0x794   :  { %8993 = vmatprep.subr.bf16.mxu1 %v12697_v26 }
 0x797   :  { %v8823_v27 = vpop.f32.mrf.mxu0  ;;  %8994 = vmatpush3.bf16.msra.mxu1 %v12703_v41 }
 0x798   :  { %8995 = vmatprep.subr.bf16.mxu1 %v12709_v47 }
 0x799   :  { %v8824_v54 = vpop.f32.mrf.mxu0 }
 0x79a   :  { %v8825_v18 = vadd.f32 %v8824_v54, %v8823_v27 }
 0x79b   :  { %v8826_v40 = vpop.f32.mrf.mxu0  ;;  %8996 = vmatpush3.bf16.msra.mxu1 %v12718_v50 }
 0x79c   :  { %v4460_v22 = vadd.f32 %v8825_v18, %v12968_v21  ;;  %v7443_v21 = vcombine.high %v7438_v15, %v7438_v15  ;;  %9768 = vmatprep.subr.bf16.mxu1 %v10495_v39 }
 0x79d   :  { %v8827_v17 = vpop.f32.mrf.mxu0 }
 0x79e   :  { %v4500_v29 = vadd.f32 %v12976_v2, %v4460_v22  ;;  %v7464_v2 = vld [vmem:[%s14189_s0 + $0x294] sm:$0xff] }
 0x79f   :  { %v7467_v19 = vcombine.low %v7464_v2, %v7464_v2  ;;  %v7468_v53 = vcombine.high %v7464_v2, %v7464_v2 }
 0x7a0   :  { %v4505_v3 = vmax.f32 %v4360_v42, %v4500_v29  ;;  %v7442_v42 = vcombine.low %v7438_v15, %v7438_v15 }
 0x7a1   :  { %5139 = vmatprep.mubr.bf16.mxu1 %v7468_v53  ;;  %v10207_v53 = vld [vmem:[%s14190_s3 + $0x354] ss:$8 sps:$4 sm:$0xff]  }
 0x7a2   :  { %v4506_v51 = vadd.f32 %v12798_v49, %v4505_v3  ;;  %5140 = vmatmul.mubr.bf16.vlgmr.msra.gmra.mxu1 %v7467_v19  ;;  %v13181_v49 = vld [vmem:[%s14188_s1 + $0x118] sm:$0xff]  }
 0x7a3   :  { %9769 = vmatpush3.bf16.msra.mxu1 %v13181_v49  ;;  %9776 = vmatprep.mubr.msk.bf16.mxu1 %vm10496_vm0, %v10495_v39 }
 0x7a4   :  { %v4507_v0 = vmax.f32 %v4506_v51, 0.0  ;;  %9770 = vmatprep.subr.bf16.mxu1 %v10495_v39 }
 0x7a6   :  { %v4508_v32 = vpack.c.bf16 %v4507_v0, %v4507_v0 }
 0x7a7   :  { %9771 = vmatpush3.bf16.msra.mxu1 %v13192_v9 }
 0x7a8   :  { %4639 = vmatmul.mubr.bf16.vlgmr.msra.gmra.mxu0 %v4508_v32  ;;  %9772 = vmatprep.subr.bf16.mxu1 %v10495_v39 }
 0x7a9   :  { %8857 = vmatpush3.bf16.msra.mxu0 %v13084_v14  ;;  %4745 = vmatprep.mubr.bf16.mxu0 %v7443_v21  ;;  %v8850_v37 = vpop.f32.mrf.mxu1 }
 0x7aa   :  { %8858 = vmatprep.subr.bf16.mxu0 %v13090_v48 }
 0x7ab   :  { %9773 = vmatpush3.bf16.msra.mxu1 %v13201_v5  ;;  %v8851_v27 = vpop.f32.mrf.mxu1 }
 0x7ac   :  { %9774 = vmatprep.subr.bf16.mxu1 %v10495_v39  ;;  %v13266_v54 = vadd.f32 %v8851_v27, %v8850_v37 }
 0x7ad   :  { %8859 = vmatpush3.bf16.msra.mxu0 %v13096_v57  ;;  %v8853_v18 = vpop.f32.mrf.mxu1 }
 0x7ae   :  { %8860 = vmatprep.subr.bf16.mxu0 %v13102_v56 }
 0x7af   :  { %9775 = vmatpush3.bf16.msra.mxu1 %v13213_v16  ;;  %v8854_v40 = vpop.f32.mrf.mxu1 }
 0x7b0   :  { %9030 = vmatprep.subr.bf16.mxu1 %v13018_v20 }
 0x7b1   :  { %8861 = vmatpush3.bf16.msra.mxu0 %v13108_v6 }
 0x7b2   :  { %8862 = vmatprep.subr.bf16.mxu0 %v13114_v61  ;;  %9777 = vmatmul.mubr.msk.bf16.vlgmr.msra.gmra.mxu1 %vm336_vm1, %v10198_v25  ;;  %v10205_v25 = vld [vmem:[%s14190_s3 + $0x350] ss:$8 sps:$4 sm:$0xff]  }
 0x7b3   :  { %9031 = vmatpush3.bf16.msra.mxu1 %v13028_v28 }
 0x7b4   :  { %9032 = vmatprep.subr.bf16.mxu1 %v13034_v31 }
 0x7b5   :  { %8863 = vmatpush3.bf16.msra.mxu0 %v13121_v1 }
 0x7b6   :  { %8864 = vmatprep.subr.bf16.mxu0 %v13127_v59 }
 0x7b7   :  { %9033 = vmatpush3.bf16.msra.mxu1 %v13040_v13 }
 0x7b8   :  { %9034 = vmatprep.subr.bf16.mxu1 %v13046_v4 }
 0x7b9   :  { %8865 = vmatpush3.bf16.msra.mxu0 %v13133_v36 }
 0x7ba   :  { %8866 = vmatprep.subr.bf16.mxu0 %v13139_v30 }
 0x7bb   :  { %9035 = vmatpush3.bf16.msra.mxu1 %v12652_v23 }
 0x7bc   :  { %9036 = vmatprep.subr.bf16.mxu1 %v12658_v11 }
 0x7bd   :  { %8867 = vmatpush3.bf16.msra.mxu0 %v12750_v46 }
 0x7be   :  { %8868 = vmatprep.subr.bf16.mxu0 %v12756_v52 }
 0x7bf   :  { %9037 = vmatpush3.bf16.msra.mxu1 %v12664_v24 }
 0x7c0   :  { %9038 = vmatprep.subr.bf16.mxu1 %v12670_v60 }
 0x7c1   :  { %8869 = vmatpush3.bf16.msra.mxu0 %v12762_v8 }
 0x7c2   :  { %8870 = vmatprep.subr.bf16.mxu0 %v12768_v58 }
 0x7c3   :  { %9039 = vmatpush3.bf16.msra.mxu1 %v12676_v33 }
 0x7c4   :  { %9040 = vmatprep.subr.bf16.mxu1 %v12682_v45 }
 0x7c5   :  { %8871 = vmatpush3.bf16.msra.mxu0 %v12777_v43 }
 0x7c6   :  { %8905 = vmatprep.subr.bf16.mxu0 %v13002_v7 }
 0x7c7   :  { %9041 = vmatpush3.bf16.msra.mxu1 %v12691_v12 }
 0x7c8   :  { %4746 = vmatmul.mubr.bf16.vlgmr.msra.gmra.mxu0 %v7442_v42  ;;  %9042 = vmatprep.subr.bf16.mxu1 %v12697_v26 }
 0x7c9   :  { %8906 = vmatpush3.bf16.msra.mxu0 %v13084_v14  ;;  %4889 = vmatprep.mubr.bf16.mxu0 %v7452_v55 }
 0x7ca   :  { %8907 = vmatprep.subr.bf16.mxu0 %v13090_v48 }
 0x7cb   :  { %9043 = vmatpush3.bf16.msra.mxu1 %v12703_v41 }
 0x7cc   :  { %9044 = vmatprep.subr.bf16.mxu1 %v12709_v47 }
 0x7cd   :  { %8908 = vmatpush3.bf16.msra.mxu0 %v13096_v57 }
 0x7ce   :  { %8909 = vmatprep.subr.bf16.mxu0 %v13102_v56 }
 0x7cf   :  { %9045 = vmatpush3.bf16.msra.mxu1 %v12718_v50 }
 0x7d0   :  { %9780 = vmatprep.subr.bf16.mxu1 %v10495_v39 }
 0x7d1   :  { %8910 = vmatpush3.bf16.msra.mxu0 %v13108_v6 }
 0x7d2   :  { %8911 = vmatprep.subr.bf16.mxu0 %v13114_v61 }
 0x7d5   :  { %8912 = vmatpush3.bf16.msra.mxu0 %v13121_v1 }
 0x7d6   :  { %8913 = vmatprep.subr.bf16.mxu0 %v13127_v59 }
 0x7d9   :  { %8914 = vmatpush3.bf16.msra.mxu0 %v13133_v36 }
 0x7da   :  { %8915 = vmatprep.subr.bf16.mxu0 %v13139_v30 }
 0x7dd   :  { %8916 = vmatpush3.bf16.msra.mxu0 %v12750_v46 }
 0x7de   :  { %8917 = vmatprep.subr.bf16.mxu0 %v12756_v52 }
 0x7e1   :  { %8918 = vmatpush3.bf16.msra.mxu0 %v12762_v8 }
 0x7e2   :  { %8919 = vmatprep.subr.bf16.mxu0 %v12768_v58 }
 0x7e5   :  { %8920 = vmatpush3.bf16.msra.mxu0 %v12777_v43 }
 0x7e6   :  { %8932 = vmatprep.subr.bf16.mxu0 %v13018_v20 }
 0x7e8   :  { %4890 = vmatmul.mubr.bf16.vlgmr.msra.gmra.mxu0 %v7451_v35 }
 0x7e9   :  { %8933 = vmatpush3.bf16.msra.mxu0 %v13028_v28  ;;  %4994 = vmatprep.mubr.bf16.mxu0 %v7459_v38 }
 0x7ea   :  { %8934 = vmatprep.subr.bf16.mxu0 %v13034_v31 }
 0x7ed   :  { %8935 = vmatpush3.bf16.msra.mxu0 %v13040_v13  ;;  %v13275_v22 = vpop.f32.mrf.mxu1 }
 0x7ee   :  { %8936 = vmatprep.subr.bf16.mxu0 %v13046_v4 }
 0x7ef   :  { %v9742_v17 = vpop.f32.mrf.mxu1 }
 0x7f1   :  { %8937 = vmatpush3.bf16.msra.mxu0 %v12652_v23  ;;  %v4790_v29 = vpop.f32.mrf.mxu1  ;;  %v7458_v23 = vcombine.low %v7455_v62, %v7455_v62  ;;  %v10208_v62 = vld [vmem:[%s14190_s3 + $0x340] ss:$8 sps:$4 sm:$0xff]  }
 0x7f2   :  { %8938 = vmatprep.subr.bf16.mxu0 %v12658_v11  ;;  %v7465_v11 = vld [vmem:[%s14189_s0 + $0x29c] sm:$0xff] }
 0x7f3   :  { %v9743_v3 = vpop.f32.mrf.mxu1  ;;  %v7469_v0 = vcombine.low %v7465_v11, %v7465_v11 }
 0x7f4   :  { %v10213_v3 = vld [vmem:[%s14190_s3 + $0x334] ss:$8 sps:$4 sm:$0xff]  }
 0x7f5   :  { %8939 = vmatpush3.bf16.msra.mxu0 %v12664_v24  ;;  %v10193_v24 = vld [vmem:[%s14189_s0 + $0x1f0] ss:$0 sps:$4 sm:$0xff]  }
 0x7f6   :  { %8940 = vmatprep.subr.bf16.mxu0 %v12670_v60  ;;  %v7470_v60 = vcombine.high %v7465_v11, %v7465_v11  ;;  %v10216_v11 = vld [vmem:[%s14190_s3 + $0x324] ss:$8 sps:$4 sm:$0xff]  }
 0x7f9   :  { %8941 = vmatpush3.bf16.msra.mxu0 %v12676_v33 }
 0x7fa   :  { %8942 = vmatprep.subr.bf16.mxu0 %v12682_v45 }
 0x7fd   :  { %8943 = vmatpush3.bf16.msra.mxu0 %v12691_v12 }
 0x7fe   :  { %8944 = vmatprep.subr.bf16.mxu0 %v12697_v26 }
 0x801   :  { %8945 = vmatpush3.bf16.msra.mxu0 %v12703_v41 }
 0x802   :  { %8946 = vmatprep.subr.bf16.mxu0 %v12709_v47 }
 0x805   :  { %8947 = vmatpush3.bf16.msra.mxu0 %v12718_v50 }
 0x806   :  { %9756 = vmatprep.subr.bf16.mxu0 %v10495_v39 }
 0x808   :  { %4995 = vmatmul.mubr.bf16.vlgmr.msra.gmra.mxu0 %v7458_v23  ;;  %v10211_v23 = vld [vmem:[%s14190_s3 + $0x330] ss:$8 sps:$4 sm:$0xff]  }
 0x809   :  { %9757 = vmatpush3.bf16.msra.mxu0 %v13181_v49  ;;  %9764 = vmatprep.mubr.msk.bf16.mxu0 %vm10496_vm0, %v10495_v39 }
 0x80a   :  { %9758 = vmatprep.subr.bf16.mxu0 %v10495_v39 }
 0x80d   :  { %9759 = vmatpush3.bf16.msra.mxu0 %v13192_v9 }
 0x80e   :  { %9760 = vmatprep.subr.bf16.mxu0 %v10495_v39  ;;  %v8899_v33 = vpop.f32.mrf.mxu1 }
 0x810   :  { %v8900_v45 = vpop.f32.mrf.mxu1 }
 0x811   :  { %9761 = vmatpush3.bf16.msra.mxu0 %v13201_v5  ;;  %v13303_v12 = vadd.f32 %v8900_v45, %v8899_v33  ;;  %v10219_v45 = vld [vmem:[%s14190_s3 + $0x314] ss:$8 sps:$4 sm:$0xff]  }
 0x812   :  { %9762 = vmatprep.subr.bf16.mxu0 %v10495_v39  ;;  %v8902_v26 = vpop.f32.mrf.mxu1 }
 0x813   :  { %v10217_v26 = vld [vmem:[%s14190_s3 + $0x310] ss:$8 sps:$4 sm:$0xff]  }
 0x814   :  { %v8903_v41 = vpop.f32.mrf.mxu1 }
 0x815   :  { %9763 = vmatpush3.bf16.msra.mxu0 %v13213_v16 }
 0x816   :  { %9003 = vmatprep.subr.bf16.mxu0 %v13002_v7 }
 0x818   :  { %9765 = vmatmul.mubr.msk.bf16.vlgmr.msra.gmra.mxu0 %vm336_vm1, %v10193_v24  ;;  %v10214_v24 = vld [vmem:[%s14190_s3 + $0x320] ss:$8 sps:$4 sm:$0xff]  }
 0x819   :  { %9004 = vmatpush3.bf16.msra.mxu0 %v13084_v14  ;;  %5179 = vmatprep.mubr.bf16.mxu0 %v7470_v60 }
 0x81a   :  { %9005 = vmatprep.subr.bf16.mxu0 %v13090_v48 }
 0x81d   :  { %9006 = vmatpush3.bf16.msra.mxu0 %v13096_v57 }
 0x81e   :  { %9007 = vmatprep.subr.bf16.mxu0 %v13102_v56  ;;  %v13312_v47 = vpop.f32.mrf.mxu1 }
 0x820   :  { %v9754_v50 = vpop.f32.mrf.mxu1 }
 0x821   :  { %9008 = vmatpush3.bf16.msra.mxu0 %v13108_v6  ;;  %v10222_v50 = vld [vmem:[%s14190_s3 + $0x304] ss:$8 sps:$4 sm:$0xff]  }
 0x822   :  { %9009 = vmatprep.subr.bf16.mxu0 %v13114_v61  ;;  %v4934_v51 = vpop.f32.mrf.mxu1 }
 0x823   :  { %v10220_v51 = vld [vmem:[%s14190_s3 + $0x300] ss:$8 sps:$4 sm:$0xff]  }
 0x824   :  { %v9755_v15 = vpop.f32.mrf.mxu1 }
 0x825   :  { %9010 = vmatpush3.bf16.msra.mxu0 %v13121_v1  ;;  %v7505_v15 = vld [vmem:[%s14189_s0 + $0x8c] sm:$0xff] }
 0x826   :  { %9011 = vmatprep.subr.bf16.mxu0 %v13127_v59 }
 0x829   :  { %9012 = vmatpush3.bf16.msra.mxu0 %v13133_v36 }
 0x82a   :  { %9013 = vmatprep.subr.bf16.mxu0 %v13139_v30 }
 0x82d   :  { %9014 = vmatpush3.bf16.msra.mxu0 %v12750_v46 }
 0x82e   :  { %9015 = vmatprep.subr.bf16.mxu0 %v12756_v52  ;;  %v10199_v52 = vld [vmem:[%s14190_s3 + $0x370] ss:$8 sps:$4 sm:$0xff]  }
 0x831   :  { %9016 = vmatpush3.bf16.msra.mxu0 %v12762_v8  ;;  %v10201_v8 = vld [vmem:[%s14190_s3 + $0x374] ss:$8 sps:$4 sm:$0xff]  }
 0x832   :  { %9017 = vmatprep.subr.bf16.mxu0 %v12768_v58  ;;  %v10204_v58 = vld [vmem:[%s14190_s3 + $0x364] ss:$8 sps:$4 sm:$0xff]  }
 0x835   :  { %9018 = vmatpush3.bf16.msra.mxu0 %v12777_v43  ;;  %v10202_v43 = vld [vmem:[%s14190_s3 + $0x360] ss:$8 sps:$4 sm:$0xff]  }
 0x836   :  { %5328 = vmatprep.subr.bf16.mxu0 %v10201_v8 }
 0x838   :  { %5180 = vmatmul.mubr.bf16.vlgmr.msra.gmra.mxu0 %v7469_v0  ;;  %v7509_v0 = vcombine.high %v7505_v15, %v7505_v15 }
 0x839   :  { %5360 = vmatprep.mubr.bf16.mxu0 %v10497_v10  ;;  %5329 = vmatpush1.bf16.msra.mxu0 %v10199_v52 }
 0x83a   :  { %5330 = vmatprep.subr.bf16.mxu0 %v10204_v58  ;;  %5427 = vmatprep.mubr.bf16.mxu1 %v7509_v0 }
 0x83d   :  { %5331 = vmatpush1.bf16.msra.mxu0 %v10202_v43  ;;  %v10225_v43 = vld [vmem:[%s14189_s0 + $0x9c] ss:$0 sps:$4 sm:$0xff]  }
 0x83e   :  { %v8970_v21 = vpop.f32.mrf.mxu1  ;;  %5332 = vmatprep.subr.bf16.mxu0 %v10207_v53  ;;  %v13413_v53 = vld [vmem:[%s14188_s1 + $0x60] sm:$0xff]  }
 0x840   :  { %v8971_v2 = vpop.f32.mrf.mxu1 }
 0x841   :  { %v13321_v32 = vadd.f32 %v8971_v2, %v8970_v21  ;;  %5333 = vmatpush1.bf16.msra.mxu0 %v10205_v25  ;;  %v7508_v21 = vcombine.low %v7505_v15, %v7505_v15  ;;  %v13419_v25 = vld [vmem:[%s14188_s1 + $0x20] sm:$0xff]  }
 0x842   :  { %v8973_v19 = vpop.f32.mrf.mxu1  ;;  %5334 = vmatprep.subr.bf16.mxu0 %v10210_v63 }
 0x843   :  { %5428 = vmatmul.mubr.bf16.vlgmr.msra.gmra.mxu1 %v7508_v21 }
 0x844   :  { %v8974_v46 = vpop.f32.mrf.mxu1  ;;  %9781 = vmatpush3.bf16.msra.mxu1 %v13181_v49  ;;  %9788 = vmatprep.mubr.msk.bf16.mxu1 %vm10496_vm0, %v10495_v39 }
 0x845   :  { %5335 = vmatpush1.bf16.msra.mxu0 %v10208_v62  ;;  %9782 = vmatprep.subr.bf16.mxu1 %v10495_v39 }
 0x846   :  { %5336 = vmatprep.subr.bf16.mxu0 %v10213_v3 }
 0x848   :  { %9783 = vmatpush3.bf16.msra.mxu1 %v13192_v9 }
 0x849   :  { %5337 = vmatpush1.bf16.msra.mxu0 %v10211_v23  ;;  %9784 = vmatprep.subr.bf16.mxu1 %v10495_v39  ;;  %v13446_v23 = vld [vmem:[%s14188_s1 + $0x10] sm:$0xff]  }
 0x84a   :  { %5338 = vmatprep.subr.bf16.mxu0 %v10216_v11  ;;  %v13452_v11 = vld [vmem:[%s14188_s1 + $0x48] sm:$0xff]  }
 0x84c   :  { %9785 = vmatpush3.bf16.msra.mxu1 %v13201_v5 }
 0x84d   :  { %5339 = vmatpush1.bf16.msra.mxu0 %v10214_v24  ;;  %9786 = vmatprep.subr.bf16.mxu1 %v10495_v39  ;;  %v7514_v24 = vld [vmem:[%s14189_s0 + $0x140] sm:$0xff] }
 0x84e   :  { %5340 = vmatprep.subr.bf16.mxu0 %v10219_v45  ;;  %v7518_v45 = vcombine.high %v7514_v24, %v7514_v24 }
 0x850   :  { %9787 = vmatpush3.bf16.msra.mxu1 %v13213_v16 }
 0x851   :  { %5341 = vmatpush1.bf16.msra.mxu0 %v10217_v26  ;;  %9079 = vmatprep.subr.bf16.mxu1 %v13018_v20 }
 0x852   :  { %5342 = vmatprep.subr.bf16.mxu0 %v10222_v50 }
 0x853   :  { %9789 = vmatmul.mubr.msk.bf16.vlgmr.msra.gmra.mxu1 %vm336_vm1, %v10225_v43  ;;  %v13505_v43 = vld [vmem:[%s14188_s1 + $0x90] sm:$0xff]  }
 0x854   :  { %9080 = vmatpush3.bf16.msra.mxu1 %v13028_v28  ;;  %5571 = vmatprep.mubr.bf16.mxu1 %v7518_v45 }
 0x855   :  { %5343 = vmatpush1.bf16.msra.mxu0 %v10220_v51  ;;  %9081 = vmatprep.subr.bf16.mxu1 %v13034_v31 }
 0x856   :  { %9052 = vmatprep.subr.bf16.mxu0 %v13002_v7 }
 0x858   :  { %9082 = vmatpush3.bf16.msra.mxu1 %v13040_v13 }
 0x859   :  { %9083 = vmatprep.subr.bf16.mxu1 %v13046_v4 }
 0x862   :  { %v8997_v38 = vpop.f32.mrf.mxu1 }
 0x864   :  { %v8998_v18 = vpop.f32.mrf.mxu1 }
 0x865   :  { %v13353_v40 = vadd.f32 %v8998_v18, %v8997_v38  ;;  %v13431_v38 = vld [vmem:[%s14188_s1 + $0x18] sm:$0xff]   ;;  %v13437_v18 = vld [vmem:[%s14188_s1 + $0x50] sm:$0xff]  }
 0x866   :  { %v9000_v29 = vpop.f32.mrf.mxu1 }
 0x868   :  { %v4640_v42 = vpop.f32.mrf.mxu0 }
 0x869   :  { %v13345_v55 = vadd.f32 %v4640_v42, %v12960_v34  ;;  %v9001_v34 = vpop.f32.mrf.mxu1  ;;  %v13425_v42 = vld [vmem:[%s14188_s1 + $0x58] sm:$0xff]  }
 0x86a   :  { %v4642_v35 = vpop.f32.mrf.mxu0 }
 0x86b   :  { %v13351_v37 = vadd.f32 %v4642_v35, %v12966_v44 }
 0x86c   :  { %v4644_v27 = vpop.f32.mrf.mxu0 }
 0x86e   :  { %v4645_v17 = vpop.f32.mrf.mxu0 }
 0x872   :  { %v13361_v44 = vpop.f32.mrf.mxu1 }
 0x874   :  { %v9778_v60 = vpop.f32.mrf.mxu1 }
 0x875   :  { %v13473_v60 = vld [vmem:[%s14188_s1] sm:$0xff]  }
 0x876   :  { %v5224_v33 = vpop.f32.mrf.mxu1 }
 0x877   :  { %v7517_v33 = vcombine.low %v7514_v24, %v7514_v24 }
 0x878   :  { %v9779_v41 = vpop.f32.mrf.mxu1 }
 0x879   :  { %v10232_v41 = vld [vmem:[%s14189_s0 + $0x150] ss:$0 sps:$4 sm:$0xff]  }
 0x888   :  { %v8872_v2 = vpop.f32.mrf.mxu0 }
 0x88a   :  { %v8873_v19 = vpop.f32.mrf.mxu0 }
 0x88b   :  { %v8874_v46 = vadd.f32 %v8873_v19, %v8872_v2 }
 0x88c   :  { %v8875_v52 = vpop.f32.mrf.mxu0 }
 0x88d   :  { %v4748_v8 = vadd.f32 %v8874_v46, %v13266_v54  ;;  %v13407_v54 = vld [vmem:[%s14188_s1 + $0x28] sm:$0xff]  }
 0x88e   :  { %v8876_v58 = vpop.f32.mrf.mxu0  ;;  %9084 = vmatpush3.bf16.msra.mxu1 %v13407_v54 }
 0x88f   :  { %9085 = vmatprep.subr.bf16.mxu1 %v13413_v53  ;;  %v4788_v34 = vadd.f32 %v13275_v22, %v4748_v8  ;;  %v13458_v22 = vld [vmem:[%s14188_s1 + $0x8] sm:$0xff]  }
 0x892   :  { %9086 = vmatpush3.bf16.msra.mxu1 %v13419_v25 }
 0x893   :  { %9087 = vmatprep.subr.bf16.mxu1 %v13425_v42 }
 0x896   :  { %9088 = vmatpush3.bf16.msra.mxu1 %v13431_v38 }
 0x897   :  { %9089 = vmatprep.subr.bf16.mxu1 %v13437_v18 }
 0x89a   :  { %9090 = vmatpush3.bf16.msra.mxu1 %v13446_v23 }
 0x89b   :  { %9091 = vmatprep.subr.bf16.mxu1 %v13452_v11 }
 0x89e   :  { %9092 = vmatpush3.bf16.msra.mxu1 %v13458_v22 }
 0x8a8   :  { %v8921_v63 = vpop.f32.mrf.mxu0 }
 0x8aa   :  { %v8922_v62 = vpop.f32.mrf.mxu0 }
 0x8ab   :  { %v8923_v35 = vadd.f32 %v8922_v62, %v8921_v63  ;;  %v13517_v63 = vld [vmem:[%s14188_s1 + $0x88] sm:$0xff]   ;;  %v13523_v62 = vld [vmem:[%s14188_s1 + $0xc0] sm:$0xff]  }
 0x8ac   :  { %v8924_v27 = vpop.f32.mrf.mxu0 }
 0x8ad   :  { %v4892_v17 = vadd.f32 %v8923_v35, %v13303_v12  ;;  %v7524_v35 = vld [vmem:[%s14189_s0 + $0x1fc] sm:$0xff] }
 0x8ae   :  { %v8925_v29 = vpop.f32.mrf.mxu0  ;;  %v7528_v27 = vcombine.low %v7524_v35, %v7524_v35 }
 0x8af   :  { %v4932_v3 = vadd.f32 %v13312_v47, %v4892_v17  ;;  %v13464_v47 = vld [vmem:[%s14188_s1 + $0x40] sm:$0xff]   ;;  %v7529_v17 = vcombine.high %v7524_v35, %v7524_v35 }
 0x8b0   :  { %9093 = vmatprep.subr.bf16.mxu1 %v13464_v47  ;;  %v13532_v29 = vld [vmem:[%s14188_s1 + $0x80] sm:$0xff]  }
 0x8b1   :  { %v4937_v12 = vmax.f32 %v4788_v34, %v4932_v3  ;;  %9094 = vmatpush3.bf16.msra.mxu1 %v13473_v60 }
 0x8b2   :  { %9792 = vmatprep.subr.bf16.mxu1 %v10495_v39 }
 0x8b4   :  { %5572 = vmatmul.mubr.bf16.vlgmr.msra.gmra.mxu1 %v7517_v33 }
 0x8b5   :  { %9793 = vmatpush3.bf16.msra.mxu1 %v13181_v49  ;;  %9800 = vmatprep.mubr.msk.bf16.mxu1 %vm10496_vm0, %v10495_v39 }
 0x8b6   :  { %9794 = vmatprep.subr.bf16.mxu1 %v10495_v39 }
 0x8b9   :  { %9795 = vmatpush3.bf16.msra.mxu1 %v13192_v9 }
 0x8ba   :  { %9796 = vmatprep.subr.bf16.mxu1 %v10495_v39 }
 0x8bd   :  { %9797 = vmatpush3.bf16.msra.mxu1 %v13201_v5 }
 0x8be   :  { %9798 = vmatprep.subr.bf16.mxu1 %v10495_v39 }
 0x8c1   :  { %9799 = vmatpush3.bf16.msra.mxu1 %v13213_v16 }
 0x8c2   :  { %9150 = vmatprep.subr.bf16.mxu1 %v13002_v7 }
 0x8c4   :  { %9801 = vmatmul.mubr.msk.bf16.vlgmr.msra.gmra.mxu1 %vm336_vm1, %v10232_v41 }
 0x8c5   :  { %9151 = vmatpush3.bf16.msra.mxu1 %v13084_v14  ;;  %5756 = vmatprep.mubr.bf16.mxu1 %v7529_v17 }
 0x8c6   :  { %9152 = vmatprep.subr.bf16.mxu1 %v13090_v48 }
 0x8c8   :  { %v8948_v26 = vpop.f32.mrf.mxu0 }
 0x8c9   :  { %9153 = vmatpush3.bf16.msra.mxu1 %v13096_v57 }
 0x8ca   :  { %v8949_v50 = vpop.f32.mrf.mxu0  ;;  %9154 = vmatprep.subr.bf16.mxu1 %v13102_v56 }
 0x8cb   :  { %v8950_v0 = vadd.f32 %v8949_v50, %v8948_v26  ;;  %v13553_v50 = vld [vmem:[%s14191_s2] ss:$0 sm:$0xff] }
 0x8cc   :  { %v8951_v51 = vpop.f32.mrf.mxu0 }
 0x8cd   :  { %9155 = vmatpush3.bf16.msra.mxu1 %v13108_v6  ;;  %v5037_v21 = vadd.f32 %v13321_v32, %v8950_v0  ;;  %v13511_v32 = vld [vmem:[%s14188_s1 + $0xc8] sm:$0xff]  }
 0x8ce   :  { %v8952_v15 = vpop.f32.mrf.mxu0  ;;  %9156 = vmatprep.subr.bf16.mxu1 %v13114_v61  ;;  %v7532_v0 = vld [vmem:[%s14189_s0 + $0x2a8] sm:$0xff] }
 0x8cf   :  { %v7506_v15 = vld [vmem:[%s14189_s0 + $0x94] sm:$0xff] }
 0x8d1   :  { %9157 = vmatpush3.bf16.msra.mxu1 %v13121_v1 }
 0x8d2   :  { %9158 = vmatprep.subr.bf16.mxu1 %v13127_v59 }
 0x8d5   :  { %9159 = vmatpush3.bf16.msra.mxu1 %v13133_v36 }
 0x8d6   :  { %9160 = vmatprep.subr.bf16.mxu1 %v13139_v30 }
 0x8d8   :  { %v5076_v2 = vpop.f32.mrf.mxu0 }
 0x8d9   :  { %v5077_v19 = vadd.f32 %v5076_v2, %v5037_v21  ;;  %9161 = vmatpush3.bf16.msra.mxu1 %v13505_v43  ;;  %v7535_v2 = vcombine.low %v7532_v0, %v7532_v0 }
 0x8da   :  { %v9766_v46 = vpop.f32.mrf.mxu0  ;;  %9162 = vmatprep.subr.bf16.mxu1 %v13511_v32 }
 0x8db   :  { %v5082_v52 = vmax.f32 %v4937_v12, %v5077_v19  ;;  %v7536_v19 = vcombine.high %v7532_v0, %v7532_v0  ;;  %v10242_v46 = vld [vmem:[%s14189_s0 + $0x2b8] ss:$0 sps:$4 sm:$0xff]   ;;  %v10246_v0 = vld [vmem:[%s14190_s3 + $0x3e0] ss:$8 sps:$4 sm:$0xff]  }
 0x8dc   :  { %v5079_v8 = vpop.f32.mrf.mxu0 }
 0x8dd   :  { %9163 = vmatpush3.bf16.msra.mxu1 %v13517_v63  ;;  %v7510_v8 = vcombine.low %v7506_v15, %v7506_v15 }
 0x8de   :  { %v9767_v58 = vpop.f32.mrf.mxu0  ;;  %9164 = vmatprep.subr.bf16.mxu1 %v13523_v62 }
 0x8e1   :  { %9165 = vmatpush3.bf16.msra.mxu1 %v13532_v29 }
 0x8e2   :  { %9177 = vmatprep.subr.bf16.mxu1 %v13018_v20 }
 0x8e4   :  { %5757 = vmatmul.mubr.bf16.vlgmr.msra.gmra.mxu1 %v7528_v27 }
 0x8e5   :  { %9178 = vmatpush3.bf16.msra.mxu1 %v13028_v28  ;;  %5861 = vmatprep.mubr.bf16.mxu1 %v7536_v19  ;;  %v10254_v19 = vld [vmem:[%s14190_s3 + $0x3c4] ss:$8 sps:$4 sm:$0xff]  }
 0x8e6   :  { %9179 = vmatprep.subr.bf16.mxu1 %v13034_v31 }
 0x8e9   :  { %9180 = vmatpush3.bf16.msra.mxu1 %v13040_v13 }
 0x8ea   :  { %9181 = vmatprep.subr.bf16.mxu1 %v13046_v4 }
 0x8ed   :  { %9182 = vmatpush3.bf16.msra.mxu1 %v13407_v54 }
 0x8ee   :  { %9183 = vmatprep.subr.bf16.mxu1 %v13413_v53 }
 0x8f1   :  { %9184 = vmatpush3.bf16.msra.mxu1 %v13419_v25 }
 0x8f2   :  { %9185 = vmatprep.subr.bf16.mxu1 %v13425_v42 }
 0x8f5   :  { %9186 = vmatpush3.bf16.msra.mxu1 %v13431_v38 }
 0x8f6   :  { %9187 = vmatprep.subr.bf16.mxu1 %v13437_v18 }
 0x8f8   :  { %v9019_v34 = vpop.f32.mrf.mxu0 }
 0x8f9   :  { %9188 = vmatpush3.bf16.msra.mxu1 %v13446_v23 }
 0x8fa   :  { %v9020_v3 = vpop.f32.mrf.mxu0  ;;  %9189 = vmatprep.subr.bf16.mxu1 %v13452_v11 }
 0x8fb   :  { %v9021_v12 = vadd.f32 %v9020_v3, %v9019_v34 }
 0x8fc   :  { %v9022_v24 = vpop.f32.mrf.mxu0 }
 0x8fd   :  { %v5182_v33 = vadd.f32 %v9021_v12, %v13353_v40  ;;  %9190 = vmatpush3.bf16.msra.mxu1 %v13458_v22 }
 0x8fe   :  { %v9023_v45 = vpop.f32.mrf.mxu0  ;;  %9191 = vmatprep.subr.bf16.mxu1 %v13464_v47 }
 0x8ff   :  { %v5222_v26 = vadd.f32 %v13361_v44, %v5182_v33  ;;  %v7511_v44 = vcombine.high %v7506_v15, %v7506_v15  ;;  %v7533_v33 = vld [vmem:[%s14189_s0 + $0x2b0] sm:$0xff] }
 0x900   :  { %v7538_v45 = vcombine.high %v7533_v33, %v7533_v33  ;;  %v10243_v15 = vld [vmem:[%s14190_s3 + $0x3f0] ss:$8 sps:$4 sm:$0xff]  }
 0x901   :  { %v5227_v41 = vmax.f32 %v5082_v52, %v5222_v26  ;;  %9192 = vmatpush3.bf16.msra.mxu1 %v13473_v60  ;;  %v7515_v52 = vld [vmem:[%s14189_s0 + $0x148] sm:$0xff] }
 0x902   :  { %9816 = vmatprep.subr.bf16.mxu1 %v10495_v39  ;;  %v7520_v58 = vcombine.high %v7515_v52, %v7515_v52  ;;  %v7519_v35 = vcombine.low %v7515_v52, %v7515_v52 }
 0x903   :  { %v5228_v51 = vadd.f32 %v13553_v50, %v5227_v41  ;;  %v9046_v17 = vpop.f32.mrf.mxu1 }
 0x904   :  { %5862 = vmatmul.mubr.bf16.vlgmr.msra.gmra.mxu1 %v7535_v2  ;;  %v10249_v2 = vld [vmem:[%s14190_s3 + $0x3d0] ss:$8 sps:$4 sm:$0xff]  }
 0x905   :  { %v5229_v40 = vmax.f32 %v5228_v51, 0.0  ;;  %9817 = vmatpush3.bf16.msra.mxu1 %v13181_v49  ;;  %9824 = vmatprep.mubr.msk.bf16.mxu1 %vm10496_vm0, %v10495_v39  ;;  %v9047_v34 = vpop.f32.mrf.mxu1 }
 0x906   :  { %9818 = vmatprep.subr.bf16.mxu1 %v10495_v39  ;;  %v13636_v3 = vadd.f32 %v9047_v34, %v9046_v17 }
 0x907   :  { %v5230_v21 = vpack.c.bf16 %v5229_v40, %v5229_v40  ;;  %v9049_v12 = vpop.f32.mrf.mxu1  ;;  %v10245_v40 = vld [vmem:[%s14190_s3 + $0x3f4] ss:$8 sps:$4 sm:$0xff]  }
 0x909   :  { %5361 = vmatmul.mubr.bf16.vlgmr.msra.gmra.mxu0 %v5230_v21  ;;  %9819 = vmatpush3.bf16.msra.mxu1 %v13192_v9  ;;  %v9050_v24 = vpop.f32.mrf.mxu1  ;;  %v10251_v21 = vld [vmem:[%s14190_s3 + $0x3d4] ss:$8 sps:$4 sm:$0xff]  }
 0x90a   :  { %9053 = vmatpush3.bf16.msra.mxu0 %v13084_v14  ;;  %5467 = vmatprep.mubr.bf16.mxu0 %v7511_v44  ;;  %v10248_v44 = vld [vmem:[%s14190_s3 + $0x3e4] ss:$8 sps:$4 sm:$0xff]  }
 0x90b   :  { %9054 = vmatprep.subr.bf16.mxu0 %v13090_v48  ;;  %9820 = vmatprep.subr.bf16.mxu1 %v10495_v39 }
 0x90d   :  { %9821 = vmatpush3.bf16.msra.mxu1 %v13201_v5 }
 0x90e   :  { %9055 = vmatpush3.bf16.msra.mxu0 %v13096_v57  ;;  %9822 = vmatprep.subr.bf16.mxu1 %v10495_v39 }
 0x90f   :  { %9056 = vmatprep.subr.bf16.mxu0 %v13102_v56 }
 0x911   :  { %9823 = vmatpush3.bf16.msra.mxu1 %v13213_v16 }
 0x912   :  { %9057 = vmatpush3.bf16.msra.mxu0 %v13108_v6  ;;  %9226 = vmatprep.subr.bf16.mxu1 %v13018_v20 }
 0x913   :  { %9058 = vmatprep.subr.bf16.mxu0 %v13114_v61 }
 0x914   :  { %9825 = vmatmul.mubr.msk.bf16.vlgmr.msra.gmra.mxu1 %vm336_vm1, %v10242_v46 }
 0x915   :  { %9227 = vmatpush3.bf16.msra.mxu1 %v13028_v28 }
 0x916   :  { %9059 = vmatpush3.bf16.msra.mxu0 %v13121_v1  ;;  %9228 = vmatprep.subr.bf16.mxu1 %v13034_v31 }
 0x917   :  { %9060 = vmatprep.subr.bf16.mxu0 %v13127_v59 }
 0x919   :  { %9229 = vmatpush3.bf16.msra.mxu1 %v13040_v13 }
 0x91a   :  { %9061 = vmatpush3.bf16.msra.mxu0 %v13133_v36  ;;  %9230 = vmatprep.subr.bf16.mxu1 %v13046_v4 }
 0x91b   :  { %9062 = vmatprep.subr.bf16.mxu0 %v13139_v30 }
 0x91d   :  { %9231 = vmatpush3.bf16.msra.mxu1 %v13407_v54 }
 0x91e   :  { %9063 = vmatpush3.bf16.msra.mxu0 %v13505_v43  ;;  %9232 = vmatprep.subr.bf16.mxu1 %v13413_v53 }
 0x91f   :  { %9064 = vmatprep.subr.bf16.mxu0 %v13511_v32 }
 0x921   :  { %9233 = vmatpush3.bf16.msra.mxu1 %v13419_v25 }
 0x922   :  { %9065 = vmatpush3.bf16.msra.mxu0 %v13517_v63  ;;  %9234 = vmatprep.subr.bf16.mxu1 %v13425_v42 }
 0x923   :  { %9066 = vmatprep.subr.bf16.mxu0 %v13523_v62 }
 0x925   :  { %9235 = vmatpush3.bf16.msra.mxu1 %v13431_v38 }
 0x926   :  { %9067 = vmatpush3.bf16.msra.mxu0 %v13532_v29  ;;  %9236 = vmatprep.subr.bf16.mxu1 %v13437_v18 }
 0x927   :  { %9101 = vmatprep.subr.bf16.mxu0 %v13002_v7  ;;  %v7523_v7 = vld [vmem:[%s14189_s0 + $0x1f4] sm:$0xff] }
 0x928   :  { %v7527_v27 = vcombine.high %v7523_v7, %v7523_v7 }
 0x929   :  { %5468 = vmatmul.mubr.bf16.vlgmr.msra.gmra.mxu0 %v7510_v8  ;;  %9237 = vmatpush3.bf16.msra.mxu1 %v13446_v23  ;;  %v10252_v8 = vld [vmem:[%s14190_s3 + $0x3c0] ss:$8 sps:$4 sm:$0xff]  }
 0x92a   :  { %9102 = vmatpush3.bf16.msra.mxu0 %v13084_v14  ;;  %5611 = vmatprep.mubr.bf16.mxu0 %v7520_v58 }
 0x92b   :  { %9103 = vmatprep.subr.bf16.mxu0 %v13090_v48  ;;  %9238 = vmatprep.subr.bf16.mxu1 %v13452_v11 }
 0x92d   :  { %9239 = vmatpush3.bf16.msra.mxu1 %v13458_v22 }
 0x92e   :  { %9104 = vmatpush3.bf16.msra.mxu0 %v13096_v57  ;;  %9240 = vmatprep.subr.bf16.mxu1 %v13464_v47 }
 0x92f   :  { %9105 = vmatprep.subr.bf16.mxu0 %v13102_v56 }
 0x931   :  { %9241 = vmatpush3.bf16.msra.mxu1 %v13473_v60 }
 0x932   :  { %9106 = vmatpush3.bf16.msra.mxu0 %v13108_v6  ;;  %9828 = vmatprep.subr.bf16.mxu1 %v10495_v39 }
 0x933   :  { %9107 = vmatprep.subr.bf16.mxu0 %v13114_v61 }
 0x936   :  { %9108 = vmatpush3.bf16.msra.mxu0 %v13121_v1 }
 0x937   :  { %9109 = vmatprep.subr.bf16.mxu0 %v13127_v59 }
 0x93a   :  { %9110 = vmatpush3.bf16.msra.mxu0 %v13133_v36 }
 0x93b   :  { %9111 = vmatprep.subr.bf16.mxu0 %v13139_v30 }
 0x93e   :  { %9112 = vmatpush3.bf16.msra.mxu0 %v13505_v43 }
 0x93f   :  { %9113 = vmatprep.subr.bf16.mxu0 %v13511_v32 }
 0x942   :  { %9114 = vmatpush3.bf16.msra.mxu0 %v13517_v63 }
 0x943   :  { %9115 = vmatprep.subr.bf16.mxu0 %v13523_v62 }
 0x946   :  { %9116 = vmatpush3.bf16.msra.mxu0 %v13532_v29 }
 0x947   :  { %9128 = vmatprep.subr.bf16.mxu0 %v13018_v20  ;;  %v13645_v20 = vpop.f32.mrf.mxu1 }
 0x949   :  { %5612 = vmatmul.mubr.bf16.vlgmr.msra.gmra.mxu0 %v7519_v35 }
 0x94a   :  { %9129 = vmatpush3.bf16.msra.mxu0 %v13028_v28  ;;  %5716 = vmatprep.mubr.bf16.mxu0 %v7527_v27  ;;  %v9790_v28 = vpop.f32.mrf.mxu1 }
 0x94b   :  { %9130 = vmatprep.subr.bf16.mxu0 %v13034_v31  ;;  %v10257_v28 = vld [vmem:[%s14190_s3 + $0x3b4] ss:$8 sps:$4 sm:$0xff]  }
 0x94c   :  { %v5512_v31 = vpop.f32.mrf.mxu1 }
 0x94d   :  { %v10255_v31 = vld [vmem:[%s14190_s3 + $0x3b0] ss:$8 sps:$4 sm:$0xff]  }
 0x94e   :  { %9131 = vmatpush3.bf16.msra.mxu0 %v13040_v13  ;;  %v9791_v13 = vpop.f32.mrf.mxu1 }
 0x94f   :  { %9132 = vmatprep.subr.bf16.mxu0 %v13046_v4  ;;  %v7526_v4 = vcombine.low %v7523_v7, %v7523_v7  ;;  %v10260_v13 = vld [vmem:[%s14190_s3 + $0x3a4] ss:$8 sps:$4 sm:$0xff]  }
 0x952   :  { %9133 = vmatpush3.bf16.msra.mxu0 %v13407_v54 }
 0x953   :  { %9134 = vmatprep.subr.bf16.mxu0 %v13413_v53 }
 0x956   :  { %9135 = vmatpush3.bf16.msra.mxu0 %v13419_v25 }
 0x957   :  { %9136 = vmatprep.subr.bf16.mxu0 %v13425_v42 }
 0x95a   :  { %9137 = vmatpush3.bf16.msra.mxu0 %v13431_v38 }
 0x95b   :  { %9138 = vmatprep.subr.bf16.mxu0 %v13437_v18 }
 0x95e   :  { %9139 = vmatpush3.bf16.msra.mxu0 %v13446_v23 }
 0x95f   :  { %9140 = vmatprep.subr.bf16.mxu0 %v13452_v11 }
 0x962   :  { %9141 = vmatpush3.bf16.msra.mxu0 %v13458_v22 }
 0x963   :  { %9142 = vmatprep.subr.bf16.mxu0 %v13464_v47 }
 0x966   :  { %9143 = vmatpush3.bf16.msra.mxu0 %v13473_v60 }
 0x967   :  { %9804 = vmatprep.subr.bf16.mxu0 %v10495_v39 }
 0x969   :  { %5717 = vmatmul.mubr.bf16.vlgmr.msra.gmra.mxu0 %v7526_v4  ;;  %v10258_v4 = vld [vmem:[%s14190_s3 + $0x3a0] ss:$8 sps:$4 sm:$0xff]  }
 0x96a   :  { %9805 = vmatpush3.bf16.msra.mxu0 %v13181_v49  ;;  %9812 = vmatprep.mubr.msk.bf16.mxu0 %vm10496_vm0, %v10495_v39  ;;  %v10237_v49 = vld [vmem:[%s14189_s0 + $0x204] ss:$0 sps:$4 sm:$0xff]  }
 0x96b   :  { %9806 = vmatprep.subr.bf16.mxu0 %v10495_v39 }
 0x96e   :  { %9807 = vmatpush3.bf16.msra.mxu0 %v13192_v9  ;;  %v13672_v9 = vld [vmem:[%s14188_s1 + $0xf8] sm:$0xff]  }
 0x96f   :  { %9808 = vmatprep.subr.bf16.mxu0 %v10495_v39 }
 0x972   :  { %9809 = vmatpush3.bf16.msra.mxu0 %v13201_v5 }
 0x973   :  { %9810 = vmatprep.subr.bf16.mxu0 %v10495_v39 }
 0x974   :  { %v9095_v5 = vpop.f32.mrf.mxu1 }
 0x976   :  { %9811 = vmatpush3.bf16.msra.mxu0 %v13213_v16  ;;  %v9096_v26 = vpop.f32.mrf.mxu1 }
 0x977   :  { %9199 = vmatprep.subr.bf16.mxu0 %v13672_v9  ;;  %v13678_v41 = vadd.f32 %v9096_v26, %v9095_v5  ;;  %v10261_v5 = vld [vmem:[%s14190_s3 + $0x390] ss:$8 sps:$4 sm:$0xff]  }
 0x978   :  { %v9098_v16 = vpop.f32.mrf.mxu1 }
 0x979   :  { %9813 = vmatmul.mubr.msk.bf16.vlgmr.msra.gmra.mxu0 %vm336_vm1, %v10237_v49  ;;  %v10266_v16 = vld [vmem:[%s14190_s3 + $0x384] ss:$8 sps:$4 sm:$0xff]  }
 0x97a   :  { %9200 = vmatpush3.bf16.msra.mxu0 %v13084_v14  ;;  %5901 = vmatprep.mubr.bf16.mxu0 %v7538_v45  ;;  %v9099_v51 = vpop.f32.mrf.mxu1  ;;  %v10263_v45 = vld [vmem:[%s14190_s3 + $0x394] ss:$8 sps:$4 sm:$0xff]  }
 0x97b   :  { %9201 = vmatprep.subr.bf16.mxu0 %v13090_v48  ;;  %v10264_v51 = vld [vmem:[%s14190_s3 + $0x380] ss:$8 sps:$4 sm:$0xff]  }
 0x97e   :  { %9202 = vmatpush3.bf16.msra.mxu0 %v13096_v57 }
 0x97f   :  { %9203 = vmatprep.subr.bf16.mxu0 %v13102_v56 }
 0x982   :  { %9204 = vmatpush3.bf16.msra.mxu0 %v13108_v6  ;;  %v7537_v6 = vcombine.low %v7533_v33, %v7533_v33 }
 0x983   :  { %9205 = vmatprep.subr.bf16.mxu0 %v13114_v61 }
 0x984   :  { %v13687_v14 = vpop.f32.mrf.mxu1 }
 0x986   :  { %9206 = vmatpush3.bf16.msra.mxu0 %v13121_v1  ;;  %v9802_v48 = vpop.f32.mrf.mxu1 }
 0x987   :  { %9207 = vmatprep.subr.bf16.mxu0 %v13127_v59  ;;  %v7573_v48 = vld [vmem:[%s14189_s0 + $0xa0] sm:$0xff] }
 0x988   :  { %v5656_v57 = vpop.f32.mrf.mxu1 }
 0x989   :  { %v7577_v57 = vcombine.high %v7573_v48, %v7573_v48 }
 0x98a   :  { %9208 = vmatpush3.bf16.msra.mxu0 %v13133_v36  ;;  %v9803_v56 = vpop.f32.mrf.mxu1 }
 0x98b   :  { %9209 = vmatprep.subr.bf16.mxu0 %v13139_v30  ;;  %v7576_v56 = vcombine.low %v7573_v48, %v7573_v48  ;;  %6149 = vmatprep.mubr.bf16.mxu1 %v7577_v57  ;;  %v13877_v48 = vld [vmem:[%s14188_s1 + $0xe8] sm:$0xff]  }
 0x98d   :  { %6150 = vmatmul.mubr.bf16.vlgmr.msra.gmra.mxu1 %v7576_v56  ;;  %v13883_v56 = vld [vmem:[%s14188_s1 + $0xa8] sm:$0xff]  }
 0x98e   :  { %9210 = vmatpush3.bf16.msra.mxu0 %v13505_v43  ;;  %9836 = vmatprep.mubr.msk.bf16.mxu1 %vm10496_vm0, %v10495_v39 }
 0x98f   :  { %9211 = vmatprep.subr.bf16.mxu0 %v13511_v32 }
 0x992   :  { %9212 = vmatpush3.bf16.msra.mxu0 %v13517_v63 }
 0x993   :  { %9213 = vmatprep.subr.bf16.mxu0 %v13523_v62 }
 0x996   :  { %9214 = vmatpush3.bf16.msra.mxu0 %v13532_v29 }
 0x997   :  { %6050 = vmatprep.subr.bf16.mxu0 %v10245_v40 }
 0x999   :  { %5902 = vmatmul.mubr.bf16.vlgmr.msra.gmra.mxu0 %v7537_v6 }
 0x99a   :  { %6082 = vmatprep.mubr.bf16.mxu0 %v10497_v10  ;;  %6051 = vmatpush1.bf16.msra.mxu0 %v10243_v15 }
 0x99b   :  { %6052 = vmatprep.subr.bf16.mxu0 %v10248_v44  ;;  %v13773_v44 = vld [vmem:[%s14188_s1 + $0x110] sm:$0xff]  }
 0x99e   :  { %6053 = vmatpush1.bf16.msra.mxu0 %v10246_v0  ;;  %v13780_v0 = vld [vmem:[%s14188_s1 + $0x108] sm:$0xff]  }
 0x99f   :  { %6054 = vmatprep.subr.bf16.mxu0 %v10251_v21  ;;  %v13793_v21 = vld [vmem:[%s14188_s1 + $0x78] sm:$0xff]  }
 0x9a2   :  { %6055 = vmatpush1.bf16.msra.mxu0 %v10249_v2  ;;  %v10269_v2 = vld [vmem:[%s14189_s0 + $0xb0] ss:$0 sps:$4 sm:$0xff]  }
 0x9a3   :  { %6056 = vmatprep.subr.bf16.mxu0 %v10254_v19  ;;  %v13803_v19 = vld [vmem:[%s14188_s1 + $0x38] sm:$0xff]  }
 0x9a4   :  { %v9166_v61 = vpop.f32.mrf.mxu1 }
 0x9a6   :  { %v9167_v1 = vpop.f32.mrf.mxu1  ;;  %6057 = vmatpush1.bf16.msra.mxu0 %v10252_v8  ;;  %v13815_v8 = vld [vmem:[%s14188_s1 + $0x30] sm:$0xff]  }
 0x9a7   :  { %v13696_v59 = vadd.f32 %v9167_v1, %v9166_v61  ;;  %6058 = vmatprep.subr.bf16.mxu0 %v10257_v28  ;;  %v13763_v1 = vld [vmem:[%s14188_s1 + $0x118] sm:$0xff]  }
 0x9a8   :  { %v9169_v36 = vpop.f32.mrf.mxu1  ;;  %9829 = vmatpush3.bf16.msra.mxu1 %v13763_v1 }
 0x9a9   :  { %9830 = vmatprep.subr.bf16.mxu1 %v10495_v39 }
 0x9aa   :  { %v9170_v30 = vpop.f32.mrf.mxu1  ;;  %6059 = vmatpush1.bf16.msra.mxu0 %v10255_v31 }
 0x9ab   :  { %6060 = vmatprep.subr.bf16.mxu0 %v10260_v13 }
 0x9ac   :  { %9831 = vmatpush3.bf16.msra.mxu1 %v13773_v44 }
 0x9ad   :  { %9832 = vmatprep.subr.bf16.mxu1 %v10495_v39 }
 0x9ae   :  { %6061 = vmatpush1.bf16.msra.mxu0 %v10258_v4  ;;  %v7582_v4 = vld [vmem:[%s14189_s0 + $0x154] sm:$0xff] }
 0x9af   :  { %6062 = vmatprep.subr.bf16.mxu0 %v10263_v45  ;;  %v13859_v45 = vld [vmem:[%s14188_s1 + $0xb8] sm:$0xff]  }
 0x9b0   :  { %9833 = vmatpush3.bf16.msra.mxu1 %v13780_v0 }
 0x9b1   :  { %9834 = vmatprep.subr.bf16.mxu1 %v10495_v39 }
 0x9b2   :  { %6063 = vmatpush1.bf16.msra.mxu0 %v10261_v5 }
 0x9b3   :  { %6064 = vmatprep.subr.bf16.mxu0 %v10266_v16 }
 0x9b6   :  { %6065 = vmatpush1.bf16.msra.mxu0 %v10264_v51  ;;  %v13871_v51 = vld [vmem:[%s14188_s1 + $0xb0] sm:$0xff]  }
 0x9b7   :  { %9248 = vmatprep.subr.bf16.mxu0 %v13672_v9 }
 0x9c4   :  { %v9193_v7 = vpop.f32.mrf.mxu1 }
 0x9c6   :  { %v9194_v17 = vpop.f32.mrf.mxu1 }
 0x9c7   :  { %v13728_v34 = vadd.f32 %v9194_v17, %v9193_v7 }
 0x9c8   :  { %v9196_v24 = vpop.f32.mrf.mxu1 }
 0x9c9   :  { %v5362_v46 = vpop.f32.mrf.mxu0 }
 0x9ca   :  { %v13720_v52 = vadd.f32 %v5362_v46, %v13345_v55  ;;  %v9197_v55 = vpop.f32.mrf.mxu1  ;;  %v13809_v46 = vld [vmem:[%s14188_s1 + $0x70] sm:$0xff]  }
 0x9cb   :  { %v5364_v58 = vpop.f32.mrf.mxu0 }
 0x9cc   :  { %v13726_v35 = vadd.f32 %v5364_v58, %v13351_v37  ;;  %v13821_v58 = vld [vmem:[%s14188_s1 + $0x68] sm:$0xff]  }
 0x9cd   :  { %v5366_v27 = vpop.f32.mrf.mxu0 }
 0x9cf   :  { %v5367_v12 = vpop.f32.mrf.mxu0 }
 0x9d4   :  { %v13736_v37 = vpop.f32.mrf.mxu1 }
 0x9d6   :  { %v9826_v33 = vpop.f32.mrf.mxu1 }
 0x9d7   :  { %v7586_v33 = vcombine.high %v7582_v4, %v7582_v4 }
 0x9d8   :  { %v5946_v49 = vpop.f32.mrf.mxu1 }
 0x9da   :  { %v9827_v26 = vpop.f32.mrf.mxu1 }
 0x9db   :  { %v13865_v26 = vld [vmem:[%s14188_s1 + $0xf0] sm:$0xff]  }
 0x9e9   :  { %v9068_v6 = vpop.f32.mrf.mxu0 }
 0x9eb   :  { %v9069_v61 = vpop.f32.mrf.mxu0 }
 0x9ec   :  { %v9070_v36 = vadd.f32 %v9069_v61, %v9068_v6  ;;  %v13889_v6 = vld [vmem:[%s14188_s1 + $0xe0] sm:$0xff]  }
 0x9ed   :  { %v9071_v30 = vpop.f32.mrf.mxu0 }
 0x9ee   :  { %v5470_v15 = vadd.f32 %v9070_v36, %v13636_v3  ;;  %v13787_v3 = vld [vmem:[%s14188_s1 + $0x100] sm:$0xff]  }
 0x9ef   :  { %v9072_v40 = vpop.f32.mrf.mxu0  ;;  %9835 = vmatpush3.bf16.msra.mxu1 %v13787_v3  ;;  %v13896_v36 = vld [vmem:[%s14188_s1 + $0xa0] sm:$0xff]  }
 0x9f0   :  { %9275 = vmatprep.subr.bf16.mxu1 %v13793_v21  ;;  %v5510_v28 = vadd.f32 %v13645_v20, %v5470_v15  ;;  %v13902_v15 = vld [vmem:[%s14188_s1 + $0xd8] sm:$0xff]  }
 0x9f2   :  { %9837 = vmatmul.mubr.msk.bf16.vlgmr.msra.gmra.mxu1 %vm336_vm1, %v10269_v2 }
 0x9f3   :  { %9276 = vmatpush3.bf16.msra.mxu1 %v13803_v19  ;;  %6293 = vmatprep.mubr.bf16.mxu1 %v7586_v33 }
 0x9f4   :  { %9277 = vmatprep.subr.bf16.mxu1 %v13809_v46 }
 0x9f7   :  { %9278 = vmatpush3.bf16.msra.mxu1 %v13815_v8 }
 0x9f8   :  { %9279 = vmatprep.subr.bf16.mxu1 %v13821_v58 }
 0x9fb   :  { %9280 = vmatpush3.bf16.msra.mxu1 %v13407_v54 }
 0x9fc   :  { %9281 = vmatprep.subr.bf16.mxu1 %v13413_v53 }
 0x9ff   :  { %9282 = vmatpush3.bf16.msra.mxu1 %v13419_v25 }
 0xa00   :  { %9283 = vmatprep.subr.bf16.mxu1 %v13425_v42 }
 0xa03   :  { %9284 = vmatpush3.bf16.msra.mxu1 %v13431_v38 }
 0xa04   :  { %9285 = vmatprep.subr.bf16.mxu1 %v13437_v18 }
 0xa07   :  { %9286 = vmatpush3.bf16.msra.mxu1 %v13446_v23 }
 0xa08   :  { %9287 = vmatprep.subr.bf16.mxu1 %v13452_v11 }
 0xa09   :  { %v9117_v7 = vpop.f32.mrf.mxu0 }
 0xa0b   :  { %v9118_v27 = vpop.f32.mrf.mxu0  ;;  %9288 = vmatpush3.bf16.msra.mxu1 %v13458_v22 }
 0xa0c   :  { %v9119_v17 = vadd.f32 %v9118_v27, %v9117_v7  ;;  %9289 = vmatprep.subr.bf16.mxu1 %v13464_v47 }
 0xa0d   :  { %v9120_v12 = vpop.f32.mrf.mxu0 }
 0xa0e   :  { %v5614_v24 = vadd.f32 %v9119_v17, %v13678_v41  ;;  %v7585_v41 = vcombine.low %v7582_v4, %v7582_v4  ;;  %v13914_v17 = vld [vmem:[%s14188_s1 + $0xd0] sm:$0xff]  }
 0xa0f   :  { %v9121_v55 = vpop.f32.mrf.mxu0  ;;  %9290 = vmatpush3.bf16.msra.mxu1 %v13473_v60 }
 0xa10   :  { %v5654_v31 = vadd.f32 %v13687_v14, %v5614_v24  ;;  %9840 = vmatprep.subr.bf16.mxu1 %v10495_v39  ;;  %v10276_v14 = vld [vmem:[%s14189_s0 + $0x164] ss:$0 sps:$4 sm:$0xff]   ;;  %v7592_v24 = vld [vmem:[%s14189_s0 + $0x210] sm:$0xff] }
 0xa11   :  { %v7596_v55 = vcombine.low %v7592_v24, %v7592_v24 }
 0xa12   :  { %v5659_v13 = vmax.f32 %v5510_v28, %v5654_v31  ;;  %6294 = vmatmul.mubr.bf16.vlgmr.msra.gmra.mxu1 %v7585_v41  ;;  %v7597_v28 = vcombine.high %v7592_v24, %v7592_v24 }
 0xa13   :  { %9841 = vmatpush3.bf16.msra.mxu1 %v13763_v1  ;;  %9848 = vmatprep.mubr.msk.bf16.mxu1 %vm10496_vm0, %v10495_v39 }
 0xa14   :  { %9842 = vmatprep.subr.bf16.mxu1 %v10495_v39 }
 0xa17   :  { %9843 = vmatpush3.bf16.msra.mxu1 %v13773_v44 }
 0xa18   :  { %9844 = vmatprep.subr.bf16.mxu1 %v10495_v39 }
 0xa1b   :  { %9845 = vmatpush3.bf16.msra.mxu1 %v13780_v0 }
 0xa1c   :  { %9846 = vmatprep.subr.bf16.mxu1 %v10495_v39 }
 0xa1f   :  { %9847 = vmatpush3.bf16.msra.mxu1 %v13787_v3 }
 0xa20   :  { %9346 = vmatprep.subr.bf16.mxu1 %v13672_v9 }
 0xa22   :  { %9849 = vmatmul.mubr.msk.bf16.vlgmr.msra.gmra.mxu1 %vm336_vm1, %v10276_v14 }
 0xa23   :  { %9347 = vmatpush3.bf16.msra.mxu1 %v13859_v45  ;;  %6478 = vmatprep.mubr.bf16.mxu1 %v7597_v28 }
 0xa24   :  { %9348 = vmatprep.subr.bf16.mxu1 %v13865_v26 }
 0xa27   :  { %9349 = vmatpush3.bf16.msra.mxu1 %v13871_v51 }
 0xa28   :  { %9350 = vmatprep.subr.bf16.mxu1 %v13877_v48 }
 0xa29   :  { %v9144_v20 = vpop.f32.mrf.mxu0 }
 0xa2b   :  { %v9145_v49 = vpop.f32.mrf.mxu0  ;;  %9351 = vmatpush3.bf16.msra.mxu1 %v13883_v56 }
 0xa2c   :  { %v9146_v57 = vadd.f32 %v9145_v49, %v9144_v20  ;;  %9352 = vmatprep.subr.bf16.mxu1 %v13889_v6 }
 0xa2d   :  { %v9147_v5 = vpop.f32.mrf.mxu0 }
 0xa2e   :  { %v5759_v61 = vadd.f32 %v13696_v59, %v9146_v57  ;;  %v13908_v59 = vld [vmem:[%s14188_s1 + $0x98] sm:$0xff]  }
 0xa2f   :  { %v9148_v16 = vpop.f32.mrf.mxu0  ;;  %9353 = vmatpush3.bf16.msra.mxu1 %v13896_v36 }
 0xa30   :  { %9354 = vmatprep.subr.bf16.mxu1 %v13902_v15  ;;  %v7574_v16 = vld [vmem:[%s14189_s0 + $0xa8] sm:$0xff] }
 0xa33   :  { %9355 = vmatpush3.bf16.msra.mxu1 %v13908_v59 }
 0xa34   :  { %9356 = vmatprep.subr.bf16.mxu1 %v13914_v17 }
 0xa37   :  { %9357 = vmatpush3.bf16.msra.mxu1 %v13505_v43 }
 0xa38   :  { %9358 = vmatprep.subr.bf16.mxu1 %v13511_v32 }
 0xa39   :  { %v5798_v30 = vpop.f32.mrf.mxu0 }
 0xa3a   :  { %v5799_v40 = vadd.f32 %v5798_v30, %v5759_v61 }
 0xa3b   :  { %v9814_v2 = vpop.f32.mrf.mxu0  ;;  %9359 = vmatpush3.bf16.msra.mxu1 %v13517_v63 }
 0xa3c   :  { %v5804_v7 = vmax.f32 %v5659_v13, %v5799_v40  ;;  %9360 = vmatprep.subr.bf16.mxu1 %v13523_v62  ;;  %v7583_v2 = vld [vmem:[%s14189_s0 + $0x15c] sm:$0xff] }
 0xa3d   :  { %v5801_v27 = vpop.f32.mrf.mxu0  ;;  %v7587_v24 = vcombine.low %v7583_v2, %v7583_v2 }
 0xa3e   :  { %v7588_v27 = vcombine.high %v7583_v2, %v7583_v2  ;;  %v10308_v2 = vld [vmem:[%s14190_s3 + $0x400] ss:$8 sps:$4 sm:$0xff]  }
 0xa3f   :  { %v9815_v12 = vpop.f32.mrf.mxu0  ;;  %9361 = vmatpush3.bf16.msra.mxu1 %v13532_v29 }
 0xa40   :  { %9373 = vmatprep.subr.bf16.mxu1 %v13793_v21  ;;  %v7591_v12 = vld [vmem:[%s14189_s0 + $0x208] sm:$0xff] }
 0xa42   :  { %6479 = vmatmul.mubr.bf16.vlgmr.msra.gmra.mxu1 %v7596_v55  ;;  %v7595_v55 = vcombine.high %v7591_v12, %v7591_v12 }
 0xa43   :  { %9374 = vmatpush3.bf16.msra.mxu1 %v13803_v19 }
 0xa44   :  { %9375 = vmatprep.subr.bf16.mxu1 %v13809_v46 }
 0xa47   :  { %9376 = vmatpush3.bf16.msra.mxu1 %v13815_v8 }
 0xa48   :  { %9377 = vmatprep.subr.bf16.mxu1 %v13821_v58 }
 0xa4b   :  { %9378 = vmatpush3.bf16.msra.mxu1 %v13407_v54 }
 0xa4c   :  { %9379 = vmatprep.subr.bf16.mxu1 %v13413_v53 }
 0xa4d   :  { %v9242_v28 = vpop.f32.mrf.mxu1 }
 0xa4f   :  { %9380 = vmatpush3.bf16.msra.mxu1 %v13419_v25 }
 0xa50   :  { %9381 = vmatprep.subr.bf16.mxu1 %v13425_v42 }
 0xa53   :  { %9382 = vmatpush3.bf16.msra.mxu1 %v13431_v38 }
 0xa54   :  { %9383 = vmatprep.subr.bf16.mxu1 %v13437_v18 }
 0xa57   :  { %9384 = vmatpush3.bf16.msra.mxu1 %v13446_v23 }
 0xa58   :  { %9385 = vmatprep.subr.bf16.mxu1 %v13452_v11 }
 0xa59   :  { %v9215_v31 = vpop.f32.mrf.mxu0 }
 0xa5b   :  { %v9216_v13 = vpop.f32.mrf.mxu0  ;;  %9386 = vmatpush3.bf16.msra.mxu1 %v13458_v22 }
 0xa5c   :  { %v9217_v4 = vadd.f32 %v9216_v13, %v9215_v31  ;;  %9387 = vmatprep.subr.bf16.mxu1 %v13464_v47  ;;  %v9243_v31 = vpop.f32.mrf.mxu1 }
 0xa5d   :  { %v9218_v41 = vpop.f32.mrf.mxu0  ;;  %v14004_v13 = vadd.f32 %v9243_v31, %v9242_v28  ;;  %v10313_v31 = vld [vmem:[%s14192_s5 + $0x70] sm:$0xff]  }
 0xa5e   :  { %v5904_v33 = vadd.f32 %v9217_v4, %v13728_v34  ;;  %v7579_v34 = vcombine.high %v7574_v16, %v7574_v16  ;;  %v9245_v4 = vpop.f32.mrf.mxu1 }
 0xa5f   :  { %v9219_v20 = vpop.f32.mrf.mxu0  ;;  %9388 = vmatpush3.bf16.msra.mxu1 %v13473_v60 }
 0xa60   :  { %v5944_v14 = vadd.f32 %v13736_v37, %v5904_v33  ;;  %v7600_v37 = vld [vmem:[%s14189_s0 + $0x2bc] sm:$0xff]  ;;  %9864 = vmatprep.subr.bf16.mxu1 %v10495_v39  ;;  %v9246_v41 = vpop.f32.mrf.mxu1 }
 0xa61   :  { %v7603_v30 = vcombine.low %v7600_v37, %v7600_v37  ;;  %v7604_v40 = vcombine.high %v7600_v37, %v7600_v37  ;;  %v10314_v41 = vld [vmem:[%s14192_s5 + $0x30] sm:$0xff]  }
 0xa62   :  { %v5949_v49 = vmax.f32 %v5804_v7, %v5944_v14  ;;  %v7578_v7 = vcombine.low %v7574_v16, %v7574_v16 }
 0xa63   :  { %6583 = vmatprep.mubr.bf16.mxu1 %v7604_v40  ;;  %v10305_v40 = vld [vmem:[%s14190_s3 + $0x410] ss:$8 sps:$4 sm:$0xff]  }
 0xa64   :  { %v5950_v5 = vadd.f32 %v13553_v50, %v5949_v49  ;;  %6584 = vmatmul.mubr.bf16.vlgmr.msra.gmra.mxu1 %v7603_v30  ;;  %v10286_v50 = vld [vmem:[%s14189_s0 + $0x2cc] ss:$0 sps:$4 sm:$0xff]   ;;  %v10301_v49 = vld [vmem:[%s14190_s3 + $0x434] ss:$8 sps:$4 sm:$0xff]  }
 0xa65   :  { %9865 = vmatpush3.bf16.msra.mxu1 %v13763_v1  ;;  %9872 = vmatprep.mubr.msk.bf16.mxu1 %vm10496_vm0, %v10495_v39 }
 0xa66   :  { %v5951_v57 = vmax.f32 %v5950_v5, 0.0  ;;  %9866 = vmatprep.subr.bf16.mxu1 %v10495_v39  ;;  %v10299_v5 = vld [vmem:[%s14190_s3 + $0x430] ss:$8 sps:$4 sm:$0xff]  }
 0xa68   :  { %v5952_v61 = vpack.c.bf16 %v5951_v57, %v5951_v57 }
 0xa69   :  { %9867 = vmatpush3.bf16.msra.mxu1 %v13773_v44 }
 0xa6a   :  { %6083 = vmatmul.mubr.bf16.vlgmr.msra.gmra.mxu0 %v5952_v61  ;;  %9868 = vmatprep.subr.bf16.mxu1 %v10495_v39  ;;  %v10307_v61 = vld [vmem:[%s14190_s3 + $0x414] ss:$8 sps:$4 sm:$0xff]  }
 0xa6b   :  { %9249 = vmatpush3.bf16.msra.mxu0 %v13859_v45  ;;  %6189 = vmatprep.mubr.bf16.mxu0 %v7579_v34  ;;  %v10302_v34 = vld [vmem:[%s14190_s3 + $0x420] ss:$8 sps:$4 sm:$0xff]  }
 0xa6c   :  { %9250 = vmatprep.subr.bf16.mxu0 %v13865_v26 }
 0xa6d   :  { %9869 = vmatpush3.bf16.msra.mxu1 %v13780_v0 }
 0xa6e   :  { %9870 = vmatprep.subr.bf16.mxu1 %v10495_v39 }
 0xa6f   :  { %9251 = vmatpush3.bf16.msra.mxu0 %v13871_v51 }
 0xa70   :  { %9252 = vmatprep.subr.bf16.mxu0 %v13877_v48 }
 0xa71   :  { %9871 = vmatpush3.bf16.msra.mxu1 %v13787_v3 }
 0xa73   :  { %9253 = vmatpush3.bf16.msra.mxu0 %v13883_v56 }
 0xa74   :  { %9254 = vmatprep.subr.bf16.mxu0 %v13889_v6  ;;  %9873 = vmatmul.mubr.msk.bf16.vlgmr.msra.gmra.mxu1 %vm336_vm1, %v10286_v50  ;;  %v10310_v50 = vld [vmem:[%s14190_s3 + $0x404] ss:$8 sps:$4 sm:$0xff]  }
 0xa77   :  { %9255 = vmatpush3.bf16.msra.mxu0 %v13896_v36 }
 0xa78   :  { %9256 = vmatprep.subr.bf16.mxu0 %v13902_v15 }
 0xa7b   :  { %9257 = vmatpush3.bf16.msra.mxu0 %v13908_v59 }
 0xa7c   :  { %9258 = vmatprep.subr.bf16.mxu0 %v13914_v17 }
 0xa7f   :  { %9259 = vmatpush3.bf16.msra.mxu0 %v13505_v43 }
 0xa80   :  { %9260 = vmatprep.subr.bf16.mxu0 %v13511_v32 }
 0xa83   :  { %9261 = vmatpush3.bf16.msra.mxu0 %v13517_v63 }
 0xa84   :  { %9262 = vmatprep.subr.bf16.mxu0 %v13523_v62 }
 0xa87   :  { %9263 = vmatpush3.bf16.msra.mxu0 %v13532_v29 }
 0xa88   :  { %9297 = vmatprep.subr.bf16.mxu0 %v13672_v9 }
 0xa8a   :  { %6190 = vmatmul.mubr.bf16.vlgmr.msra.gmra.mxu0 %v7578_v7 }
 0xa8b   :  { %9298 = vmatpush3.bf16.msra.mxu0 %v13859_v45  ;;  %6333 = vmatprep.mubr.bf16.mxu0 %v7588_v27 }
 0xa8c   :  { %9299 = vmatprep.subr.bf16.mxu0 %v13865_v26 }
 0xa8f   :  { %9300 = vmatpush3.bf16.msra.mxu0 %v13871_v51 }
 0xa90   :  { %9301 = vmatprep.subr.bf16.mxu0 %v13877_v48 }
 0xa93   :  { %9302 = vmatpush3.bf16.msra.mxu0 %v13883_v56 }
 0xa94   :  { %9303 = vmatprep.subr.bf16.mxu0 %v13889_v6 }
 0xa97   :  { %9304 = vmatpush3.bf16.msra.mxu0 %v13896_v36 }
 0xa98   :  { %9305 = vmatprep.subr.bf16.mxu0 %v13902_v15 }
 0xa9b   :  { %9306 = vmatpush3.bf16.msra.mxu0 %v13908_v59 }
 0xa9c   :  { %9307 = vmatprep.subr.bf16.mxu0 %v13914_v17 }
 0xa9f   :  { %9308 = vmatpush3.bf16.msra.mxu0 %v13505_v43 }
 0xaa0   :  { %9309 = vmatprep.subr.bf16.mxu0 %v13511_v32 }
 0xaa3   :  { %9310 = vmatpush3.bf16.msra.mxu0 %v13517_v63 }
 0xaa4   :  { %9311 = vmatprep.subr.bf16.mxu0 %v13523_v62 }
 0xaa7   :  { %9312 = vmatpush3.bf16.msra.mxu0 %v13532_v29 }
 0xaa8   :  { %9324 = vmatprep.subr.bf16.mxu0 %v13793_v21 }
 0xaaa   :  { %6334 = vmatmul.mubr.bf16.vlgmr.msra.gmra.mxu0 %v7587_v24 }
 0xaab   :  { %9325 = vmatpush3.bf16.msra.mxu0 %v13803_v19  ;;  %6438 = vmatprep.mubr.bf16.mxu0 %v7595_v55  ;;  %v10312_v55 = vld [vmem:[%s14192_s5 + $0x38] sm:$0xff]  }
 0xaac   :  { %9326 = vmatprep.subr.bf16.mxu0 %v13809_v46 }
 0xaaf   :  { %9327 = vmatpush3.bf16.msra.mxu0 %v13815_v8 }
 0xab0   :  { %9328 = vmatprep.subr.bf16.mxu0 %v13821_v58 }
 0xab2   :  { %v14013_v21 = vpop.f32.mrf.mxu1 }
 0xab3   :  { %9329 = vmatpush3.bf16.msra.mxu0 %v13407_v54  ;;  %v7594_v54 = vcombine.low %v7591_v12, %v7591_v12  ;;  %v10311_v12 = vld [vmem:[%s14192_s5 + $0x78] sm:$0xff]  }
 0xab4   :  { %9330 = vmatprep.subr.bf16.mxu0 %v13413_v53  ;;  %v9838_v19 = vpop.f32.mrf.mxu1  ;;  %v7601_v53 = vld [vmem:[%s14189_s0 + $0x2c4] sm:$0xff]  ;;  %9422 = vmatprep.subr.bf16.mxu1 %v10311_v12 }
 0xab5   :  { %9423 = vmatpush3.bf16.msra.mxu1 %v10312_v55 }
 0xab6   :  { %v6234_v46 = vpop.f32.mrf.mxu1  ;;  %9424 = vmatprep.subr.bf16.mxu1 %v10313_v31 }
 0xab7   :  { %9331 = vmatpush3.bf16.msra.mxu0 %v13419_v25  ;;  %v10281_v25 = vld [vmem:[%s14189_s0 + $0x218] ss:$0 sps:$4 sm:$0xff]   ;;  %v10315_v46 = vld [vmem:[%s14192_s5 + $0x68] sm:$0xff]  }
 0xab8   :  { %9332 = vmatprep.subr.bf16.mxu0 %v13425_v42  ;;  %v9839_v8 = vpop.f32.mrf.mxu1  ;;  %v7606_v42 = vcombine.high %v7601_v53, %v7601_v53 }
 0xab9   :  { %9425 = vmatpush3.bf16.msra.mxu1 %v10314_v41  ;;  %v10316_v8 = vld [vmem:[%s14192_s5 + $0x28] sm:$0xff]  }
 0xaba   :  { %9426 = vmatprep.subr.bf16.mxu1 %v10315_v46 }
 0xabb   :  { %9333 = vmatpush3.bf16.msra.mxu0 %v13431_v38 }
 0xabc   :  { %9334 = vmatprep.subr.bf16.mxu0 %v13437_v18 }
 0xabd   :  { %9427 = vmatpush3.bf16.msra.mxu1 %v10316_v8  ;;  %v7641_v8 = vld [vmem:[%s14194_s6] ss:$0 sm:$0xff] }
 0xabf   :  { %9335 = vmatpush3.bf16.msra.mxu0 %v13446_v23 }
 0xac0   :  { %9336 = vmatprep.subr.bf16.mxu0 %v13452_v11 }
 0xac3   :  { %9337 = vmatpush3.bf16.msra.mxu0 %v13458_v22 }
 0xac4   :  { %9338 = vmatprep.subr.bf16.mxu0 %v13464_v47 }
 0xac7   :  { %9339 = vmatpush3.bf16.msra.mxu0 %v13473_v60 }
 0xac8   :  { %9852 = vmatprep.subr.bf16.mxu0 %v10495_v39 }
 0xaca   :  { %6439 = vmatmul.mubr.bf16.vlgmr.msra.gmra.mxu0 %v7594_v54  ;;  %v10318_v54 = vld [vmem:[%s14192_s5 + $0x20] sm:$0xff]  }
 0xacb   :  { %9853 = vmatpush3.bf16.msra.mxu0 %v13763_v1  ;;  %9860 = vmatprep.mubr.msk.bf16.mxu0 %vm10496_vm0, %v10495_v39  ;;  %v7605_v1 = vcombine.low %v7601_v53, %v7601_v53  ;;  %v10319_v53 = vld [vmem:[%s14192_s5 + $0x58] sm:$0xff]  }
 0xacc   :  { %9854 = vmatprep.subr.bf16.mxu0 %v10495_v39 }
 0xacf   :  { %9855 = vmatpush3.bf16.msra.mxu0 %v13773_v44 }
 0xad0   :  { %9856 = vmatprep.subr.bf16.mxu0 %v10495_v39 }
 0xad2   :  { %v9291_v38 = vpop.f32.mrf.mxu1 }
 0xad3   :  { %9857 = vmatpush3.bf16.msra.mxu0 %v13780_v0 }
 0xad4   :  { %9858 = vmatprep.subr.bf16.mxu0 %v10495_v39  ;;  %v9292_v39 = vpop.f32.mrf.mxu1 }
 0xad5   :  { %v14041_v18 = vadd.f32 %v9292_v39, %v9291_v38  ;;  %v10322_v38 = vld [vmem:[%s14192_s5 + $0x10] sm:$0xff]  }
 0xad6   :  { %v9294_v23 = vpop.f32.mrf.mxu1 }
 0xad7   :  { %9859 = vmatpush3.bf16.msra.mxu0 %v13787_v3 }
 0xad8   :  { %9395 = vmatprep.subr.bf16.mxu0 %v13672_v9  ;;  %v9295_v11 = vpop.f32.mrf.mxu1 }
 0xada   :  { %9861 = vmatmul.mubr.msk.bf16.vlgmr.msra.gmra.mxu0 %vm336_vm1, %v10281_v25  ;;  %v10320_v25 = vld [vmem:[%s14192_s5 + $0x18] sm:$0xff]  }
 0xadb   :  { %9396 = vmatpush3.bf16.msra.mxu0 %v13859_v45  ;;  %6623 = vmatprep.mubr.bf16.mxu0 %v7606_v42  ;;  %v10293_v45 = vld [vmem:[%s14190_s3 + $0x450] ss:$8 sps:$4 sm:$0xff]  }
 0xadc   :  { %9397 = vmatprep.subr.bf16.mxu0 %v13865_v26  ;;  %v10298_v26 = vld [vmem:[%s14190_s3 + $0x444] ss:$8 sps:$4 sm:$0xff]   ;;  %v10321_v42 = vld [vmem:[%s14192_s5 + $0x50] sm:$0xff]  }
 0xadf   :  { %9398 = vmatpush3.bf16.msra.mxu0 %v13871_v51 }
 0xae0   :  { %9399 = vmatprep.subr.bf16.mxu0 %v13877_v48 }
 0xae2   :  { %v14050_v22 = vpop.f32.mrf.mxu1 }
 0xae3   :  { %9400 = vmatpush3.bf16.msra.mxu0 %v13883_v56  ;;  %v10296_v56 = vld [vmem:[%s14190_s3 + $0x440] ss:$8 sps:$4 sm:$0xff]  }
 0xae4   :  { %9401 = vmatprep.subr.bf16.mxu0 %v13889_v6  ;;  %v9850_v47 = vpop.f32.mrf.mxu1 }
 0xae6   :  { %v6378_v60 = vpop.f32.mrf.mxu1 }
 0xae7   :  { %9402 = vmatpush3.bf16.msra.mxu0 %v13896_v36 }
 0xae8   :  { %9403 = vmatprep.subr.bf16.mxu0 %v13902_v15  ;;  %v9851_v9 = vpop.f32.mrf.mxu1 }
 0xaeb   :  { %9404 = vmatpush3.bf16.msra.mxu0 %v13908_v59 }
 0xaec   :  { %9405 = vmatprep.subr.bf16.mxu0 %v13914_v17 }
 0xaef   :  { %9406 = vmatpush3.bf16.msra.mxu0 %v13505_v43 }
 0xaf0   :  { %9407 = vmatprep.subr.bf16.mxu0 %v13511_v32  ;;  %v10287_v32 = vld [vmem:[%s14190_s3 + $0x470] ss:$8 sps:$4 sm:$0xff]  }
 0xaf3   :  { %9408 = vmatpush3.bf16.msra.mxu0 %v13517_v63  ;;  %v10289_v63 = vld [vmem:[%s14190_s3 + $0x474] ss:$8 sps:$4 sm:$0xff]  }
 0xaf4   :  { %9409 = vmatprep.subr.bf16.mxu0 %v13523_v62  ;;  %v10292_v62 = vld [vmem:[%s14190_s3 + $0x464] ss:$8 sps:$4 sm:$0xff]  }
 0xaf7   :  { %9410 = vmatpush3.bf16.msra.mxu0 %v13532_v29  ;;  %v10295_v29 = vld [vmem:[%s14190_s3 + $0x454] ss:$8 sps:$4 sm:$0xff]  }
 0xaf8   :  { %6772 = vmatprep.subr.bf16.mxu0 %v10289_v63 }
 0xafa   :  { %6624 = vmatmul.mubr.bf16.vlgmr.msra.gmra.mxu0 %v7605_v1 }
 0xafb   :  { %6804 = vmatprep.mubr.bf16.mxu0 %v10497_v10  ;;  %6773 = vmatpush1.bf16.msra.mxu0 %v10287_v32  ;;  %v10290_v10 = vld [vmem:[%s14190_s3 + $0x460] ss:$8 sps:$4 sm:$0xff]  }
 0xafc   :  { %6774 = vmatprep.subr.bf16.mxu0 %v10292_v62 }
 0xaff   :  { %6775 = vmatpush1.bf16.msra.mxu0 %v10290_v10 }
 0xb00   :  { %6776 = vmatprep.subr.bf16.mxu0 %v10295_v29 }
 0xb02   :  { %v9362_v44 = vpop.f32.mrf.mxu1 }
 0xb03   :  { %6777 = vmatpush1.bf16.msra.mxu0 %v10293_v45 }
 0xb04   :  { %v9363_v0 = vpop.f32.mrf.mxu1  ;;  %6778 = vmatprep.subr.bf16.mxu0 %v10298_v26 }
 0xb05   :  { %v14059_v3 = vadd.f32 %v9363_v0, %v9362_v44 }
 0xb06   :  { %v9365_v58 = vpop.f32.mrf.mxu1 }
 0xb07   :  { %6779 = vmatpush1.bf16.msra.mxu0 %v10296_v56 }
 0xb08   :  { %v9366_v43 = vpop.f32.mrf.mxu1  ;;  %6780 = vmatprep.subr.bf16.mxu0 %v10301_v49 }
 0xb0b   :  { %6781 = vmatpush1.bf16.msra.mxu0 %v10299_v5 }
 0xb24   :  { %v9389_v36 = vpop.f32.mrf.mxu1 }
 0xb26   :  { %v9390_v17 = vpop.f32.mrf.mxu1 }
 0xb27   :  { %v14091_v33 = vadd.f32 %v9390_v17, %v9389_v36 }
 0xb28   :  { %v9392_v14 = vpop.f32.mrf.mxu1 }
 0xb2a   :  { %v6084_v51 = vpop.f32.mrf.mxu0 }
 0xb2b   :  { %v14083_v48 = vadd.f32 %v6084_v51, %v13720_v52  ;;  %v9393_v52 = vpop.f32.mrf.mxu1 }
 0xb2c   :  { %v6086_v6 = vpop.f32.mrf.mxu0 }
 0xb2d   :  { %v14089_v15 = vadd.f32 %v6086_v6, %v13726_v35  ;;  %v10304_v35 = vld [vmem:[%s14190_s3 + $0x424] ss:$8 sps:$4 sm:$0xff]  }
 0xb2e   :  { %v6088_v59 = vpop.f32.mrf.mxu0  ;;  %6782 = vmatprep.subr.bf16.mxu0 %v10304_v35  ;;  %v10323_v35 = vld [vmem:[%s14192_s5 + $0x48] sm:$0xff]  }
 0xb2f   :  { %6783 = vmatpush1.bf16.msra.mxu0 %v10302_v34  ;;  %v6817_v34 = vlaneseq }
 0xb30   :  { %v6089_v20 = vpop.f32.mrf.mxu0  ;;  %6784 = vmatprep.subr.bf16.mxu0 %v10307_v61 }
 0xb33   :  { %6785 = vmatpush1.bf16.msra.mxu0 %v10305_v40 }
 0xb34   :  { %v14099_v16 = vpop.f32.mrf.mxu1  ;;  %6786 = vmatprep.subr.bf16.mxu0 %v10310_v50 }
 0xb36   :  { %v9874_v57 = vpop.f32.mrf.mxu1 }
 0xb37   :  { %6787 = vmatpush1.bf16.msra.mxu0 %v10308_v2  ;;  %v10326_v57 = vld [vmem:[%s14192_s5] sm:$0xff]  }
 0xb38   :  { %v6668_v37 = vpop.f32.mrf.mxu1 }
 0xb39   :  { %v6818_v37 = vshrl.u32 %v6817_v34, 7 }
 0xb3a   :  { %v9875_v30 = vpop.f32.mrf.mxu1 }
 0xb3b   :  { %v6819_v61 = vsub.s32 0, %v6818_v37  ;;  %v6815_v30 = vld [vmem:[%s14193_s4] sm:$0x3]  ;;  %v6823_v40 = vsub.s32 1, %v6818_v37 }
 0xb3d   :  { %v6820_v2 = vrot.slane %v6815_v30, %v6819_v61 }
 0xb4a   :  { %v9264_v7 = vpop.f32.mrf.mxu0 }
 0xb4c   :  { %v9265_v27 = vpop.f32.mrf.mxu0 }
 0xb4d   :  { %v9266_v24 = vadd.f32 %v9265_v27, %v9264_v7  ;;  %v6824_v27 = vrot.slane %v6815_v30, %v6823_v40 }
 0xb4e   :  { %v9267_v28 = vpop.f32.mrf.mxu0 }
 0xb4f   :  { %v6192_v4 = vadd.f32 %v9266_v24, %v14004_v13  ;;  %v10317_v13 = vld [vmem:[%s14192_s5 + $0x60] sm:$0xff]  }
 0xb50   :  { %v9268_v19 = vpop.f32.mrf.mxu0  ;;  %9428 = vmatprep.subr.bf16.mxu1 %v10317_v13 }
 0xb51   :  { %9429 = vmatpush3.bf16.msra.mxu1 %v10318_v54  ;;  %v6232_v1 = vadd.f32 %v14013_v21, %v6192_v4 }
 0xb52   :  { %9430 = vmatprep.subr.bf16.mxu1 %v10319_v53 }
 0xb55   :  { %9431 = vmatpush3.bf16.msra.mxu1 %v10320_v25 }
 0xb56   :  { %9432 = vmatprep.subr.bf16.mxu1 %v10321_v42 }
 0xb59   :  { %9433 = vmatpush3.bf16.msra.mxu1 %v10322_v38 }
 0xb5a   :  { %9434 = vmatprep.subr.bf16.mxu1 %v10323_v35 }
 0xb6a   :  { %v9313_v39 = vpop.f32.mrf.mxu0 }
 0xb6c   :  { %v9314_v23 = vpop.f32.mrf.mxu0 }
 0xb6d   :  { %v9315_v11 = vadd.f32 %v9314_v23, %v9313_v39 }
 0xb6e   :  { %v9316_v47 = vpop.f32.mrf.mxu0 }
 0xb6f   :  { %v6336_v60 = vadd.f32 %v9315_v11, %v14041_v18 }
 0xb70   :  { %v9317_v9 = vpop.f32.mrf.mxu0 }
 0xb71   :  { %v6376_v44 = vadd.f32 %v14050_v22, %v6336_v60 }
 0xb73   :  { %v6381_v0 = vmax.f32 %v6232_v1, %v6376_v44 }
 0xb8a   :  { %v9340_v58 = vpop.f32.mrf.mxu0 }
 0xb8c   :  { %v9341_v43 = vpop.f32.mrf.mxu0 }
 0xb8d   :  { %v9342_v62 = vadd.f32 %v9341_v43, %v9340_v58 }
 0xb8e   :  { %v9343_v32 = vpop.f32.mrf.mxu0 }
 0xb8f   :  { %v6481_v10 = vadd.f32 %v14059_v3, %v9342_v62  ;;  %v10494_v3 = vld [vmem:[%s14191_s2] ss:$0 sm:$0xff] }
 0xb90   :  { %v9344_v63 = vpop.f32.mrf.mxu0 }
 0xb9a   :  { %v6520_v29 = vpop.f32.mrf.mxu0 }
 0xb9b   :  { %v6521_v45 = vadd.f32 %v6520_v29, %v6481_v10 }
 0xb9c   :  { %v9862_v26 = vpop.f32.mrf.mxu0 }
 0xb9d   :  { %v6526_v51 = vmax.f32 %v6381_v0, %v6521_v45 }
 0xb9e   :  { %v6523_v56 = vpop.f32.mrf.mxu0 }
 0xba0   :  { %v9863_v6 = vpop.f32.mrf.mxu0 }
 0xbba   :  { %v9411_v18 = vpop.f32.mrf.mxu0 }
 0xbbc   :  { %v9412_v36 = vpop.f32.mrf.mxu0 }
 0xbbd   :  { %v9413_v59 = vadd.f32 %v9412_v36, %v9411_v18 }
 0xbbe   :  { %v9414_v21 = vpop.f32.mrf.mxu0 }
 0xbbf   :  { %v6626_v22 = vadd.f32 %v9413_v59, %v14091_v33  ;;  %v10324_v33 = vld [vmem:[%s14192_s5 + $0x8] sm:$0xff]  }
 0xbc0   :  { %v9415_v17 = vpop.f32.mrf.mxu0  ;;  %9435 = vmatpush3.bf16.msra.mxu1 %v10324_v33 }
 0xbc1   :  { %v6666_v20 = vadd.f32 %v14099_v16, %v6626_v22  ;;  %v10325_v16 = vld [vmem:[%s14192_s5 + $0x40] sm:$0xff]  }
 0xbc2   :  { %9436 = vmatprep.subr.bf16.mxu1 %v10325_v16 }
 0xbc3   :  { %v6671_v14 = vmax.f32 %v6526_v51, %v6666_v20 }
 0xbc4   :  { %9437 = vmatpush3.bf16.msra.mxu1 %v10326_v57 }
 0xbc5   :  { %v6672_v52 = vadd.f32 %v10494_v3, %v6671_v14 }
 0xbc7   :  { %v6673_v49 = vmax.f32 %v6672_v52, 0.0 }
 0xbc9   :  { %v6674_v5 = vpack.c.bf16 %v6673_v49, %v6673_v49 }
 0xbcb   :  { %6805 = vmatmul.mubr.bf16.vlgmr.msra.gmra.mxu0 %v6674_v5 }
 0xc8b   :  { %v6806_v50 = vpop.f32.mrf.mxu0 }
 0xc8c   :  { %v6813_v7 = vadd.f32 %v6806_v50, %v14083_v48 }
 0xc8d   :  { %v6808_v12 = vpop.f32.mrf.mxu0 }
 0xc8e   :  { %v6814_v24 = vadd.f32 %v6808_v12, %v14089_v15  ;;  %v6827_v55 = vadd.f32 %v6820_v2, %v6813_v7 }
 0xc8f   :  { %v6810_v28 = vpop.f32.mrf.mxu0 }
 0xc90   :  { %v6828_v31 = vadd.f32 %v6824_v27, %v6814_v24  ;;  %v6829_v19 = vpack.c.bf16 %v6827_v55, %v6827_v55 }
 0xc91   :  { %v6811_v4 = vpop.f32.mrf.mxu0 }
 0xc92   :  { %v6830_v41 = vpack.c.bf16 %v6828_v31, %v6828_v31 }
 0xc94   :  { %6998 = vmatprep.mubr.bf16.mxu1 %v6830_v41 }
 0xc95   :  { %6999 = vmatmul.mubr.bf16.vlgmr.msra.gmra.mxu1 %v6829_v19 }
 0xd55   :  { %v9438_v46 = vpop.f32.mrf.mxu1 }
 0xd57   :  { %v9439_v13 = vpop.f32.mrf.mxu1 }
 0xd58   :  { %v9440_v54 = vadd.f32 %v9439_v13, %v9438_v46 }
 0xd59   :  { %v9441_v48 = vpop.f32.mrf.mxu1 }
 0xd5a   :  { %v7001_v53 = vadd.f32 %v9440_v54, %v7641_v8 }
 0xd5b   :  { %v9442_v25 = vpop.f32.mrf.mxu1 }
 0xd5c   :  { %7006 = vst [vmem:[%s14195_s7] sm:$0xff] %v7001_v53 }

</bundles_post_ra>
